<compile_context>
chip_gen: v5e
topology: v5e:2x2
jax: 0.10.0
libtpu: 0.0.40
codegen_flags: <defaults>
</compile_context>

<pallas_src>
import functools
import math

import jax
import jax.numpy as jnp
from jax.experimental import pallas as pl
from jax.experimental.pallas import tpu as pltpu

SELF_HEADS = 16        # MultiheadAttention(text_emb_size, text_emb_size, 16)
CROSS_HEADS = 16       # BidirectionalCrossAttention(heads=16, dim_head=1024)
CROSS_DIM_HEAD = 1024


# ---------------------------------------------------------------------------
# 1) Fused self-attention block: qkv proj -> per-head SDPA -> output proj
# ---------------------------------------------------------------------------
def _self_attn_block_kernel(x_ref, qkvw_ref, qkvb_ref, ow_ref, ob_ref, o_ref,
                            *, B, S, H, hd):
    E = H * hd
    x = x_ref[...]                                                   # (B*S, E)
    qkv = (jnp.dot(x, qkvw_ref[...], preferred_element_type=jnp.float32)
           + qkvb_ref[...])                                          # (B*S, 3E)
    qkv3 = qkv.reshape(B, S, 3 * E)                                  # (B, S, H*3hd)
    scale = 1.0 / math.sqrt(hd)

    head_outs = []
    for h in range(H):                                               # unrolled, 16 heads
        base = 3 * hd * h
        q = qkv3[:, :, base:base + hd]                               # (B, S, hd)
        k = qkv3[:, :, base + hd:base + 2 * hd]                      # (B, S, hd)
        v = qkv3[:, :, base + 2 * hd:base + 3 * hd]                  # (B, S, hd)
        logits = jnp.einsum("bsd,btd->bst", q, k,
                            preferred_element_type=jnp.float32) * scale
        logits = logits - jnp.max(logits, axis=-1, keepdims=True)
        p = jnp.exp(logits)
        attn = p / jnp.sum(p, axis=-1, keepdims=True)                # softmax over keys
        head_outs.append(jnp.einsum("bst,btd->bsd", attn, v,
                                    preferred_element_type=jnp.float32))
    vals = jnp.concatenate(head_outs, axis=-1).reshape(B * S, E)     # (B*S, E)
    o_ref[...] = (jnp.dot(vals, ow_ref[...], preferred_element_type=jnp.float32)
                  + ob_ref[...]).astype(o_ref.dtype)


def self_attention_block(x2d, qkv_w, qkv_b, o_w, o_b, *, B, S, H):
    M, E = x2d.shape
    hd = E // H
    kern = functools.partial(_self_attn_block_kernel, B=B, S=S, H=H, hd=hd)
    return pl.pallas_call(
        kern,
        out_shape=jax.ShapeDtypeStruct((M, E), jnp.float32),
        grid=(1,),
        in_specs=[
            pl.BlockSpec((M, E), lambda i: (0, 0)),
            pl.BlockSpec((E, 3 * E), lambda i: (0, 0)),
            pl.BlockSpec((1, 3 * E), lambda i: (0, 0)),
            pl.BlockSpec((E, E), lambda i: (0, 0)),
            pl.BlockSpec((1, E), lambda i: (0, 0)),
        ],
        out_specs=pl.BlockSpec((M, E), lambda i: (0, 0)),
    )(x2d, qkv_w, qkv_b, o_w, o_b)


# ---------------------------------------------------------------------------
# 2) Fused bidirectional cross-attention: one kernel, parallel grid over heads
# ---------------------------------------------------------------------------
def _cross_attn_block_kernel(img_ref, txt_ref, toqk_ref, tov_ref, ctoqk_ref,
                             ctov_ref, toout_ref, ctoout_ref,
                             img_part_ref, txt_part_ref, *, B, S, scale):
    img = img_ref[...]                                               # (B, D)
    txt = txt_ref[...]                                               # (B*S, E)

    # Per-head projections (weight slabs selected by the BlockSpec index_map).
    qk = jnp.dot(img, toqk_ref[...], preferred_element_type=jnp.float32)   # (B, dh)
    vx = jnp.dot(img, tov_ref[...], preferred_element_type=jnp.float32)    # (B, dh)
    cqk = jnp.dot(txt, ctoqk_ref[...], preferred_element_type=jnp.float32) # (B*S, dh)
    cv = jnp.dot(txt, ctov_ref[...], preferred_element_type=jnp.float32)   # (B*S, dh)

    dh = qk.shape[-1]
    cqk3 = cqk.reshape(B, S, dh)
    cv3 = cv.reshape(B, S, dh)
    qk3 = qk.reshape(B, 1, dh)

    # sim: (B, i=1, j=S); image attends to text context.
    sim = jnp.einsum("bid,bjd->bij", qk3, cqk3,
                     preferred_element_type=jnp.float32) * scale
    sim = sim - jnp.max(sim, axis=-1, keepdims=True)
    p = jnp.exp(sim)
    attn = p / jnp.sum(p, axis=-1, keepdims=True)                    # softmax over j
    out = jnp.einsum("bij,bjd->bid", attn, cv3,
                     preferred_element_type=jnp.float32).reshape(B, dh)

    # Per-head partial of the output projections; summed over heads in XLA.
    img_part_ref[0] = jnp.dot(out, toout_ref[...],
                              preferred_element_type=jnp.float32
                              ).astype(img_part_ref.dtype)           # (B, D)
    # Context path: softmax over the length-1 image axis is identically 1, so
    # context_out == v broadcast over S; project v directly (exact reference math).
    txt_part_ref[0] = jnp.dot(vx, ctoout_ref[...],
                              preferred_element_type=jnp.float32
                              ).astype(txt_part_ref.dtype)           # (B, E)


def cross_attention_block(img_emb, text1_2d, to_qk_w, to_v_w, ctx_to_qk_w,
                          ctx_to_v_w, to_out_w, ctx_to_out_w,
                          *, B, S, heads, dim_head):
    D = img_emb.shape[1]
    E = text1_2d.shape[1]
    H, dh = heads, dim_head
    inner = H * dh
    scale = dh ** (-0.5)
    kern = functools.partial(_cross_attn_block_kernel, B=B, S=S, scale=scale)

    flops = 2 * (2 * B * D * inner + 2 * B * S * E * inner
                 + B * inner * D + B * inner * E
                 + 2 * B * inner * S)
    bytes_accessed = 4 * (2 * D * inner + 2 * E * inner + inner * D + inner * E
                          + B * D + B * S * E + H * B * D + H * B * E)
    cost = pl.CostEstimate(flops=flops, transcendentals=B * H * S,
                           bytes_accessed=bytes_accessed)

    return pl.pallas_call(
        kern,
        out_shape=(
            jax.ShapeDtypeStruct((H, B, D), jnp.float32),
            jax.ShapeDtypeStruct((H, B, E), jnp.float32),
        ),
        grid=(H,),
        in_specs=[
            pl.BlockSpec((B, D), lambda h: (0, 0)),           # img (resident)
            pl.BlockSpec((B * S, E), lambda h: (0, 0)),       # text (resident)
            pl.BlockSpec((D, dh), lambda h: (0, h)),          # to_qk_w   head slab
            pl.BlockSpec((D, dh), lambda h: (0, h)),          # to_v_w    head slab
            pl.BlockSpec((E, dh), lambda h: (0, h)),          # ctx_to_qk_w
            pl.BlockSpec((E, dh), lambda h: (0, h)),          # ctx_to_v_w
            pl.BlockSpec((dh, D), lambda h: (h, 0)),          # to_out_w  head rows
            pl.BlockSpec((dh, E), lambda h: (h, 0)),          # ctx_to_out_w
        ],
        out_specs=(
            pl.BlockSpec((1, B, D), lambda h: (h, 0, 0)),
            pl.BlockSpec((1, B, E), lambda h: (h, 0, 0)),
        ),
        compiler_params=pltpu.CompilerParams(dimension_semantics=("parallel",)),
        cost_estimate=cost,
    )(img_emb, text1_2d, to_qk_w, to_v_w, ctx_to_qk_w, ctx_to_v_w,
      to_out_w, ctx_to_out_w)


# ---------------------------------------------------------------------------
# 3) Fused text MLP: Linear -> Tanh -> Linear -> Tanh -> Linear
# ---------------------------------------------------------------------------
def _mlp_kernel(x_ref, w1_ref, b1_ref, w2_ref, b2_ref, w3_ref, b3_ref, o_ref):
    h = jnp.tanh(jnp.dot(x_ref[...], w1_ref[...],
                         preferred_element_type=jnp.float32) + b1_ref[...])
    h = jnp.tanh(jnp.dot(h, w2_ref[...],
                         preferred_element_type=jnp.float32) + b2_ref[...])
    o_ref[...] = (jnp.dot(h, w3_ref[...], preferred_element_type=jnp.float32)
                  + b3_ref[...]).astype(o_ref.dtype)


def mlp(x, w1, b1, w2, b2, w3, b3):
    M, E = x.shape
    H = w1.shape[1]
    O = w3.shape[1]
    return pl.pallas_call(
        _mlp_kernel,
        out_shape=jax.ShapeDtypeStruct((M, O), jnp.float32),
        grid=(1,),
        in_specs=[
            pl.BlockSpec((M, E), lambda i: (0, 0)),
            pl.BlockSpec((E, H), lambda i: (0, 0)),
            pl.BlockSpec((1, H), lambda i: (0, 0)),
            pl.BlockSpec((H, H), lambda i: (0, 0)),
            pl.BlockSpec((1, H), lambda i: (0, 0)),
            pl.BlockSpec((H, O), lambda i: (0, 0)),
            pl.BlockSpec((1, O), lambda i: (0, 0)),
        ],
        out_specs=pl.BlockSpec((M, O), lambda i: (0, 0)),
    )(x, w1, b1, w2, b2, w3, b3)


# ---------------------------------------------------------------------------
# Parameters (deterministic synthetic init — shapes follow QFormerBlock.__init__)
# ---------------------------------------------------------------------------
def init_params(key, img_emb_size, text_emb_size, output_size):
    inner = CROSS_HEADS * CROSS_DIM_HEAD
    E, D, O = text_emb_size, img_emb_size, output_size
    ks = jax.random.split(key, 12)

    def w(k, shape, scale=0.02):
        return jax.random.normal(k, shape, jnp.float32) * scale

    return dict(
        # MultiheadAttention
        qkv_w=w(ks[0], (E, 3 * E)), qkv_b=jnp.zeros((1, 3 * E), jnp.float32),
        o_w=w(ks[1], (E, E)),       o_b=jnp.zeros((1, E), jnp.float32),
        # BidirectionalCrossAttention (qk/v projections are bias-free)
        to_qk_w=w(ks[2], (D, inner)),
        to_v_w=w(ks[3], (D, inner)),
        ctx_to_qk_w=w(ks[4], (E, inner)),
        ctx_to_v_w=w(ks[5], (E, inner)),
        to_out_w=w(ks[6], (inner, D)),     to_out_b=jnp.zeros((1, D), jnp.float32),
        ctx_to_out_w=w(ks[7], (inner, E)), ctx_to_out_b=jnp.zeros((1, E), jnp.float32),
        # text_mlp
        mlp_w1=w(ks[8], (E, 2 * E)),     mlp_b1=jnp.zeros((1, 2 * E), jnp.float32),
        mlp_w2=w(ks[9], (2 * E, 2 * E)), mlp_b2=jnp.zeros((1, 2 * E), jnp.float32),
        mlp_w3=w(ks[10], (2 * E, O)),    mlp_b3=jnp.zeros((1, O), jnp.float32),
    )


# ---------------------------------------------------------------------------
# Forward pass (3 Pallas kernels, tiny glue in XLA)
# ---------------------------------------------------------------------------
def qformer_block_forward(params, img_emb, text_emb):
    B, S, E = text_emb.shape
    D = img_emb.shape[1]

    # -------- 1) self attention over text (fully fused) --------
    text1 = self_attention_block(
        text_emb.reshape(B * S, E),
        params["qkv_w"], params["qkv_b"], params["o_w"], params["o_b"],
        B=B, S=S, H=SELF_HEADS)                                   # (B*S, E)

    # -------- 2) bidirectional cross attention (one kernel, grid over heads) --------
    img_part, txt_part = cross_attention_block(
        img_emb, text1,
        params["to_qk_w"], params["to_v_w"],
        params["ctx_to_qk_w"], params["ctx_to_v_w"],
        params["to_out_w"], params["ctx_to_out_w"],
        B=B, S=S, heads=CROSS_HEADS, dim_head=CROSS_DIM_HEAD)

    img_out = (jnp.sum(img_part, axis=0) + params["to_out_b"]).reshape(B, 1, D)
    text2_row = jnp.sum(txt_part, axis=0) + params["ctx_to_out_b"]   # (B, E)
    # context_attn (softmax over the length-1 image axis) is exactly 1, so every
    # sequence position gets the same context_out row.
    text2 = jnp.broadcast_to(text2_row[:, None, :], (B, S, E))

    # -------- 3) text MLP --------
    text3 = mlp(
        text2.reshape(B * S, E),
        params["mlp_w1"], params["mlp_b1"],
        params["mlp_w2"], params["mlp_b2"],
        params["mlp_w3"], params["mlp_b3"],
    ).reshape(B, S, -1)

    return img_out, text3


# ---------------------------------------------------------------------------
if __name__ == "__main__":
    B, S = 2, 8
    img_emb_size, text_emb_size, output_size = 32, 64, 48

    key = jax.random.PRNGKey(0)
    kp, ki, kt = jax.random.split(key, 3)
    params = init_params(kp, img_emb_size, text_emb_size, output_size)
    img_emb = jax.random.normal(ki, (B, img_emb_size), jnp.float32)
    text_emb = jax.random.normal(kt, (B, S, text_emb_size), jnp.float32)

    fwd = jax.jit(qformer_block_forward)
    img_out, text_out = fwd(params, img_emb, text_emb)
    jax.block_until_ready((img_out, text_out))

    assert img_out.shape == (B, 1, img_emb_size), img_out.shape
    assert text_out.shape == (B, S, output_size), text_out.shape
    assert jnp.all(jnp.isfinite(img_out)) and jnp.all(jnp.isfinite(text_out))
    print("KERNEL_OK")
</pallas_src>

<mosaic_0001>
module attributes {stable_mosaic.version = 11 : i64} {
  func.func @_self_attn_block_kernel(%arg0: i32, %arg1: memref<16x64xf32, #tpu.memory_space<vmem>>, %arg2: memref<64x192xf32, #tpu.memory_space<vmem>>, %arg3: memref<1x192xf32, #tpu.memory_space<vmem>>, %arg4: memref<64x64xf32, #tpu.memory_space<vmem>>, %arg5: memref<1x64xf32, #tpu.memory_space<vmem>>, %arg6: memref<16x64xf32, #tpu.memory_space<vmem>>) attributes {dimension_semantics = [#tpu.dimension_semantics<arbitrary>], iteration_bounds = array<i64: 1>, scalar_prefetch = 0 : i64, scratch_operands = 0 : i64, tpu.core_type = #tpu.core_type<tc>, window_params = [{pipeline_mode = #tpu.pipeline_mode<synchronous>, transform_indices = @transform_0, window_bounds = array<i64: 16, 64>}, {pipeline_mode = #tpu.pipeline_mode<synchronous>, transform_indices = @transform_1, window_bounds = array<i64: 64, 192>}, {pipeline_mode = #tpu.pipeline_mode<synchronous>, transform_indices = @transform_2, window_bounds = array<i64: 1, 192>}, {pipeline_mode = #tpu.pipeline_mode<synchronous>, transform_indices = @transform_3, window_bounds = array<i64: 64, 64>}, {pipeline_mode = #tpu.pipeline_mode<synchronous>, transform_indices = @transform_4, window_bounds = array<i64: 1, 64>}, {pipeline_mode = #tpu.pipeline_mode<synchronous>, transform_indices = @transform_5, window_bounds = array<i64: 16, 64>}]} {
    %c0 = arith.constant 0 : index
    %c0_0 = arith.constant 0 : index
    %0 = vector.load %arg1[%c0, %c0_0] : memref<16x64xf32, #tpu.memory_space<vmem>>, vector<16x64xf32>
    %c0_1 = arith.constant 0 : index
    %c0_2 = arith.constant 0 : index
    %1 = vector.load %arg2[%c0_1, %c0_2] : memref<64x192xf32, #tpu.memory_space<vmem>>, vector<64x192xf32>
    %cst = arith.constant dense<0.000000e+00> : vector<16x192xf32>
    %2 = tpu.matmul %0, %1, %cst {dimension_numbers = #tpu.dot_dimension_numbers<[1], [0], [0], [1], [0, 0, 1, 1], [], []>} : vector<16x64xf32>, vector<64x192xf32>, vector<16x192xf32> -> vector<16x192xf32>
    %c0_3 = arith.constant 0 : index
    %c0_4 = arith.constant 0 : index
    %3 = vector.load %arg3[%c0_3, %c0_4] : memref<1x192xf32, #tpu.memory_space<vmem>>, vector<1x192xf32>
    %4 = vector.broadcast %3 : vector<1x192xf32> to vector<16x192xf32>
    %5 = arith.addf %2, %4 : vector<16x192xf32>
    %6 = vector.shape_cast %5 : vector<16x192xf32> to vector<2x8x192xf32>
    %7 = vector.extract_strided_slice %6 {offsets = [0, 0, 0], sizes = [2, 8, 4], strides = [1, 1, 1]} : vector<2x8x192xf32> to vector<2x8x4xf32>
    %8 = vector.extract_strided_slice %6 {offsets = [0, 0, 4], sizes = [2, 8, 4], strides = [1, 1, 1]} : vector<2x8x192xf32> to vector<2x8x4xf32>
    %9 = vector.extract_strided_slice %6 {offsets = [0, 0, 8], sizes = [2, 8, 4], strides = [1, 1, 1]} : vector<2x8x192xf32> to vector<2x8x4xf32>
    "tpu.trace_start"() <{level = 10 : i32, message = "bsd,btd->bst"}> : () -> ()
    %cst_5 = arith.constant dense<0.000000e+00> : vector<2x8x8xf32>
    %10 = tpu.matmul %7, %8, %cst_5 {dimension_numbers = #tpu.dot_dimension_numbers<[2], [2], [1], [1], [0, 0, 0, 1, 1, 1], [0], [0]>} : vector<2x8x4xf32>, vector<2x8x4xf32>, vector<2x8x8xf32> -> vector<2x8x8xf32>
    "tpu.trace_stop"() : () -> ()
    %cst_6 = arith.constant 5.000000e-01 : f32
    %11 = vector.broadcast %cst_6 : f32 to vector<2x8x8xf32>
    %12 = arith.mulf %10, %11 : vector<2x8x8xf32>
    %cst_7 = arith.constant dense<0xFF800000> : vector<2x8xf32>
    %13 = vector.multi_reduction <maximumf>, %12, %cst_7 [2] : vector<2x8x8xf32> to vector<2x8xf32>
    %14 = vector.shape_cast %13 : vector<2x8xf32> to vector<2x8x1xf32>
    %15 = vector.broadcast %14 : vector<2x8x1xf32> to vector<2x8x8xf32>
    %16 = arith.subf %12, %15 : vector<2x8x8xf32>
    %17 = math.exp %16 : vector<2x8x8xf32>
    %cst_8 = arith.constant dense<0.000000e+00> : vector<2x8xf32>
    %18 = vector.multi_reduction <add>, %17, %cst_8 [2] : vector<2x8x8xf32> to vector<2x8xf32>
    %19 = vector.shape_cast %18 : vector<2x8xf32> to vector<2x8x1xf32>
    %20 = vector.broadcast %19 : vector<2x8x1xf32> to vector<2x8x8xf32>
    %21 = arith.divf %17, %20 : vector<2x8x8xf32>
    "tpu.trace_start"() <{level = 10 : i32, message = "bst,btd->bsd"}> : () -> ()
    %cst_9 = arith.constant dense<0.000000e+00> : vector<2x8x4xf32>
    %22 = tpu.matmul %21, %9, %cst_9 {dimension_numbers = #tpu.dot_dimension_numbers<[2], [1], [1], [2], [0, 0, 0, 1, 1, 2], [0], [0]>} : vector<2x8x8xf32>, vector<2x8x4xf32>, vector<2x8x4xf32> -> vector<2x8x4xf32>
    "tpu.trace_stop"() : () -> ()
    %23 = vector.extract_strided_slice %6 {offsets = [0, 0, 12], sizes = [2, 8, 4], strides = [1, 1, 1]} : vector<2x8x192xf32> to vector<2x8x4xf32>
    %24 = vector.extract_strided_slice %6 {offsets = [0, 0, 16], sizes = [2, 8, 4], strides = [1, 1, 1]} : vector<2x8x192xf32> to vector<2x8x4xf32>
    %25 = vector.extract_strided_slice %6 {offsets = [0, 0, 20], sizes = [2, 8, 4], strides = [1, 1, 1]} : vector<2x8x192xf32> to vector<2x8x4xf32>
    "tpu.trace_start"() <{level = 10 : i32, message = "bsd,btd->bst"}> : () -> ()
    %cst_10 = arith.constant dense<0.000000e+00> : vector<2x8x8xf32>
    %26 = tpu.matmul %23, %24, %cst_10 {dimension_numbers = #tpu.dot_dimension_numbers<[2], [2], [1], [1], [0, 0, 0, 1, 1, 1], [0], [0]>} : vector<2x8x4xf32>, vector<2x8x4xf32>, vector<2x8x8xf32> -> vector<2x8x8xf32>
    "tpu.trace_stop"() : () -> ()
    %cst_11 = arith.constant 5.000000e-01 : f32
    %27 = vector.broadcast %cst_11 : f32 to vector<2x8x8xf32>
    %28 = arith.mulf %26, %27 : vector<2x8x8xf32>
    %cst_12 = arith.constant dense<0xFF800000> : vector<2x8xf32>
    %29 = vector.multi_reduction <maximumf>, %28, %cst_12 [2] : vector<2x8x8xf32> to vector<2x8xf32>
    %30 = vector.shape_cast %29 : vector<2x8xf32> to vector<2x8x1xf32>
    %31 = vector.broadcast %30 : vector<2x8x1xf32> to vector<2x8x8xf32>
    %32 = arith.subf %28, %31 : vector<2x8x8xf32>
    %33 = math.exp %32 : vector<2x8x8xf32>
    %cst_13 = arith.constant dense<0.000000e+00> : vector<2x8xf32>
    %34 = vector.multi_reduction <add>, %33, %cst_13 [2] : vector<2x8x8xf32> to vector<2x8xf32>
    %35 = vector.shape_cast %34 : vector<2x8xf32> to vector<2x8x1xf32>
    %36 = vector.broadcast %35 : vector<2x8x1xf32> to vector<2x8x8xf32>
    %37 = arith.divf %33, %36 : vector<2x8x8xf32>
    "tpu.trace_start"() <{level = 10 : i32, message = "bst,btd->bsd"}> : () -> ()
    %cst_14 = arith.constant dense<0.000000e+00> : vector<2x8x4xf32>
    %38 = tpu.matmul %37, %25, %cst_14 {dimension_numbers = #tpu.dot_dimension_numbers<[2], [1], [1], [2], [0, 0, 0, 1, 1, 2], [0], [0]>} : vector<2x8x8xf32>, vector<2x8x4xf32>, vector<2x8x4xf32> -> vector<2x8x4xf32>
    "tpu.trace_stop"() : () -> ()
    %39 = vector.extract_strided_slice %6 {offsets = [0, 0, 24], sizes = [2, 8, 4], strides = [1, 1, 1]} : vector<2x8x192xf32> to vector<2x8x4xf32>
    %40 = vector.extract_strided_slice %6 {offsets = [0, 0, 28], sizes = [2, 8, 4], strides = [1, 1, 1]} : vector<2x8x192xf32> to vector<2x8x4xf32>
    %41 = vector.extract_strided_slice %6 {offsets = [0, 0, 32], sizes = [2, 8, 4], strides = [1, 1, 1]} : vector<2x8x192xf32> to vector<2x8x4xf32>
    "tpu.trace_start"() <{level = 10 : i32, message = "bsd,btd->bst"}> : () -> ()
    %cst_15 = arith.constant dense<0.000000e+00> : vector<2x8x8xf32>
    %42 = tpu.matmul %39, %40, %cst_15 {dimension_numbers = #tpu.dot_dimension_numbers<[2], [2], [1], [1], [0, 0, 0, 1, 1, 1], [0], [0]>} : vector<2x8x4xf32>, vector<2x8x4xf32>, vector<2x8x8xf32> -> vector<2x8x8xf32>
    "tpu.trace_stop"() : () -> ()
    %cst_16 = arith.constant 5.000000e-01 : f32
    %43 = vector.broadcast %cst_16 : f32 to vector<2x8x8xf32>
    %44 = arith.mulf %42, %43 : vector<2x8x8xf32>
    %cst_17 = arith.constant dense<0xFF800000> : vector<2x8xf32>
    %45 = vector.multi_reduction <maximumf>, %44, %cst_17 [2] : vector<2x8x8xf32> to vector<2x8xf32>
    %46 = vector.shape_cast %45 : vector<2x8xf32> to vector<2x8x1xf32>
    %47 = vector.broadcast %46 : vector<2x8x1xf32> to vector<2x8x8xf32>
    %48 = arith.subf %44, %47 : vector<2x8x8xf32>
    %49 = math.exp %48 : vector<2x8x8xf32>
    %cst_18 = arith.constant dense<0.000000e+00> : vector<2x8xf32>
    %50 = vector.multi_reduction <add>, %49, %cst_18 [2] : vector<2x8x8xf32> to vector<2x8xf32>
    %51 = vector.shape_cast %50 : vector<2x8xf32> to vector<2x8x1xf32>
    %52 = vector.broadcast %51 : vector<2x8x1xf32> to vector<2x8x8xf32>
    %53 = arith.divf %49, %52 : vector<2x8x8xf32>
    "tpu.trace_start"() <{level = 10 : i32, message = "bst,btd->bsd"}> : () -> ()
    %cst_19 = arith.constant dense<0.000000e+00> : vector<2x8x4xf32>
    %54 = tpu.matmul %53, %41, %cst_19 {dimension_numbers = #tpu.dot_dimension_numbers<[2], [1], [1], [2], [0, 0, 0, 1, 1, 2], [0], [0]>} : vector<2x8x8xf32>, vector<2x8x4xf32>, vector<2x8x4xf32> -> vector<2x8x4xf32>
    "tpu.trace_stop"() : () -> ()
    %55 = vector.extract_strided_slice %6 {offsets = [0, 0, 36], sizes = [2, 8, 4], strides = [1, 1, 1]} : vector<2x8x192xf32> to vector<2x8x4xf32>
    %56 = vector.extract_strided_slice %6 {offsets = [0, 0, 40], sizes = [2, 8, 4], strides = [1, 1, 1]} : vector<2x8x192xf32> to vector<2x8x4xf32>
    %57 = vector.extract_strided_slice %6 {offsets = [0, 0, 44], sizes = [2, 8, 4], strides = [1, 1, 1]} : vector<2x8x192xf32> to vector<2x8x4xf32>
    "tpu.trace_start"() <{level = 10 : i32, message = "bsd,btd->bst"}> : () -> ()
    %cst_20 = arith.constant dense<0.000000e+00> : vector<2x8x8xf32>
    %58 = tpu.matmul %55, %56, %cst_20 {dimension_numbers = #tpu.dot_dimension_numbers<[2], [2], [1], [1], [0, 0, 0, 1, 1, 1], [0], [0]>} : vector<2x8x4xf32>, vector<2x8x4xf32>, vector<2x8x8xf32> -> vector<2x8x8xf32>
    "tpu.trace_stop"() : () -> ()
    %cst_21 = arith.constant 5.000000e-01 : f32
    %59 = vector.broadcast %cst_21 : f32 to vector<2x8x8xf32>
    %60 = arith.mulf %58, %59 : vector<2x8x8xf32>
    %cst_22 = arith.constant dense<0xFF800000> : vector<2x8xf32>
    %61 = vector.multi_reduction <maximumf>, %60, %cst_22 [2] : vector<2x8x8xf32> to vector<2x8xf32>
    %62 = vector.shape_cast %61 : vector<2x8xf32> to vector<2x8x1xf32>
    %63 = vector.broadcast %62 : vector<2x8x1xf32> to vector<2x8x8xf32>
    %64 = arith.subf %60, %63 : vector<2x8x8xf32>
    %65 = math.exp %64 : vector<2x8x8xf32>
    %cst_23 = arith.constant dense<0.000000e+00> : vector<2x8xf32>
    %66 = vector.multi_reduction <add>, %65, %cst_23 [2] : vector<2x8x8xf32> to vector<2x8xf32>
    %67 = vector.shape_cast %66 : vector<2x8xf32> to vector<2x8x1xf32>
    %68 = vector.broadcast %67 : vector<2x8x1xf32> to vector<2x8x8xf32>
    %69 = arith.divf %65, %68 : vector<2x8x8xf32>
    "tpu.trace_start"() <{level = 10 : i32, message = "bst,btd->bsd"}> : () -> ()
    %cst_24 = arith.constant dense<0.000000e+00> : vector<2x8x4xf32>
    %70 = tpu.matmul %69, %57, %cst_24 {dimension_numbers = #tpu.dot_dimension_numbers<[2], [1], [1], [2], [0, 0, 0, 1, 1, 2], [0], [0]>} : vector<2x8x8xf32>, vector<2x8x4xf32>, vector<2x8x4xf32> -> vector<2x8x4xf32>
    "tpu.trace_stop"() : () -> ()
    %71 = vector.extract_strided_slice %6 {offsets = [0, 0, 48], sizes = [2, 8, 4], strides = [1, 1, 1]} : vector<2x8x192xf32> to vector<2x8x4xf32>
    %72 = vector.extract_strided_slice %6 {offsets = [0, 0, 52], sizes = [2, 8, 4], strides = [1, 1, 1]} : vector<2x8x192xf32> to vector<2x8x4xf32>
    %73 = vector.extract_strided_slice %6 {offsets = [0, 0, 56], sizes = [2, 8, 4], strides = [1, 1, 1]} : vector<2x8x192xf32> to vector<2x8x4xf32>
    "tpu.trace_start"() <{level = 10 : i32, message = "bsd,btd->bst"}> : () -> ()
    %cst_25 = arith.constant dense<0.000000e+00> : vector<2x8x8xf32>
    %74 = tpu.matmul %71, %72, %cst_25 {dimension_numbers = #tpu.dot_dimension_numbers<[2], [2], [1], [1], [0, 0, 0, 1, 1, 1], [0], [0]>} : vector<2x8x4xf32>, vector<2x8x4xf32>, vector<2x8x8xf32> -> vector<2x8x8xf32>
    "tpu.trace_stop"() : () -> ()
    %cst_26 = arith.constant 5.000000e-01 : f32
    %75 = vector.broadcast %cst_26 : f32 to vector<2x8x8xf32>
    %76 = arith.mulf %74, %75 : vector<2x8x8xf32>
    %cst_27 = arith.constant dense<0xFF800000> : vector<2x8xf32>
    %77 = vector.multi_reduction <maximumf>, %76, %cst_27 [2] : vector<2x8x8xf32> to vector<2x8xf32>
    %78 = vector.shape_cast %77 : vector<2x8xf32> to vector<2x8x1xf32>
    %79 = vector.broadcast %78 : vector<2x8x1xf32> to vector<2x8x8xf32>
    %80 = arith.subf %76, %79 : vector<2x8x8xf32>
    %81 = math.exp %80 : vector<2x8x8xf32>
    %cst_28 = arith.constant dense<0.000000e+00> : vector<2x8xf32>
    %82 = vector.multi_reduction <add>, %81, %cst_28 [2] : vector<2x8x8xf32> to vector<2x8xf32>
    %83 = vector.shape_cast %82 : vector<2x8xf32> to vector<2x8x1xf32>
    %84 = vector.broadcast %83 : vector<2x8x1xf32> to vector<2x8x8xf32>
    %85 = arith.divf %81, %84 : vector<2x8x8xf32>
    "tpu.trace_start"() <{level = 10 : i32, message = "bst,btd->bsd"}> : () -> ()
    %cst_29 = arith.constant dense<0.000000e+00> : vector<2x8x4xf32>
    %86 = tpu.matmul %85, %73, %cst_29 {dimension_numbers = #tpu.dot_dimension_numbers<[2], [1], [1], [2], [0, 0, 0, 1, 1, 2], [0], [0]>} : vector<2x8x8xf32>, vector<2x8x4xf32>, vector<2x8x4xf32> -> vector<2x8x4xf32>
    "tpu.trace_stop"() : () -> ()
    %87 = vector.extract_strided_slice %6 {offsets = [0, 0, 60], sizes = [2, 8, 4], strides = [1, 1, 1]} : vector<2x8x192xf32> to vector<2x8x4xf32>
    %88 = vector.extract_strided_slice %6 {offsets = [0, 0, 64], sizes = [2, 8, 4], strides = [1, 1, 1]} : vector<2x8x192xf32> to vector<2x8x4xf32>
    %89 = vector.extract_strided_slice %6 {offsets = [0, 0, 68], sizes = [2, 8, 4], strides = [1, 1, 1]} : vector<2x8x192xf32> to vector<2x8x4xf32>
    "tpu.trace_start"() <{level = 10 : i32, message = "bsd,btd->bst"}> : () -> ()
    %cst_30 = arith.constant dense<0.000000e+00> : vector<2x8x8xf32>
    %90 = tpu.matmul %87, %88, %cst_30 {dimension_numbers = #tpu.dot_dimension_numbers<[2], [2], [1], [1], [0, 0, 0, 1, 1, 1], [0], [0]>} : vector<2x8x4xf32>, vector<2x8x4xf32>, vector<2x8x8xf32> -> vector<2x8x8xf32>
    "tpu.trace_stop"() : () -> ()
    %cst_31 = arith.constant 5.000000e-01 : f32
    %91 = vector.broadcast %cst_31 : f32 to vector<2x8x8xf32>
    %92 = arith.mulf %90, %91 : vector<2x8x8xf32>
    %cst_32 = arith.constant dense<0xFF800000> : vector<2x8xf32>
    %93 = vector.multi_reduction <maximumf>, %92, %cst_32 [2] : vector<2x8x8xf32> to vector<2x8xf32>
    %94 = vector.shape_cast %93 : vector<2x8xf32> to vector<2x8x1xf32>
    %95 = vector.broadcast %94 : vector<2x8x1xf32> to vector<2x8x8xf32>
    %96 = arith.subf %92, %95 : vector<2x8x8xf32>
    %97 = math.exp %96 : vector<2x8x8xf32>
    %cst_33 = arith.constant dense<0.000000e+00> : vector<2x8xf32>
    %98 = vector.multi_reduction <add>, %97, %cst_33 [2] : vector<2x8x8xf32> to vector<2x8xf32>
    %99 = vector.shape_cast %98 : vector<2x8xf32> to vector<2x8x1xf32>
    %100 = vector.broadcast %99 : vector<2x8x1xf32> to vector<2x8x8xf32>
    %101 = arith.divf %97, %100 : vector<2x8x8xf32>
    "tpu.trace_start"() <{level = 10 : i32, message = "bst,btd->bsd"}> : () -> ()
    %cst_34 = arith.constant dense<0.000000e+00> : vector<2x8x4xf32>
    %102 = tpu.matmul %101, %89, %cst_34 {dimension_numbers = #tpu.dot_dimension_numbers<[2], [1], [1], [2], [0, 0, 0, 1, 1, 2], [0], [0]>} : vector<2x8x8xf32>, vector<2x8x4xf32>, vector<2x8x4xf32> -> vector<2x8x4xf32>
    "tpu.trace_stop"() : () -> ()
    %103 = vector.extract_strided_slice %6 {offsets = [0, 0, 72], sizes = [2, 8, 4], strides = [1, 1, 1]} : vector<2x8x192xf32> to vector<2x8x4xf32>
    %104 = vector.extract_strided_slice %6 {offsets = [0, 0, 76], sizes = [2, 8, 4], strides = [1, 1, 1]} : vector<2x8x192xf32> to vector<2x8x4xf32>
    %105 = vector.extract_strided_slice %6 {offsets = [0, 0, 80], sizes = [2, 8, 4], strides = [1, 1, 1]} : vector<2x8x192xf32> to vector<2x8x4xf32>
    "tpu.trace_start"() <{level = 10 : i32, message = "bsd,btd->bst"}> : () -> ()
    %cst_35 = arith.constant dense<0.000000e+00> : vector<2x8x8xf32>
    %106 = tpu.matmul %103, %104, %cst_35 {dimension_numbers = #tpu.dot_dimension_numbers<[2], [2], [1], [1], [0, 0, 0, 1, 1, 1], [0], [0]>} : vector<2x8x4xf32>, vector<2x8x4xf32>, vector<2x8x8xf32> -> vector<2x8x8xf32>
    "tpu.trace_stop"() : () -> ()
    %cst_36 = arith.constant 5.000000e-01 : f32
    %107 = vector.broadcast %cst_36 : f32 to vector<2x8x8xf32>
    %108 = arith.mulf %106, %107 : vector<2x8x8xf32>
    %cst_37 = arith.constant dense<0xFF800000> : vector<2x8xf32>
    %109 = vector.multi_reduction <maximumf>, %108, %cst_37 [2] : vector<2x8x8xf32> to vector<2x8xf32>
    %110 = vector.shape_cast %109 : vector<2x8xf32> to vector<2x8x1xf32>
    %111 = vector.broadcast %110 : vector<2x8x1xf32> to vector<2x8x8xf32>
    %112 = arith.subf %108, %111 : vector<2x8x8xf32>
    %113 = math.exp %112 : vector<2x8x8xf32>
    %cst_38 = arith.constant dense<0.000000e+00> : vector<2x8xf32>
    %114 = vector.multi_reduction <add>, %113, %cst_38 [2] : vector<2x8x8xf32> to vector<2x8xf32>
    %115 = vector.shape_cast %114 : vector<2x8xf32> to vector<2x8x1xf32>
    %116 = vector.broadcast %115 : vector<2x8x1xf32> to vector<2x8x8xf32>
    %117 = arith.divf %113, %116 : vector<2x8x8xf32>
    "tpu.trace_start"() <{level = 10 : i32, message = "bst,btd->bsd"}> : () -> ()
    %cst_39 = arith.constant dense<0.000000e+00> : vector<2x8x4xf32>
    %118 = tpu.matmul %117, %105, %cst_39 {dimension_numbers = #tpu.dot_dimension_numbers<[2], [1], [1], [2], [0, 0, 0, 1, 1, 2], [0], [0]>} : vector<2x8x8xf32>, vector<2x8x4xf32>, vector<2x8x4xf32> -> vector<2x8x4xf32>
    "tpu.trace_stop"() : () -> ()
    %119 = vector.extract_strided_slice %6 {offsets = [0, 0, 84], sizes = [2, 8, 4], strides = [1, 1, 1]} : vector<2x8x192xf32> to vector<2x8x4xf32>
    %120 = vector.extract_strided_slice %6 {offsets = [0, 0, 88], sizes = [2, 8, 4], strides = [1, 1, 1]} : vector<2x8x192xf32> to vector<2x8x4xf32>
    %121 = vector.extract_strided_slice %6 {offsets = [0, 0, 92], sizes = [2, 8, 4], strides = [1, 1, 1]} : vector<2x8x192xf32> to vector<2x8x4xf32>
    "tpu.trace_start"() <{level = 10 : i32, message = "bsd,btd->bst"}> : () -> ()
    %cst_40 = arith.constant dense<0.000000e+00> : vector<2x8x8xf32>
    %122 = tpu.matmul %119, %120, %cst_40 {dimension_numbers = #tpu.dot_dimension_numbers<[2], [2], [1], [1], [0, 0, 0, 1, 1, 1], [0], [0]>} : vector<2x8x4xf32>, vector<2x8x4xf32>, vector<2x8x8xf32> -> vector<2x8x8xf32>
    "tpu.trace_stop"() : () -> ()
    %cst_41 = arith.constant 5.000000e-01 : f32
    %123 = vector.broadcast %cst_41 : f32 to vector<2x8x8xf32>
    %124 = arith.mulf %122, %123 : vector<2x8x8xf32>
    %cst_42 = arith.constant dense<0xFF800000> : vector<2x8xf32>
    %125 = vector.multi_reduction <maximumf>, %124, %cst_42 [2] : vector<2x8x8xf32> to vector<2x8xf32>
    %126 = vector.shape_cast %125 : vector<2x8xf32> to vector<2x8x1xf32>
    %127 = vector.broadcast %126 : vector<2x8x1xf32> to vector<2x8x8xf32>
    %128 = arith.subf %124, %127 : vector<2x8x8xf32>
    %129 = math.exp %128 : vector<2x8x8xf32>
    %cst_43 = arith.constant dense<0.000000e+00> : vector<2x8xf32>
    %130 = vector.multi_reduction <add>, %129, %cst_43 [2] : vector<2x8x8xf32> to vector<2x8xf32>
    %131 = vector.shape_cast %130 : vector<2x8xf32> to vector<2x8x1xf32>
    %132 = vector.broadcast %131 : vector<2x8x1xf32> to vector<2x8x8xf32>
    %133 = arith.divf %129, %132 : vector<2x8x8xf32>
    "tpu.trace_start"() <{level = 10 : i32, message = "bst,btd->bsd"}> : () -> ()
    %cst_44 = arith.constant dense<0.000000e+00> : vector<2x8x4xf32>
    %134 = tpu.matmul %133, %121, %cst_44 {dimension_numbers = #tpu.dot_dimension_numbers<[2], [1], [1], [2], [0, 0, 0, 1, 1, 2], [0], [0]>} : vector<2x8x8xf32>, vector<2x8x4xf32>, vector<2x8x4xf32> -> vector<2x8x4xf32>
    "tpu.trace_stop"() : () -> ()
    %135 = vector.extract_strided_slice %6 {offsets = [0, 0, 96], sizes = [2, 8, 4], strides = [1, 1, 1]} : vector<2x8x192xf32> to vector<2x8x4xf32>
    %136 = vector.extract_strided_slice %6 {offsets = [0, 0, 100], sizes = [2, 8, 4], strides = [1, 1, 1]} : vector<2x8x192xf32> to vector<2x8x4xf32>
    %137 = vector.extract_strided_slice %6 {offsets = [0, 0, 104], sizes = [2, 8, 4], strides = [1, 1, 1]} : vector<2x8x192xf32> to vector<2x8x4xf32>
    "tpu.trace_start"() <{level = 10 : i32, message = "bsd,btd->bst"}> : () -> ()
    %cst_45 = arith.constant dense<0.000000e+00> : vector<2x8x8xf32>
    %138 = tpu.matmul %135, %136, %cst_45 {dimension_numbers = #tpu.dot_dimension_numbers<[2], [2], [1], [1], [0, 0, 0, 1, 1, 1], [0], [0]>} : vector<2x8x4xf32>, vector<2x8x4xf32>, vector<2x8x8xf32> -> vector<2x8x8xf32>
    "tpu.trace_stop"() : () -> ()
    %cst_46 = arith.constant 5.000000e-01 : f32
    %139 = vector.broadcast %cst_46 : f32 to vector<2x8x8xf32>
    %140 = arith.mulf %138, %139 : vector<2x8x8xf32>
    %cst_47 = arith.constant dense<0xFF800000> : vector<2x8xf32>
    %141 = vector.multi_reduction <maximumf>, %140, %cst_47 [2] : vector<2x8x8xf32> to vector<2x8xf32>
    %142 = vector.shape_cast %141 : vector<2x8xf32> to vector<2x8x1xf32>
    %143 = vector.broadcast %142 : vector<2x8x1xf32> to vector<2x8x8xf32>
    %144 = arith.subf %140, %143 : vector<2x8x8xf32>
    %145 = math.exp %144 : vector<2x8x8xf32>
    %cst_48 = arith.constant dense<0.000000e+00> : vector<2x8xf32>
    %146 = vector.multi_reduction <add>, %145, %cst_48 [2] : vector<2x8x8xf32> to vector<2x8xf32>
    %147 = vector.shape_cast %146 : vector<2x8xf32> to vector<2x8x1xf32>
    %148 = vector.broadcast %147 : vector<2x8x1xf32> to vector<2x8x8xf32>
    %149 = arith.divf %145, %148 : vector<2x8x8xf32>
    "tpu.trace_start"() <{level = 10 : i32, message = "bst,btd->bsd"}> : () -> ()
    %cst_49 = arith.constant dense<0.000000e+00> : vector<2x8x4xf32>
    %150 = tpu.matmul %149, %137, %cst_49 {dimension_numbers = #tpu.dot_dimension_numbers<[2], [1], [1], [2], [0, 0, 0, 1, 1, 2], [0], [0]>} : vector<2x8x8xf32>, vector<2x8x4xf32>, vector<2x8x4xf32> -> vector<2x8x4xf32>
    "tpu.trace_stop"() : () -> ()
    %151 = vector.extract_strided_slice %6 {offsets = [0, 0, 108], sizes = [2, 8, 4], strides = [1, 1, 1]} : vector<2x8x192xf32> to vector<2x8x4xf32>
    %152 = vector.extract_strided_slice %6 {offsets = [0, 0, 112], sizes = [2, 8, 4], strides = [1, 1, 1]} : vector<2x8x192xf32> to vector<2x8x4xf32>
    %153 = vector.extract_strided_slice %6 {offsets = [0, 0, 116], sizes = [2, 8, 4], strides = [1, 1, 1]} : vector<2x8x192xf32> to vector<2x8x4xf32>
    "tpu.trace_start"() <{level = 10 : i32, message = "bsd,btd->bst"}> : () -> ()
    %cst_50 = arith.constant dense<0.000000e+00> : vector<2x8x8xf32>
    %154 = tpu.matmul %151, %152, %cst_50 {dimension_numbers = #tpu.dot_dimension_numbers<[2], [2], [1], [1], [0, 0, 0, 1, 1, 1], [0], [0]>} : vector<2x8x4xf32>, vector<2x8x4xf32>, vector<2x8x8xf32> -> vector<2x8x8xf32>
    "tpu.trace_stop"() : () -> ()
    %cst_51 = arith.constant 5.000000e-01 : f32
    %155 = vector.broadcast %cst_51 : f32 to vector<2x8x8xf32>
    %156 = arith.mulf %154, %155 : vector<2x8x8xf32>
    %cst_52 = arith.constant dense<0xFF800000> : vector<2x8xf32>
    %157 = vector.multi_reduction <maximumf>, %156, %cst_52 [2] : vector<2x8x8xf32> to vector<2x8xf32>
    %158 = vector.shape_cast %157 : vector<2x8xf32> to vector<2x8x1xf32>
    %159 = vector.broadcast %158 : vector<2x8x1xf32> to vector<2x8x8xf32>
    %160 = arith.subf %156, %159 : vector<2x8x8xf32>
    %161 = math.exp %160 : vector<2x8x8xf32>
    %cst_53 = arith.constant dense<0.000000e+00> : vector<2x8xf32>
    %162 = vector.multi_reduction <add>, %161, %cst_53 [2] : vector<2x8x8xf32> to vector<2x8xf32>
    %163 = vector.shape_cast %162 : vector<2x8xf32> to vector<2x8x1xf32>
    %164 = vector.broadcast %163 : vector<2x8x1xf32> to vector<2x8x8xf32>
    %165 = arith.divf %161, %164 : vector<2x8x8xf32>
    "tpu.trace_start"() <{level = 10 : i32, message = "bst,btd->bsd"}> : () -> ()
    %cst_54 = arith.constant dense<0.000000e+00> : vector<2x8x4xf32>
    %166 = tpu.matmul %165, %153, %cst_54 {dimension_numbers = #tpu.dot_dimension_numbers<[2], [1], [1], [2], [0, 0, 0, 1, 1, 2], [0], [0]>} : vector<2x8x8xf32>, vector<2x8x4xf32>, vector<2x8x4xf32> -> vector<2x8x4xf32>
    "tpu.trace_stop"() : () -> ()
    %167 = vector.extract_strided_slice %6 {offsets = [0, 0, 120], sizes = [2, 8, 4], strides = [1, 1, 1]} : vector<2x8x192xf32> to vector<2x8x4xf32>
    %168 = vector.extract_strided_slice %6 {offsets = [0, 0, 124], sizes = [2, 8, 4], strides = [1, 1, 1]} : vector<2x8x192xf32> to vector<2x8x4xf32>
    %169 = vector.extract_strided_slice %6 {offsets = [0, 0, 128], sizes = [2, 8, 4], strides = [1, 1, 1]} : vector<2x8x192xf32> to vector<2x8x4xf32>
    "tpu.trace_start"() <{level = 10 : i32, message = "bsd,btd->bst"}> : () -> ()
    %cst_55 = arith.constant dense<0.000000e+00> : vector<2x8x8xf32>
    %170 = tpu.matmul %167, %168, %cst_55 {dimension_numbers = #tpu.dot_dimension_numbers<[2], [2], [1], [1], [0, 0, 0, 1, 1, 1], [0], [0]>} : vector<2x8x4xf32>, vector<2x8x4xf32>, vector<2x8x8xf32> -> vector<2x8x8xf32>
    "tpu.trace_stop"() : () -> ()
    %cst_56 = arith.constant 5.000000e-01 : f32
    %171 = vector.broadcast %cst_56 : f32 to vector<2x8x8xf32>
    %172 = arith.mulf %170, %171 : vector<2x8x8xf32>
    %cst_57 = arith.constant dense<0xFF800000> : vector<2x8xf32>
    %173 = vector.multi_reduction <maximumf>, %172, %cst_57 [2] : vector<2x8x8xf32> to vector<2x8xf32>
    %174 = vector.shape_cast %173 : vector<2x8xf32> to vector<2x8x1xf32>
    %175 = vector.broadcast %174 : vector<2x8x1xf32> to vector<2x8x8xf32>
    %176 = arith.subf %172, %175 : vector<2x8x8xf32>
    %177 = math.exp %176 : vector<2x8x8xf32>
    %cst_58 = arith.constant dense<0.000000e+00> : vector<2x8xf32>
    %178 = vector.multi_reduction <add>, %177, %cst_58 [2] : vector<2x8x8xf32> to vector<2x8xf32>
    %179 = vector.shape_cast %178 : vector<2x8xf32> to vector<2x8x1xf32>
    %180 = vector.broadcast %179 : vector<2x8x1xf32> to vector<2x8x8xf32>
    %181 = arith.divf %177, %180 : vector<2x8x8xf32>
    "tpu.trace_start"() <{level = 10 : i32, message = "bst,btd->bsd"}> : () -> ()
    %cst_59 = arith.constant dense<0.000000e+00> : vector<2x8x4xf32>
    %182 = tpu.matmul %181, %169, %cst_59 {dimension_numbers = #tpu.dot_dimension_numbers<[2], [1], [1], [2], [0, 0, 0, 1, 1, 2], [0], [0]>} : vector<2x8x8xf32>, vector<2x8x4xf32>, vector<2x8x4xf32> -> vector<2x8x4xf32>
    "tpu.trace_stop"() : () -> ()
    %183 = vector.extract_strided_slice %6 {offsets = [0, 0, 132], sizes = [2, 8, 4], strides = [1, 1, 1]} : vector<2x8x192xf32> to vector<2x8x4xf32>
    %184 = vector.extract_strided_slice %6 {offsets = [0, 0, 136], sizes = [2, 8, 4], strides = [1, 1, 1]} : vector<2x8x192xf32> to vector<2x8x4xf32>
    %185 = vector.extract_strided_slice %6 {offsets = [0, 0, 140], sizes = [2, 8, 4], strides = [1, 1, 1]} : vector<2x8x192xf32> to vector<2x8x4xf32>
    "tpu.trace_start"() <{level = 10 : i32, message = "bsd,btd->bst"}> : () -> ()
    %cst_60 = arith.constant dense<0.000000e+00> : vector<2x8x8xf32>
    %186 = tpu.matmul %183, %184, %cst_60 {dimension_numbers = #tpu.dot_dimension_numbers<[2], [2], [1], [1], [0, 0, 0, 1, 1, 1], [0], [0]>} : vector<2x8x4xf32>, vector<2x8x4xf32>, vector<2x8x8xf32> -> vector<2x8x8xf32>
    "tpu.trace_stop"() : () -> ()
    %cst_61 = arith.constant 5.000000e-01 : f32
    %187 = vector.broadcast %cst_61 : f32 to vector<2x8x8xf32>
    %188 = arith.mulf %186, %187 : vector<2x8x8xf32>
    %cst_62 = arith.constant dense<0xFF800000> : vector<2x8xf32>
    %189 = vector.multi_reduction <maximumf>, %188, %cst_62 [2] : vector<2x8x8xf32> to vector<2x8xf32>
    %190 = vector.shape_cast %189 : vector<2x8xf32> to vector<2x8x1xf32>
    %191 = vector.broadcast %190 : vector<2x8x1xf32> to vector<2x8x8xf32>
    %192 = arith.subf %188, %191 : vector<2x8x8xf32>
    %193 = math.exp %192 : vector<2x8x8xf32>
    %cst_63 = arith.constant dense<0.000000e+00> : vector<2x8xf32>
    %194 = vector.multi_reduction <add>, %193, %cst_63 [2] : vector<2x8x8xf32> to vector<2x8xf32>
    %195 = vector.shape_cast %194 : vector<2x8xf32> to vector<2x8x1xf32>
    %196 = vector.broadcast %195 : vector<2x8x1xf32> to vector<2x8x8xf32>
    %197 = arith.divf %193, %196 : vector<2x8x8xf32>
    "tpu.trace_start"() <{level = 10 : i32, message = "bst,btd->bsd"}> : () -> ()
    %cst_64 = arith.constant dense<0.000000e+00> : vector<2x8x4xf32>
    %198 = tpu.matmul %197, %185, %cst_64 {dimension_numbers = #tpu.dot_dimension_numbers<[2], [1], [1], [2], [0, 0, 0, 1, 1, 2], [0], [0]>} : vector<2x8x8xf32>, vector<2x8x4xf32>, vector<2x8x4xf32> -> vector<2x8x4xf32>
    "tpu.trace_stop"() : () -> ()
    %199 = vector.extract_strided_slice %6 {offsets = [0, 0, 144], sizes = [2, 8, 4], strides = [1, 1, 1]} : vector<2x8x192xf32> to vector<2x8x4xf32>
    %200 = vector.extract_strided_slice %6 {offsets = [0, 0, 148], sizes = [2, 8, 4], strides = [1, 1, 1]} : vector<2x8x192xf32> to vector<2x8x4xf32>
    %201 = vector.extract_strided_slice %6 {offsets = [0, 0, 152], sizes = [2, 8, 4], strides = [1, 1, 1]} : vector<2x8x192xf32> to vector<2x8x4xf32>
    "tpu.trace_start"() <{level = 10 : i32, message = "bsd,btd->bst"}> : () -> ()
    %cst_65 = arith.constant dense<0.000000e+00> : vector<2x8x8xf32>
    %202 = tpu.matmul %199, %200, %cst_65 {dimension_numbers = #tpu.dot_dimension_numbers<[2], [2], [1], [1], [0, 0, 0, 1, 1, 1], [0], [0]>} : vector<2x8x4xf32>, vector<2x8x4xf32>, vector<2x8x8xf32> -> vector<2x8x8xf32>
    "tpu.trace_stop"() : () -> ()
    %cst_66 = arith.constant 5.000000e-01 : f32
    %203 = vector.broadcast %cst_66 : f32 to vector<2x8x8xf32>
    %204 = arith.mulf %202, %203 : vector<2x8x8xf32>
    %cst_67 = arith.constant dense<0xFF800000> : vector<2x8xf32>
    %205 = vector.multi_reduction <maximumf>, %204, %cst_67 [2] : vector<2x8x8xf32> to vector<2x8xf32>
    %206 = vector.shape_cast %205 : vector<2x8xf32> to vector<2x8x1xf32>
    %207 = vector.broadcast %206 : vector<2x8x1xf32> to vector<2x8x8xf32>
    %208 = arith.subf %204, %207 : vector<2x8x8xf32>
    %209 = math.exp %208 : vector<2x8x8xf32>
    %cst_68 = arith.constant dense<0.000000e+00> : vector<2x8xf32>
    %210 = vector.multi_reduction <add>, %209, %cst_68 [2] : vector<2x8x8xf32> to vector<2x8xf32>
    %211 = vector.shape_cast %210 : vector<2x8xf32> to vector<2x8x1xf32>
    %212 = vector.broadcast %211 : vector<2x8x1xf32> to vector<2x8x8xf32>
    %213 = arith.divf %209, %212 : vector<2x8x8xf32>
    "tpu.trace_start"() <{level = 10 : i32, message = "bst,btd->bsd"}> : () -> ()
    %cst_69 = arith.constant dense<0.000000e+00> : vector<2x8x4xf32>
    %214 = tpu.matmul %213, %201, %cst_69 {dimension_numbers = #tpu.dot_dimension_numbers<[2], [1], [1], [2], [0, 0, 0, 1, 1, 2], [0], [0]>} : vector<2x8x8xf32>, vector<2x8x4xf32>, vector<2x8x4xf32> -> vector<2x8x4xf32>
    "tpu.trace_stop"() : () -> ()
    %215 = vector.extract_strided_slice %6 {offsets = [0, 0, 156], sizes = [2, 8, 4], strides = [1, 1, 1]} : vector<2x8x192xf32> to vector<2x8x4xf32>
    %216 = vector.extract_strided_slice %6 {offsets = [0, 0, 160], sizes = [2, 8, 4], strides = [1, 1, 1]} : vector<2x8x192xf32> to vector<2x8x4xf32>
    %217 = vector.extract_strided_slice %6 {offsets = [0, 0, 164], sizes = [2, 8, 4], strides = [1, 1, 1]} : vector<2x8x192xf32> to vector<2x8x4xf32>
    "tpu.trace_start"() <{level = 10 : i32, message = "bsd,btd->bst"}> : () -> ()
    %cst_70 = arith.constant dense<0.000000e+00> : vector<2x8x8xf32>
    %218 = tpu.matmul %215, %216, %cst_70 {dimension_numbers = #tpu.dot_dimension_numbers<[2], [2], [1], [1], [0, 0, 0, 1, 1, 1], [0], [0]>} : vector<2x8x4xf32>, vector<2x8x4xf32>, vector<2x8x8xf32> -> vector<2x8x8xf32>
    "tpu.trace_stop"() : () -> ()
    %cst_71 = arith.constant 5.000000e-01 : f32
    %219 = vector.broadcast %cst_71 : f32 to vector<2x8x8xf32>
    %220 = arith.mulf %218, %219 : vector<2x8x8xf32>
    %cst_72 = arith.constant dense<0xFF800000> : vector<2x8xf32>
    %221 = vector.multi_reduction <maximumf>, %220, %cst_72 [2] : vector<2x8x8xf32> to vector<2x8xf32>
    %222 = vector.shape_cast %221 : vector<2x8xf32> to vector<2x8x1xf32>
    %223 = vector.broadcast %222 : vector<2x8x1xf32> to vector<2x8x8xf32>
    %224 = arith.subf %220, %223 : vector<2x8x8xf32>
    %225 = math.exp %224 : vector<2x8x8xf32>
    %cst_73 = arith.constant dense<0.000000e+00> : vector<2x8xf32>
    %226 = vector.multi_reduction <add>, %225, %cst_73 [2] : vector<2x8x8xf32> to vector<2x8xf32>
    %227 = vector.shape_cast %226 : vector<2x8xf32> to vector<2x8x1xf32>
    %228 = vector.broadcast %227 : vector<2x8x1xf32> to vector<2x8x8xf32>
    %229 = arith.divf %225, %228 : vector<2x8x8xf32>
    "tpu.trace_start"() <{level = 10 : i32, message = "bst,btd->bsd"}> : () -> ()
    %cst_74 = arith.constant dense<0.000000e+00> : vector<2x8x4xf32>
    %230 = tpu.matmul %229, %217, %cst_74 {dimension_numbers = #tpu.dot_dimension_numbers<[2], [1], [1], [2], [0, 0, 0, 1, 1, 2], [0], [0]>} : vector<2x8x8xf32>, vector<2x8x4xf32>, vector<2x8x4xf32> -> vector<2x8x4xf32>
    "tpu.trace_stop"() : () -> ()
    %231 = vector.extract_strided_slice %6 {offsets = [0, 0, 168], sizes = [2, 8, 4], strides = [1, 1, 1]} : vector<2x8x192xf32> to vector<2x8x4xf32>
    %232 = vector.extract_strided_slice %6 {offsets = [0, 0, 172], sizes = [2, 8, 4], strides = [1, 1, 1]} : vector<2x8x192xf32> to vector<2x8x4xf32>
    %233 = vector.extract_strided_slice %6 {offsets = [0, 0, 176], sizes = [2, 8, 4], strides = [1, 1, 1]} : vector<2x8x192xf32> to vector<2x8x4xf32>
    "tpu.trace_start"() <{level = 10 : i32, message = "bsd,btd->bst"}> : () -> ()
    %cst_75 = arith.constant dense<0.000000e+00> : vector<2x8x8xf32>
    %234 = tpu.matmul %231, %232, %cst_75 {dimension_numbers = #tpu.dot_dimension_numbers<[2], [2], [1], [1], [0, 0, 0, 1, 1, 1], [0], [0]>} : vector<2x8x4xf32>, vector<2x8x4xf32>, vector<2x8x8xf32> -> vector<2x8x8xf32>
    "tpu.trace_stop"() : () -> ()
    %cst_76 = arith.constant 5.000000e-01 : f32
    %235 = vector.broadcast %cst_76 : f32 to vector<2x8x8xf32>
    %236 = arith.mulf %234, %235 : vector<2x8x8xf32>
    %cst_77 = arith.constant dense<0xFF800000> : vector<2x8xf32>
    %237 = vector.multi_reduction <maximumf>, %236, %cst_77 [2] : vector<2x8x8xf32> to vector<2x8xf32>
    %238 = vector.shape_cast %237 : vector<2x8xf32> to vector<2x8x1xf32>
    %239 = vector.broadcast %238 : vector<2x8x1xf32> to vector<2x8x8xf32>
    %240 = arith.subf %236, %239 : vector<2x8x8xf32>
    %241 = math.exp %240 : vector<2x8x8xf32>
    %cst_78 = arith.constant dense<0.000000e+00> : vector<2x8xf32>
    %242 = vector.multi_reduction <add>, %241, %cst_78 [2] : vector<2x8x8xf32> to vector<2x8xf32>
    %243 = vector.shape_cast %242 : vector<2x8xf32> to vector<2x8x1xf32>
    %244 = vector.broadcast %243 : vector<2x8x1xf32> to vector<2x8x8xf32>
    %245 = arith.divf %241, %244 : vector<2x8x8xf32>
    "tpu.trace_start"() <{level = 10 : i32, message = "bst,btd->bsd"}> : () -> ()
    %cst_79 = arith.constant dense<0.000000e+00> : vector<2x8x4xf32>
    %246 = tpu.matmul %245, %233, %cst_79 {dimension_numbers = #tpu.dot_dimension_numbers<[2], [1], [1], [2], [0, 0, 0, 1, 1, 2], [0], [0]>} : vector<2x8x8xf32>, vector<2x8x4xf32>, vector<2x8x4xf32> -> vector<2x8x4xf32>
    "tpu.trace_stop"() : () -> ()
    %247 = vector.extract_strided_slice %6 {offsets = [0, 0, 180], sizes = [2, 8, 4], strides = [1, 1, 1]} : vector<2x8x192xf32> to vector<2x8x4xf32>
    %248 = vector.extract_strided_slice %6 {offsets = [0, 0, 184], sizes = [2, 8, 4], strides = [1, 1, 1]} : vector<2x8x192xf32> to vector<2x8x4xf32>
    %249 = vector.extract_strided_slice %6 {offsets = [0, 0, 188], sizes = [2, 8, 4], strides = [1, 1, 1]} : vector<2x8x192xf32> to vector<2x8x4xf32>
    "tpu.trace_start"() <{level = 10 : i32, message = "bsd,btd->bst"}> : () -> ()
    %cst_80 = arith.constant dense<0.000000e+00> : vector<2x8x8xf32>
    %250 = tpu.matmul %247, %248, %cst_80 {dimension_numbers = #tpu.dot_dimension_numbers<[2], [2], [1], [1], [0, 0, 0, 1, 1, 1], [0], [0]>} : vector<2x8x4xf32>, vector<2x8x4xf32>, vector<2x8x8xf32> -> vector<2x8x8xf32>
    "tpu.trace_stop"() : () -> ()
    %cst_81 = arith.constant 5.000000e-01 : f32
    %251 = vector.broadcast %cst_81 : f32 to vector<2x8x8xf32>
    %252 = arith.mulf %250, %251 : vector<2x8x8xf32>
    %cst_82 = arith.constant dense<0xFF800000> : vector<2x8xf32>
    %253 = vector.multi_reduction <maximumf>, %252, %cst_82 [2] : vector<2x8x8xf32> to vector<2x8xf32>
    %254 = vector.shape_cast %253 : vector<2x8xf32> to vector<2x8x1xf32>
    %255 = vector.broadcast %254 : vector<2x8x1xf32> to vector<2x8x8xf32>
    %256 = arith.subf %252, %255 : vector<2x8x8xf32>
    %257 = math.exp %256 : vector<2x8x8xf32>
    %cst_83 = arith.constant dense<0.000000e+00> : vector<2x8xf32>
    %258 = vector.multi_reduction <add>, %257, %cst_83 [2] : vector<2x8x8xf32> to vector<2x8xf32>
    %259 = vector.shape_cast %258 : vector<2x8xf32> to vector<2x8x1xf32>
    %260 = vector.broadcast %259 : vector<2x8x1xf32> to vector<2x8x8xf32>
    %261 = arith.divf %257, %260 : vector<2x8x8xf32>
    "tpu.trace_start"() <{level = 10 : i32, message = "bst,btd->bsd"}> : () -> ()
    %cst_84 = arith.constant dense<0.000000e+00> : vector<2x8x4xf32>
    %262 = tpu.matmul %261, %249, %cst_84 {dimension_numbers = #tpu.dot_dimension_numbers<[2], [1], [1], [2], [0, 0, 0, 1, 1, 2], [0], [0]>} : vector<2x8x8xf32>, vector<2x8x4xf32>, vector<2x8x4xf32> -> vector<2x8x4xf32>
    "tpu.trace_stop"() : () -> ()
    %263 = tpu.concatenate %22, %38, %54, %70, %86, %102, %118, %134, %150, %166, %182, %198, %214, %230, %246, %262 in 2 : vector<2x8x4xf32>, vector<2x8x4xf32>, vector<2x8x4xf32>, vector<2x8x4xf32>, vector<2x8x4xf32>, vector<2x8x4xf32>, vector<2x8x4xf32>, vector<2x8x4xf32>, vector<2x8x4xf32>, vector<2x8x4xf32>, vector<2x8x4xf32>, vector<2x8x4xf32>, vector<2x8x4xf32>, vector<2x8x4xf32>, vector<2x8x4xf32>, vector<2x8x4xf32> -> vector<2x8x64xf32>
    %264 = vector.shape_cast %263 : vector<2x8x64xf32> to vector<16x64xf32>
    %c0_85 = arith.constant 0 : index
    %c0_86 = arith.constant 0 : index
    %265 = vector.load %arg4[%c0_85, %c0_86] : memref<64x64xf32, #tpu.memory_space<vmem>>, vector<64x64xf32>
    %cst_87 = arith.constant dense<0.000000e+00> : vector<16x64xf32>
    %266 = tpu.matmul %264, %265, %cst_87 {dimension_numbers = #tpu.dot_dimension_numbers<[1], [0], [0], [1], [0, 0, 1, 1], [], []>} : vector<16x64xf32>, vector<64x64xf32>, vector<16x64xf32> -> vector<16x64xf32>
    %c0_88 = arith.constant 0 : index
    %c0_89 = arith.constant 0 : index
    %267 = vector.load %arg5[%c0_88, %c0_89] : memref<1x64xf32, #tpu.memory_space<vmem>>, vector<1x64xf32>
    %268 = vector.broadcast %267 : vector<1x64xf32> to vector<16x64xf32>
    %269 = arith.addf %266, %268 : vector<16x64xf32>
    %c0_90 = arith.constant 0 : index
    %c0_91 = arith.constant 0 : index
    %270 = vector.load %arg6[%c0_90, %c0_91] : memref<16x64xf32, #tpu.memory_space<vmem>>, vector<16x64xf32>
    tpu.vector_store %arg6[%c0_90, %c0_91], %269 {strides = array<i32>} : memref<16x64xf32, #tpu.memory_space<vmem>>, vector<16x64xf32>,
    return
  }
  func.func @transform_0(%arg0: i32) -> (i32, i32) {
    %c0_i32 = arith.constant 0 : i32
    %c0_i32_0 = arith.constant 0 : i32
    %c0_i32_1 = arith.constant 0 : i32
    return %c0_i32, %c0_i32_0 : i32, i32
  }
  func.func @transform_1(%arg0: i32) -> (i32, i32) {
    %c0_i32 = arith.constant 0 : i32
    %c0_i32_0 = arith.constant 0 : i32
    %c0_i32_1 = arith.constant 0 : i32
    return %c0_i32, %c0_i32_0 : i32, i32
  }
  func.func @transform_2(%arg0: i32) -> (i32, i32) {
    %c0_i32 = arith.constant 0 : i32
    %c0_i32_0 = arith.constant 0 : i32
    %c0_i32_1 = arith.constant 0 : i32
    return %c0_i32, %c0_i32_0 : i32, i32
  }
  func.func @transform_3(%arg0: i32) -> (i32, i32) {
    %c0_i32 = arith.constant 0 : i32
    %c0_i32_0 = arith.constant 0 : i32
    %c0_i32_1 = arith.constant 0 : i32
    return %c0_i32, %c0_i32_0 : i32, i32
  }
  func.func @transform_4(%arg0: i32) -> (i32, i32) {
    %c0_i32 = arith.constant 0 : i32
    %c0_i32_0 = arith.constant 0 : i32
    %c0_i32_1 = arith.constant 0 : i32
    return %c0_i32, %c0_i32_0 : i32, i32
  }
  func.func @transform_5(%arg0: i32) -> (i32, i32) {
    %c0_i32 = arith.constant 0 : i32
    %c0_i32_0 = arith.constant 0 : i32
    %c0_i32_1 = arith.constant 0 : i32
    return %c0_i32, %c0_i32_0 : i32, i32
  }
}

module attributes {stable_mosaic.version = 11 : i64} {
  func.func @_cross_attn_block_kernel(%arg0: i32, %arg1: memref<2x32xf32, #tpu.memory_space<vmem>>, %arg2: memref<16x64xf32, #tpu.memory_space<vmem>>, %arg3: memref<32x1024xf32, #tpu.memory_space<vmem>>, %arg4: memref<32x1024xf32, #tpu.memory_space<vmem>>, %arg5: memref<64x1024xf32, #tpu.memory_space<vmem>>, %arg6: memref<64x1024xf32, #tpu.memory_space<vmem>>, %arg7: memref<1024x32xf32, #tpu.memory_space<vmem>>, %arg8: memref<1024x64xf32, #tpu.memory_space<vmem>>, %arg9: memref<1x2x32xf32, #tpu.memory_space<vmem>>, %arg10: memref<1x2x64xf32, #tpu.memory_space<vmem>>) attributes {dimension_semantics = [#tpu.dimension_semantics<parallel>], iteration_bounds = array<i64: 16>, scalar_prefetch = 0 : i64, scratch_operands = 0 : i64, tpu.core_type = #tpu.core_type<tc>, window_params = [{pipeline_mode = #tpu.pipeline_mode<synchronous>, transform_indices = @transform_0, window_bounds = array<i64: 2, 32>}, {pipeline_mode = #tpu.pipeline_mode<synchronous>, transform_indices = @transform_1, window_bounds = array<i64: 16, 64>}, {transform_indices = @transform_2, window_bounds = array<i64: 32, 1024>}, {transform_indices = @transform_3, window_bounds = array<i64: 32, 1024>}, {transform_indices = @transform_4, window_bounds = array<i64: 64, 1024>}, {transform_indices = @transform_5, window_bounds = array<i64: 64, 1024>}, {transform_indices = @transform_6, window_bounds = array<i64: 1024, 32>}, {transform_indices = @transform_7, window_bounds = array<i64: 1024, 64>}, {transform_indices = @transform_8, window_bounds = array<i64: 1, 2, 32>}, {transform_indices = @transform_9, window_bounds = array<i64: 1, 2, 64>}]} {
    %c0 = arith.constant 0 : index
    %c0_0 = arith.constant 0 : index
    %0 = vector.load %arg1[%c0, %c0_0] : memref<2x32xf32, #tpu.memory_space<vmem>>, vector<2x32xf32>
    %c0_1 = arith.constant 0 : index
    %c0_2 = arith.constant 0 : index
    %1 = vector.load %arg2[%c0_1, %c0_2] : memref<16x64xf32, #tpu.memory_space<vmem>>, vector<16x64xf32>
    %c0_3 = arith.constant 0 : index
    %c0_4 = arith.constant 0 : index
    %2 = vector.load %arg3[%c0_3, %c0_4] : memref<32x1024xf32, #tpu.memory_space<vmem>>, vector<32x1024xf32>
    %cst = arith.constant dense<0.000000e+00> : vector<2x1024xf32>
    %3 = tpu.matmul %0, %2, %cst {dimension_numbers = #tpu.dot_dimension_numbers<[1], [0], [0], [1], [0, 0, 1, 1], [], []>} : vector<2x32xf32>, vector<32x1024xf32>, vector<2x1024xf32> -> vector<2x1024xf32>
    %c0_5 = arith.constant 0 : index
    %c0_6 = arith.constant 0 : index
    %4 = vector.load %arg4[%c0_5, %c0_6] : memref<32x1024xf32, #tpu.memory_space<vmem>>, vector<32x1024xf32>
    %cst_7 = arith.constant dense<0.000000e+00> : vector<2x1024xf32>
    %5 = tpu.matmul %0, %4, %cst_7 {dimension_numbers = #tpu.dot_dimension_numbers<[1], [0], [0], [1], [0, 0, 1, 1], [], []>} : vector<2x32xf32>, vector<32x1024xf32>, vector<2x1024xf32> -> vector<2x1024xf32>
    %c0_8 = arith.constant 0 : index
    %c0_9 = arith.constant 0 : index
    %6 = vector.load %arg5[%c0_8, %c0_9] : memref<64x1024xf32, #tpu.memory_space<vmem>>, vector<64x1024xf32>
    %cst_10 = arith.constant dense<0.000000e+00> : vector<16x1024xf32>
    %7 = tpu.matmul %1, %6, %cst_10 {dimension_numbers = #tpu.dot_dimension_numbers<[1], [0], [0], [1], [0, 0, 1, 1], [], []>} : vector<16x64xf32>, vector<64x1024xf32>, vector<16x1024xf32> -> vector<16x1024xf32>
    %c0_11 = arith.constant 0 : index
    %c0_12 = arith.constant 0 : index
    %8 = vector.load %arg6[%c0_11, %c0_12] : memref<64x1024xf32, #tpu.memory_space<vmem>>, vector<64x1024xf32>
    %cst_13 = arith.constant dense<0.000000e+00> : vector<16x1024xf32>
    %9 = tpu.matmul %1, %8, %cst_13 {dimension_numbers = #tpu.dot_dimension_numbers<[1], [0], [0], [1], [0, 0, 1, 1], [], []>} : vector<16x64xf32>, vector<64x1024xf32>, vector<16x1024xf32> -> vector<16x1024xf32>
    %10 = vector.shape_cast %7 : vector<16x1024xf32> to vector<2x8x1024xf32>
    %11 = vector.shape_cast %9 : vector<16x1024xf32> to vector<2x8x1024xf32>
    %12 = vector.shape_cast %3 : vector<2x1024xf32> to vector<2x1x1024xf32>
    "tpu.trace_start"() <{level = 10 : i32, message = "bid,bjd->bij"}> : () -> ()
    %cst_14 = arith.constant dense<0.000000e+00> : vector<2x1x8xf32>
    %13 = tpu.matmul %12, %10, %cst_14 {dimension_numbers = #tpu.dot_dimension_numbers<[2], [2], [1], [1], [0, 0, 0, 1, 1, 1], [0], [0]>} : vector<2x1x1024xf32>, vector<2x8x1024xf32>, vector<2x1x8xf32> -> vector<2x1x8xf32>
    "tpu.trace_stop"() : () -> ()
    %cst_15 = arith.constant 3.125000e-02 : f32
    %14 = vector.broadcast %cst_15 : f32 to vector<2x1x8xf32>
    %15 = arith.mulf %13, %14 : vector<2x1x8xf32>
    %cst_16 = arith.constant dense<0xFF800000> : vector<2x1xf32>
    %16 = vector.multi_reduction <maximumf>, %15, %cst_16 [2] : vector<2x1x8xf32> to vector<2x1xf32>
    %17 = vector.shape_cast %16 : vector<2x1xf32> to vector<2x1x1xf32>
    %18 = vector.broadcast %17 : vector<2x1x1xf32> to vector<2x1x8xf32>
    %19 = arith.subf %15, %18 : vector<2x1x8xf32>
    %20 = math.exp %19 : vector<2x1x8xf32>
    %cst_17 = arith.constant dense<0.000000e+00> : vector<2x1xf32>
    %21 = vector.multi_reduction <add>, %20, %cst_17 [2] : vector<2x1x8xf32> to vector<2x1xf32>
    %22 = vector.shape_cast %21 : vector<2x1xf32> to vector<2x1x1xf32>
    %23 = vector.broadcast %22 : vector<2x1x1xf32> to vector<2x1x8xf32>
    %24 = arith.divf %20, %23 : vector<2x1x8xf32>
    "tpu.trace_start"() <{level = 10 : i32, message = "bij,bjd->bid"}> : () -> ()
    %cst_18 = arith.constant dense<0.000000e+00> : vector<2x1x1024xf32>
    %25 = tpu.matmul %24, %11, %cst_18 {dimension_numbers = #tpu.dot_dimension_numbers<[2], [1], [1], [2], [0, 0, 0, 1, 1, 2], [0], [0]>} : vector<2x1x8xf32>, vector<2x8x1024xf32>, vector<2x1x1024xf32> -> vector<2x1x1024xf32>
    "tpu.trace_stop"() : () -> ()
    %26 = vector.shape_cast %25 : vector<2x1x1024xf32> to vector<2x1024xf32>
    %c0_19 = arith.constant 0 : index
    %c0_20 = arith.constant 0 : index
    %27 = vector.load %arg7[%c0_19, %c0_20] : memref<1024x32xf32, #tpu.memory_space<vmem>>, vector<1024x32xf32>
    %cst_21 = arith.constant dense<0.000000e+00> : vector<2x32xf32>
    %28 = tpu.matmul %26, %27, %cst_21 {dimension_numbers = #tpu.dot_dimension_numbers<[1], [0], [0], [1], [0, 0, 1, 1], [], []>} : vector<2x1024xf32>, vector<1024x32xf32>, vector<2x32xf32> -> vector<2x32xf32>
    %c0_22 = arith.constant 0 : index
    %c0_23 = arith.constant 0 : index
    %c0_24 = arith.constant 0 : index
    %29 = vector.load %arg9[%c0_22, %c0_23, %c0_24] : memref<1x2x32xf32, #tpu.memory_space<vmem>>, vector<1x2x32xf32>
    %30 = vector.shape_cast %29 : vector<1x2x32xf32> to vector<2x32xf32>
    %31 = vector.shape_cast %28 : vector<2x32xf32> to vector<1x2x32xf32>
    tpu.vector_store %arg9[%c0_22, %c0_23, %c0_24], %31 {strides = array<i32>} : memref<1x2x32xf32, #tpu.memory_space<vmem>>, vector<1x2x32xf32>,
    %c0_25 = arith.constant 0 : index
    %c0_26 = arith.constant 0 : index
    %32 = vector.load %arg8[%c0_25, %c0_26] : memref<1024x64xf32, #tpu.memory_space<vmem>>, vector<1024x64xf32>
    %cst_27 = arith.constant dense<0.000000e+00> : vector<2x64xf32>
    %33 = tpu.matmul %5, %32, %cst_27 {dimension_numbers = #tpu.dot_dimension_numbers<[1], [0], [0], [1], [0, 0, 1, 1], [], []>} : vector<2x1024xf32>, vector<1024x64xf32>, vector<2x64xf32> -> vector<2x64xf32>
    %c0_28 = arith.constant 0 : index
    %c0_29 = arith.constant 0 : index
    %c0_30 = arith.constant 0 : index
    %34 = vector.load %arg10[%c0_28, %c0_29, %c0_30] : memref<1x2x64xf32, #tpu.memory_space<vmem>>, vector<1x2x64xf32>
    %35 = vector.shape_cast %34 : vector<1x2x64xf32> to vector<2x64xf32>
    %36 = vector.shape_cast %33 : vector<2x64xf32> to vector<1x2x64xf32>
    tpu.vector_store %arg10[%c0_28, %c0_29, %c0_30], %36 {strides = array<i32>} : memref<1x2x64xf32, #tpu.memory_space<vmem>>, vector<1x2x64xf32>,
    return
  }
  func.func @transform_0(%arg0: i32) -> (i32, i32) {
    %c0_i32 = arith.constant 0 : i32
    %c0_i32_0 = arith.constant 0 : i32
    %c0_i32_1 = arith.constant 0 : i32
    return %c0_i32, %c0_i32_0 : i32, i32
  }
  func.func @transform_1(%arg0: i32) -> (i32, i32) {
    %c0_i32 = arith.constant 0 : i32
    %c0_i32_0 = arith.constant 0 : i32
    %c0_i32_1 = arith.constant 0 : i32
    return %c0_i32, %c0_i32_0 : i32, i32
  }
  func.func @transform_2(%arg0: i32) -> (i32, i32) {
    %c0_i32 = arith.constant 0 : i32
    %c0_i32_0 = arith.constant 0 : i32
    return %c0_i32, %arg0 : i32, i32
  }
  func.func @transform_3(%arg0: i32) -> (i32, i32) {
    %c0_i32 = arith.constant 0 : i32
    %c0_i32_0 = arith.constant 0 : i32
    return %c0_i32, %arg0 : i32, i32
  }
  func.func @transform_4(%arg0: i32) -> (i32, i32) {
    %c0_i32 = arith.constant 0 : i32
    %c0_i32_0 = arith.constant 0 : i32
    return %c0_i32, %arg0 : i32, i32
  }
  func.func @transform_5(%arg0: i32) -> (i32, i32) {
    %c0_i32 = arith.constant 0 : i32
    %c0_i32_0 = arith.constant 0 : i32
    return %c0_i32, %arg0 : i32, i32
  }
  func.func @transform_6(%arg0: i32) -> (i32, i32) {
    %c0_i32 = arith.constant 0 : i32
    %c0_i32_0 = arith.constant 0 : i32
    return %arg0, %c0_i32 : i32, i32
  }
  func.func @transform_7(%arg0: i32) -> (i32, i32) {
    %c0_i32 = arith.constant 0 : i32
    %c0_i32_0 = arith.constant 0 : i32
    return %arg0, %c0_i32 : i32, i32
  }
  func.func @transform_8(%arg0: i32) -> (i32, i32, i32) {
    %c0_i32 = arith.constant 0 : i32
    %c0_i32_0 = arith.constant 0 : i32
    %c0_i32_1 = arith.constant 0 : i32
    return %arg0, %c0_i32, %c0_i32_0 : i32, i32, i32
  }
  func.func @transform_9(%arg0: i32) -> (i32, i32, i32) {
    %c0_i32 = arith.constant 0 : i32
    %c0_i32_0 = arith.constant 0 : i32
    %c0_i32_1 = arith.constant 0 : i32
    return %arg0, %c0_i32, %c0_i32_0 : i32, i32, i32
  }
}

module attributes {stable_mosaic.version = 11 : i64} {
  func.func @_mlp_kernel(%arg0: i32, %arg1: memref<16x64xf32, #tpu.memory_space<vmem>>, %arg2: memref<64x128xf32, #tpu.memory_space<vmem>>, %arg3: memref<1x128xf32, #tpu.memory_space<vmem>>, %arg4: memref<128x128xf32, #tpu.memory_space<vmem>>, %arg5: memref<1x128xf32, #tpu.memory_space<vmem>>, %arg6: memref<128x48xf32, #tpu.memory_space<vmem>>, %arg7: memref<1x48xf32, #tpu.memory_space<vmem>>, %arg8: memref<16x48xf32, #tpu.memory_space<vmem>>) attributes {dimension_semantics = [#tpu.dimension_semantics<arbitrary>], iteration_bounds = array<i64: 1>, scalar_prefetch = 0 : i64, scratch_operands = 0 : i64, tpu.core_type = #tpu.core_type<tc>, window_params = [{pipeline_mode = #tpu.pipeline_mode<synchronous>, transform_indices = @transform_0, window_bounds = array<i64: 16, 64>}, {pipeline_mode = #tpu.pipeline_mode<synchronous>, transform_indices = @transform_1, window_bounds = array<i64: 64, 128>}, {pipeline_mode = #tpu.pipeline_mode<synchronous>, transform_indices = @transform_2, window_bounds = array<i64: 1, 128>}, {pipeline_mode = #tpu.pipeline_mode<synchronous>, transform_indices = @transform_3, window_bounds = array<i64: 128, 128>}, {pipeline_mode = #tpu.pipeline_mode<synchronous>, transform_indices = @transform_4, window_bounds = array<i64: 1, 128>}, {pipeline_mode = #tpu.pipeline_mode<synchronous>, transform_indices = @transform_5, window_bounds = array<i64: 128, 48>}, {pipeline_mode = #tpu.pipeline_mode<synchronous>, transform_indices = @transform_6, window_bounds = array<i64: 1, 48>}, {pipeline_mode = #tpu.pipeline_mode<synchronous>, transform_indices = @transform_7, window_bounds = array<i64: 16, 48>}]} {
    %c0 = arith.constant 0 : index
    %c0_0 = arith.constant 0 : index
    %0 = vector.load %arg1[%c0, %c0_0] : memref<16x64xf32, #tpu.memory_space<vmem>>, vector<16x64xf32>
    %c0_1 = arith.constant 0 : index
    %c0_2 = arith.constant 0 : index
    %1 = vector.load %arg2[%c0_1, %c0_2] : memref<64x128xf32, #tpu.memory_space<vmem>>, vector<64x128xf32>
    %cst = arith.constant dense<0.000000e+00> : vector<16x128xf32>
    %2 = tpu.matmul %0, %1, %cst {dimension_numbers = #tpu.dot_dimension_numbers<[1], [0], [0], [1], [0, 0, 1, 1], [], []>} : vector<16x64xf32>, vector<64x128xf32>, vector<16x128xf32> -> vector<16x128xf32>
    %c0_3 = arith.constant 0 : index
    %c0_4 = arith.constant 0 : index
    %3 = vector.load %arg3[%c0_3, %c0_4] : memref<1x128xf32, #tpu.memory_space<vmem>>, vector<1x128xf32>
    %4 = vector.broadcast %3 : vector<1x128xf32> to vector<16x128xf32>
    %5 = arith.addf %2, %4 : vector<16x128xf32>
    %6 = math.tanh %5 : vector<16x128xf32>
    %c0_5 = arith.constant 0 : index
    %c0_6 = arith.constant 0 : index
    %7 = vector.load %arg4[%c0_5, %c0_6] : memref<128x128xf32, #tpu.memory_space<vmem>>, vector<128x128xf32>
    %cst_7 = arith.constant dense<0.000000e+00> : vector<16x128xf32>
    %8 = tpu.matmul %6, %7, %cst_7 {dimension_numbers = #tpu.dot_dimension_numbers<[1], [0], [0], [1], [0, 0, 1, 1], [], []>} : vector<16x128xf32>, vector<128x128xf32>, vector<16x128xf32> -> vector<16x128xf32>
    %c0_8 = arith.constant 0 : index
    %c0_9 = arith.constant 0 : index
    %9 = vector.load %arg5[%c0_8, %c0_9] : memref<1x128xf32, #tpu.memory_space<vmem>>, vector<1x128xf32>
    %10 = vector.broadcast %9 : vector<1x128xf32> to vector<16x128xf32>
    %11 = arith.addf %8, %10 : vector<16x128xf32>
    %12 = math.tanh %11 : vector<16x128xf32>
    %c0_10 = arith.constant 0 : index
    %c0_11 = arith.constant 0 : index
    %13 = vector.load %arg6[%c0_10, %c0_11] : memref<128x48xf32, #tpu.memory_space<vmem>>, vector<128x48xf32>
    %cst_12 = arith.constant dense<0.000000e+00> : vector<16x48xf32>
    %14 = tpu.matmul %12, %13, %cst_12 {dimension_numbers = #tpu.dot_dimension_numbers<[1], [0], [0], [1], [0, 0, 1, 1], [], []>} : vector<16x128xf32>, vector<128x48xf32>, vector<16x48xf32> -> vector<16x48xf32>
    %c0_13 = arith.constant 0 : index
    %c0_14 = arith.constant 0 : index
    %15 = vector.load %arg7[%c0_13, %c0_14] : memref<1x48xf32, #tpu.memory_space<vmem>>, vector<1x48xf32>
    %16 = vector.broadcast %15 : vector<1x48xf32> to vector<16x48xf32>
    %17 = arith.addf %14, %16 : vector<16x48xf32>
    %c0_15 = arith.constant 0 : index
    %c0_16 = arith.constant 0 : index
    %18 = vector.load %arg8[%c0_15, %c0_16] : memref<16x48xf32, #tpu.memory_space<vmem>>, vector<16x48xf32>
    tpu.vector_store %arg8[%c0_15, %c0_16], %17 {strides = array<i32>} : memref<16x48xf32, #tpu.memory_space<vmem>>, vector<16x48xf32>,
    return
  }
  func.func @transform_0(%arg0: i32) -> (i32, i32) {
    %c0_i32 = arith.constant 0 : i32
    %c0_i32_0 = arith.constant 0 : i32
    %c0_i32_1 = arith.constant 0 : i32
    return %c0_i32, %c0_i32_0 : i32, i32
  }
  func.func @transform_1(%arg0: i32) -> (i32, i32) {
    %c0_i32 = arith.constant 0 : i32
    %c0_i32_0 = arith.constant 0 : i32
    %c0_i32_1 = arith.constant 0 : i32
    return %c0_i32, %c0_i32_0 : i32, i32
  }
  func.func @transform_2(%arg0: i32) -> (i32, i32) {
    %c0_i32 = arith.constant 0 : i32
    %c0_i32_0 = arith.constant 0 : i32
    %c0_i32_1 = arith.constant 0 : i32
    return %c0_i32, %c0_i32_0 : i32, i32
  }
  func.func @transform_3(%arg0: i32) -> (i32, i32) {
    %c0_i32 = arith.constant 0 : i32
    %c0_i32_0 = arith.constant 0 : i32
    %c0_i32_1 = arith.constant 0 : i32
    return %c0_i32, %c0_i32_0 : i32, i32
  }
  func.func @transform_4(%arg0: i32) -> (i32, i32) {
    %c0_i32 = arith.constant 0 : i32
    %c0_i32_0 = arith.constant 0 : i32
    %c0_i32_1 = arith.constant 0 : i32
    return %c0_i32, %c0_i32_0 : i32, i32
  }
  func.func @transform_5(%arg0: i32) -> (i32, i32) {
    %c0_i32 = arith.constant 0 : i32
    %c0_i32_0 = arith.constant 0 : i32
    %c0_i32_1 = arith.constant 0 : i32
    return %c0_i32, %c0_i32_0 : i32, i32
  }
  func.func @transform_6(%arg0: i32) -> (i32, i32) {
    %c0_i32 = arith.constant 0 : i32
    %c0_i32_0 = arith.constant 0 : i32
    %c0_i32_1 = arith.constant 0 : i32
    return %c0_i32, %c0_i32_0 : i32, i32
  }
  func.func @transform_7(%arg0: i32) -> (i32, i32) {
    %c0_i32 = arith.constant 0 : i32
    %c0_i32_0 = arith.constant 0 : i32
    %c0_i32_1 = arith.constant 0 : i32
    return %c0_i32, %c0_i32_0 : i32, i32
  }
}

</mosaic_0001>

<bundles_post_ra>
// kernel: qformer_block_forward.3
= control target key start
LH: loop header
LB: loop body
LE: loop exit
PB: predicated region body
PF: predicated region fallthrough
CT: control target
= control target key end

     0   :  { %vm44_vm0 = vcmask 523264   ;;  %s3158_s15 = smov 112   ;;  %s3159_s16 = smov 116   ;;  %vm100_vm1 = vcmask 31744   ;;  %vm154_vm2 = vcmask 64512   ;;  %s4582_s1 = inlined_call_operand.vmem [shape: f32[64,192], index: 1, kind: input, shape index: {}]   ;;  %s4583_s0 = inlined_call_operand.vmem [shape: f32[16,64], index: 0, kind: input, shape index: {}]   ;;  %s4584_s2 = inlined_call_operand.vmem [shape: f32[1,192], index: 2, kind: input, shape index: {}]   ;;  %s4585_s4 = inlined_call_operand.vmem [shape: f32[1,64], index: 4, kind: input, shape index: {}]   ;;  %s4586_s3 = inlined_call_operand.vmem [shape: f32[64,64], index: 3, kind: input, shape index: {}]   ;;  %s4587_s5 = inlined_call_operand.vmem [shape: f32[16,64], index: 5, kind: output, shape index: {}]  }
   0x1   :  { %v36_v0 = vld [vmem:[%s4582_s1 + $0x70] sm:$0xff]  ;;  %v34_v1 = vld [vmem:[%s4582_s1 + $0x60] sm:$0xff]  ;;  %v21_v9 = vld [vmem:[%s4583_s0 + $0x8] sm:$0xff]  ;;  %s3162_s17 = smov 104   ;;  %s3163_s22 = smov 52  }
   0x2   :  { %59 = vmatpush.msra.mxu1 %v36_v0  ;;  %v32_v2 = vld [vmem:[%s4582_s1 + $0x50] sm:$0xff]  ;;  %v30_v3 = vld [vmem:[%s4582_s1 + $0x40] sm:$0xff]  ;;  %v37_v16 = vld [vmem:[%s4582_s1 + $0x78] sm:$0xff]  ;;  %s3164_s23 = smov 88   ;;  %s3165_s24 = smov 80  }
   0x3   :  { %v28_v4 = vld [vmem:[%s4582_s1 + $0x30] sm:$0xff]  ;;  %v26_v5 = vld [vmem:[%s4582_s1 + $0x20] sm:$0xff]  ;;  %v35_v17 = vld [vmem:[%s4582_s1 + $0x68] sm:$0xff]  ;;  %s3166_s8 = smov 44   ;;  %s3167_s9 = smov 92  }
   0x4   :  { %60 = vmatpush.msra.mxu1 %v34_v1  ;;  %v24_v6 = vld [vmem:[%s4582_s1 + $0x10] sm:$0xff]  ;;  %v22_v7 = vld [vmem:[%s4582_s1] sm:$0xff]  ;;  %v33_v18 = vld [vmem:[%s4582_s1 + $0x58] sm:$0xff]  ;;  %s3168_s10 = smov 68   ;;  %s3169_s18 = smov 76  }
   0x5   :  { %v20_v8 = vld [vmem:[%s4583_s0] sm:$0xff]  ;;  %s3160_s0 = smov 124   ;;  %v31_v19 = vld [vmem:[%s4582_s1 + $0x48] sm:$0xff]  ;;  %v29_v20 = vld [vmem:[%s4582_s1 + $0x38] sm:$0xff]  ;;  %s3170_s19 = smov 40  }
   0x6   :  { %61 = vmatpush.msra.mxu1 %v32_v2  ;;  %v3254_v10 = vld [vmem:[%s4584_s2] sm:$0x3]  ;;  %s3161_s2 = smov 100   ;;  %v27_v21 = vld [vmem:[%s4582_s1 + $0x28] sm:$0xff]  ;;  %v25_v22 = vld [vmem:[%s4582_s1 + $0x18] sm:$0xff]  ;;  %s3172_s20 = smov 32  }
   0x7   :  { %v40_v11 = vperm.slane %v3254_v10, 0  ;;  %v23_v23 = vld [vmem:[%s4582_s1 + $0x8] sm:$0xff]  ;;  %s3171_s1 = smov 64   ;;  %s3173_s21 = smov 56   ;;  %v41_v37 = vperm.slane %v3254_v10, 1 }
   0x8   :  { %62 = vmatpush.msra.mxu1 %v30_v3  ;;  %s3174_s25 = smov 120   ;;  %s3175_s26 = smov 16  }
   0x9   :  { %s3176_s27 = smov 28   ;;  %s3177_s28 = smov 8  }
   0xa   :  { %63 = vmatpush.msra.mxu1 %v28_v4  ;;  %s3178_s29 = smov 108   ;;  %s3179_s30 = smov 4  }
   0xb   :  { %s3180_s6 = smov 20   ;;  %s3181_s7 = smov 96  }
   0xc   :  { %64 = vmatpush.msra.mxu1 %v26_v5  ;;  %s3186_s11 = smov 12   ;;  %s3187_s12 = smov 36  }
   0xd   :  { %s3188_s13 = smov 24  }
   0xe   :  { %65 = vmatpush.msra.mxu1 %v24_v6 }
  0x10   :  { %66 = vmatpush.msra.mxu1 %v22_v7 }
  0x11   :  { %2831 = vmatmul.msk.f32.vlgmr.msra.gmra.mxu1 %vm44_vm0, %v20_v8 }
  0x12   :  { %82 = vmatpush.msrb.mxu1 %v37_v16 }
  0x14   :  { %83 = vmatpush.msrb.mxu1 %v35_v17 }
  0x16   :  { %84 = vmatpush.msrb.mxu1 %v33_v18 }
  0x18   :  { %85 = vmatpush.msrb.mxu1 %v31_v19 }
  0x19   :  { %2832 = vmatmul.msk.f32.gmra.mxu1 %vm44_vm0, %v21_v9 }
  0x1a   :  { %86 = vmatpush.msrb.mxu1 %v29_v20 }
  0x1c   :  { %87 = vmatpush.msrb.mxu1 %v27_v21 }
  0x1e   :  { %88 = vmatpush.msrb.mxu1 %v25_v22 }
  0x20   :  { %89 = vmatpush.msrb.mxu1 %v23_v23 }
  0x21   :  { %2833 = vmatmul.msk.f32.vlgmr.msrb.gmra.mxu1 %vm44_vm0, %v20_v8 }
  0x29   :  { %2834 = vmatmul.msk.f32.gmra.mxu1 %vm44_vm0, %v21_v9 }
  0x8e   :  { %v68_v12 = vpop.f32.mrf.mxu1 }
  0x8f   :  { %v3257_v13 = vadd.f32 %v68_v12, %v40_v11 }
  0x91   :  { %257 = vrot.lane.b32.xlu2 %v3257_v13, %s3158_s15  ;;  %255 = vrot.lane.b32.xlu1 %v3257_v13, %s3159_s16 }
  0x92   :  { %98 = vrot.lane.b32.xlu0 %v3257_v13, %s3160_s0 }
  0x96   :  { %v71_v14 = vpop.f32.mrf.mxu1 }
  0x97   :  { %v3265_v15 = vadd.f32 %v71_v14, %v40_v11 }
  0x99   :  { %415 = vrot.lane.b32.xlu2 %v3257_v13, %s3161_s2  ;;  %413 = vrot.lane.b32.xlu1 %v3257_v13, %s3162_s17  ;;  %v3324_v24 = vpack.i.bf16 %v3265_v15, %v3257_v13 }
  0x9a   :  { %126 = vrot.lane.b32.xlu0 %v3265_v15, %s3160_s0 }
  0x9e   :  { %v91_v40 = vpop.f32.mrf.mxu1 }
  0x9f   :  { %v3392_v41 = vadd.f32 %v91_v40, %v41_v37 }
  0xa1   :  { %1047 = vrot.lane.b32.xlu2 %v3257_v13, %s3163_s22  ;;  %573 = vrot.lane.b32.xlu1 %v3257_v13, %s3164_s23 }
  0xa2   :  { %729 = vrot.lane.b32.xlu0 %v3257_v13, %s3165_s24 }
  0xa6   :  { %v94_v20 = vpop.f32.mrf.mxu1 }
  0xa7   :  { %v3450_v21 = vadd.f32 %v94_v20, %v41_v37 }
  0xa9   :  { %1203 = vrot.lane.b32.xlu2 %v3257_v13, %s3166_s8  ;;  %571 = vrot.lane.b32.xlu1 %v3257_v13, %s3167_s9 }
  0xaa   :  { %887 = vrot.lane.b32.xlu0 %v3257_v13, %s3168_s10 }
  0xb1   :  { %759 = vrot.lane.b32.xlu2 %v3265_v15, %s3169_s18  ;;  %731 = vrot.lane.b32.xlu1 %v3257_v13, %s3169_s18 }
  0xb2   :  { %1205 = vrot.lane.b32.xlu0 %v3257_v13, %s3170_s19 }
  0xb9   :  { %1075 = vrot.lane.b32.xlu2 %v3265_v15, %s3163_s22  ;;  %889 = vrot.lane.b32.xlu1 %v3257_v13, %s3171_s1 }
  0xba   :  { %1361 = vrot.lane.b32.xlu0 %v3257_v13, %s3172_s20 }
  0xc1   :  { %1231 = vrot.lane.b32.xlu2 %v3265_v15, %s3166_s8  ;;  %1045 = vrot.lane.b32.xlu1 %v3257_v13, %s3173_s21 }
  0xc2   :  { %2965 = vrot.lane.b32.xlu0 %v3324_v24, %s3174_s25 }
  0xc9   :  { %1521 = vrot.lane.b32.xlu2 %v3257_v13, %s3175_s26  ;;  %1363 = vrot.lane.b32.xlu1 %v3257_v13, %s3176_s27 }
  0xca   :  { %283 = vrot.lane.b32.xlu0 %v3265_v15, %s3159_s16 }
  0xd1   :  { %1549 = vrot.lane.b32.xlu2 %v3265_v15, %s3175_s26  ;;  %443 = vrot.lane.b32.xlu1 %v3265_v15, %s3161_s2 }
  0xd2   :  { %285 = vrot.lane.b32.xlu0 %v3265_v15, %s3158_s15 }
  0xd9   :  { %1677 = vrot.lane.b32.xlu2 %v3257_v13, %s3177_s28  ;;  %601 = vrot.lane.b32.xlu1 %v3265_v15, %s3164_s23 }
  0xda   :  { %2970 = vrot.lane.b32.xlu0 %v3324_v24, %s3178_s29 }
  0xe1   :  { %1705 = vrot.lane.b32.xlu2 %v3265_v15, %s3177_s28  ;;  %599 = vrot.lane.b32.xlu1 %v3265_v15, %s3167_s9 }
  0xe2   :  { %441 = vrot.lane.b32.xlu0 %v3265_v15, %s3162_s17 }
  0xe9   :  { %757 = vrot.lane.b32.xlu1 %v3265_v15, %s3165_s24 }
  0xea   :  { %915 = vrot.lane.b32.xlu0 %v3265_v15, %s3168_s10 }
  0xeb   :  { %v258_v25 = vpop.permute.xlu2 %257 }
  0xf1   :  { %917 = vrot.lane.b32.xlu1 %v3265_v15, %s3171_s1 }
  0xf2   :  { %1233 = vrot.lane.b32.xlu0 %v3265_v15, %s3170_s19 }
  0xf3   :  { %v416_v26 = vpop.permute.xlu2 %415 }
  0xf4   :  { %2847 = vmatpush.xpose.msk.msra.mxu0 %vm100_vm1, %v416_v26 }
  0xf9   :  { %1073 = vrot.lane.b32.xlu1 %v3265_v15, %s3173_s21 }
  0xfa   :  { %1679 = vrot.lane.b32.xlu0 %v3257_v13, %s3179_s30 }
  0xfb   :  { %v1048_v46 = vpop.permute.xlu2 %1047 }
 0x101   :  { %1391 = vrot.lane.b32.xlu1 %v3265_v15, %s3176_s27 }
 0x102   :  { %1389 = vrot.lane.b32.xlu0 %v3265_v15, %s3172_s20 }
 0x103   :  { %v3372_v27 = vpop.permute.xlu1 %255  ;;  %v1204_v49 = vpop.permute.xlu2 %1203 }
 0x104   :  { %v99_v28 = vpop.permute.xlu0 %98 }
 0x105   :  { %2835 = vmatpush.xpose.msk.msra.mxu2 %vm100_vm1, %v99_v28 }
 0x108   :  { %2836 = vmatmul.msk.f32.vlgmr.msra.gmra.mxu2 %vm100_vm1, %v3257_v13 }
 0x109   :  { %1519 = vrot.lane.b32.xlu1 %v3257_v13, %s3180_s6 }
 0x10a   :  { %1707 = vrot.lane.b32.xlu0 %v3265_v15, %s3179_s30 }
 0x10b   :  { %v414_v29 = vpop.permute.xlu1 %413  ;;  %v760_v53 = vpop.permute.xlu2 %759 }
 0x10c   :  { %v127_v30 = vpop.permute.xlu0 %126  ;;  %2848 = vmatmul.msk.f32.vlgmr.msra.gmra.mxu0 %vm100_vm1, %v414_v29 }
 0x10d   :  { %2837 = vmatpush.xpose.msk.msra.mxu3 %vm100_vm1, %v127_v30 }
 0x110   :  { %2838 = vmatmul.msk.f32.vlgmr.msra.gmra.mxu3 %vm100_vm1, %v3265_v15 }
 0x111   :  { %1547 = vrot.lane.b32.xlu1 %v3265_v15, %s3180_s6 }
 0x112   :  { %1830 = vrot.lane.b32.xlu0 %v3392_v41, %s3160_s0 }
 0x113   :  { %v574_v31 = vpop.permute.xlu1 %573  ;;  %v1076_v57 = vpop.permute.xlu2 %1075 }
 0x114   :  { %v730_v32 = vpop.permute.xlu0 %729 }
 0x119   :  { %1832 = vrot.lane.b32.xlu1 %v3392_v41, %s3174_s25 }
 0x11b   :  { %v572_v33 = vpop.permute.xlu1 %571  ;;  %v1232_v60 = vpop.permute.xlu2 %1231 }
 0x11c   :  { %v888_v34 = vpop.permute.xlu0 %887 }
 0x123   :  { %v732_v35 = vpop.permute.xlu1 %731  ;;  %v1522_v1 = vpop.permute.xlu2 %1521 }
 0x124   :  { %v1206_v36 = vpop.permute.xlu0 %1205 }
 0x12b   :  { %v890_v38 = vpop.permute.xlu1 %889  ;;  %v1550_v4 = vpop.permute.xlu2 %1549 }
 0x12c   :  { %v3388_v39 = vpop.permute.xlu0 %1361 }
 0x133   :  { %v1046_v42 = vpop.permute.xlu1 %1045  ;;  %v1678_v7 = vpop.permute.xlu2 %1677 }
 0x134   :  { %v2966_v43 = vpop.permute.xlu0 %2965 }
 0x135   :  { %v2967_v44 = vunpack.i.l.bf16 %v2966_v43  ;;  %v2968_v45 = vunpack.i.h.bf16 %v2966_v43 }
 0x137   :  { %224 = vmatpush.msrb.mxu2 %v2967_v44  ;;  %250 = vmatpush.msrb.mxu3 %v2968_v45 }
 0x139   :  { %2841 = vmatpush.xpose.msk.msra.mxu2 %vm100_vm1, %v258_v25 }
 0x13b   :  { %v1364_v47 = vpop.permute.xlu1 %1363  ;;  %v1706_v15 = vpop.permute.xlu2 %1705 }
 0x13c   :  { %v3399_v48 = vpop.permute.xlu0 %283 }
 0x143   :  { %v444_v50 = vpop.permute.xlu1 %443 }
 0x144   :  { %v286_v51 = vpop.permute.xlu0 %285  ;;  %2849 = vmatpush.xpose.msk.msrb.mxu0 %vm100_vm1, %v444_v50 }
 0x145   :  { %2843 = vmatpush.xpose.msk.msra.mxu3 %vm100_vm1, %v286_v51 }
 0x148   :  { %2853 = vmatpush.xpose.msk.msra.mxu0 %vm100_vm1, %v574_v31 }
 0x14b   :  { %v602_v52 = vpop.permute.xlu1 %601 }
 0x14c   :  { %v3404_v54 = vpop.permute.xlu0 %2970  ;;  %2855 = vmatpush.xpose.msk.msra.mxu1 %vm100_vm1, %v602_v52 }
 0x150   :  { %2861 = vmatpush.xpose.msk.msrb.mxu1 %vm100_vm1, %v760_v53 }
 0x153   :  { %v600_v55 = vpop.permute.xlu1 %599 }
 0x154   :  { %v442_v56 = vpop.permute.xlu0 %441  ;;  %2856 = vmatmul.msk.f32.vlgmr.msra.gmra.mxu1 %vm100_vm1, %v600_v55 }
 0x155   :  { %2850 = vmatmul.msk.f32.vlgmr.msrb.gmra.mxu0 %vm100_vm1, %v442_v56 }
 0x156   :  { %2859 = vmatpush.xpose.msk.msrb.mxu0 %vm100_vm1, %v732_v35 }
 0x15b   :  { %v758_v58 = vpop.permute.xlu1 %757 }
 0x15c   :  { %v916_v59 = vpop.permute.xlu0 %915  ;;  %2862 = vmatmul.msk.f32.vlgmr.msrb.gmra.mxu1 %vm100_vm1, %v758_v58 }
 0x15d   :  { %2854 = vmatmul.msk.f32.vlgmr.msra.gmra.mxu0 %vm100_vm1, %v572_v33 }
 0x15e   :  { %2865 = vmatpush.xpose.msk.msra.mxu0 %vm100_vm1, %v890_v38 }
 0x163   :  { %v918_v61 = vpop.permute.xlu1 %917 }
 0x164   :  { %v1234_v62 = vpop.permute.xlu0 %1233  ;;  %2867 = vmatpush.xpose.msk.msra.mxu1 %vm100_vm1, %v918_v61 }
 0x165   :  { %2860 = vmatmul.msk.f32.vlgmr.msrb.gmra.mxu0 %vm100_vm1, %v730_v32 }
 0x166   :  { %2871 = vmatpush.xpose.msk.msrb.mxu0 %vm100_vm1, %v1048_v46 }
 0x167   :  { %2868 = vmatmul.msk.f32.vlgmr.msra.gmra.mxu1 %vm100_vm1, %v916_v59 }
 0x168   :  { %2873 = vmatpush.xpose.msk.msrb.mxu1 %vm100_vm1, %v1076_v57 }
 0x16b   :  { %v1074_v63 = vpop.permute.xlu1 %1073 }
 0x16c   :  { %2879 = vmatpush.xpose.msk.msra.mxu1 %vm100_vm1, %v1234_v62  ;;  %v1680_v0 = vpop.permute.xlu0 %1679 }
 0x16d   :  { %2866 = vmatmul.msk.f32.vlgmr.msra.gmra.mxu0 %vm100_vm1, %v888_v34 }
 0x16e   :  { %2877 = vmatpush.xpose.msk.msra.mxu0 %vm100_vm1, %v1206_v36 }
 0x16f   :  { %2874 = vmatmul.msk.f32.vlgmr.msrb.gmra.mxu1 %vm100_vm1, %v1074_v63 }
 0x173   :  { %v1392_v2 = vpop.permute.xlu1 %1391 }
 0x174   :  { %2885 = vmatpush.xpose.msk.msrb.mxu1 %vm100_vm1, %v1392_v2  ;;  %v1390_v3 = vpop.permute.xlu0 %1389 }
 0x175   :  { %2872 = vmatmul.msk.f32.vlgmr.msrb.gmra.mxu0 %vm100_vm1, %v1046_v42 }
 0x176   :  { %2883 = vmatpush.xpose.msk.msrb.mxu0 %vm100_vm1, %v1364_v47 }
 0x177   :  { %2880 = vmatmul.msk.f32.vlgmr.msra.gmra.mxu1 %vm100_vm1, %v1232_v60 }
 0x178   :  { %2891 = vmatpush.xpose.msk.msra.mxu1 %vm100_vm1, %v1550_v4 }
 0x17b   :  { %v1520_v5 = vpop.permute.xlu1 %1519 }
 0x17c   :  { %v1708_v6 = vpop.permute.xlu0 %1707 }
 0x17d   :  { %2878 = vmatmul.msk.f32.vlgmr.msra.gmra.mxu0 %vm100_vm1, %v1204_v49 }
 0x17e   :  { %2889 = vmatpush.xpose.msk.msra.mxu0 %vm100_vm1, %v1522_v1 }
 0x17f   :  { %2886 = vmatmul.msk.f32.vlgmr.msrb.gmra.mxu1 %vm100_vm1, %v1390_v3 }
 0x180   :  { %2897 = vmatpush.xpose.msk.msrb.mxu1 %vm100_vm1, %v1708_v6 }
 0x183   :  { %v1548_v8 = vpop.permute.xlu1 %1547 }
 0x184   :  { %v1831_v23 = vpop.permute.xlu0 %1830 }
 0x185   :  { %2884 = vmatmul.msk.f32.vlgmr.msrb.gmra.mxu0 %vm100_vm1, %v3388_v39 }
 0x186   :  { %2895 = vmatpush.xpose.msk.msrb.mxu0 %vm100_vm1, %v1680_v0 }
 0x187   :  { %2892 = vmatmul.msk.f32.vlgmr.msra.gmra.mxu1 %vm100_vm1, %v1548_v8 }
 0x189   :  { %v438_v9 = vpop.f32.mrf.mxu0 }
 0x18a   :  { %v469_v11 = vmul.f32 0.5, %v438_v9 }
 0x18b   :  { %v122_v12 = vpop.f32.mrf.mxu2  ;;  %v1833_v22 = vpop.permute.xlu1 %1832 }
 0x18c   :  { %v3436_v13 = vmul.f32 0.5, %v122_v12  ;;  %v471_v14 = vsel %vm154_vm2, %v469_v11, -inf }
 0x18d   :  { %2890 = vmatmul.msk.f32.vlgmr.msra.gmra.mxu0 %vm100_vm1, %v1520_v5  ;;  %472 = vmax.xlane.f32.xlu0 %v471_v14 }
 0x18e   :  { %v155_v16 = vsel %vm154_vm2, %v3436_v13, -inf  ;;  %2901 = vmatpush.xpose.msk.msra.mxu0 %vm100_vm1, %v1833_v22 }
 0x18f   :  { %156 = vmax.xlane.f32.xlu1 %v155_v16  ;;  %2898 = vmatmul.msk.f32.vlgmr.msrb.gmra.mxu1 %vm100_vm1, %v1706_v15 }
 0x193   :  { %v149_v17 = vpop.f32.mrf.mxu3 }
 0x194   :  { %v3443_v18 = vmul.f32 0.5, %v149_v17 }
 0x195   :  { %2896 = vmatmul.msk.f32.vlgmr.msrb.gmra.mxu0 %vm100_vm1, %v1678_v7 }
 0x196   :  { %v158_v19 = vsel %vm154_vm2, %v3443_v18, -inf }
 0x197   :  { %159 = vmax.xlane.f32.xlu1 %v158_v19 }
 0x19d   :  { %2902 = vmatmul.msk.f32.vlgmr.msra.gmra.mxu0 %vm100_vm1, %v1831_v23 }
 0x1a1   :  { %1859 = vrot.lane.b32.xlu0 %v3450_v21, %s3160_s0  ;;  %s3182_s0 = smov 84  }
 0x1a9   :  { %2149 = vrot.lane.b32.xlu0 %v3392_v41, %s3181_s7 }
 0x1b0   :  { %1861 = vrot.lane.b32.xlu1 %v3450_v21, %s3174_s25 }
 0x1b1   :  { %2177 = vrot.lane.b32.xlu0 %v3450_v21, %s3181_s7 }
 0x1b8   :  { %1989 = vrot.lane.b32.xlu1 %v3392_v41, %s3158_s15 }
 0x1b9   :  { %2305 = vrot.lane.b32.xlu0 %v3392_v41, %s3164_s23 }
 0x1c0   :  { %2017 = vrot.lane.b32.xlu1 %v3450_v21, %s3158_s15  ;;  %s3183_s15 = smov 72  }
 0x1c1   :  { %2333 = vrot.lane.b32.xlu0 %v3450_v21, %s3164_s23  ;;  %s3185_s23 = smov 48  }
 0x1c8   :  { %2307 = vrot.lane.b32.xlu1 %v3392_v41, %s3182_s0 }
 0x1c9   :  { %2491 = vrot.lane.b32.xlu0 %v3450_v21, %s3169_s18 }
 0x1d0   :  { %2335 = vrot.lane.b32.xlu1 %v3450_v21, %s3182_s0 }
 0x1d1   :  { %v624_v37 = vpop.f32.mrf.mxu1 }
 0x1d2   :  { %v466_v10 = vpop.f32.mrf.mxu0  ;;  %v3500_v38 = vmul.f32 0.5, %v624_v37 }
 0x1d3   :  { %v3476_v25 = vmul.f32 0.5, %v466_v10 }
 0x1d4   :  { %v632_v40 = vsel %vm154_vm2, %v3500_v38, -inf }
 0x1d5   :  { %v474_v26 = vsel %vm154_vm2, %v3476_v25, -inf }
 0x1d6   :  { %475 = vmax.xlane.f32.xlu2 %v474_v26 }
 0x1d8   :  { %2463 = vrot.lane.b32.xlu1 %v3392_v41, %s3169_s18 }
 0x1d9   :  { %v782_v14 = vpop.f32.mrf.mxu1 }
 0x1da   :  { %v3482_v28 = vpop.f32.mrf.mxu0  ;;  %v3553_v22 = vmul.f32 0.5, %v782_v14 }
 0x1dc   :  { %v790_v26 = vsel %vm154_vm2, %v3553_v22, -inf }
 0x1e2   :  { %v3488_v29 = vpop.f32.mrf.mxu0 }
 0x1e4   :  { %v940_v20 = vpop.f32.mrf.mxu1 }
 0x1ea   :  { %v912_v31 = vpop.f32.mrf.mxu0 }
 0x1eb   :  { %v3504_v43 = vmul.f32 0.5, %v912_v31  ;;  %v3561_v31 = vmul.f32 0.5, %v940_v20 }
 0x1ed   :  { %v945_v45 = vsel %vm154_vm2, %v3504_v43, -inf }
 0x1ee   :  { %1991 = vrot.lane.b32.xlu2 %v3392_v41, %s3178_s29 }
 0x1f2   :  { %v1070_v35 = vpop.f32.mrf.mxu0 }
 0x1f3   :  { %v3508_v47 = vmul.f32 0.5, %v1070_v35 }
 0x1f5   :  { %v1103_v50 = vsel %vm154_vm2, %v3508_v47, -inf }
 0x1f6   :  { %2019 = vrot.lane.b32.xlu2 %v3450_v21, %s3178_s29 }
 0x1fa   :  { %v1228_v42 = vpop.f32.mrf.mxu0 }
 0x1fb   :  { %v3515_v53 = vmul.f32 0.5, %v1228_v42 }
 0x1fd   :  { %v1261_v57 = vsel %vm154_vm2, %v3515_v53, -inf }
 0x1fe   :  { %2147 = vrot.lane.b32.xlu2 %v3392_v41, %s3161_s2 }
 0x200   :  { %v473_v30 = vpop.xlane.xlu0 %472 }
 0x201   :  { %v477_v32 = vsub.f32 %v469_v11, %v473_v30  ;;  %v1098_v30 = vpop.f32.mrf.mxu1 }
 0x202   :  { %v157_v39 = vpop.xlane.xlu1 %156  ;;  %v1386_v46 = vpop.f32.mrf.mxu0  ;;  %v3566_v35 = vmul.f32 0.5, %v1098_v30 }
 0x203   :  { %v479_v33 = vmul.f32 1.442695, %v477_v32  ;;  %v161_v51 = vsub.f32 %v3436_v13, %v157_v39  ;;  %v3522_v59 = vmul.f32 0.5, %v1386_v46 }
 0x205   :  { %3030 = vpow2.f32 %v479_v33  ;;  %v163_v55 = vmul.f32 1.442695, %v161_v51  ;;  %v1419_v63 = vsel %vm154_vm2, %v3522_v59, -inf  ;;  %v948_v33 = vsel %vm154_vm2, %v3561_v31, -inf }
 0x206   :  { %2175 = vrot.lane.b32.xlu2 %v3450_v21, %s3161_s2  ;;  %s3184_s2 = smov 60  }
 0x207   :  { %3032 = vpow2.f32 %v163_v55 }
 0x209   :  { %v1256_v39 = vpop.f32.mrf.mxu1 }
 0x20a   :  { %v160_v44 = vpop.xlane.xlu1 %159  ;;  %v3517_v56 = vpop.f32.mrf.mxu0  ;;  %v3572_v42 = vmul.f32 0.5, %v1256_v39 }
 0x20b   :  { %v3494_v34 = vpop.eup %3030  ;;  %v162_v58 = vsub.f32 %v3443_v18, %v160_v44  ;;  %v3582_v51 = vmul.f32 0.5, %v3517_v56 }
 0x20c   :  { %v483_v36 = vsel %vm154_vm2, %v3494_v34, 0.0 }
 0x20d   :  { %484 = vadd.xlane.f32.xlu1 %v483_v36  ;;  %v165_v60 = vmul.f32 1.442695, %v162_v58  ;;  %v3524_v61 = vpop.eup %3032  ;;  %v1577_v55 = vsel %vm154_vm2, %v3582_v51, -inf }
 0x20e   :  { %2465 = vrot.lane.b32.xlu2 %v3392_v41, %s3183_s15  ;;  %v167_v0 = vsel %vm154_vm2, %v3524_v61, 0.0 }
 0x20f   :  { %3034 = vpow2.f32 %v165_v60 }
 0x211   :  { %v3576_v46 = vpop.f32.mrf.mxu1 }
 0x212   :  { %v1702_v62 = vpop.f32.mrf.mxu0 }
 0x213   :  { %v1860_v52 = vpop.permute.xlu0 %1859  ;;  %v3530_v1 = vmul.f32 0.5, %v1702_v62 }
 0x215   :  { %633 = vmax.xlane.f32.xlu1 %v632_v40  ;;  %v3532_v2 = vpop.eup %3034  ;;  %v1735_v4 = vsel %vm154_vm2, %v3530_v1, -inf  ;;  %v1106_v40 = vsel %vm154_vm2, %v3566_v35, -inf }
 0x216   :  { %v170_v5 = vsel %vm154_vm2, %v3532_v2, 0.0 }
 0x21a   :  { %v1855_v3 = vpop.f32.mrf.mxu0 }
 0x21b   :  { %v3538_v6 = vmul.f32 0.5, %v1855_v3  ;;  %v2150_v15 = vpop.permute.xlu0 %2149 }
 0x21d   :  { %946 = vmax.xlane.f32.xlu1 %v945_v45  ;;  %v1889_v8 = vsel %vm154_vm2, %v3538_v6, -inf }
 0x222   :  { %v1862_v49 = vpop.permute.xlu1 %1861 }
 0x223   :  { %2903 = vmatpush.xpose.msk.msra.mxu1 %vm100_vm1, %v1862_v49  ;;  %v2178_v10 = vpop.permute.xlu0 %2177 }
 0x225   :  { %1104 = vmax.xlane.f32.xlu1 %v1103_v50  ;;  %v1264_v50 = vsel %vm154_vm2, %v3572_v42, -inf }
 0x226   :  { %2904 = vmatmul.msk.f32.vlgmr.msra.gmra.mxu1 %vm100_vm1, %v1860_v52  ;;  %v3585_v52 = vmul.f32 0.5, %v3482_v28 }
 0x228   :  { %v629_v58 = vsel %vm154_vm2, %v3585_v52, -inf }
 0x22a   :  { %v1990_v7 = vpop.permute.xlu1 %1989 }
 0x22b   :  { %v2306_v36 = vpop.permute.xlu0 %2305 }
 0x22d   :  { %1262 = vmax.xlane.f32.xlu1 %v1261_v57  ;;  %v1572_v57 = vpop.f32.mrf.mxu1 }
 0x22e   :  { %v3593_v62 = vmul.f32 0.5, %v1572_v57 }
 0x230   :  { %v1580_v28 = vsel %vm154_vm2, %v3593_v62, -inf }
 0x232   :  { %v2018_v9 = vpop.permute.xlu1 %2017 }
 0x233   :  { %v2334_v44 = vpop.permute.xlu0 %2333 }
 0x235   :  { %1420 = vmax.xlane.f32.xlu1 %v1419_v63  ;;  %v3596_v63 = vmul.f32 0.5, %v3488_v29  ;;  %v1730_v29 = vpop.f32.mrf.mxu1 }
 0x237   :  { %168 = vadd.xlane.f32.xlu2 %v167_v0  ;;  %v787_v56 = vsel %vm154_vm2, %v3596_v63, -inf }
 0x23a   :  { %v2308_v17 = vpop.permute.xlu1 %2307 }
 0x23d   :  { %1736 = vmax.xlane.f32.xlu1 %v1735_v4 }
 0x23f   :  { %171 = vadd.xlane.f32.xlu2 %v170_v5 }
 0x245   :  { %1890 = vmax.xlane.f32.xlu1 %v1889_v8  ;;  %v3607_v8 = vmul.f32 0.5, %v1730_v29 }
 0x249   :  { %v476_v11 = vpop.xlane.xlu2 %475 }
 0x24a   :  { %v478_v12 = vsub.f32 %v3476_v25, %v476_v11  ;;  %v2336_v25 = vpop.permute.xlu1 %2335 }
 0x24c   :  { %v481_v13 = vmul.f32 1.442695, %v478_v12 }
 0x24e   :  { %3036 = vpow2.f32 %v481_v13 }
 0x251   :  { %v1992_v16 = vpop.permute.xlu2 %1991 }
 0x252   :  { %2907 = vmatpush.xpose.msk.msrb.mxu0 %vm100_vm1, %v1992_v16  ;;  %v2464_v49 = vpop.permute.xlu1 %2463 }
 0x254   :  { %v3545_v18 = vpop.eup %3036 }
 0x255   :  { %2908 = vmatmul.msk.f32.vlgmr.msrb.gmra.mxu0 %vm100_vm1, %v1990_v7  ;;  %v486_v19 = vsel %vm154_vm2, %v3545_v18, 0.0 }
 0x256   :  { %2913 = vmatpush.xpose.msk.msra.mxu0 %vm100_vm1, %v2150_v15  ;;  %487 = vadd.xlane.f32.xlu0 %v486_v19 }
 0x257   :  { %2493 = vrot.lane.b32.xlu2 %v3450_v21, %s3183_s15 }
 0x259   :  { %v2020_v23 = vpop.permute.xlu2 %2019 }
 0x25a   :  { %2919 = vmatpush.xpose.msk.msrb.mxu0 %vm100_vm1, %v2308_v17  ;;  %2909 = vmatpush.xpose.msk.msrb.mxu1 %vm100_vm1, %v2020_v23 }
 0x25d   :  { %2910 = vmatmul.msk.f32.vlgmr.msrb.gmra.mxu1 %vm100_vm1, %v2018_v9  ;;  %v1738_v9 = vsel %vm154_vm2, %v3607_v8, -inf }
 0x25e   :  { %2915 = vmatpush.xpose.msk.msra.mxu1 %vm100_vm1, %v2178_v10  ;;  %791 = vmax.xlane.f32.xlu0 %v790_v26 }
 0x261   :  { %v2148_v32 = vpop.permute.xlu2 %2147 }
 0x262   :  { %2921 = vmatpush.xpose.msk.msrb.mxu1 %vm100_vm1, %v2336_v25  ;;  %2914 = vmatmul.msk.f32.vlgmr.msra.gmra.mxu0 %vm100_vm1, %v2148_v32 }
 0x266   :  { %949 = vmax.xlane.f32.xlu0 %v948_v33 }
 0x269   :  { %v2176_v37 = vpop.permute.xlu2 %2175 }
 0x26a   :  { %2916 = vmatmul.msk.f32.vlgmr.msra.gmra.mxu1 %vm100_vm1, %v2176_v37  ;;  %2920 = vmatmul.msk.f32.vlgmr.msrb.gmra.mxu0 %vm100_vm1, %v2306_v36 }
 0x26e   :  { %1107 = vmax.xlane.f32.xlu0 %v1106_v40  ;;  %v2972_v40 = vunpack.i.l.bf16 %v3404_v54 }
 0x271   :  { %v2466_v45 = vpop.permute.xlu2 %2465 }
 0x272   :  { %2922 = vmatmul.msk.f32.vlgmr.msrb.gmra.mxu1 %vm100_vm1, %v2334_v44  ;;  %2925 = vmatpush.xpose.msk.msra.mxu0 %vm100_vm1, %v2466_v45  ;;  %v2492_v44 = vpop.permute.xlu0 %2491 }
 0x275   :  { %2926 = vmatmul.msk.f32.vlgmr.msra.gmra.mxu0 %vm100_vm1, %v2464_v49 }
 0x276   :  { %1265 = vmax.xlane.f32.xlu0 %v1264_v50 }
 0x27e   :  { %1578 = vmax.xlane.f32.xlu0 %v1577_v55 }
 0x280   :  { %630 = vmax.xlane.f32.xlu2 %v629_v58  ;;  %v3591_v60 = vpop.xlane.xlu1 %484 }
 0x281   :  { %vm494_vm12 = vweird.f32 %v3591_v60 }
 0x286   :  { %1581 = vmax.xlane.f32.xlu0 %v1580_v28 }
 0x288   :  { %788 = vmax.xlane.f32.xlu2 %v787_v56  ;;  %v634_v0 = vpop.xlane.xlu1 %633 }
 0x289   :  { %v636_v3 = vsub.f32 %v3500_v38, %v634_v0  ;;  %v2973_v0 = vunpack.i.h.bf16 %v3404_v54 }
 0x28b   :  { %v639_v4 = vmul.f32 1.442695, %v636_v3 }
 0x28d   :  { %3038 = vpow2.f32 %v639_v4 }
 0x293   :  { %v3603_v5 = vpop.eup %3038 }
 0x294   :  { %v644_v7 = vsel %vm154_vm2, %v3603_v5, 0.0 }
 0x295   :  { %645 = vadd.xlane.f32.xlu0 %v644_v7 }
 0x29d   :  { %1739 = vmax.xlane.f32.xlu0 %v1738_v9 }
 0x2a0   :  { %2975 = vrot.lane.b32.xlu2 %v3324_v24, %s3181_s7 }
 0x2a3   :  { %v1884_v11 = vpop.f32.mrf.mxu1 }
 0x2a4   :  { %v3613_v38 = vmul.f32 0.5, %v1884_v11 }
 0x2a6   :  { %v1892_v12 = vsel %vm154_vm2, %v3613_v38, -inf }
 0x2a7   :  { %1893 = vmax.xlane.f32.xlu0 %v1892_v12 }
 0x2aa   :  { %v169_v13 = vpop.xlane.xlu2 %168 }
 0x2ab   :  { %3040 = vrcp.f32 %v169_v13  ;;  %v184_v19 = vand.u32 2147483648, %v169_v13  ;;  %v182_v23 = vand.u32 2147483647, %v169_v13  ;;  %vm178_vm4 = vweird.f32 %v169_v13 }
 0x2ad   :  { %v185_v26 = vor.u32 1.1754944e-38, %v184_v19  ;;  %vm183_vm6 = vcmp.eq.f32.partialorder %v182_v23, 8.507059e+37  ;;  %v947_v23 = vpop.xlane.xlu1 %946 }
 0x2b1   :  { %v3041_v14 = vpop.eup %3040 }
 0x2b2   :  { %v174_v15 = vmul.f32 %v3041_v14, %v169_v13  ;;  %v172_v16 = vpop.xlane.xlu2 %171  ;;  %vm179_vm3 = vweird.f32 %v3041_v14 }
 0x2b3   :  { %3042 = vrcp.f32 %v172_v16  ;;  %vm180_vm5 = vmor %vm178_vm4, %vm179_vm3  ;;  %v199_v45 = vand.u32 2147483648, %v172_v16  ;;  %v197_v50 = vand.u32 2147483647, %v172_v16  ;;  %vm193_vm8 = vweird.f32 %v172_v16 }
 0x2b4   :  { %v175_v17 = vsub.f32 1.0, %v174_v15 }
 0x2b5   :  { %v200_v57 = vor.u32 1.1754944e-38, %v199_v45  ;;  %vm198_vm10 = vcmp.eq.f32.partialorder %v197_v50, 8.507059e+37  ;;  %v1105_v50 = vpop.xlane.xlu1 %1104 }
 0x2b6   :  { %v176_v20 = vmul.f32 %v3041_v14, %v175_v17 }
 0x2b8   :  { %v177_v10 = vadd.f32 %v3041_v14, %v176_v20 }
 0x2b9   :  { %v3043_v25 = vpop.eup %3042 }
 0x2ba   :  { %v189_v30 = vmul.f32 %v3043_v25, %v172_v16  ;;  %v2494_v32 = vpop.permute.xlu2 %2493  ;;  %v181_v33 = vsel %vm180_vm5, %v3041_v14, %v177_v10  ;;  %vm194_vm7 = vweird.f32 %v3043_v25 }
 0x2bb   :  { %2985 = vrot.lane.b32.xlu0 %v3324_v24, %s3183_s15  ;;  %2927 = vmatpush.xpose.msk.msra.mxu1 %vm100_vm1, %v2494_v32  ;;  %v186_v36 = vsel %vm183_vm6, %v185_v26, %v181_v33  ;;  %vm195_vm9 = vmor %vm193_vm8, %vm194_vm7 }
 0x2bc   :  { %v190_v37 = vsub.f32 1.0, %v189_v30  ;;  %v187_v39 = vmul.f32 %v3524_v61, %v186_v36  ;;  %v3625_v61 = vmul.f32 0.5, %v3576_v46  ;;  %v951_v30 = vsub.f32 %v3504_v43, %v947_v23 }
 0x2be   :  { %v191_v49 = vmul.f32 %v3043_v25, %v190_v37  ;;  %2839 = vmatmul.msk.f32.vlgmr.msrb.gmra.mxu2 %vm154_vm2, %v187_v39  ;;  %2928 = vmatmul.msk.f32.vlgmr.msra.gmra.mxu1 %vm100_vm1, %v2492_v44  ;;  %v1422_v3 = vsel %vm154_vm2, %v3625_v61, -inf  ;;  %v953_v36 = vmul.f32 1.442695, %v951_v30 }
 0x2bf   :  { %382 = vmatpush.msrb.mxu2 %v2972_v40 }
 0x2c0   :  { %v192_v55 = vadd.f32 %v3043_v25, %v191_v49 }
 0x2c2   :  { %v196_v58 = vsel %vm195_vm9, %v3043_v25, %v192_v55 }
 0x2c3   :  { %v201_v28 = vsel %vm198_vm10, %v200_v57, %v196_v58 }
 0x2c4   :  { %v202_v56 = vmul.f32 %v3532_v2, %v201_v28  ;;  %v1109_v28 = vsub.f32 %v3508_v47, %v1105_v50 }
 0x2c6   :  { %2840 = vmatmul.msk.f32.vlgmr.msrb.gmra.mxu3 %vm154_vm2, %v202_v56  ;;  %2842 = vmatmul.msk.f32.vlgmr.msra.gmra.mxu2 %vm100_vm1, %v3372_v27  ;;  %v1111_v56 = vmul.f32 1.442695, %v1109_v28 }
 0x2c7   :  { %408 = vmatpush.msrb.mxu3 %v2973_v0  ;;  %v1263_v0 = vpop.xlane.xlu1 %1262 }
 0x2c9   :  { %1423 = vmax.xlane.f32.xlu2 %v1422_v3  ;;  %v3634_v4 = vpop.xlane.xlu0 %487 }
 0x2ca   :  { %vm509_vm3 = vweird.f32 %v3634_v4 }
 0x2ce   :  { %2844 = vmatmul.msk.f32.vlgmr.msra.gmra.mxu3 %vm100_vm1, %v3399_v48 }
 0x2d1   :  { %v792_v46 = vpop.xlane.xlu0 %791 }
 0x2d2   :  { %v2014_v7 = vpop.f32.mrf.mxu0  ;;  %v794_v2 = vsub.f32 %v3553_v22, %v792_v46  ;;  %v1267_v46 = vsub.f32 %v3515_v53, %v1263_v0 }
 0x2d3   :  { %v3639_v54 = vmul.f32 0.5, %v2014_v7 }
 0x2d4   :  { %v797_v27 = vmul.f32 1.442695, %v794_v2  ;;  %v1269_v2 = vmul.f32 1.442695, %v1267_v46 }
 0x2d5   :  { %v2047_v29 = vsel %vm154_vm2, %v3639_v54, -inf }
 0x2d6   :  { %2048 = vmax.xlane.f32.xlu1 %v2047_v29  ;;  %3044 = vpow2.f32 %v797_v27 }
 0x2d9   :  { %v950_v9 = vpop.xlane.xlu0 %949 }
 0x2da   :  { %v2042_v11 = vpop.f32.mrf.mxu1  ;;  %v952_v12 = vsub.f32 %v3561_v31, %v950_v9 }
 0x2db   :  { %v3644_v13 = vmul.f32 0.5, %v2042_v11 }
 0x2dc   :  { %v955_v14 = vmul.f32 1.442695, %v952_v12  ;;  %v3648_v22 = vpop.eup %3044 }
 0x2dd   :  { %v2050_v48 = vsel %vm154_vm2, %v3644_v13, -inf  ;;  %v802_v15 = vsel %vm154_vm2, %v3648_v22, 0.0 }
 0x2de   :  { %2051 = vmax.xlane.f32.xlu1 %v2050_v48  ;;  %3046 = vpow2.f32 %v955_v14  ;;  %v1421_v14 = vpop.xlane.xlu1 %1420 }
 0x2df   :  { %v2172_v37 = vpop.f32.mrf.mxu0 }
 0x2e0   :  { %v3665_v45 = vmul.f32 0.5, %v2172_v37 }
 0x2e1   :  { %2980 = vrot.lane.b32.xlu2 %v3324_v24, %s3182_s0  ;;  %v1108_v39 = vpop.xlane.xlu0 %1107 }
 0x2e2   :  { %v2205_v55 = vsel %vm154_vm2, %v3665_v45, -inf }
 0x2e4   :  { %v3654_v16 = vpop.eup %3046 }
 0x2e5   :  { %803 = vadd.xlane.f32.xlu0 %v802_v15  ;;  %v960_v31 = vsel %vm154_vm2, %v3654_v16, 0.0 }
 0x2e7   :  { %v2200_v12 = vpop.f32.mrf.mxu1 }
 0x2e8   :  { %v3693_v15 = vmul.f32 0.5, %v2200_v12 }
 0x2e9   :  { %v1266_v27 = vpop.xlane.xlu0 %1265 }
 0x2ea   :  { %v1268_v11 = vsub.f32 %v3572_v42, %v1266_v27 }
 0x2ec   :  { %v1271_v48 = vmul.f32 1.442695, %v1268_v11 }
 0x2ed   :  { %961 = vadd.xlane.f32.xlu0 %v960_v31  ;;  %v1425_v31 = vsub.f32 %v3522_v59, %v1421_v14 }
 0x2ef   :  { %v2358_v59 = vpop.f32.mrf.mxu1 }
 0x2f3   :  { %v631_v17 = vpop.xlane.xlu2 %630 }
 0x2f4   :  { %v635_v19 = vsub.f32 %v3585_v52, %v631_v17  ;;  %v2208_v17 = vsel %vm154_vm2, %v3693_v15, -inf }
 0x2f6   :  { %v637_v20 = vmul.f32 1.442695, %v635_v19  ;;  %v1427_v19 = vmul.f32 1.442695, %v1425_v31 }
 0x2f8   :  { %3048 = vpow2.f32 %v637_v20 }
 0x2fb   :  { %v789_v10 = vpop.xlane.xlu2 %788 }
 0x2fc   :  { %v793_v25 = vsub.f32 %v3596_v63, %v789_v10  ;;  %v1110_v63 = vsub.f32 %v3566_v35, %v1108_v39 }
 0x2fe   :  { %v3660_v26 = vpop.eup %3048  ;;  %v795_v32 = vmul.f32 1.442695, %v793_v25  ;;  %v1113_v57 = vmul.f32 1.442695, %v1110_v63  ;;  %v2330_v25 = vpop.f32.mrf.mxu0 }
 0x2ff   :  { %v641_v33 = vsel %vm154_vm2, %v3660_v26, 0.0  ;;  %v3748_v31 = vmul.f32 0.5, %v2330_v25 }
 0x300   :  { %3050 = vpow2.f32 %v795_v32  ;;  %642 = vadd.xlane.f32.xlu1 %v641_v33  ;;  %v3708_v32 = vmul.f32 0.5, %v2358_v59 }
 0x301   :  { %3052 = vpow2.f32 %v953_v36 }
 0x302   :  { %3054 = vpow2.f32 %v1113_v57  ;;  %v2366_v37 = vsel %vm154_vm2, %v3708_v32, -inf }
 0x303   :  { %v2976_v52 = vpop.permute.xlu2 %2975  ;;  %3056 = vpow2.f32 %v1111_v56  ;;  %v3729_v56 = vpop.xlane.xlu1 %1736 }
 0x304   :  { %v2978_v40 = vunpack.i.h.bf16 %v2976_v52  ;;  %v2977_v44 = vunpack.i.l.bf16 %v2976_v52  ;;  %3058 = vpow2.f32 %v1269_v2 }
 0x305   :  { %3060 = vpow2.f32 %v1271_v48 }
 0x306   :  { %v3667_v49 = vpop.eup %3050  ;;  %540 = vmatpush.msra.mxu2 %v2977_v44  ;;  %566 = vmatpush.msra.mxu3 %v2978_v40  ;;  %3062 = vpow2.f32 %v1427_v19  ;;  %v2488_v39 = vpop.f32.mrf.mxu0  ;;  %v2363_v19 = vsel %vm154_vm2, %v3748_v31, -inf }
 0x307   :  { %v799_v43 = vsel %vm154_vm2, %v3667_v49, 0.0  ;;  %v3674_v58 = vpop.eup %3052  ;;  %v3715_v63 = vmul.f32 0.5, %v2488_v39 }
 0x308   :  { %800 = vadd.xlane.f32.xlu1 %v799_v43  ;;  %v957_v35 = vsel %vm154_vm2, %v3674_v58, 0.0  ;;  %v3679_v3 = vpop.eup %3054 }
 0x309   :  { %v1118_v7 = vsel %vm154_vm2, %v3679_v3, 0.0  ;;  %v3684_v29 = vpop.eup %3056 }
 0x30a   :  { %2206 = vmax.xlane.f32.xlu2 %v2205_v55  ;;  %v1115_v47 = vsel %vm154_vm2, %v3684_v29, 0.0  ;;  %v3688_v9 = vpop.eup %3058 }
 0x30b   :  { %v1273_v53 = vsel %vm154_vm2, %v3688_v9, 0.0  ;;  %v3698_v20 = vpop.eup %3060  ;;  %v1891_v46 = vpop.xlane.xlu1 %1890 }
 0x30c   :  { %v1276_v42 = vsel %vm154_vm2, %v3698_v20, 0.0  ;;  %v3702_v23 = vpop.eup %3062  ;;  %v1895_v39 = vsub.f32 %v3538_v6, %v1891_v46 }
 0x30d   :  { %v1431_v10 = vsel %vm154_vm2, %v3702_v23, 0.0 }
 0x310   :  { %958 = vadd.xlane.f32.xlu1 %v957_v35 }
 0x318   :  { %1119 = vadd.xlane.f32.xlu1 %v1118_v7 }
 0x320   :  { %1116 = vadd.xlane.f32.xlu1 %v1115_v47  ;;  %v1579_v47 = vpop.xlane.xlu0 %1578 }
 0x328   :  { %1274 = vadd.xlane.f32.xlu1 %v1273_v53  ;;  %v1582_v11 = vpop.xlane.xlu0 %1581  ;;  %v1583_v53 = vsub.f32 %v3582_v51, %v1579_v47 }
 0x32a   :  { %v1585_v14 = vmul.f32 1.442695, %v1583_v53 }
 0x330   :  { %2209 = vmax.xlane.f32.xlu1 %v2208_v17  ;;  %v3746_v48 = vpop.xlane.xlu0 %645  ;;  %v1584_v17 = vsub.f32 %v3593_v62, %v1582_v11 }
 0x338   :  { %1277 = vadd.xlane.f32.xlu1 %v1276_v42  ;;  %v1740_v59 = vpop.xlane.xlu0 %1739 }
 0x339   :  { %v1742_v51 = vsub.f32 %v3607_v8, %v1740_v59 }
 0x33c   :  { %v1424_v33 = vpop.xlane.xlu2 %1423 }
 0x33d   :  { %v1426_v36 = vsub.f32 %v3625_v61, %v1424_v33  ;;  %v2521_v61 = vsel %vm154_vm2, %v3715_v63, -inf }
 0x33f   :  { %v1429_v40 = vmul.f32 1.442695, %v1426_v36  ;;  %v1745_v36 = vmul.f32 1.442695, %v1742_v51 }
 0x340   :  { %1432 = vadd.xlane.f32.xlu1 %v1431_v10  ;;  %v1587_v10 = vmul.f32 1.442695, %v1584_v17 }
 0x341   :  { %v3706_v30 = vpop.f32.mrf.mxu2  ;;  %3064 = vpow2.f32 %v1429_v40 }
 0x342   :  { %4599 = vst [vmem:[#allocation2_spill] sm:$0xff] %v3706_v30  ;;  %3066 = vpow2.f32 %v1585_v14 }
 0x343   :  { %3068 = vpow2.f32 %v1587_v10 }
 0x344   :  { %3070 = vpow2.f32 %v1745_v36  ;;  %v3783_v53 = vpop.permute.xlu2 %2980 }
 0x347   :  { %v3725_v28 = vpop.eup %3064 }
 0x348   :  { %2367 = vmax.xlane.f32.xlu1 %v2366_v37  ;;  %v1434_v0 = vsel %vm154_vm2, %v3725_v28, 0.0  ;;  %v3755_v33 = vpop.eup %3066 }
 0x349   :  { %v3713_v52 = vpop.f32.mrf.mxu3  ;;  %v280_v44 = vpop.f32.mrf.mxu2  ;;  %v1589_v25 = vsel %vm154_vm2, %v3755_v33, 0.0 }
 0x34a   :  { %4600 = vst [vmem:[#allocation3_spill] sm:$0xff] %v3713_v52  ;;  %v3717_v43 = vmul.f32 0.5, %v280_v44  ;;  %v3735_v7 = vpop.xlane.xlu1 %2048  ;;  %v3762_v62 = vpop.eup %3068  ;;  %v1897_v44 = vmul.f32 1.442695, %v1895_v39 }
 0x34b   :  { %v1592_v40 = vsel %vm154_vm2, %v3762_v62, 0.0 }
 0x34c   :  { %v313_v50 = vsel %vm154_vm2, %v3717_v43, -inf  ;;  %3072 = vpow2.f32 %v1897_v44 }
 0x34d   :  { %314 = vmax.xlane.f32.xlu0 %v313_v50  ;;  %v1894_v50 = vpop.xlane.xlu0 %1893 }
 0x350   :  { %2522 = vmax.xlane.f32.xlu1 %v2521_v61  ;;  %v3767_v61 = vpop.eup %3070 }
 0x351   :  { %v308_v55 = vpop.f32.mrf.mxu3  ;;  %4601 = vst [vmem:[#allocation4_spill] sm:$0xff] %v3767_v61 }
 0x352   :  { %v3723_v57 = vmul.f32 0.5, %v308_v55  ;;  %v3739_v2 = vpop.xlane.xlu1 %2051  ;;  %v1750_v55 = vsel %vm154_vm2, %v3767_v61, 0.0 }
 0x354   :  { %v316_v35 = vsel %vm154_vm2, %v3723_v57, -inf }
 0x355   :  { %317 = vmax.xlane.f32.xlu2 %v316_v35  ;;  %v3773_v35 = vpop.permute.xlu0 %2985 }
 0x358   :  { %1435 = vadd.xlane.f32.xlu1 %v1434_v0  ;;  %v3775_v0 = vpop.eup %3072 }
 0x359   :  { %4602 = vst [vmem:[#allocation5_spill] sm:$0xff] %v3775_v0  ;;  %v1901_v46 = vsel %vm154_vm2, %v3775_v0, 0.0 }
 0x35d   :  { %v3781_v47 = vpop.xlane.xlu0 %803 }
 0x361   :  { %2990 = vrot.lane.b32.xlu0 %v3324_v24, %s3184_s2 }
 0x365   :  { %v3785_v14 = vpop.xlane.xlu0 %961 }
 0x36d   :  { %2995 = vrot.lane.b32.xlu2 %v3324_v24, %s3185_s23 }
 0x373   :  { %v3741_v27 = vpop.xlane.xlu1 %642 }
 0x37b   :  { %v3744_v12 = vpop.xlane.xlu1 %800 }
 0x383   :  { %v3753_v42 = vpop.xlane.xlu1 %958 }
 0x38b   :  { %2364 = vmax.xlane.f32.xlu0 %v2363_v19  ;;  %v3760_v37 = vpop.xlane.xlu1 %1119  ;;  %v2207_v19 = vpop.xlane.xlu2 %2206 }
 0x393   :  { %1590 = vadd.xlane.f32.xlu0 %v1589_v25  ;;  %v3769_v8 = vpop.xlane.xlu1 %1116 }
 0x39b   :  { %1593 = vadd.xlane.f32.xlu0 %v1592_v40  ;;  %v3777_v6 = vpop.xlane.xlu1 %1274 }
 0x3a3   :  { %1751 = vadd.xlane.f32.xlu0 %v1750_v55  ;;  %v2210_v11 = vpop.xlane.xlu1 %2209 }
 0x3ab   :  { %1902 = vadd.xlane.f32.xlu0 %v1901_v46  ;;  %v3787_v17 = vpop.xlane.xlu1 %1277  ;;  %v2516_v46 = vpop.f32.mrf.mxu1 }
 0x3ac   :  { %v3799_v52 = vmul.f32 0.5, %v2516_v46 }
 0x3b3   :  { %v3792_v36 = vpop.xlane.xlu1 %1432 }
 0x3bf   :  { %3010 = vrot.lane.b32.xlu0 %v3324_v24, %s3186_s11 }
 0x3c0   :  { %v315_v10 = vpop.xlane.xlu0 %314 }
 0x3c1   :  { %v319_v59 = vsub.f32 %v3717_v43, %v315_v10  ;;  %v2368_v43 = vpop.xlane.xlu1 %2367 }
 0x3c3   :  { %v321_v51 = vmul.f32 1.442695, %v319_v59  ;;  %v2054_v59 = vsub.f32 %v3644_v13, %v3739_v2  ;;  %v1896_v2 = vsub.f32 %v3613_v38, %v1894_v50 }
 0x3c5   :  { %3074 = vpow2.f32 %v321_v51  ;;  %v2057_v51 = vmul.f32 1.442695, %v2054_v59  ;;  %v1899_v59 = vmul.f32 1.442695, %v1896_v2 }
 0x3c8   :  { %v318_v25 = vpop.xlane.xlu2 %317 }
 0x3c9   :  { %v320_v39 = vsub.f32 %v3723_v57, %v318_v25  ;;  %v2524_v57 = vsel %vm154_vm2, %v3799_v52, -inf  ;;  %v2523_v25 = vpop.xlane.xlu1 %2522 }
 0x3cb   :  { %v323_v40 = vmul.f32 1.442695, %v320_v39  ;;  %v3795_v44 = vpop.eup %3074  ;;  %v2527_v39 = vsub.f32 %v3715_v63, %v2523_v25  ;;  %v1741_v63 = vsub.f32 %v3530_v1, %v3729_v56  ;;  %v2211_v56 = vsub.f32 %v3665_v45, %v2207_v19 }
 0x3cc   :  { %v325_v55 = vsel %vm154_vm2, %v3795_v44, 0.0 }
 0x3cd   :  { %3076 = vpow2.f32 %v323_v40  ;;  %326 = vadd.xlane.f32.xlu1 %v325_v55  ;;  %v2529_v40 = vmul.f32 1.442695, %v2527_v39 }
 0x3ce   :  { %3078 = vpow2.f32 %v2057_v51  ;;  %v2053_v51 = vsub.f32 %v3639_v54, %v3735_v7  ;;  %v2213_v7 = vmul.f32 1.442695, %v2211_v56 }
 0x3cf   :  { %3080 = vpow2.f32 %v2529_v40 }
 0x3d0   :  { %v2055_v39 = vmul.f32 1.442695, %v2053_v51 }
 0x3d3   :  { %v3801_v30 = vpop.eup %3076  ;;  %v3829_v25 = vpop.permute.xlu0 %2990 }
 0x3d4   :  { %v328_v10 = vsel %vm154_vm2, %v3801_v30, 0.0  ;;  %v3810_v55 = vpop.eup %3078 }
 0x3d5   :  { %329 = vadd.xlane.f32.xlu2 %v328_v10  ;;  %2525 = vmax.xlane.f32.xlu1 %v2524_v57  ;;  %4603 = vst [vmem:[#allocation6_spill] sm:$0xff] %v3810_v55  ;;  %v2062_v46 = vsel %vm154_vm2, %v3810_v55, 0.0  ;;  %v3816_v10 = vpop.eup %3080  ;;  %v1743_v57 = vmul.f32 1.442695, %v1741_v63  ;;  %v2370_v63 = vsub.f32 %v3708_v32, %v2368_v43 }
 0x3d6   :  { %4604 = vst [vmem:[#allocation7_spill] sm:$0xff] %v3816_v10  ;;  %v2533_v13 = vsel %vm154_vm2, %v3816_v10, 0.0 }
 0x3d7   :  { %3082 = vpow2.f32 %v1743_v57  ;;  %v2373_v57 = vmul.f32 1.442695, %v2370_v63 }
 0x3d8   :  { %3084 = vpow2.f32 %v1899_v59 }
 0x3d9   :  { %3086 = vpow2.f32 %v2055_v39 }
 0x3dd   :  { %v3832_v40 = vpop.eup %3082 }
 0x3de   :  { %4605 = vst [vmem:[#allocation8_spill] sm:$0xff] %v3832_v40  ;;  %v3835_v38 = vpop.eup %3084  ;;  %v1747_v50 = vsel %vm154_vm2, %v3832_v40, 0.0 }
 0x3df   :  { %4606 = vst [vmem:[#allocation9_spill] sm:$0xff] %v3835_v38 }
 0x3e9   :  { %2063 = vadd.xlane.f32.xlu0 %v2062_v46 }
 0x3ed   :  { %3000 = vrot.lane.b32.xlu2 %v3324_v24, %s3187_s12 }
 0x3ee   :  { %3005 = vrot.lane.b32.xlu1 %v3324_v24, %s3188_s13  ;;  %v2212_v24 = vsub.f32 %v3693_v15, %v2210_v11  ;;  %v1904_v15 = vsel %vm154_vm2, %v3835_v38, 0.0  ;;  %v3842_v11 = vpop.eup %3086 }
 0x3ef   :  { %4607 = vst [vmem:[#allocation10_spill] sm:$0xff] %v3842_v11  ;;  %v2059_v19 = vsel %vm154_vm2, %v3842_v11, 0.0 }
 0x3f0   :  { %v2215_v1 = vmul.f32 1.442695, %v2212_v24 }
 0x3f1   :  { %2534 = vadd.xlane.f32.xlu0 %v2533_v13 }
 0x3f2   :  { %3088 = vpow2.f32 %v2215_v1  ;;  %v3864_v1 = vpop.xlane.xlu1 %1435 }
 0x3f3   :  { %3090 = vpow2.f32 %v2213_v7 }
 0x3f8   :  { %v3844_v45 = vpop.eup %3088 }
 0x3f9   :  { %4608 = vst [vmem:[#allocation11_spill] sm:$0xff] %v3844_v45  ;;  %v3851_v2 = vpop.eup %3090 }
 0x3fa   :  { %4609 = vst [vmem:[#allocation12_spill] sm:$0xff] %v3851_v2  ;;  %v2217_v51 = vsel %vm154_vm2, %v3851_v2, 0.0 }
 0x3fe   :  { %v2365_v46 = vpop.xlane.xlu0 %2364 }
 0x3ff   :  { %v2369_v54 = vsub.f32 %v3748_v31, %v2365_v46  ;;  %v2220_v31 = vsel %vm154_vm2, %v3844_v45, 0.0  ;;  %v3014_v46 = vpack.i.bf16 %v3450_v21, %v3392_v41 }
 0x401   :  { %v2371_v13 = vmul.f32 1.442695, %v2369_v54  ;;  %v3871_v54 = vpop.permute.xlu2 %2995 }
 0x403   :  { %3092 = vpow2.f32 %v2371_v13 }
 0x404   :  { %3094 = vpow2.f32 %v2373_v57 }
 0x405   :  { %2411 = vrot.lane.b32.xlu0 %v3392_v41, %s3165_s24  ;;  %3096 = vrcp.f32 %v3591_v60 }
 0x406   :  { %3098 = vrcp.f32 %v3634_v4 }
 0x409   :  { %v3853_v59 = vpop.eup %3092 }
 0x40a   :  { %4610 = vst [vmem:[#allocation13_spill] sm:$0xff] %v3853_v59  ;;  %v2375_v24 = vsel %vm154_vm2, %v3853_v59, 0.0  ;;  %v3859_v32 = vpop.eup %3094 }
 0x40b   :  { %4611 = vst [vmem:[#allocation14_spill] sm:$0xff] %v3859_v32  ;;  %v2378_v43 = vsel %vm154_vm2, %v3859_v32, 0.0  ;;  %v3097_v39 = vpop.eup %3096 }
 0x40c   :  { %v490_v56 = vmul.f32 %v3097_v39, %v3591_v60  ;;  %v3873_v7 = vpop.eup %3098  ;;  %vm495_vm11 = vweird.f32 %v3097_v39 }
 0x40d   :  { %vm3887_vm13 = vmor %vm494_vm12, %vm495_vm11  ;;  %vm510_vm5 = vweird.f32 %v3873_v7 }
 0x40e   :  { %vm3922_vm8 = vmor %vm509_vm3, %vm510_vm5  ;;  %vm652_vm3 = vweird.f32 %v3741_v27 }
 0x416   :  { %1748 = vadd.xlane.f32.xlu2 %v1747_v50  ;;  %v491_v50 = vsub.f32 1.0, %v490_v56 }
 0x418   :  { %1905 = vadd.xlane.f32.xlu1 %v1904_v15  ;;  %v492_v13 = vmul.f32 %v3097_v39, %v491_v50 }
 0x41a   :  { %v493_v63 = vadd.f32 %v3097_v39, %v492_v13  ;;  %v498_v13 = vand.u32 2147483647, %v3591_v60 }
 0x41c   :  { %vm499_vm15 = vcmp.eq.f32.partialorder %v498_v13, 8.507059e+37  ;;  %v2982_v13 = vunpack.i.l.bf16 %v3783_v53 }
 0x41e   :  { %2060 = vadd.xlane.f32.xlu2 %v2059_v19  ;;  %v505_v19 = vmul.f32 %v3873_v7, %v3634_v4 }
 0x420   :  { %2221 = vadd.xlane.f32.xlu1 %v2220_v31  ;;  %v500_v31 = vand.u32 2147483648, %v3591_v60 }
 0x422   :  { %v501_v45 = vor.u32 1.1754944e-38, %v500_v31 }
 0x426   :  { %2218 = vadd.xlane.f32.xlu2 %v2217_v51  ;;  %v506_v51 = vsub.f32 1.0, %v505_v19  ;;  %v497_v19 = vsel %vm3887_vm13, %v3097_v39, %v493_v63 }
 0x427   :  { %v502_v39 = vsel %vm499_vm15, %v501_v45, %v497_v19 }
 0x428   :  { %2376 = vadd.xlane.f32.xlu1 %v2375_v24  ;;  %v507_v55 = vmul.f32 %v3873_v7, %v506_v51 }
 0x42a   :  { %v508_v51 = vadd.f32 %v3873_v7, %v507_v55 }
 0x430   :  { %2379 = vadd.xlane.f32.xlu1 %v2378_v43 }
 0x43e   :  { %3015 = vrot.lane.b32.xlu2 %v3014_v46, %s3159_s16 }
 0x440   :  { %v327_v15 = vpop.xlane.xlu1 %326 }
 0x441   :  { %3100 = vrcp.f32 %v327_v15  ;;  %v342_v11 = vand.u32 2147483648, %v327_v15  ;;  %v340_v60 = vand.u32 2147483647, %v327_v15  ;;  %vm336_vm4 = vweird.f32 %v327_v15 }
 0x442   :  { %3102 = vrcp.f32 %v3741_v27 }
 0x443   :  { %3104 = vrcp.f32 %v3746_v48  ;;  %vm341_vm7 = vcmp.eq.f32.partialorder %v340_v60, 8.507059e+37 }
 0x446   :  { %3020 = vrot.lane.b32.xlu2 %v3014_v46, %s3162_s17 }
 0x447   :  { %v3101_v57 = vpop.eup %3100 }
 0x448   :  { %v3881_v24 = vpop.xlane.xlu2 %329  ;;  %v332_v43 = vmul.f32 %v3101_v57, %v327_v15  ;;  %v2526_v56 = vpop.xlane.xlu1 %2525  ;;  %vm337_vm14 = vweird.f32 %v3101_v57 }
 0x449   :  { %3106 = vrcp.f32 %v3881_v24  ;;  %v3885_v50 = vpop.eup %3102  ;;  %v2528_v32 = vsub.f32 %v3799_v52, %v2526_v56  ;;  %vm338_vm6 = vmor %vm336_vm4, %vm337_vm14  ;;  %v513_v56 = vand.u32 2147483647, %v3634_v4  ;;  %vm351_vm10 = vweird.f32 %v3881_v24 }
 0x44a   :  { %v3893_v59 = vpop.eup %3104  ;;  %v333_v2 = vsub.f32 1.0, %v332_v43  ;;  %3108 = vrcp.f32 %v3744_v12  ;;  %v648_v0 = vmul.f32 %v3885_v50, %v3741_v27  ;;  %vm653_vm14 = vweird.f32 %v3885_v50 }
 0x44b   :  { %v2531_v38 = vmul.f32 1.442695, %v2528_v32  ;;  %v663_v52 = vmul.f32 %v3893_v59, %v3746_v48  ;;  %v515_v32 = vand.u32 2147483648, %v3634_v4  ;;  %vm514_vm11 = vcmp.eq.f32.partialorder %v513_v56, 8.507059e+37  ;;  %vm3966_vm5 = vmor %vm652_vm3, %vm653_vm14 }
 0x44c   :  { %v334_v61 = vmul.f32 %v3101_v57, %v333_v2  ;;  %v343_v2 = vor.u32 1.1754944e-38, %v342_v11  ;;  %v649_v43 = vsub.f32 1.0, %v648_v0  ;;  %v357_v11 = vand.u32 2147483648, %v3881_v24 }
 0x44d   :  { %3110 = vpow2.f32 %v2531_v38  ;;  %v664_v45 = vsub.f32 1.0, %v663_v52  ;;  %vm668_vm15 = vweird.f32 %v3893_v59  ;;  %vm667_vm4 = vweird.f32 %v3746_v48 }
 0x44e   :  { %3025 = vrot.lane.b32.xlu2 %v3014_v46, %s3167_s9  ;;  %v335_v63 = vadd.f32 %v3101_v57, %v334_v61  ;;  %3112 = vrcp.f32 %v3781_v47  ;;  %v650_v60 = vmul.f32 %v3885_v50, %v649_v43  ;;  %v673_v0 = vand.u32 2147483648, %v3746_v48 }
 0x44f   :  { %v3107_v10 = vpop.eup %3106  ;;  %3114 = vrcp.f32 %v3753_v42  ;;  %vm968_vm3 = vweird.f32 %v3753_v42 }
 0x450   :  { %v347_v31 = vmul.f32 %v3107_v10, %v3881_v24  ;;  %v339_v38 = vsel %vm338_vm6, %v3101_v57, %v335_v63  ;;  %v3909_v46 = vpop.eup %3108  ;;  %vm352_vm9 = vweird.f32 %v3107_v10  ;;  %v355_v57 = vand.u32 2147483647, %v3881_v24  ;;  %vm3984_vm6 = vmor %vm667_vm4, %vm668_vm15 }
 0x451   :  { %v344_v61 = vsel %vm341_vm7, %v343_v2, %v339_v38  ;;  %v806_v52 = vmul.f32 %v3909_v46, %v3744_v12  ;;  %v516_v63 = vor.u32 1.1754944e-38, %v515_v32  ;;  %v665_v2 = vmul.f32 %v3893_v59, %v664_v45  ;;  %vm353_vm12 = vmor %vm351_vm10, %vm352_vm9 }
 0x452   :  { %v348_v15 = vsub.f32 1.0, %v347_v31  ;;  %v345_v19 = vmul.f32 %v3795_v44, %v344_v61  ;;  %v512_v44 = vsel %vm3922_vm8, %v3873_v7, %v508_v51  ;;  %3116 = vrcp.f32 %v3785_v14 }
 0x453   :  { %v3916_v40 = vpop.eup %3110  ;;  %v358_v7 = vor.u32 1.1754944e-38, %v357_v11  ;;  %v517_v43 = vsel %vm514_vm11, %v516_v63, %v512_v44  ;;  %vm356_vm13 = vcmp.eq.f32.partialorder %v355_v57, 8.507059e+37  ;;  %v503_v38 = vmul.f32 %v3494_v34, %v502_v39 }
 0x454   :  { %v349_v55 = vmul.f32 %v3107_v10, %v348_v15  ;;  %2845 = vmatmul.msk.f32.vlgmr.msrb.gmra.mxu2 %vm154_vm2, %v345_v19  ;;  %v2536_v4 = vsel %vm154_vm2, %v3916_v40, 0.0  ;;  %v3943_v51 = vpop.eup %3112  ;;  %v651_v24 = vadd.f32 %v3885_v50, %v650_v60  ;;  %v807_v45 = vsub.f32 1.0, %v806_v52  ;;  %v3959_v19 = vpop.xlane.xlu0 %1590 }
 0x455   :  { %698 = vmatpush.msrb.mxu2 %v2982_v13  ;;  %2537 = vadd.xlane.f32.xlu1 %v2536_v4  ;;  %v3948_v15 = vpop.eup %3114  ;;  %v666_v56 = vadd.f32 %v3893_v59, %v665_v2  ;;  %v658_v13 = vand.u32 2147483648, %v3741_v27  ;;  %v821_v34 = vmul.f32 %v3943_v51, %v3781_v47  ;;  %v656_v39 = vand.u32 2147483647, %v3741_v27 }
 0x456   :  { %v350_v31 = vadd.f32 %v3107_v10, %v349_v55  ;;  %2437 = vrot.lane.b32.xlu2 %v3450_v21, %s3165_s24  ;;  %v2987_v55 = vunpack.i.l.bf16 %v3773_v35  ;;  %3118 = vrcp.f32 %v3769_v8  ;;  %v671_v27 = vand.u32 2147483647, %v3746_v48 }
 0x457   :  { %v655_v57 = vsel %vm3966_vm5, %v3885_v50, %v651_v24  ;;  %v808_v44 = vmul.f32 %v3909_v46, %v807_v45  ;;  %v964_v60 = vmul.f32 %v3948_v15, %v3753_v42  ;;  %v659_v4 = vor.u32 1.1754944e-38, %v658_v13 }
 0x458   :  { %v354_v32 = vsel %vm353_vm12, %v3107_v10, %v350_v31  ;;  %v2983_v10 = vunpack.i.h.bf16 %v3783_v53  ;;  %v3972_v53 = vpop.eup %3116  ;;  %v670_v48 = vsel %vm3984_vm6, %v3893_v59, %v666_v56  ;;  %v822_v50 = vsub.f32 1.0, %v821_v34 }
 0x459   :  { %v359_v61 = vsel %vm356_vm13, %v358_v7, %v354_v32  ;;  %vm657_vm7 = vcmp.eq.f32.partialorder %v656_v39, 8.507059e+37  ;;  %v518_v63 = vmul.f32 %v3545_v18, %v517_v43  ;;  %v674_v2 = vor.u32 1.1754944e-38, %v673_v0 }
 0x45a   :  { %v360_v11 = vmul.f32 %v3801_v30, %v359_v61  ;;  %v979_v31 = vmul.f32 %v3972_v53, %v3785_v14  ;;  %v660_v7 = vsel %vm657_vm7, %v659_v4, %v655_v57  ;;  %3120 = vrcp.f32 %v3760_v37 }
 0x45b   :  { %vm672_vm8 = vcmp.eq.f32.partialorder %v671_v27, 8.507059e+37  ;;  %v809_v32 = vadd.f32 %v3909_v46, %v808_v44  ;;  %vm811_vm9 = vweird.f32 %v3909_v46  ;;  %v965_v59 = vsub.f32 1.0, %v964_v60 }
 0x45c   :  { %2846 = vmatmul.msk.f32.vlgmr.msrb.gmra.mxu3 %vm154_vm2, %v360_v11  ;;  %2851 = vmatmul.msk.f32.vlgmr.msra.gmra.mxu2 %vm154_vm2, %v503_v38  ;;  %v3999_v38 = vpop.eup %3118  ;;  %v675_v24 = vsel %vm672_vm8, %v674_v2, %v670_v48  ;;  %v2988_v45 = vunpack.i.h.bf16 %v3773_v35  ;;  %v816_v18 = vand.u32 2147483648, %v3744_v12  ;;  %3122 = vrcp.f32 %v3777_v6  ;;  %v4020_v39 = vpop.xlane.xlu0 %1593 }
 0x45d   :  { %724 = vmatpush.msrb.mxu3 %v2983_v10  ;;  %856 = vmatpush.msra.mxu2 %v2987_v55  ;;  %v823_v43 = vmul.f32 %v3943_v51, %v822_v50  ;;  %vm810_vm10 = vweird.f32 %v3744_v12  ;;  %v814_v61 = vand.u32 2147483647, %v3744_v12  ;;  %v661_v56 = vmul.f32 %v3660_v26, %v660_v7 }
 0x45e   :  { %2595 = vrot.lane.b32.xlu2 %v3450_v21, %s3168_s10  ;;  %v980_v13 = vsub.f32 1.0, %v979_v31  ;;  %vm4008_vm11 = vmor %vm810_vm10, %vm811_vm9  ;;  %v2992_v10 = vunpack.i.l.bf16 %v3829_v25  ;;  %v966_v34 = vmul.f32 %v3948_v15, %v965_v59  ;;  %v1122_v12 = vmul.f32 %v3999_v38, %v3769_v8 }
 0x45f   :  { %v813_v35 = vsel %vm4008_vm11, %v3909_v46, %v809_v32  ;;  %vm825_vm12 = vweird.f32 %v3781_v47  ;;  %v829_v0 = vand.u32 2147483647, %v3781_v47  ;;  %v817_v55 = vor.u32 1.1754944e-38, %v816_v18 }
 0x460   :  { %v4023_v26 = vpop.eup %3120  ;;  %v676_v46 = vmul.f32 %v3603_v5, %v675_v24  ;;  %v824_v30 = vadd.f32 %v3943_v51, %v823_v43  ;;  %vm826_vm13 = vweird.f32 %v3943_v51  ;;  %v831_v27 = vand.u32 2147483648, %v3781_v47 }
 0x461   :  { %vm815_vm14 = vcmp.eq.f32.partialorder %v814_v61, 8.507059e+37  ;;  %v981_v44 = vmul.f32 %v3972_v53, %v980_v13  ;;  %vm969_vm15 = vweird.f32 %v3948_v15  ;;  %3124 = vrcp.f32 %v3787_v17  ;;  %vm4048_vm4 = vmor %vm825_vm12, %vm826_vm13 }
 0x462   :  { %v4031_v57 = vpop.eup %3122  ;;  %v818_v60 = vsel %vm815_vm14, %v817_v55, %v813_v35  ;;  %v967_v52 = vadd.f32 %v3948_v15, %v966_v34  ;;  %v1137_v5 = vmul.f32 %v4023_v26, %v3760_v37  ;;  %v1123_v4 = vsub.f32 1.0, %v1122_v12  ;;  %vm4064_vm6 = vmor %vm968_vm3, %vm969_vm15 }
 0x463   :  { %3126 = vrcp.f32 %v3792_v36  ;;  %v987_v48 = vand.u32 2147483647, %v3785_v14  ;;  %v989_v50 = vand.u32 2147483648, %v3785_v14  ;;  %v972_v31 = vand.u32 2147483647, %v3753_v42 }
 0x464   :  { %2852 = vmatmul.msk.f32.vlgmr.msra.gmra.mxu3 %vm154_vm2, %v518_v63  ;;  %2857 = vmatmul.msk.f32.vlgmr.msrb.gmra.mxu2 %vm154_vm2, %v661_v56  ;;  %v974_v63 = vand.u32 2147483648, %v3753_v42  ;;  %v1280_v7 = vmul.f32 %v4031_v57, %v3777_v6  ;;  %v2993_v32 = vunpack.i.h.bf16 %v3829_v25  ;;  %v819_v59 = vmul.f32 %v3667_v49, %v818_v60  ;;  %v4090_v35 = vpop.xlane.xlu0 %1751 }
 0x465   :  { %882 = vmatpush.msra.mxu3 %v2988_v45  ;;  %1014 = vmatpush.msrb.mxu2 %v2992_v10  ;;  %v828_v24 = vsel %vm4048_vm4, %v3943_v51, %v824_v30  ;;  %v982_v45 = vadd.f32 %v3972_v53, %v981_v44  ;;  %vm984_vm5 = vweird.f32 %v3972_v53  ;;  %v2997_v42 = vunpack.i.l.bf16 %v3871_v54  ;;  %v3001_v30 = vpop.permute.xlu2 %3000 }
 0x466   :  { %v832_v25 = vor.u32 1.1754944e-38, %v831_v27  ;;  %v971_v49 = vsel %vm4064_vm6, %v3948_v15, %v967_v52  ;;  %v1138_v51 = vsub.f32 1.0, %v1137_v5  ;;  %v1124_v18 = vmul.f32 %v3999_v38, %v1123_v4 }
 0x467   :  { %v4075_v43 = vpop.eup %3124  ;;  %vm830_vm7 = vcmp.eq.f32.partialorder %v829_v0, 8.507059e+37  ;;  %vm983_vm8 = vweird.f32 %v3785_v14  ;;  %v975_v61 = vor.u32 1.1754944e-38, %v974_v63  ;;  %vm4086_vm10 = vcmp.eq.f32.partialorder %v987_v48, 8.507059e+37 }
 0x468   :  { %v833_v13 = vsel %vm830_vm7, %v832_v25, %v828_v24  ;;  %vm4082_vm9 = vmor %vm983_vm8, %vm984_vm5  ;;  %vm973_vm11 = vcmp.eq.f32.partialorder %v972_v31, 8.507059e+37  ;;  %v1281_v10 = vsub.f32 1.0, %v1280_v7  ;;  %v990_v34 = vor.u32 1.1754944e-38, %v989_v50 }
 0x469   :  { %v4078_v56 = vpop.eup %3126  ;;  %v986_v14 = vsel %vm4082_vm9, %v3972_v53, %v982_v45  ;;  %v976_v12 = vsel %vm973_vm11, %v975_v61, %v971_v49  ;;  %3128 = vrcp.f32 %v3864_v1  ;;  %v1139_v0 = vmul.f32 %v4023_v26, %v1138_v51  ;;  %v3006_v51 = vpop.permute.xlu1 %3005 }
 0x46a   :  { %v1125_v55 = vadd.f32 %v3999_v38, %v1124_v18  ;;  %vm1127_vm12 = vweird.f32 %v3999_v38  ;;  %vm1126_vm13 = vweird.f32 %v3769_v8  ;;  %v1132_v27 = vand.u32 2147483648, %v3769_v8 }
 0x46b   :  { %v1438_v53 = vmul.f32 %v4078_v56, %v3792_v36  ;;  %v834_v44 = vmul.f32 %v3648_v22, %v833_v13  ;;  %v1130_v60 = vand.u32 2147483647, %v3769_v8  ;;  %v1282_v52 = vmul.f32 %v4031_v57, %v1281_v10  ;;  %vm4114_vm14 = vmor %vm1126_vm13, %vm1127_vm12 }
 0x46c   :  { %2858 = vmatmul.msk.f32.vlgmr.msrb.gmra.mxu3 %vm154_vm2, %v676_v46  ;;  %2863 = vmatmul.msk.f32.vlgmr.msra.gmra.mxu2 %vm154_vm2, %v819_v59  ;;  %v1295_v46 = vmul.f32 %v4075_v43, %v3787_v17  ;;  %v2998_v5 = vunpack.i.h.bf16 %v3871_v54  ;;  %v977_v4 = vmul.f32 %v3674_v58, %v976_v12  ;;  %v991_v48 = vsel %vm4086_vm10, %v990_v34, %v986_v14  ;;  %v4148_v49 = vpop.xlane.xlu0 %1902 }
 0x46d   :  { %1040 = vmatpush.msrb.mxu3 %v2993_v32  ;;  %1172 = vmatpush.msra.mxu2 %v2997_v42  ;;  %3130 = vrcp.f32 %v3959_v19  ;;  %v3002_v63 = vunpack.i.l.bf16 %v3001_v30  ;;  %v1140_v22 = vadd.f32 %v4023_v26, %v1139_v0  ;;  %vm1142_vm15 = vweird.f32 %v4023_v26 }
 0x46e   :  { %2569 = vrot.lane.b32.xlu1 %v3392_v41, %s3168_s10  ;;  %v1129_v58 = vsel %vm4114_vm14, %v3999_v38, %v1125_v55  ;;  %v1296_v8 = vsub.f32 1.0, %v1295_v46  ;;  %vm1141_vm3 = vweird.f32 %v3760_v37  ;;  %v1147_v2 = vand.u32 2147483648, %v3760_v37 }
 0x46f   :  { %v4126_v54 = vpop.eup %3128  ;;  %v1133_v31 = vor.u32 1.1754944e-38, %v1132_v27  ;;  %v1439_v7 = vsub.f32 1.0, %v1438_v53  ;;  %v1145_v32 = vand.u32 2147483647, %v3760_v37  ;;  %vm1131_vm4 = vcmp.eq.f32.partialorder %v1130_v60, 8.507059e+37  ;;  %vm4135_vm6 = vmor %vm1141_vm3, %vm1142_vm15 }
 0x470   :  { %v1283_v59 = vadd.f32 %v4031_v57, %v1282_v52  ;;  %vm1285_vm5 = vweird.f32 %v4031_v57  ;;  %v1288_v45 = vand.u32 2147483647, %v3777_v6  ;;  %v1290_v47 = vand.u32 2147483648, %v3777_v6 }
 0x471   :  { %v1134_v24 = vsel %vm1131_vm4, %v1133_v31, %v1129_v58  ;;  %v1144_v37 = vsel %vm4135_vm6, %v4023_v26, %v1140_v22  ;;  %vm1284_vm7 = vweird.f32 %v3777_v6  ;;  %v1297_v42 = vmul.f32 %v4075_v43, %v1296_v8 }
 0x472   :  { %v1453_v25 = vmul.f32 %v4126_v54, %v3864_v1  ;;  %v1148_v61 = vor.u32 1.1754944e-38, %v1147_v2  ;;  %vm4152_vm8 = vmor %vm1284_vm7, %vm1285_vm5  ;;  %v1440_v15 = vmul.f32 %v4078_v56, %v1439_v7  ;;  %3132 = vrcp.f32 %v4020_v39 }
 0x473   :  { %v4150_v18 = vpop.eup %3130  ;;  %v992_v6 = vmul.f32 %v3654_v16, %v991_v48  ;;  %vm1146_vm9 = vcmp.eq.f32.partialorder %v1145_v32, 8.507059e+37  ;;  %v1287_v26 = vsel %vm4152_vm8, %v4031_v57, %v1283_v59  ;;  %v3003_v11 = vunpack.i.h.bf16 %v3001_v30 }
 0x474   :  { %2864 = vmatmul.msk.f32.vlgmr.msra.gmra.mxu3 %vm154_vm2, %v834_v44  ;;  %2869 = vmatmul.msk.f32.vlgmr.msrb.gmra.mxu2 %vm154_vm2, %v977_v4  ;;  %v1135_v10 = vmul.f32 %v3684_v29, %v1134_v24  ;;  %v1149_v14 = vsel %vm1146_vm9, %v1148_v61, %v1144_v37  ;;  %vm1289_vm10 = vcmp.eq.f32.partialorder %v1288_v45, 8.507059e+37  ;;  %v1291_v34 = vor.u32 1.1754944e-38, %v1290_v47  ;;  %v3011_v48 = vpop.permute.xlu0 %3010 }
 0x475   :  { %1198 = vmatpush.msra.mxu3 %v2998_v5  ;;  %1330 = vmatpush.msrb.mxu2 %v3002_v63  ;;  %v3007_v12 = vunpack.i.l.bf16 %v3006_v51  ;;  %v1298_v0 = vadd.f32 %v4075_v43, %v1297_v42  ;;  %vm1300_vm11 = vweird.f32 %v4075_v43  ;;  %v1454_v55 = vsub.f32 1.0, %v1453_v25 }
 0x476   :  { %v1596_v16 = vmul.f32 %v4150_v18, %v3959_v19  ;;  %v1292_v57 = vsel %vm1289_vm10, %v1291_v34, %v1287_v26  ;;  %v1305_v29 = vand.u32 2147483648, %v3787_v17  ;;  %v1441_v46 = vadd.f32 %v4078_v56, %v1440_v15 }
 0x477   :  { %vm1443_vm12 = vweird.f32 %v4078_v56  ;;  %vm1299_vm13 = vweird.f32 %v3787_v17  ;;  %v1303_v30 = vand.u32 2147483647, %v3787_v17  ;;  %v1448_v27 = vand.u32 2147483648, %v3792_v36 }
 0x478   :  { %3134 = vrcp.f32 %v4090_v35  ;;  %v4176_v53 = vpop.eup %3132  ;;  %vm4180_vm14 = vmor %vm1299_vm13, %vm1300_vm11  ;;  %vm1442_vm15 = vweird.f32 %v3792_v36  ;;  %v1446_v60 = vand.u32 2147483647, %v3792_v36  ;;  %v1455_v5 = vmul.f32 %v4126_v54, %v1454_v55 }
 0x479   :  { %3136 = vrcp.f32 %v4148_v49  ;;  %v1302_v17 = vsel %vm4180_vm14, %v4075_v43, %v1298_v0  ;;  %vm4190_vm3 = vmor %vm1442_vm15, %vm1443_vm12  ;;  %v1597_v4 = vsub.f32 1.0, %v1596_v16  ;;  %v1306_v50 = vor.u32 1.1754944e-38, %v1305_v29 }
 0x47a   :  { %v1445_v63 = vsel %vm4190_vm3, %v4078_v56, %v1441_v46  ;;  %v1150_v36 = vmul.f32 %v3679_v3, %v1149_v14  ;;  %v1293_v22 = vmul.f32 %v3688_v9, %v1292_v57  ;;  %vm1304_vm4 = vcmp.eq.f32.partialorder %v1303_v30, 8.507059e+37 }
 0x47b   :  { %v1449_v58 = vor.u32 1.1754944e-38, %v1448_v27  ;;  %v1611_v43 = vmul.f32 %v4176_v53, %v4020_v39  ;;  %v3008_v8 = vunpack.i.h.bf16 %v3006_v51  ;;  %v1307_v2 = vsel %vm1304_vm4, %v1306_v50, %v1302_v17 }
 0x47c   :  { %2870 = vmatmul.msk.f32.vlgmr.msrb.gmra.mxu3 %vm154_vm2, %v992_v6  ;;  %2875 = vmatmul.msk.f32.vlgmr.msra.gmra.mxu2 %vm154_vm2, %v1135_v10  ;;  %vm1447_vm5 = vcmp.eq.f32.partialorder %v1446_v60, 8.507059e+37  ;;  %v3012_v31 = vunpack.i.l.bf16 %v3011_v48  ;;  %v1456_v56 = vadd.f32 %v4126_v54, %v1455_v5  ;;  %vm1458_vm6 = vweird.f32 %v4126_v54  ;;  %v4241_v14 = vpop.xlane.xlu0 %2063 }
 0x47d   :  { %1356 = vmatpush.msrb.mxu3 %v3003_v11  ;;  %1488 = vmatpush.msra.mxu2 %v3007_v12  ;;  %v1450_v32 = vsel %vm1447_vm5, %v1449_v58, %v1445_v63  ;;  %v1598_v3 = vmul.f32 %v4150_v18, %v1597_v4  ;;  %v1461_v59 = vand.u32 2147483647, %v3864_v1  ;;  %v1463_v38 = vand.u32 2147483648, %v3864_v1 }
 0x47e   :  { %v4203_v7 = vpop.eup %3134  ;;  %vm1457_vm7 = vweird.f32 %v3864_v1  ;;  %v1612_v24 = vsub.f32 1.0, %v1611_v43  ;;  %v1308_v37 = vmul.f32 %v3698_v20, %v1307_v2  ;;  %v1451_v42 = vmul.f32 %v3702_v23, %v1450_v32 }
 0x47f   :  { %v4209_v9 = vpop.eup %3136  ;;  %vm4214_vm8 = vmor %vm1457_vm7, %vm1458_vm6  ;;  %v1769_v47 = vmul.f32 %v4203_v7, %v4090_v35  ;;  %v1599_v51 = vadd.f32 %v4150_v18, %v1598_v3  ;;  %vm1601_vm9 = vweird.f32 %v4150_v18  ;;  %vm1462_vm10 = vcmp.eq.f32.partialorder %v1461_v59, 8.507059e+37 }
 0x480   :  { %v1460_v25 = vsel %vm4214_vm8, %v4126_v54, %v1456_v56  ;;  %v1908_v1 = vmul.f32 %v4209_v9, %v4148_v49  ;;  %v1464_v13 = vor.u32 1.1754944e-38, %v1463_v38  ;;  %v1606_v15 = vand.u32 2147483648, %v3959_v19 }
 0x481   :  { %vm1600_vm11 = vweird.f32 %v3959_v19  ;;  %v1604_v20 = vand.u32 2147483647, %v3959_v19  ;;  %v1613_v23 = vmul.f32 %v4176_v53, %v1612_v24  ;;  %v3013_v54 = vunpack.i.h.bf16 %v3011_v48 }
 0x482   :  { %v1465_v6 = vsel %vm1462_vm10, %v1464_v13, %v1460_v25  ;;  %vm4236_vm12 = vmor %vm1600_vm11, %vm1601_vm9  ;;  %v1619_v11 = vand.u32 2147483647, %v4020_v39  ;;  %v1770_v10 = vsub.f32 1.0, %v1769_v47  ;;  %v1621_v12 = vand.u32 2147483648, %v4020_v39  ;;  %v4654_v13 = vld [vmem:[#allocation8_spill] sm:$0xff] }
 0x483   :  { %v1603_v19 = vsel %vm4236_vm12, %v4150_v18, %v1599_v51  ;;  %v1909_v0 = vsub.f32 1.0, %v1908_v1  ;;  %v1607_v55 = vor.u32 1.1754944e-38, %v1606_v15  ;;  %vm1605_vm13 = vcmp.eq.f32.partialorder %v1604_v20, 8.507059e+37 }
 0x484   :  { %2876 = vmatmul.msk.f32.vlgmr.msra.gmra.mxu3 %vm154_vm2, %v1150_v36  ;;  %2881 = vmatmul.msk.f32.vlgmr.msrb.gmra.mxu2 %vm154_vm2, %v1293_v22  ;;  %v1614_v16 = vadd.f32 %v4176_v53, %v1613_v23  ;;  %vm1616_vm14 = vweird.f32 %v4176_v53  ;;  %vm1615_vm15 = vweird.f32 %v4020_v39  ;;  %v1771_v29 = vmul.f32 %v4203_v7, %v1770_v10  ;;  %v4656_v10 = vld [vmem:[#allocation5_spill] sm:$0xff] }
 0x485   :  { %1514 = vmatpush.msra.mxu3 %v3008_v8  ;;  %1646 = vmatpush.msrb.mxu2 %v3012_v31  ;;  %v1608_v18 = vsel %vm1605_vm13, %v1607_v55, %v1603_v19  ;;  %v1466_v46 = vmul.f32 %v3725_v28, %v1465_v6  ;;  %vm4259_vm3 = vcmp.eq.f32.partialorder %v1619_v11, 8.507059e+37  ;;  %v1910_v27 = vmul.f32 %v4209_v9, %v1909_v0  ;;  %vm4267_vm4 = vmor %vm1615_vm15, %vm1616_vm14 }
 0x486   :  { %vm1773_vm5 = vweird.f32 %v4090_v35  ;;  %v1777_v39 = vand.u32 2147483647, %v4090_v35  ;;  %v1779_v28 = vand.u32 2147483648, %v4090_v35  ;;  %v1618_v5 = vsel %vm4267_vm4, %v4176_v53, %v1614_v16 }
 0x487   :  { %vm1774_vm6 = vweird.f32 %v4203_v7  ;;  %v1609_v48 = vmul.f32 %v3755_v33, %v1608_v18  ;;  %v1772_v50 = vadd.f32 %v4203_v7, %v1771_v29  ;;  %vm1913_vm7 = vweird.f32 %v4209_v9 }
 0x488   :  { %v1911_v53 = vadd.f32 %v4209_v9, %v1910_v27  ;;  %vm4300_vm9 = vmor %vm1773_vm5, %vm1774_vm6  ;;  %vm4304_vm10 = vcmp.eq.f32.partialorder %v1777_v39, 8.507059e+37  ;;  %v1780_v31 = vor.u32 1.1754944e-38, %v1779_v28  ;;  %vm1912_vm11 = vweird.f32 %v4148_v49 }
 0x489   :  { %v4229_v61 = vpop.xlane.xlu2 %1748  ;;  %v1918_v32 = vand.u32 2147483648, %v4148_v49  ;;  %vm4314_vm12 = vmor %vm1912_vm11, %vm1913_vm7  ;;  %v1916_v56 = vand.u32 2147483647, %v4148_v49  ;;  %v1776_v38 = vsel %vm4300_vm9, %v4203_v7, %v1772_v50  ;;  %v2091_v17 = vand.u32 2147483648, %v4241_v14 }
 0x48a   :  { %3138 = vrcp.f32 %v4229_v61  ;;  %v1764_v63 = vand.u32 2147483648, %v4229_v61  ;;  %v1762_v33 = vand.u32 2147483647, %v4229_v61  ;;  %vm1758_vm13 = vweird.f32 %v4229_v61 }
 0x48b   :  { %v4243_v34 = vpop.xlane.xlu1 %1905  ;;  %v1915_v49 = vsel %vm4314_vm12, %v4209_v9, %v1911_v53  ;;  %v1919_v51 = vor.u32 1.1754944e-38, %v1918_v32  ;;  %v1781_v9 = vsel %vm4304_vm10, %v1780_v31, %v1776_v38  ;;  %vm2085_vm12 = vweird.f32 %v4241_v14 }
 0x48c   :  { %2882 = vmatmul.msk.f32.vlgmr.msrb.gmra.mxu3 %vm154_vm2, %v1308_v37  ;;  %3140 = vrcp.f32 %v4243_v34  ;;  %2887 = vmatmul.msk.f32.vlgmr.msra.gmra.mxu2 %vm154_vm2, %v1451_v42  ;;  %v1765_v45 = vor.u32 1.1754944e-38, %v1764_v63  ;;  %vm1763_vm15 = vcmp.eq.f32.partialorder %v1762_v33, 8.507059e+37  ;;  %vm1927_vm4 = vweird.f32 %v4243_v34 }
 0x48d   :  { %1672 = vmatpush.msrb.mxu3 %v3013_v54  ;;  %1801 = vmatpush.msra.mxu2 %v3392_v41  ;;  %3142 = vrcp.f32 %v4241_v14  ;;  %v1622_v41 = vor.u32 1.1754944e-38, %v1621_v12  ;;  %v1931_v30 = vand.u32 2147483647, %v4243_v34  ;;  %v2089_v8 = vand.u32 2147483647, %v4241_v14 }
 0x48e   :  { %v2092_v32 = vor.u32 1.1754944e-38, %v2091_v17 }
 0x48f   :  { %vm1932_vm11 = vcmp.eq.f32.partialorder %v1931_v30, 8.507059e+37 }
 0x490   :  { %v3139_v57 = vpop.eup %3138 }
 0x491   :  { %v1754_v44 = vmul.f32 %v3139_v57, %v4229_v61  ;;  %v4265_v60 = vpop.xlane.xlu2 %2060  ;;  %vm1759_vm8 = vweird.f32 %v3139_v57 }
 0x492   :  { %3144 = vrcp.f32 %v4265_v60  ;;  %v4275_v52 = vpop.eup %3140  ;;  %vm1760_vm14 = vmor %vm1758_vm13, %vm1759_vm8  ;;  %vm2070_vm8 = vweird.f32 %v4265_v60  ;;  %v2074_v28 = vand.u32 2147483647, %v4265_v60 }
 0x493   :  { %v1755_v4 = vsub.f32 1.0, %v1754_v44  ;;  %v1923_v36 = vmul.f32 %v4275_v52, %v4243_v34  ;;  %v4287_v22 = vpop.xlane.xlu1 %2221  ;;  %v4290_v58 = vpop.eup %3142  ;;  %vm1928_vm5 = vweird.f32 %v4275_v52 }
 0x494   :  { %2888 = vmatmul.msk.f32.vlgmr.msra.gmra.mxu3 %vm154_vm2, %v1466_v46  ;;  %2893 = vmatmul.msk.f32.vlgmr.msrb.gmra.mxu2 %vm154_vm2, %v1609_v48  ;;  %v2081_v24 = vmul.f32 %v4290_v58, %v4241_v14  ;;  %vm4366_vm7 = vmor %vm1927_vm4, %vm1928_vm5  ;;  %vm2086_vm9 = vweird.f32 %v4290_v58  ;;  %vm2075_vm13 = vcmp.eq.f32.partialorder %v2074_v28, 8.507059e+37 }
 0x495   :  { %v1756_v43 = vmul.f32 %v3139_v57, %v1755_v4  ;;  %1824 = vmatpush.msra.mxu3 %v3450_v21  ;;  %v1623_v21 = vsel %vm4259_vm3, %v1622_v41, %v1618_v5  ;;  %v1924_v47 = vsub.f32 1.0, %v1923_v36  ;;  %vm1917_vm3 = vcmp.eq.f32.partialorder %v1916_v56, 8.507059e+37 }
 0x496   :  { %v1624_v1 = vmul.f32 %v3762_v62, %v1623_v21  ;;  %v1920_v20 = vsel %vm1917_vm3, %v1919_v51, %v1915_v49  ;;  %v2082_v23 = vsub.f32 1.0, %v2081_v24  ;;  %v4655_v62 = vld [vmem:[#allocation4_spill] sm:$0xff]  ;;  %v2076_v41 = vand.u32 2147483648, %v4265_v60 }
 0x497   :  { %v1757_v3 = vadd.f32 %v3139_v57, %v1756_v43  ;;  %v1925_v54 = vmul.f32 %v4275_v52, %v1924_v47  ;;  %v1782_v11 = vmul.f32 %v4655_v62, %v1781_v9  ;;  %v1921_v19 = vmul.f32 %v4656_v10, %v1920_v20  ;;  %v4663_v47 = vld [vmem:[#allocation9_spill] sm:$0xff]  ;;  %v4665_v20 = vld [vmem:[#allocation6_spill] sm:$0xff] }
 0x498   :  { %v4320_v59 = vpop.eup %3144  ;;  %v2083_v0 = vmul.f32 %v4290_v58, %v2082_v23  ;;  %v2077_v33 = vor.u32 1.1754944e-38, %v2076_v41  ;;  %vm2090_vm3 = vcmp.eq.f32.partialorder %v2089_v8, 8.507059e+37 }
 0x499   :  { %v1761_v37 = vsel %vm1760_vm14, %v3139_v57, %v1757_v3  ;;  %v2066_v42 = vmul.f32 %v4320_v59, %v4265_v60  ;;  %v4333_v25 = vpop.xlane.xlu2 %2218  ;;  %v1926_v55 = vadd.f32 %v4275_v52, %v1925_v54  ;;  %v1933_v57 = vand.u32 2147483648, %v4243_v34  ;;  %vm4402_vm14 = vmor %vm2085_vm12, %vm2086_vm9 }
 0x49a   :  { %v1766_v7 = vsel %vm1763_vm15, %v1765_v45, %v1761_v37  ;;  %3146 = vrcp.f32 %v4333_v25  ;;  %vm2071_vm6 = vweird.f32 %v4320_v59  ;;  %v2084_v48 = vadd.f32 %v4290_v58, %v2083_v0 }
 0x49b   :  { %v2067_v61 = vsub.f32 1.0, %v2066_v42  ;;  %3148 = vrcp.f32 %v4287_v22  ;;  %v1767_v15 = vmul.f32 %v4654_v13, %v1766_v7  ;;  %v4342_v6 = vpop.xlane.xlu1 %2376  ;;  %v1930_v34 = vsel %vm4366_vm7, %v4275_v52, %v1926_v55  ;;  %vm4381_vm10 = vmor %vm2070_vm8, %vm2071_vm6  ;;  %v4664_v42 = vld [vmem:[#allocation10_spill] sm:$0xff] }
 0x49c   :  { %2894 = vmatmul.msk.f32.vlgmr.msrb.gmra.mxu3 %vm154_vm2, %v1624_v1  ;;  %3150 = vrcp.f32 %v4342_v6  ;;  %v1934_v36 = vor.u32 1.1754944e-38, %v1933_v57  ;;  %v2088_v56 = vsel %vm4402_vm14, %v4290_v58, %v2084_v48  ;;  %v2234_v38 = vand.u32 2147483648, %v4333_v25 }
 0x49d   :  { %v2068_v26 = vmul.f32 %v4320_v59, %v2067_v61  ;;  %2899 = vmatmul.msk.f32.vlgmr.msra.gmra.mxu2 %vm154_vm2, %v1767_v15  ;;  %vm2228_vm4 = vweird.f32 %v4333_v25  ;;  %v2232_v37 = vand.u32 2147483647, %v4333_v25  ;;  %v2093_v7 = vsel %vm2090_vm3, %v2092_v32, %v2088_v56  ;;  %v4420_v61 = vpop.xlane.xlu0 %2534 }
 0x49e   :  { %v1935_v2 = vsel %vm1932_vm11, %v1934_v36, %v1930_v34  ;;  %v2235_v9 = vor.u32 1.1754944e-38, %v2234_v38  ;;  %v2094_v23 = vmul.f32 %v4665_v20, %v2093_v7  ;;  %vm2243_vm8 = vweird.f32 %v4287_v22  ;;  %v4669_v34 = vld [vmem:[#allocation11_spill] sm:$0xff] }
 0x49f   :  { %v2069_v18 = vadd.f32 %v4320_v59, %v2068_v26  ;;  %v1936_v49 = vmul.f32 %v4663_v47, %v1935_v2  ;;  %vm2233_vm6 = vcmp.eq.f32.partialorder %v2232_v37, 8.507059e+37  ;;  %v2392_v0 = vand.u32 2147483648, %v4342_v6 }
 0x4a0   :  { %v4350_v12 = vpop.eup %3146  ;;  %vm2386_vm11 = vweird.f32 %v4342_v6 }
 0x4a1   :  { %v4356_v16 = vpop.eup %3148  ;;  %v2224_v29 = vmul.f32 %v4350_v12, %v4333_v25  ;;  %v3016_v46 = vpop.permute.xlu2 %3015  ;;  %v2073_v53 = vsel %vm4381_vm10, %v4320_v59, %v2069_v18  ;;  %vm2229_vm15 = vweird.f32 %v4350_v12 }
 0x4a2   :  { %v3018_v27 = vunpack.i.h.bf16 %v3016_v46  ;;  %v3017_v44 = vunpack.i.l.bf16 %v3016_v46  ;;  %v4372_v4 = vpop.eup %3150  ;;  %v2239_v60 = vmul.f32 %v4356_v16, %v4287_v22  ;;  %v2078_v21 = vsel %vm2075_vm13, %v2077_v33, %v2073_v53  ;;  %vm2230_vm5 = vmor %vm2228_vm4, %vm2229_vm15  ;;  %v4668_v46 = vld [vmem:[#allocation12_spill] sm:$0xff] }
 0x4a3   :  { %v2225_v5 = vsub.f32 1.0, %v2224_v29  ;;  %v4387_v63 = vpop.xlane.xlu1 %2379  ;;  %v2382_v43 = vmul.f32 %v4372_v4, %v4342_v6  ;;  %v2079_v51 = vmul.f32 %v4664_v42, %v2078_v21  ;;  %vm2244_vm7 = vweird.f32 %v4356_v16 }
 0x4a4   :  { %2900 = vmatmul.msk.f32.vlgmr.msra.gmra.mxu3 %vm154_vm2, %v1782_v11  ;;  %1958 = vmatpush.msrb.mxu2 %v3017_v44  ;;  %3152 = vrcp.f32 %v4387_v63  ;;  %v2240_v35 = vsub.f32 1.0, %v2239_v60  ;;  %v2249_v11 = vand.u32 2147483648, %v4287_v22  ;;  %vm2387_vm9 = vweird.f32 %v4372_v4  ;;  %vm4436_vm10 = vmor %vm2243_vm8, %vm2244_vm7  ;;  %v4670_v60 = vld [vmem:[#allocation13_spill] sm:$0xff] }
 0x4a5   :  { %v2226_v52 = vmul.f32 %v4350_v12, %v2225_v5  ;;  %1984 = vmatpush.msrb.mxu3 %v3018_v27  ;;  %2905 = vmatmul.msk.f32.vlgmr.msrb.gmra.mxu2 %vm154_vm2, %v1921_v19  ;;  %v2383_v14 = vsub.f32 1.0, %v2382_v43  ;;  %v2390_v29 = vand.u32 2147483647, %v4342_v6  ;;  %vm2388_vm12 = vmor %vm2386_vm11, %vm2387_vm9  ;;  %v2412_v27 = vpop.permute.xlu0 %2411  ;;  %v2393_v6 = vor.u32 1.1754944e-38, %v2392_v0 }
 0x4a6   :  { %v2241_v1 = vmul.f32 %v4356_v16, %v2240_v35  ;;  %v2250_v44 = vor.u32 1.1754944e-38, %v2249_v11  ;;  %v2407_v5 = vand.u32 2147483648, %v4387_v63  ;;  %vm2401_vm3 = vweird.f32 %v4387_v63 }
 0x4a7   :  { %v2227_v3 = vadd.f32 %v4350_v12, %v2226_v52  ;;  %v2384_v15 = vmul.f32 %v4372_v4, %v2383_v14  ;;  %vm2391_vm14 = vcmp.eq.f32.partialorder %v2390_v29, 8.507059e+37  ;;  %3154 = vrcp.f32 %v4420_v61 }
 0x4a8   :  { %v2242_v54 = vadd.f32 %v4356_v16, %v2241_v1  ;;  %v2408_v52 = vor.u32 1.1754944e-38, %v2407_v5 }
 0x4a9   :  { %v3021_v59 = vpop.permute.xlu2 %3020  ;;  %v2231_v13 = vsel %vm2230_vm5, %v4350_v12, %v2227_v3  ;;  %v2385_v10 = vadd.f32 %v4372_v4, %v2384_v15  ;;  %v2247_v12 = vand.u32 2147483647, %v4287_v22 }
 0x4aa   :  { %v3023_v24 = vunpack.i.h.bf16 %v3021_v59  ;;  %v3022_v45 = vunpack.i.l.bf16 %v3021_v59  ;;  %v4416_v58 = vpop.eup %3152  ;;  %v2236_v26 = vsel %vm2233_vm6, %v2235_v9, %v2231_v13  ;;  %v2246_v41 = vsel %vm4436_vm10, %v4356_v16, %v2242_v54 }
 0x4ab   :  { %v2397_v25 = vmul.f32 %v4416_v58, %v4387_v63  ;;  %v2237_v30 = vmul.f32 %v4668_v46, %v2236_v26  ;;  %v2389_v17 = vsel %vm2388_vm12, %v4372_v4, %v2385_v10  ;;  %vm2248_vm13 = vcmp.eq.f32.partialorder %v2247_v12, 8.507059e+37 }
 0x4ac   :  { %2906 = vmatmul.msk.f32.vlgmr.msrb.gmra.mxu3 %vm154_vm2, %v1936_v49  ;;  %2116 = vmatpush.msra.mxu2 %v3022_v45  ;;  %v2251_v39 = vsel %vm2248_vm13, %v2250_v44, %v2246_v41  ;;  %v2394_v28 = vsel %vm2391_vm14, %v2393_v6, %v2389_v17  ;;  %vm2402_vm15 = vweird.f32 %v4416_v58  ;;  %v2405_v4 = vand.u32 2147483647, %v4387_v63  ;;  %v4671_v63 = vld [vmem:[#allocation14_spill] sm:$0xff] }
 0x4ad   :  { %2142 = vmatpush.msra.mxu3 %v3023_v24  ;;  %2911 = vmatmul.msk.f32.vlgmr.msra.gmra.mxu2 %vm154_vm2, %v2079_v51  ;;  %v2398_v62 = vsub.f32 1.0, %v2397_v25  ;;  %v2252_v50 = vmul.f32 %v4669_v34, %v2251_v39  ;;  %vm2403_vm4 = vmor %vm2401_vm3, %vm2402_vm15  ;;  %v2395_v36 = vmul.f32 %v4670_v60, %v2394_v28  ;;  %v3155_v2 = vpop.eup %3154  ;;  %v2550_v49 = vand.u32 2147483648, %v4420_v61 }
 0x4ae   :  { %vm2406_vm5 = vcmp.eq.f32.partialorder %v2405_v4, 8.507059e+37  ;;  %v2540_v32 = vmul.f32 %v3155_v2, %v4420_v61  ;;  %vm2545_vm7 = vweird.f32 %v3155_v2  ;;  %vm2544_vm10 = vweird.f32 %v4420_v61 }
 0x4af   :  { %v2399_v22 = vmul.f32 %v4416_v58, %v2398_v62  ;;  %v2548_v51 = vand.u32 2147483647, %v4420_v61  ;;  %vm2546_vm12 = vmor %vm2544_vm10, %vm2545_vm7  ;;  %v2551_v15 = vor.u32 1.1754944e-38, %v2550_v49  ;;  %vm2745_vm14 = vcmask 97280  }
 0x4b0   :  { %v2541_v21 = vsub.f32 1.0, %v2540_v32  ;;  %vm2748_vm15 = vcmask 130048   ;;  %vm2751_vm3 = vcmask 162816   ;;  %vm2763_vm7 = vcmask 293888  }
 0x4b1   :  { %v3026_v19 = vpop.permute.xlu2 %3025  ;;  %v2400_v16 = vadd.f32 %v4416_v58, %v2399_v22  ;;  %vm2549_vm13 = vcmp.eq.f32.partialorder %v2548_v51, 8.507059e+37  ;;  %v4673_v51 = vld [vmem:[#allocation2_spill] sm:$0xff]  ;;  %vm2772_vm10 = vcmask 392192  }
 0x4b2   :  { %v3028_v55 = vunpack.i.h.bf16 %v3026_v19  ;;  %v3027_v57 = vunpack.i.l.bf16 %v3026_v19  ;;  %v2542_v3 = vmul.f32 %v3155_v2, %v2541_v21  ;;  %v2790_v21 = vld [vmem:[%s4586_s3 + $0x30] sm:$0xff] }
 0x4b3   :  { %v2404_v53 = vsel %vm2403_vm4, %v4416_v58, %v2400_v16  ;;  %vm2754_vm4 = vcmask 195584  }
 0x4b4   :  { %2912 = vmatmul.msk.f32.vlgmr.msra.gmra.mxu3 %vm154_vm2, %v2094_v23  ;;  %2274 = vmatpush.msrb.mxu2 %v3027_v57  ;;  %v2409_v43 = vsel %vm2406_vm5, %v2408_v52, %v2404_v53  ;;  %v2543_v45 = vadd.f32 %v3155_v2, %v2542_v3  ;;  %v4672_v23 = vld [vmem:[#allocation7_spill] sm:$0xff]  ;;  %v2787_v3 = vld [vmem:[%s4586_s3 + $0x18] sm:$0xff]  ;;  %vm2757_vm5 = vcmask 228352  }
 0x4b5   :  { %2300 = vmatpush.msrb.mxu3 %v3028_v55  ;;  %2917 = vmatmul.msk.f32.vlgmr.msrb.gmra.mxu2 %vm154_vm2, %v2237_v30  ;;  %v2410_v8 = vmul.f32 %v4671_v63, %v2409_v43 }
 0x4b6   :  { %2432 = vmatpush.msra.mxu2 %v2412_v27  ;;  %v2547_v1 = vsel %vm2546_vm12, %v3155_v2, %v2543_v45  ;;  %vm2778_vm12 = vcmask 457728  }
 0x4b7   :  { %v2552_v25 = vsel %vm2549_vm13, %v2551_v15, %v2547_v1  ;;  %vm2781_vm13 = vcmask 490496  }
 0x4b8   :  { %v2553_v54 = vmul.f32 %v4672_v23, %v2552_v25 }
 0x4b9   :  { %v2438_v48 = vpop.permute.xlu2 %2437 }
 0x4ba   :  { %2458 = vmatpush.msra.mxu3 %v2438_v48 }
 0x4bc   :  { %2918 = vmatmul.msk.f32.vlgmr.msrb.gmra.mxu3 %vm154_vm2, %v2252_v50 }
 0x4bd   :  { %2923 = vmatmul.msk.f32.vlgmr.msra.gmra.mxu2 %vm154_vm2, %v2395_v36 }
 0x4c1   :  { %v2596_v33 = vpop.permute.xlu2 %2595 }
 0x4c2   :  { %2616 = vmatpush.msrb.mxu3 %v2596_v33 }
 0x4c4   :  { %2924 = vmatmul.msk.f32.vlgmr.msra.gmra.mxu3 %vm154_vm2, %v2410_v8  ;;  %v2791_v8 = vld [vmem:[%s4586_s3 + $0x38] sm:$0xff] }
 0x4c5   :  { %2810 = vmatpush.msrb.mxu0 %v2791_v8 }
 0x4c7   :  { %2811 = vmatpush.msrb.mxu0 %v2790_v21 }
 0x4c8   :  { %v2538_v31 = vpop.xlane.xlu1 %2537 }
 0x4c9   :  { %3156 = vrcp.f32 %v2538_v31  ;;  %v2565_v59 = vand.u32 2147483648, %v2538_v31  ;;  %v2563_v24 = vand.u32 2147483647, %v2538_v31  ;;  %vm2559_vm8 = vweird.f32 %v2538_v31 }
 0x4cb   :  { %v2566_v37 = vor.u32 1.1754944e-38, %v2565_v59  ;;  %vm2564_vm11 = vcmp.eq.f32.partialorder %v2563_v24, 8.507059e+37  ;;  %v2785_v24 = vld [vmem:[%s4586_s3 + $0x8] sm:$0xff] }
 0x4cf   :  { %v3157_v35 = vpop.eup %3156 }
 0x4d0   :  { %v2555_v56 = vmul.f32 %v3157_v35, %v2538_v31  ;;  %vm2560_vm6 = vweird.f32 %v3157_v35 }
 0x4d1   :  { %vm2561_vm9 = vmor %vm2559_vm8, %vm2560_vm6  ;;  %vm2760_vm6 = vcmask 261120   ;;  %vm2766_vm8 = vcmask 326656  }
 0x4d2   :  { %v2556_v14 = vsub.f32 1.0, %v2555_v56  ;;  %v2788_v56 = vld [vmem:[%s4586_s3 + $0x20] sm:$0xff] }
 0x4d4   :  { %v2557_v38 = vmul.f32 %v3157_v35, %v2556_v14 }
 0x4d6   :  { %v2558_v47 = vadd.f32 %v3157_v35, %v2557_v38  ;;  %v2786_v38 = vld [vmem:[%s4586_s3 + $0x10] sm:$0xff] }
 0x4d7   :  { %v384_v42 = vpop.f32.mrf.mxu2 }
 0x4d8   :  { %v2562_v58 = vsel %vm2561_vm9, %v3157_v35, %v2558_v47  ;;  %2623 = vrot.lane.b32.xlu0 %v384_v42, %s3179_s30  ;;  %v2789_v35 = vld [vmem:[%s4586_s3 + $0x28] sm:$0xff]  ;;  %v2784_v47 = vld [vmem:[%s4586_s3] sm:$0xff]  ;;  %vm2769_vm9 = vcmask 359424  }
 0x4d9   :  { %v2567_v7 = vsel %vm2564_vm11, %v2566_v37, %v2562_v58  ;;  %2812 = vmatpush.msrb.mxu0 %v2789_v35  ;;  %vm2775_vm11 = vcmask 424960  }
 0x4da   :  { %v2568_v13 = vmul.f32 %v3916_v40, %v2567_v7 }
 0x4db   :  { %2813 = vmatpush.msrb.mxu0 %v2788_v56 }
 0x4dc   :  { %2930 = vmatmul.msk.f32.vlgmr.msrb.gmra.mxu3 %vm154_vm2, %v2568_v13 }
 0x4dd   :  { %2814 = vmatpush.msrb.mxu0 %v2787_v3 }
 0x4df   :  { %v410_v9 = vpop.f32.mrf.mxu3  ;;  %v542_v20 = vpop.f32.mrf.mxu2  ;;  %2815 = vmatpush.msrb.mxu0 %v2786_v38 }
 0x4e0   :  { %2625 = vrot.lane.b32.xlu0 %v410_v9, %s3179_s30  ;;  %2631 = vrot.lane.b32.xlu2 %v542_v20, %s3177_s28  ;;  %v2570_v61 = vpop.permute.xlu1 %2569 }
 0x4e1   :  { %2590 = vmatpush.msrb.mxu2 %v2570_v61  ;;  %2816 = vmatpush.msrb.mxu0 %v2785_v24 }
 0x4e2   :  { %2929 = vmatmul.msk.f32.vlgmr.msrb.gmra.mxu2 %vm154_vm2, %v2553_v54 }
 0x4e3   :  { %2817 = vmatpush.msrb.mxu0 %v2784_v47 }
 0x4e7   :  { %v568_v26 = vpop.f32.mrf.mxu3  ;;  %v700_v62 = vpop.f32.mrf.mxu2 }
 0x4e8   :  { %2633 = vrot.lane.b32.xlu1 %v568_v26, %s3177_s28  ;;  %2639 = vrot.lane.b32.xlu0 %v700_v62, %s3186_s11 }
 0x4ef   :  { %v726_v40 = vpop.f32.mrf.mxu3  ;;  %v858_v11 = vpop.f32.mrf.mxu2 }
 0x4f0   :  { %2647 = vrot.lane.b32.xlu2 %v858_v11, %s3175_s26 }
 0x4f7   :  { %v884_v10 = vpop.f32.mrf.mxu3  ;;  %v1016_v19 = vpop.f32.mrf.mxu2 }
 0x4f8   :  { %2649 = vrot.lane.b32.xlu0 %v884_v10, %s3175_s26  ;;  %2641 = vrot.lane.b32.xlu2 %v726_v40, %s3186_s11 }
 0x4f9   :  { %2655 = vrot.lane.b32.xlu1 %v1016_v19, %s3180_s6 }
 0x4ff   :  { %v1042_v12 = vpop.f32.mrf.mxu3  ;;  %v1174_v0 = vpop.f32.mrf.mxu2 }
 0x500   :  { %2663 = vrot.lane.b32.xlu0 %v1174_v0, %s3188_s13  ;;  %v4674_v0 = vld [vmem:[#allocation3_spill] sm:$0xff] }
 0x501   :  { %2657 = vrot.lane.b32.xlu1 %v1042_v12, %s3180_s6 }
 0x507   :  { %v1200_v55 = vpop.f32.mrf.mxu3  ;;  %v1332_v57 = vpop.f32.mrf.mxu2 }
 0x508   :  { %2671 = vrot.lane.b32.xlu2 %v1332_v57, %s3176_s27 }
 0x50f   :  { %v1358_v18 = vpop.f32.mrf.mxu3  ;;  %v1490_v29 = vpop.f32.mrf.mxu2 }
 0x510   :  { %2673 = vrot.lane.b32.xlu0 %v1358_v18, %s3176_s27  ;;  %2665 = vrot.lane.b32.xlu2 %v1200_v55, %s3188_s13 }
 0x511   :  { %2679 = vrot.lane.b32.xlu1 %v1490_v29, %s3172_s20 }
 0x517   :  { %v1516_v46 = vpop.f32.mrf.mxu3  ;;  %v1648_v30 = vpop.f32.mrf.mxu2 }
 0x518   :  { %2687 = vrot.lane.b32.xlu2 %v1648_v30, %s3187_s12 }
 0x519   :  { %2681 = vrot.lane.b32.xlu1 %v1516_v46, %s3172_s20 }
 0x51f   :  { %v1674_v41 = vpop.f32.mrf.mxu3 }
 0x520   :  { %v1803_v22 = vpop.f32.mrf.mxu2 }
 0x521   :  { %2695 = vrot.lane.b32.xlu0 %v1803_v22, %s3170_s19 }
 0x527   :  { %v1826_v27 = vpop.f32.mrf.mxu3 }
 0x528   :  { %2697 = vrot.lane.b32.xlu2 %v1826_v27, %s3170_s19  ;;  %v1960_v44 = vpop.f32.mrf.mxu2 }
 0x529   :  { %2689 = vrot.lane.b32.xlu0 %v1674_v41, %s3187_s12  ;;  %2703 = vrot.lane.b32.xlu1 %v1960_v44, %s3166_s8 }
 0x52f   :  { %v1986_v17 = vpop.f32.mrf.mxu3 }
 0x530   :  { %v2118_v6 = vpop.f32.mrf.mxu2 }
 0x531   :  { %2705 = vrot.lane.b32.xlu1 %v1986_v17, %s3166_s8  ;;  %2711 = vrot.lane.b32.xlu2 %v2118_v6, %s3185_s23 }
 0x537   :  { %v2144_v39 = vpop.f32.mrf.mxu3 }
 0x538   :  { %v2276_v28 = vpop.f32.mrf.mxu2 }
 0x539   :  { %2719 = vrot.lane.b32.xlu0 %v2276_v28, %s3163_s22 }
 0x53a   :  { %v2632_v60 = vpop.permute.xlu2 %2631 }
 0x53f   :  { %v2302_v16 = vpop.f32.mrf.mxu3 }
 0x540   :  { %v2434_v5 = vpop.f32.mrf.mxu2 }
 0x541   :  { %2713 = vrot.lane.b32.xlu0 %v2144_v39, %s3185_s23  ;;  %2727 = vrot.lane.b32.xlu1 %v2434_v5, %s3173_s21 }
 0x547   :  { %v2460_v48 = vpop.f32.mrf.mxu3 }
 0x549   :  { %2729 = vrot.lane.b32.xlu1 %v2460_v48, %s3173_s21 }
 0x54a   :  { %v2624_v50 = vpop.permute.xlu0 %2623  ;;  %v2648_v52 = vpop.permute.xlu2 %2647 }
 0x54b   :  { %v2741_v58 = vsel %vm100_vm1, %v4673_v51, %v2624_v50 }
 0x54c   :  { %v2743_v13 = vsel %vm154_vm2, %v2741_v58, %v2632_v60 }
 0x552   :  { %v2626_v36 = vpop.permute.xlu0 %2625  ;;  %v4503_v63 = vpop.permute.xlu2 %2641 }
 0x553   :  { %v2742_v55 = vsel %vm100_vm1, %v4674_v0, %v2626_v36 }
 0x55a   :  { %v4501_v53 = vpop.permute.xlu1 %2633  ;;  %v2640_v33 = vpop.permute.xlu0 %2639 }
 0x55b   :  { %v2746_v15 = vsel %vm2745_vm14, %v2743_v13, %v2640_v33  ;;  %v2744_v18 = vsel %vm154_vm2, %v2742_v55, %v4501_v53  ;;  %v3029_v33 = vld [vmem:[%s4585_s4] ss:$0 sm:$0xff] }
 0x55c   :  { %v2749_v9 = vsel %vm2748_vm15, %v2746_v15, %v2648_v52  ;;  %v2747_v22 = vsel %vm2745_vm14, %v2744_v18, %v4503_v63 }
 0x55f   :  { %v2618_v4 = vpop.f32.mrf.mxu3 }
 0x560   :  { %2737 = vrot.lane.b32.xlu0 %v2618_v4, %s3184_s2 }
 0x562   :  { %v2672_v32 = vpop.permute.xlu2 %2671 }
 0x565   :  { %v2592_v34 = vpop.f32.mrf.mxu2 }
 0x566   :  { %2735 = vrot.lane.b32.xlu2 %v2592_v34, %s3184_s2 }
 0x56a   :  { %v4508_v2 = vpop.permute.xlu0 %2649  ;;  %v2666_v45 = vpop.permute.xlu2 %2665 }
 0x56b   :  { %v2656_v43 = vpop.permute.xlu1 %2655  ;;  %v2750_v44 = vsel %vm2748_vm15, %v2747_v22, %v4508_v2 }
 0x56c   :  { %v2752_v20 = vsel %vm2751_vm3, %v2749_v9, %v2656_v43 }
 0x56e   :  { %2721 = vrot.lane.b32.xlu2 %v2302_v16, %s3163_s22 }
 0x572   :  { %v2664_v59 = vpop.permute.xlu0 %2663  ;;  %v2688_v42 = vpop.permute.xlu2 %2687 }
 0x573   :  { %v4510_v31 = vpop.permute.xlu1 %2657  ;;  %v2755_v61 = vsel %vm2754_vm4, %v2752_v20, %v2664_v59 }
 0x574   :  { %v2758_v54 = vsel %vm2757_vm5, %v2755_v61, %v2672_v32  ;;  %v2753_v17 = vsel %vm2751_vm3, %v2750_v44, %v4510_v31 }
 0x575   :  { %v2756_v6 = vsel %vm2754_vm4, %v2753_v17, %v2666_v45 }
 0x582   :  { %v2674_v49 = vpop.permute.xlu0 %2673  ;;  %v2698_v25 = vpop.permute.xlu2 %2697 }
 0x583   :  { %v2680_v14 = vpop.permute.xlu1 %2679  ;;  %v2759_v39 = vsel %vm2757_vm5, %v2756_v6, %v2674_v49 }
 0x584   :  { %v2761_v62 = vsel %vm2760_vm6, %v2758_v54, %v2680_v14 }
 0x585   :  { %v2764_v11 = vsel %vm2763_vm7, %v2761_v62, %v2688_v42 }
 0x58b   :  { %v2682_v37 = vpop.permute.xlu1 %2681  ;;  %v2712_v40 = vpop.permute.xlu2 %2711 }
 0x58c   :  { %v2762_v28 = vsel %vm2760_vm6, %v2759_v39, %v2682_v37 }
 0x593   :  { %v2696_v7 = vpop.permute.xlu0 %2695 }
 0x594   :  { %v2767_v10 = vsel %vm2766_vm8, %v2764_v11, %v2696_v7 }
 0x59b   :  { %v2704_v1 = vpop.permute.xlu1 %2703  ;;  %v2690_v23 = vpop.permute.xlu0 %2689 }
 0x59c   :  { %v2770_v19 = vsel %vm2769_vm9, %v2767_v10, %v2704_v1  ;;  %v2765_v16 = vsel %vm2763_vm7, %v2762_v28, %v2690_v23 }
 0x59d   :  { %v2773_v29 = vsel %vm2772_vm10, %v2770_v19, %v2712_v40  ;;  %v2768_v48 = vsel %vm2766_vm8, %v2765_v16, %v2698_v25 }
 0x5a3   :  { %v2706_v26 = vpop.permute.xlu1 %2705 }
 0x5a4   :  { %v2771_v34 = vsel %vm2769_vm9, %v2768_v48, %v2706_v26 }
 0x5ab   :  { %v2720_v12 = vpop.permute.xlu0 %2719 }
 0x5ac   :  { %v2776_v46 = vsel %vm2775_vm11, %v2773_v29, %v2720_v12 }
 0x5b3   :  { %v2728_v57 = vpop.permute.xlu1 %2727  ;;  %v2714_v5 = vpop.permute.xlu0 %2713 }
 0x5b4   :  { %v2779_v30 = vsel %vm2778_vm12, %v2776_v46, %v2728_v57  ;;  %v2774_v50 = vsel %vm2772_vm10, %v2771_v34, %v2714_v5 }
 0x5bb   :  { %v2730_v36 = vpop.permute.xlu1 %2729 }
 0x5c0   :  { %v2736_v41 = vpop.permute.xlu2 %2735 }
 0x5c1   :  { %v2782_v27 = vsel %vm2781_vm13, %v2779_v30, %v2736_v41 }
 0x5c2   :  { %2931 = vmatmul.msk.f32.vlgmr.msrb.gmra.mxu0 %vm44_vm0, %v2782_v27 }
 0x5c8   :  { %v2722_v4 = vpop.permute.xlu2 %2721 }
 0x5c9   :  { %v2777_v60 = vsel %vm2775_vm11, %v2774_v50, %v2722_v4 }
 0x5ca   :  { %v2780_v52 = vsel %vm2778_vm12, %v2777_v60, %v2730_v36 }
 0x5d2   :  { %v2738_v53 = vpop.permute.xlu0 %2737 }
 0x5d3   :  { %v2783_v43 = vsel %vm2781_vm13, %v2780_v52, %v2738_v53 }
 0x5d4   :  { %2932 = vmatmul.msk.f32.gmra.mxu0 %vm44_vm0, %v2783_v43 }
 0x63f   :  { %v2819_v63 = vpop.f32.mrf.mxu0 }
 0x640   :  { %v2820_v8 = vadd.f32 %v3029_v33, %v2819_v63 }
 0x642   :  { %2825 = vst.msk [vmem:[%s4587_s5] sm:$0xff] %vm44_vm0, %v2820_v8 }
 0x651   :  { %v2822_v2 = vpop.f32.mrf.mxu0 }
 0x652   :  { %v2823_v31 = vadd.f32 %v3029_v33, %v2822_v2 }
 0x654   :  { %2826 = vst.msk [vmem:[%s4587_s5 + $0x8] sm:$0xff] %vm44_vm0, %v2823_v31 }

// kernel: qformer_block_forward.4
= control target key start
LH: loop header
LB: loop body
LE: loop exit
PB: predicated region body
PF: predicated region fallthrough
CT: control target
= control target key end

     0   :  { %s3565_s30 = smov 0   ;;  %s3567_s10 = smov 0   ;;  %s4742_s0 = inlined_call_operand.vmem [shape: f32[2,32], index: 0, kind: input, shape index: {}]   ;;  %s4743_s1 = inlined_call_operand.vmem [shape: f32[16,64], index: 1, kind: input, shape index: {}]   ;;  %s4744_s2 = inlined_call_operand.vmem [shape: f32[32,16384], index: 2, kind: input, shape index: {}]   ;;  %s4745_s3 = inlined_call_operand.vmem [shape: f32[32,16384], index: 3, kind: input, shape index: {}]   ;;  %s4746_s4 = inlined_call_operand.vmem [shape: f32[64,16384], index: 4, kind: input, shape index: {}]   ;;  %s4747_s5 = inlined_call_operand.vmem [shape: f32[64,16384], index: 5, kind: input, shape index: {}]   ;;  %s4748_s6 = inlined_call_operand.vmem [shape: f32[16384,32], index: 6, kind: input, shape index: {}]   ;;  %s4749_s7 = inlined_call_operand.vmem [shape: f32[16384,64], index: 7, kind: input, shape index: {}]   ;;  %s4750_s8 = inlined_call_operand.vmem [shape: f32[16,2,32], index: 8, kind: output, shape index: {0}]   ;;  %s4751_s9 = inlined_call_operand.vmem [shape: f32[16,2,64], index: 9, kind: output, shape index: {1}]  }
   0x1   :  { %s3569_s11 = smov 0  }
   0x2 LB: > { %s3581_s12 = sadd.s32 4294967295, %s3513_s11   ;;  %s3584_s13 = sadd.s32 1, %s3513_s11   ;;  %s3513_s11 = sphi %s3569_s11, %s4755_s11   ;;  %s3509_s10 = sphi %s3567_s10, %s4754_s10   ;;  %s3505_s30 = sphi %s3565_s30, %s4753_s30  }
   0x3   : > { %s66_s14 = ssub.s32 %s3513_s11, %s3584_s13  ;;  %s69_s15 = sadd.s32 1, %s3509_s10 }
   0x4   : > { %p67_p0 = scmp.eq.s32.totalorder %s66_s14, 0  ;;  %p76_p1 = scmp.ne.s32.totalorder %s3509_s10, %s3505_s30 }
   0x5   : > { %p77_p2 = scmp.eq.s32.totalorder %s3513_s11, 0  ;;  %p3365_p4 = scmp.ge.s32.totalorder %s3513_s11, 16 }
   0x6   : > { %s3593_s16 = scalar_select %p67_p0, %s3509_s10, %s69_s15  }
   0x7   : > { %p3595_p3 = por %p77_p2, %p76_p1  ;;  %290 = sbr.rel (%p3365_p4) target bundleno = 220 (0xdc), region = 24 }
   0xc   : > { %293 = sbr.rel (!%p3595_p3) target bundleno = 48 (0x30), region = 28  ;;  %s295_s18 = sand.u32 (%p3595_p3), 1, %s3509_s10  }
   0xd   : > { %s3455_s19 = sshll.u32 (%p3595_p3), %s3513_s11, 6  ;;  %s3366_s20 = sshll.u32 (%p3595_p3), %s295_s18, 8 }
   0xe   : > { %s3607_s23 = scalar_lea.vmem (%p3595_p3), %s4744_s2, %s3455_s19  ;;  %s3612_s24 = scalar_lea.vmem (%p3595_p3), [#allocation2], %s3366_s20 }
   0xf   : > { %v313_v0 = vld [vmem:[%s3607_s23] sm:$0xff] (%p3595_p3)  ;;  %v315_v1 = vld [vmem:[%s3607_s23 + $0x8] sm:$0xff] (%p3595_p3)  ;;  %v317_v2 = vld [vmem:[%s3607_s23 + $0x10] sm:$0xff] (%p3595_p3) }
  0x10   : > { %314 = vst [vmem:[%s3612_s24] sm:$0xff] (%p3595_p3), %v313_v0  ;;  %v319_v3 = vld [vmem:[%s3607_s23 + $0x18] sm:$0xff] (%p3595_p3)  ;;  %v321_v4 = vld [vmem:[%s3607_s23 + $0x20] sm:$0xff] (%p3595_p3)  ;;  %v323_v5 = vld [vmem:[%s3607_s23 + $0x28] sm:$0xff] (%p3595_p3) }
  0x11   : > { %316 = vst [vmem:[%s3612_s24 + $0x8] sm:$0xff] %v315_v1  ;;  %v325_v6 = vld [vmem:[%s3607_s23 + $0x30] sm:$0xff]  ;;  %v327_v7 = vld [vmem:[%s3607_s23 + $0x38] sm:$0xff]  ;;  %v329_v8 = vld [vmem:[%s3607_s23 + $0x400] sm:$0xff] }
  0x12   : > { %318 = vst [vmem:[%s3612_s24 + $0x10] sm:$0xff] %v317_v2  ;;  %v331_v9 = vld [vmem:[%s3607_s23 + $0x408] sm:$0xff]  ;;  %v333_v10 = vld [vmem:[%s3607_s23 + $0x410] sm:$0xff]  ;;  %v335_v11 = vld [vmem:[%s3607_s23 + $0x418] sm:$0xff] }
  0x13   : > { %320 = vst [vmem:[%s3612_s24 + $0x18] sm:$0xff] %v319_v3  ;;  %v337_v12 = vld [vmem:[%s3607_s23 + $0x420] sm:$0xff]  ;;  %v339_v13 = vld [vmem:[%s3607_s23 + $0x428] sm:$0xff]  ;;  %v341_v14 = vld [vmem:[%s3607_s23 + $0x430] sm:$0xff] }
  0x14   : > { %322 = vst [vmem:[%s3612_s24 + $0x20] sm:$0xff] %v321_v4  ;;  %v343_v15 = vld [vmem:[%s3607_s23 + $0x438] sm:$0xff]  ;;  %v345_v16 = vld [vmem:[%s3607_s23 + $0x800] sm:$0xff]  ;;  %v347_v17 = vld [vmem:[%s3607_s23 + $0x808] sm:$0xff] }
  0x15   : > { %324 = vst [vmem:[%s3612_s24 + $0x28] sm:$0xff] %v323_v5  ;;  %v349_v18 = vld [vmem:[%s3607_s23 + $0x810] sm:$0xff]  ;;  %v351_v19 = vld [vmem:[%s3607_s23 + $0x818] sm:$0xff]  ;;  %v353_v20 = vld [vmem:[%s3607_s23 + $0x820] sm:$0xff] }
  0x16   : > { %326 = vst [vmem:[%s3612_s24 + $0x30] sm:$0xff] %v325_v6  ;;  %v355_v21 = vld [vmem:[%s3607_s23 + $0x828] sm:$0xff]  ;;  %v357_v22 = vld [vmem:[%s3607_s23 + $0x830] sm:$0xff]  ;;  %v359_v23 = vld [vmem:[%s3607_s23 + $0x838] sm:$0xff] }
  0x17   : > { %328 = vst [vmem:[%s3612_s24 + $0x38] sm:$0xff] %v327_v7  ;;  %v361_v24 = vld [vmem:[%s3607_s23 + $0xc00] sm:$0xff]  ;;  %v363_v25 = vld [vmem:[%s3607_s23 + $0xc08] sm:$0xff]  ;;  %v365_v26 = vld [vmem:[%s3607_s23 + $0xc10] sm:$0xff] }
  0x18   : > { %330 = vst [vmem:[%s3612_s24 + $0x40] sm:$0xff] %v329_v8  ;;  %v367_v27 = vld [vmem:[%s3607_s23 + $0xc18] sm:$0xff]  ;;  %v369_v28 = vld [vmem:[%s3607_s23 + $0xc20] sm:$0xff]  ;;  %v371_v29 = vld [vmem:[%s3607_s23 + $0xc28] sm:$0xff] }
  0x19   : > { %332 = vst [vmem:[%s3612_s24 + $0x48] sm:$0xff] %v331_v9  ;;  %v373_v30 = vld [vmem:[%s3607_s23 + $0xc30] sm:$0xff]  ;;  %v375_v31 = vld [vmem:[%s3607_s23 + $0xc38] sm:$0xff] }
  0x1a   : > { %334 = vst [vmem:[%s3612_s24 + $0x50] sm:$0xff] %v333_v10 }
  0x1b   : > { %336 = vst [vmem:[%s3612_s24 + $0x58] sm:$0xff] %v335_v11 }
  0x1c   : > { %338 = vst [vmem:[%s3612_s24 + $0x60] sm:$0xff] %v337_v12 }
  0x1d   : > { %340 = vst [vmem:[%s3612_s24 + $0x68] sm:$0xff] %v339_v13 }
  0x1e   : > { %342 = vst [vmem:[%s3612_s24 + $0x70] sm:$0xff] %v341_v14 }
  0x1f   : > { %344 = vst [vmem:[%s3612_s24 + $0x78] sm:$0xff] %v343_v15 }
  0x20   : > { %346 = vst [vmem:[%s3612_s24 + $0x80] sm:$0xff] %v345_v16 }
  0x21   : > { %348 = vst [vmem:[%s3612_s24 + $0x88] sm:$0xff] %v347_v17 }
  0x22   : > { %350 = vst [vmem:[%s3612_s24 + $0x90] sm:$0xff] %v349_v18 }
  0x23   : > { %352 = vst [vmem:[%s3612_s24 + $0x98] sm:$0xff] %v351_v19 }
  0x24   : > { %354 = vst [vmem:[%s3612_s24 + $0xa0] sm:$0xff] %v353_v20 }
  0x25   : > { %356 = vst [vmem:[%s3612_s24 + $0xa8] sm:$0xff] %v355_v21 }
  0x26   : > { %358 = vst [vmem:[%s3612_s24 + $0xb0] sm:$0xff] %v357_v22 }
  0x27   : > { %360 = vst [vmem:[%s3612_s24 + $0xb8] sm:$0xff] %v359_v23 }
  0x28   : > { %362 = vst [vmem:[%s3612_s24 + $0xc0] sm:$0xff] %v361_v24 }
  0x29   : > { %364 = vst [vmem:[%s3612_s24 + $0xc8] sm:$0xff] %v363_v25 }
  0x2a   : > { %366 = vst [vmem:[%s3612_s24 + $0xd0] sm:$0xff] %v365_v26 }
  0x2b   : > { %368 = vst [vmem:[%s3612_s24 + $0xd8] sm:$0xff] %v367_v27 }
  0x2c   : > { %370 = vst [vmem:[%s3612_s24 + $0xe0] sm:$0xff] %v369_v28 }
  0x2d   : > { %372 = vst [vmem:[%s3612_s24 + $0xe8] sm:$0xff] %v371_v29 }
  0x2e   : > { %374 = vst [vmem:[%s3612_s24 + $0xf0] sm:$0xff] %v373_v30 }
  0x2f   : > { %376 = vst [vmem:[%s3612_s24 + $0xf8] sm:$0xff] %v375_v31 }
  0x30 PF: > { %382 = sbr.rel (!%p3595_p3) target bundleno = 84 (0x54), region = 51  ;;  %s384_s25 = sand.u32 (%p3595_p3), 1, %s3509_s10  }
  0x31   : > { %s3456_s26 = sshll.u32 (%p3595_p3), %s3513_s11, 6  ;;  %s3369_s27 = sshll.u32 (%p3595_p3), %s384_s25, 8 }
  0x32   : > { %s3682_s14 = scalar_lea.vmem (%p3595_p3), %s4745_s3, %s3456_s26  ;;  %s3687_s15 = scalar_lea.vmem (%p3595_p3), [#allocation3], %s3369_s27 }
  0x33   : > { %v402_v32 = vld [vmem:[%s3682_s14] sm:$0xff] (%p3595_p3)  ;;  %v404_v33 = vld [vmem:[%s3682_s14 + $0x8] sm:$0xff] (%p3595_p3)  ;;  %v406_v34 = vld [vmem:[%s3682_s14 + $0x10] sm:$0xff] (%p3595_p3) }
  0x34   : > { %403 = vst [vmem:[%s3687_s15] sm:$0xff] (%p3595_p3), %v402_v32  ;;  %v408_v35 = vld [vmem:[%s3682_s14 + $0x18] sm:$0xff] (%p3595_p3)  ;;  %v410_v36 = vld [vmem:[%s3682_s14 + $0x20] sm:$0xff] (%p3595_p3)  ;;  %v412_v37 = vld [vmem:[%s3682_s14 + $0x28] sm:$0xff] (%p3595_p3) }
  0x35   : > { %405 = vst [vmem:[%s3687_s15 + $0x8] sm:$0xff] %v404_v33  ;;  %v414_v38 = vld [vmem:[%s3682_s14 + $0x30] sm:$0xff]  ;;  %v416_v39 = vld [vmem:[%s3682_s14 + $0x38] sm:$0xff]  ;;  %v418_v40 = vld [vmem:[%s3682_s14 + $0x400] sm:$0xff] }
  0x36   : > { %407 = vst [vmem:[%s3687_s15 + $0x10] sm:$0xff] %v406_v34  ;;  %v420_v41 = vld [vmem:[%s3682_s14 + $0x408] sm:$0xff]  ;;  %v422_v42 = vld [vmem:[%s3682_s14 + $0x410] sm:$0xff]  ;;  %v424_v43 = vld [vmem:[%s3682_s14 + $0x418] sm:$0xff] }
  0x37   : > { %409 = vst [vmem:[%s3687_s15 + $0x18] sm:$0xff] %v408_v35  ;;  %v426_v44 = vld [vmem:[%s3682_s14 + $0x420] sm:$0xff]  ;;  %v428_v45 = vld [vmem:[%s3682_s14 + $0x428] sm:$0xff]  ;;  %v430_v46 = vld [vmem:[%s3682_s14 + $0x430] sm:$0xff] }
  0x38   : > { %411 = vst [vmem:[%s3687_s15 + $0x20] sm:$0xff] %v410_v36  ;;  %v432_v47 = vld [vmem:[%s3682_s14 + $0x438] sm:$0xff]  ;;  %v434_v48 = vld [vmem:[%s3682_s14 + $0x800] sm:$0xff]  ;;  %v436_v49 = vld [vmem:[%s3682_s14 + $0x808] sm:$0xff] }
  0x39   : > { %413 = vst [vmem:[%s3687_s15 + $0x28] sm:$0xff] %v412_v37  ;;  %v438_v50 = vld [vmem:[%s3682_s14 + $0x810] sm:$0xff]  ;;  %v440_v51 = vld [vmem:[%s3682_s14 + $0x818] sm:$0xff]  ;;  %v442_v52 = vld [vmem:[%s3682_s14 + $0x820] sm:$0xff] }
  0x3a   : > { %415 = vst [vmem:[%s3687_s15 + $0x30] sm:$0xff] %v414_v38  ;;  %v444_v53 = vld [vmem:[%s3682_s14 + $0x828] sm:$0xff]  ;;  %v446_v54 = vld [vmem:[%s3682_s14 + $0x830] sm:$0xff]  ;;  %v448_v55 = vld [vmem:[%s3682_s14 + $0x838] sm:$0xff] }
  0x3b   : > { %417 = vst [vmem:[%s3687_s15 + $0x38] sm:$0xff] %v416_v39  ;;  %v450_v56 = vld [vmem:[%s3682_s14 + $0xc00] sm:$0xff]  ;;  %v452_v57 = vld [vmem:[%s3682_s14 + $0xc08] sm:$0xff]  ;;  %v454_v58 = vld [vmem:[%s3682_s14 + $0xc10] sm:$0xff] }
  0x3c   : > { %419 = vst [vmem:[%s3687_s15 + $0x40] sm:$0xff] %v418_v40  ;;  %v456_v59 = vld [vmem:[%s3682_s14 + $0xc18] sm:$0xff]  ;;  %v458_v60 = vld [vmem:[%s3682_s14 + $0xc20] sm:$0xff]  ;;  %v460_v61 = vld [vmem:[%s3682_s14 + $0xc28] sm:$0xff] }
  0x3d   : > { %421 = vst [vmem:[%s3687_s15 + $0x48] sm:$0xff] %v420_v41  ;;  %v462_v62 = vld [vmem:[%s3682_s14 + $0xc30] sm:$0xff]  ;;  %v464_v63 = vld [vmem:[%s3682_s14 + $0xc38] sm:$0xff] }
  0x3e   : > { %423 = vst [vmem:[%s3687_s15 + $0x50] sm:$0xff] %v422_v42 }
  0x3f   : > { %425 = vst [vmem:[%s3687_s15 + $0x58] sm:$0xff] %v424_v43 }
  0x40   : > { %427 = vst [vmem:[%s3687_s15 + $0x60] sm:$0xff] %v426_v44 }
  0x41   : > { %429 = vst [vmem:[%s3687_s15 + $0x68] sm:$0xff] %v428_v45 }
  0x42   : > { %431 = vst [vmem:[%s3687_s15 + $0x70] sm:$0xff] %v430_v46 }
  0x43   : > { %433 = vst [vmem:[%s3687_s15 + $0x78] sm:$0xff] %v432_v47 }
  0x44   : > { %435 = vst [vmem:[%s3687_s15 + $0x80] sm:$0xff] %v434_v48 }
  0x45   : > { %437 = vst [vmem:[%s3687_s15 + $0x88] sm:$0xff] %v436_v49 }
  0x46   : > { %439 = vst [vmem:[%s3687_s15 + $0x90] sm:$0xff] %v438_v50 }
  0x47   : > { %441 = vst [vmem:[%s3687_s15 + $0x98] sm:$0xff] %v440_v51 }
  0x48   : > { %443 = vst [vmem:[%s3687_s15 + $0xa0] sm:$0xff] %v442_v52 }
  0x49   : > { %445 = vst [vmem:[%s3687_s15 + $0xa8] sm:$0xff] %v444_v53 }
  0x4a   : > { %447 = vst [vmem:[%s3687_s15 + $0xb0] sm:$0xff] %v446_v54 }
  0x4b   : > { %449 = vst [vmem:[%s3687_s15 + $0xb8] sm:$0xff] %v448_v55 }
  0x4c   : > { %451 = vst [vmem:[%s3687_s15 + $0xc0] sm:$0xff] %v450_v56 }
  0x4d   : > { %453 = vst [vmem:[%s3687_s15 + $0xc8] sm:$0xff] %v452_v57 }
  0x4e   : > { %455 = vst [vmem:[%s3687_s15 + $0xd0] sm:$0xff] %v454_v58 }
  0x4f   : > { %457 = vst [vmem:[%s3687_s15 + $0xd8] sm:$0xff] %v456_v59 }
  0x50   : > { %459 = vst [vmem:[%s3687_s15 + $0xe0] sm:$0xff] %v458_v60 }
  0x51   : > { %461 = vst [vmem:[%s3687_s15 + $0xe8] sm:$0xff] %v460_v61 }
  0x52   : > { %463 = vst [vmem:[%s3687_s15 + $0xf0] sm:$0xff] %v462_v62 }
  0x53   : > { %465 = vst [vmem:[%s3687_s15 + $0xf8] sm:$0xff] %v464_v63 }
  0x54 PF: > { %471 = sbr.rel (!%p3595_p3) target bundleno = 152 (0x98), region = 74  ;;  %s473_s18 = sand.u32 (%p3595_p3), 1, %s3509_s10  }
  0x55   : > { %s3457_s19 = sshll.u32 (%p3595_p3), %s3513_s11, 6  ;;  %s3372_s20 = sshll.u32 (%p3595_p3), %s473_s18, 9 }
  0x56   : > { %s3757_s23 = scalar_lea.vmem (%p3595_p3), %s4746_s4, %s3457_s19  ;;  %s3762_s24 = scalar_lea.vmem (%p3595_p3), [#allocation4], %s3372_s20 }
  0x57   : > { %v491_v0 = vld [vmem:[%s3757_s23] sm:$0xff] (%p3595_p3)  ;;  %v493_v1 = vld [vmem:[%s3757_s23 + $0x8] sm:$0xff] (%p3595_p3)  ;;  %v495_v2 = vld [vmem:[%s3757_s23 + $0x10] sm:$0xff] (%p3595_p3) }
  0x58   : > { %492 = vst [vmem:[%s3762_s24] sm:$0xff] (%p3595_p3), %v491_v0  ;;  %v497_v3 = vld [vmem:[%s3757_s23 + $0x18] sm:$0xff] (%p3595_p3)  ;;  %v499_v4 = vld [vmem:[%s3757_s23 + $0x20] sm:$0xff] (%p3595_p3)  ;;  %v501_v5 = vld [vmem:[%s3757_s23 + $0x28] sm:$0xff] (%p3595_p3) }
  0x59   : > { %494 = vst [vmem:[%s3762_s24 + $0x8] sm:$0xff] %v493_v1  ;;  %v503_v6 = vld [vmem:[%s3757_s23 + $0x30] sm:$0xff]  ;;  %v505_v7 = vld [vmem:[%s3757_s23 + $0x38] sm:$0xff]  ;;  %v507_v8 = vld [vmem:[%s3757_s23 + $0x400] sm:$0xff] }
  0x5a   : > { %496 = vst [vmem:[%s3762_s24 + $0x10] sm:$0xff] %v495_v2  ;;  %v509_v9 = vld [vmem:[%s3757_s23 + $0x408] sm:$0xff]  ;;  %v511_v10 = vld [vmem:[%s3757_s23 + $0x410] sm:$0xff]  ;;  %v513_v11 = vld [vmem:[%s3757_s23 + $0x418] sm:$0xff] }
  0x5b   : > { %498 = vst [vmem:[%s3762_s24 + $0x18] sm:$0xff] %v497_v3  ;;  %v515_v12 = vld [vmem:[%s3757_s23 + $0x420] sm:$0xff]  ;;  %v517_v13 = vld [vmem:[%s3757_s23 + $0x428] sm:$0xff]  ;;  %v519_v14 = vld [vmem:[%s3757_s23 + $0x430] sm:$0xff] }
  0x5c   : > { %500 = vst [vmem:[%s3762_s24 + $0x20] sm:$0xff] %v499_v4  ;;  %v521_v15 = vld [vmem:[%s3757_s23 + $0x438] sm:$0xff]  ;;  %v523_v16 = vld [vmem:[%s3757_s23 + $0x800] sm:$0xff]  ;;  %v525_v17 = vld [vmem:[%s3757_s23 + $0x808] sm:$0xff] }
  0x5d   : > { %502 = vst [vmem:[%s3762_s24 + $0x28] sm:$0xff] %v501_v5  ;;  %v527_v18 = vld [vmem:[%s3757_s23 + $0x810] sm:$0xff]  ;;  %v529_v19 = vld [vmem:[%s3757_s23 + $0x818] sm:$0xff]  ;;  %v531_v20 = vld [vmem:[%s3757_s23 + $0x820] sm:$0xff] }
  0x5e   : > { %504 = vst [vmem:[%s3762_s24 + $0x30] sm:$0xff] %v503_v6  ;;  %v533_v21 = vld [vmem:[%s3757_s23 + $0x828] sm:$0xff]  ;;  %v535_v22 = vld [vmem:[%s3757_s23 + $0x830] sm:$0xff]  ;;  %v537_v23 = vld [vmem:[%s3757_s23 + $0x838] sm:$0xff] }
  0x5f   : > { %506 = vst [vmem:[%s3762_s24 + $0x38] sm:$0xff] %v505_v7  ;;  %v539_v24 = vld [vmem:[%s3757_s23 + $0xc00] sm:$0xff]  ;;  %v541_v25 = vld [vmem:[%s3757_s23 + $0xc08] sm:$0xff]  ;;  %v543_v26 = vld [vmem:[%s3757_s23 + $0xc10] sm:$0xff] }
  0x60   : > { %508 = vst [vmem:[%s3762_s24 + $0x40] sm:$0xff] %v507_v8  ;;  %v545_v27 = vld [vmem:[%s3757_s23 + $0xc18] sm:$0xff]  ;;  %v547_v28 = vld [vmem:[%s3757_s23 + $0xc20] sm:$0xff]  ;;  %v549_v29 = vld [vmem:[%s3757_s23 + $0xc28] sm:$0xff] }
  0x61   : > { %510 = vst [vmem:[%s3762_s24 + $0x48] sm:$0xff] %v509_v9  ;;  %v551_v30 = vld [vmem:[%s3757_s23 + $0xc30] sm:$0xff]  ;;  %v553_v31 = vld [vmem:[%s3757_s23 + $0xc38] sm:$0xff]  ;;  %v555_v32 = vld [vmem:[%s3757_s23 + $0x1000] sm:$0xff] }
  0x62   : > { %512 = vst [vmem:[%s3762_s24 + $0x50] sm:$0xff] %v511_v10  ;;  %v557_v33 = vld [vmem:[%s3757_s23 + $0x1008] sm:$0xff]  ;;  %v559_v34 = vld [vmem:[%s3757_s23 + $0x1010] sm:$0xff]  ;;  %v561_v35 = vld [vmem:[%s3757_s23 + $0x1018] sm:$0xff] }
  0x63   : > { %514 = vst [vmem:[%s3762_s24 + $0x58] sm:$0xff] %v513_v11  ;;  %v563_v36 = vld [vmem:[%s3757_s23 + $0x1020] sm:$0xff]  ;;  %v565_v37 = vld [vmem:[%s3757_s23 + $0x1028] sm:$0xff]  ;;  %v567_v38 = vld [vmem:[%s3757_s23 + $0x1030] sm:$0xff] }
  0x64   : > { %516 = vst [vmem:[%s3762_s24 + $0x60] sm:$0xff] %v515_v12  ;;  %v569_v39 = vld [vmem:[%s3757_s23 + $0x1038] sm:$0xff]  ;;  %v571_v40 = vld [vmem:[%s3757_s23 + $0x1400] sm:$0xff]  ;;  %v573_v41 = vld [vmem:[%s3757_s23 + $0x1408] sm:$0xff] }
  0x65   : > { %518 = vst [vmem:[%s3762_s24 + $0x68] sm:$0xff] %v517_v13  ;;  %v575_v42 = vld [vmem:[%s3757_s23 + $0x1410] sm:$0xff]  ;;  %v577_v43 = vld [vmem:[%s3757_s23 + $0x1418] sm:$0xff]  ;;  %v579_v44 = vld [vmem:[%s3757_s23 + $0x1420] sm:$0xff] }
  0x66   : > { %520 = vst [vmem:[%s3762_s24 + $0x70] sm:$0xff] %v519_v14  ;;  %v581_v45 = vld [vmem:[%s3757_s23 + $0x1428] sm:$0xff]  ;;  %v583_v46 = vld [vmem:[%s3757_s23 + $0x1430] sm:$0xff]  ;;  %v585_v47 = vld [vmem:[%s3757_s23 + $0x1438] sm:$0xff] }
  0x67   : > { %522 = vst [vmem:[%s3762_s24 + $0x78] sm:$0xff] %v521_v15  ;;  %v587_v48 = vld [vmem:[%s3757_s23 + $0x1800] sm:$0xff]  ;;  %v589_v49 = vld [vmem:[%s3757_s23 + $0x1808] sm:$0xff]  ;;  %v591_v50 = vld [vmem:[%s3757_s23 + $0x1810] sm:$0xff] }
  0x68   : > { %524 = vst [vmem:[%s3762_s24 + $0x80] sm:$0xff] %v523_v16  ;;  %v593_v51 = vld [vmem:[%s3757_s23 + $0x1818] sm:$0xff]  ;;  %v595_v52 = vld [vmem:[%s3757_s23 + $0x1820] sm:$0xff]  ;;  %v597_v53 = vld [vmem:[%s3757_s23 + $0x1828] sm:$0xff] }
  0x69   : > { %526 = vst [vmem:[%s3762_s24 + $0x88] sm:$0xff] %v525_v17  ;;  %v599_v54 = vld [vmem:[%s3757_s23 + $0x1830] sm:$0xff]  ;;  %v601_v55 = vld [vmem:[%s3757_s23 + $0x1838] sm:$0xff]  ;;  %v603_v56 = vld [vmem:[%s3757_s23 + $0x1c00] sm:$0xff] }
  0x6a   : > { %528 = vst [vmem:[%s3762_s24 + $0x90] sm:$0xff] %v527_v18  ;;  %v605_v57 = vld [vmem:[%s3757_s23 + $0x1c08] sm:$0xff]  ;;  %v607_v58 = vld [vmem:[%s3757_s23 + $0x1c10] sm:$0xff]  ;;  %v609_v59 = vld [vmem:[%s3757_s23 + $0x1c18] sm:$0xff] }
  0x6b   : > { %530 = vst [vmem:[%s3762_s24 + $0x98] sm:$0xff] %v529_v19  ;;  %v611_v60 = vld [vmem:[%s3757_s23 + $0x1c20] sm:$0xff]  ;;  %v613_v61 = vld [vmem:[%s3757_s23 + $0x1c28] sm:$0xff]  ;;  %v615_v62 = vld [vmem:[%s3757_s23 + $0x1c30] sm:$0xff] }
  0x6c   : > { %532 = vst [vmem:[%s3762_s24 + $0xa0] sm:$0xff] %v531_v20  ;;  %v617_v63 = vld [vmem:[%s3757_s23 + $0x1c38] sm:$0xff] }
  0x6d   : > { %534 = vst [vmem:[%s3762_s24 + $0xa8] sm:$0xff] %v533_v21 }
  0x6e   : > { %536 = vst [vmem:[%s3762_s24 + $0xb0] sm:$0xff] %v535_v22 }
  0x6f   : > { %538 = vst [vmem:[%s3762_s24 + $0xb8] sm:$0xff] %v537_v23 }
  0x70   : > { %540 = vst [vmem:[%s3762_s24 + $0xc0] sm:$0xff] %v539_v24 }
  0x71   : > { %542 = vst [vmem:[%s3762_s24 + $0xc8] sm:$0xff] %v541_v25 }
  0x72   : > { %544 = vst [vmem:[%s3762_s24 + $0xd0] sm:$0xff] %v543_v26 }
  0x73   : > { %546 = vst [vmem:[%s3762_s24 + $0xd8] sm:$0xff] %v545_v27 }
  0x74   : > { %548 = vst [vmem:[%s3762_s24 + $0xe0] sm:$0xff] %v547_v28 }
  0x75   : > { %550 = vst [vmem:[%s3762_s24 + $0xe8] sm:$0xff] %v549_v29 }
  0x76   : > { %552 = vst [vmem:[%s3762_s24 + $0xf0] sm:$0xff] %v551_v30 }
  0x77   : > { %554 = vst [vmem:[%s3762_s24 + $0xf8] sm:$0xff] %v553_v31 }
  0x78   : > { %556 = vst [vmem:[%s3762_s24 + $0x100] sm:$0xff] %v555_v32 }
  0x79   : > { %558 = vst [vmem:[%s3762_s24 + $0x108] sm:$0xff] %v557_v33 }
  0x7a   : > { %560 = vst [vmem:[%s3762_s24 + $0x110] sm:$0xff] %v559_v34 }
  0x7b   : > { %562 = vst [vmem:[%s3762_s24 + $0x118] sm:$0xff] %v561_v35 }
  0x7c   : > { %564 = vst [vmem:[%s3762_s24 + $0x120] sm:$0xff] %v563_v36 }
  0x7d   : > { %566 = vst [vmem:[%s3762_s24 + $0x128] sm:$0xff] %v565_v37 }
  0x7e   : > { %568 = vst [vmem:[%s3762_s24 + $0x130] sm:$0xff] %v567_v38 }
  0x7f   : > { %570 = vst [vmem:[%s3762_s24 + $0x138] sm:$0xff] %v569_v39 }
  0x80   : > { %572 = vst [vmem:[%s3762_s24 + $0x140] sm:$0xff] %v571_v40 }
  0x81   : > { %574 = vst [vmem:[%s3762_s24 + $0x148] sm:$0xff] %v573_v41 }
  0x82   : > { %576 = vst [vmem:[%s3762_s24 + $0x150] sm:$0xff] %v575_v42 }
  0x83   : > { %578 = vst [vmem:[%s3762_s24 + $0x158] sm:$0xff] %v577_v43 }
  0x84   : > { %580 = vst [vmem:[%s3762_s24 + $0x160] sm:$0xff] %v579_v44 }
  0x85   : > { %582 = vst [vmem:[%s3762_s24 + $0x168] sm:$0xff] %v581_v45 }
  0x86   : > { %584 = vst [vmem:[%s3762_s24 + $0x170] sm:$0xff] %v583_v46 }
  0x87   : > { %586 = vst [vmem:[%s3762_s24 + $0x178] sm:$0xff] %v585_v47 }
  0x88   : > { %588 = vst [vmem:[%s3762_s24 + $0x180] sm:$0xff] %v587_v48 }
  0x89   : > { %590 = vst [vmem:[%s3762_s24 + $0x188] sm:$0xff] %v589_v49 }
  0x8a   : > { %592 = vst [vmem:[%s3762_s24 + $0x190] sm:$0xff] %v591_v50 }
  0x8b   : > { %594 = vst [vmem:[%s3762_s24 + $0x198] sm:$0xff] %v593_v51 }
  0x8c   : > { %596 = vst [vmem:[%s3762_s24 + $0x1a0] sm:$0xff] %v595_v52 }
  0x8d   : > { %598 = vst [vmem:[%s3762_s24 + $0x1a8] sm:$0xff] %v597_v53 }
  0x8e   : > { %600 = vst [vmem:[%s3762_s24 + $0x1b0] sm:$0xff] %v599_v54 }
  0x8f   : > { %602 = vst [vmem:[%s3762_s24 + $0x1b8] sm:$0xff] %v601_v55 }
  0x90   : > { %604 = vst [vmem:[%s3762_s24 + $0x1c0] sm:$0xff] %v603_v56 }
  0x91   : > { %606 = vst [vmem:[%s3762_s24 + $0x1c8] sm:$0xff] %v605_v57 }
  0x92   : > { %608 = vst [vmem:[%s3762_s24 + $0x1d0] sm:$0xff] %v607_v58 }
  0x93   : > { %610 = vst [vmem:[%s3762_s24 + $0x1d8] sm:$0xff] %v609_v59 }
  0x94   : > { %612 = vst [vmem:[%s3762_s24 + $0x1e0] sm:$0xff] %v611_v60 }
  0x95   : > { %614 = vst [vmem:[%s3762_s24 + $0x1e8] sm:$0xff] %v613_v61 }
  0x96   : > { %616 = vst [vmem:[%s3762_s24 + $0x1f0] sm:$0xff] %v615_v62 }
  0x97   : > { %618 = vst [vmem:[%s3762_s24 + $0x1f8] sm:$0xff] %v617_v63 }
  0x98 PF: > { %624 = sbr.rel (!%p3595_p3) target bundleno = 220 (0xdc), region = 97  ;;  %s626_s25 = sand.u32 (%p3595_p3), 1, %s3509_s10  }
  0x99   : > { %s3458_s26 = sshll.u32 (%p3595_p3), %s3513_s11, 6  ;;  %s3375_s27 = sshll.u32 (%p3595_p3), %s626_s25, 9 }
  0x9a   : > { %s3896_s14 = scalar_lea.vmem (%p3595_p3), %s4747_s5, %s3458_s26  ;;  %s3901_s17 = scalar_lea.vmem (%p3595_p3), [#allocation5], %s3375_s27 }
  0x9b   : > { %v644_v0 = vld [vmem:[%s3896_s14] sm:$0xff] (%p3595_p3)  ;;  %v646_v1 = vld [vmem:[%s3896_s14 + $0x8] sm:$0xff] (%p3595_p3)  ;;  %v648_v2 = vld [vmem:[%s3896_s14 + $0x10] sm:$0xff] (%p3595_p3) }
  0x9c   : > { %645 = vst [vmem:[%s3901_s17] sm:$0xff] (%p3595_p3), %v644_v0  ;;  %v650_v3 = vld [vmem:[%s3896_s14 + $0x18] sm:$0xff] (%p3595_p3)  ;;  %v652_v4 = vld [vmem:[%s3896_s14 + $0x20] sm:$0xff] (%p3595_p3)  ;;  %v654_v5 = vld [vmem:[%s3896_s14 + $0x28] sm:$0xff] (%p3595_p3) }
  0x9d   : > { %647 = vst [vmem:[%s3901_s17 + $0x8] sm:$0xff] %v646_v1  ;;  %v656_v6 = vld [vmem:[%s3896_s14 + $0x30] sm:$0xff]  ;;  %v658_v7 = vld [vmem:[%s3896_s14 + $0x38] sm:$0xff]  ;;  %v660_v8 = vld [vmem:[%s3896_s14 + $0x400] sm:$0xff] }
  0x9e   : > { %649 = vst [vmem:[%s3901_s17 + $0x10] sm:$0xff] %v648_v2  ;;  %v662_v9 = vld [vmem:[%s3896_s14 + $0x408] sm:$0xff]  ;;  %v664_v10 = vld [vmem:[%s3896_s14 + $0x410] sm:$0xff]  ;;  %v666_v11 = vld [vmem:[%s3896_s14 + $0x418] sm:$0xff] }
  0x9f   : > { %651 = vst [vmem:[%s3901_s17 + $0x18] sm:$0xff] %v650_v3  ;;  %v668_v12 = vld [vmem:[%s3896_s14 + $0x420] sm:$0xff]  ;;  %v670_v13 = vld [vmem:[%s3896_s14 + $0x428] sm:$0xff]  ;;  %v672_v14 = vld [vmem:[%s3896_s14 + $0x430] sm:$0xff] }
  0xa0   : > { %653 = vst [vmem:[%s3901_s17 + $0x20] sm:$0xff] %v652_v4  ;;  %v674_v15 = vld [vmem:[%s3896_s14 + $0x438] sm:$0xff]  ;;  %v676_v16 = vld [vmem:[%s3896_s14 + $0x800] sm:$0xff]  ;;  %v678_v17 = vld [vmem:[%s3896_s14 + $0x808] sm:$0xff] }
  0xa1   : > { %655 = vst [vmem:[%s3901_s17 + $0x28] sm:$0xff] %v654_v5  ;;  %v680_v18 = vld [vmem:[%s3896_s14 + $0x810] sm:$0xff]  ;;  %v682_v19 = vld [vmem:[%s3896_s14 + $0x818] sm:$0xff]  ;;  %v684_v20 = vld [vmem:[%s3896_s14 + $0x820] sm:$0xff] }
  0xa2   : > { %657 = vst [vmem:[%s3901_s17 + $0x30] sm:$0xff] %v656_v6  ;;  %v686_v21 = vld [vmem:[%s3896_s14 + $0x828] sm:$0xff]  ;;  %v688_v22 = vld [vmem:[%s3896_s14 + $0x830] sm:$0xff]  ;;  %v690_v23 = vld [vmem:[%s3896_s14 + $0x838] sm:$0xff] }
  0xa3   : > { %659 = vst [vmem:[%s3901_s17 + $0x38] sm:$0xff] %v658_v7  ;;  %v692_v24 = vld [vmem:[%s3896_s14 + $0xc00] sm:$0xff]  ;;  %v694_v25 = vld [vmem:[%s3896_s14 + $0xc08] sm:$0xff]  ;;  %v696_v26 = vld [vmem:[%s3896_s14 + $0xc10] sm:$0xff] }
  0xa4   : > { %661 = vst [vmem:[%s3901_s17 + $0x40] sm:$0xff] %v660_v8  ;;  %v698_v27 = vld [vmem:[%s3896_s14 + $0xc18] sm:$0xff]  ;;  %v700_v28 = vld [vmem:[%s3896_s14 + $0xc20] sm:$0xff]  ;;  %v702_v29 = vld [vmem:[%s3896_s14 + $0xc28] sm:$0xff] }
  0xa5   : > { %663 = vst [vmem:[%s3901_s17 + $0x48] sm:$0xff] %v662_v9  ;;  %v704_v30 = vld [vmem:[%s3896_s14 + $0xc30] sm:$0xff]  ;;  %v706_v31 = vld [vmem:[%s3896_s14 + $0xc38] sm:$0xff]  ;;  %v708_v32 = vld [vmem:[%s3896_s14 + $0x1000] sm:$0xff] }
  0xa6   : > { %665 = vst [vmem:[%s3901_s17 + $0x50] sm:$0xff] %v664_v10  ;;  %v710_v33 = vld [vmem:[%s3896_s14 + $0x1008] sm:$0xff]  ;;  %v712_v34 = vld [vmem:[%s3896_s14 + $0x1010] sm:$0xff]  ;;  %v714_v35 = vld [vmem:[%s3896_s14 + $0x1018] sm:$0xff] }
  0xa7   : > { %667 = vst [vmem:[%s3901_s17 + $0x58] sm:$0xff] %v666_v11  ;;  %v716_v36 = vld [vmem:[%s3896_s14 + $0x1020] sm:$0xff]  ;;  %v718_v37 = vld [vmem:[%s3896_s14 + $0x1028] sm:$0xff]  ;;  %v720_v38 = vld [vmem:[%s3896_s14 + $0x1030] sm:$0xff] }
  0xa8   : > { %669 = vst [vmem:[%s3901_s17 + $0x60] sm:$0xff] %v668_v12  ;;  %v722_v39 = vld [vmem:[%s3896_s14 + $0x1038] sm:$0xff]  ;;  %v724_v40 = vld [vmem:[%s3896_s14 + $0x1400] sm:$0xff]  ;;  %v726_v41 = vld [vmem:[%s3896_s14 + $0x1408] sm:$0xff] }
  0xa9   : > { %671 = vst [vmem:[%s3901_s17 + $0x68] sm:$0xff] %v670_v13  ;;  %v728_v42 = vld [vmem:[%s3896_s14 + $0x1410] sm:$0xff]  ;;  %v730_v43 = vld [vmem:[%s3896_s14 + $0x1418] sm:$0xff]  ;;  %v732_v44 = vld [vmem:[%s3896_s14 + $0x1420] sm:$0xff] }
  0xaa   : > { %673 = vst [vmem:[%s3901_s17 + $0x70] sm:$0xff] %v672_v14  ;;  %v734_v45 = vld [vmem:[%s3896_s14 + $0x1428] sm:$0xff]  ;;  %v736_v46 = vld [vmem:[%s3896_s14 + $0x1430] sm:$0xff]  ;;  %v738_v47 = vld [vmem:[%s3896_s14 + $0x1438] sm:$0xff] }
  0xab   : > { %675 = vst [vmem:[%s3901_s17 + $0x78] sm:$0xff] %v674_v15  ;;  %v740_v48 = vld [vmem:[%s3896_s14 + $0x1800] sm:$0xff]  ;;  %v742_v49 = vld [vmem:[%s3896_s14 + $0x1808] sm:$0xff]  ;;  %v744_v50 = vld [vmem:[%s3896_s14 + $0x1810] sm:$0xff] }
  0xac   : > { %677 = vst [vmem:[%s3901_s17 + $0x80] sm:$0xff] %v676_v16  ;;  %v746_v51 = vld [vmem:[%s3896_s14 + $0x1818] sm:$0xff]  ;;  %v748_v52 = vld [vmem:[%s3896_s14 + $0x1820] sm:$0xff]  ;;  %v750_v53 = vld [vmem:[%s3896_s14 + $0x1828] sm:$0xff] }
  0xad   : > { %679 = vst [vmem:[%s3901_s17 + $0x88] sm:$0xff] %v678_v17  ;;  %v752_v54 = vld [vmem:[%s3896_s14 + $0x1830] sm:$0xff]  ;;  %v754_v55 = vld [vmem:[%s3896_s14 + $0x1838] sm:$0xff]  ;;  %v756_v56 = vld [vmem:[%s3896_s14 + $0x1c00] sm:$0xff] }
  0xae   : > { %681 = vst [vmem:[%s3901_s17 + $0x90] sm:$0xff] %v680_v18  ;;  %v758_v57 = vld [vmem:[%s3896_s14 + $0x1c08] sm:$0xff]  ;;  %v760_v58 = vld [vmem:[%s3896_s14 + $0x1c10] sm:$0xff]  ;;  %v762_v59 = vld [vmem:[%s3896_s14 + $0x1c18] sm:$0xff] }
  0xaf   : > { %683 = vst [vmem:[%s3901_s17 + $0x98] sm:$0xff] %v682_v19  ;;  %v764_v60 = vld [vmem:[%s3896_s14 + $0x1c20] sm:$0xff]  ;;  %v766_v61 = vld [vmem:[%s3896_s14 + $0x1c28] sm:$0xff]  ;;  %v768_v62 = vld [vmem:[%s3896_s14 + $0x1c30] sm:$0xff] }
  0xb0   : > { %685 = vst [vmem:[%s3901_s17 + $0xa0] sm:$0xff] %v684_v20  ;;  %v770_v63 = vld [vmem:[%s3896_s14 + $0x1c38] sm:$0xff] }
  0xb1   : > { %687 = vst [vmem:[%s3901_s17 + $0xa8] sm:$0xff] %v686_v21 }
  0xb2   : > { %689 = vst [vmem:[%s3901_s17 + $0xb0] sm:$0xff] %v688_v22 }
  0xb3   : > { %691 = vst [vmem:[%s3901_s17 + $0xb8] sm:$0xff] %v690_v23 }
  0xb4   : > { %693 = vst [vmem:[%s3901_s17 + $0xc0] sm:$0xff] %v692_v24 }
  0xb5   : > { %695 = vst [vmem:[%s3901_s17 + $0xc8] sm:$0xff] %v694_v25 }
  0xb6   : > { %697 = vst [vmem:[%s3901_s17 + $0xd0] sm:$0xff] %v696_v26 }
  0xb7   : > { %699 = vst [vmem:[%s3901_s17 + $0xd8] sm:$0xff] %v698_v27 }
  0xb8   : > { %701 = vst [vmem:[%s3901_s17 + $0xe0] sm:$0xff] %v700_v28 }
  0xb9   : > { %703 = vst [vmem:[%s3901_s17 + $0xe8] sm:$0xff] %v702_v29 }
  0xba   : > { %705 = vst [vmem:[%s3901_s17 + $0xf0] sm:$0xff] %v704_v30 }
  0xbb   : > { %707 = vst [vmem:[%s3901_s17 + $0xf8] sm:$0xff] %v706_v31 }
  0xbc   : > { %709 = vst [vmem:[%s3901_s17 + $0x100] sm:$0xff] %v708_v32 }
  0xbd   : > { %711 = vst [vmem:[%s3901_s17 + $0x108] sm:$0xff] %v710_v33 }
  0xbe   : > { %713 = vst [vmem:[%s3901_s17 + $0x110] sm:$0xff] %v712_v34 }
  0xbf   : > { %715 = vst [vmem:[%s3901_s17 + $0x118] sm:$0xff] %v714_v35 }
  0xc0   : > { %717 = vst [vmem:[%s3901_s17 + $0x120] sm:$0xff] %v716_v36 }
  0xc1   : > { %719 = vst [vmem:[%s3901_s17 + $0x128] sm:$0xff] %v718_v37 }
  0xc2   : > { %721 = vst [vmem:[%s3901_s17 + $0x130] sm:$0xff] %v720_v38 }
  0xc3   : > { %723 = vst [vmem:[%s3901_s17 + $0x138] sm:$0xff] %v722_v39 }
  0xc4   : > { %725 = vst [vmem:[%s3901_s17 + $0x140] sm:$0xff] %v724_v40 }
  0xc5   : > { %727 = vst [vmem:[%s3901_s17 + $0x148] sm:$0xff] %v726_v41 }
  0xc6   : > { %729 = vst [vmem:[%s3901_s17 + $0x150] sm:$0xff] %v728_v42 }
  0xc7   : > { %731 = vst [vmem:[%s3901_s17 + $0x158] sm:$0xff] %v730_v43 }
  0xc8   : > { %733 = vst [vmem:[%s3901_s17 + $0x160] sm:$0xff] %v732_v44 }
  0xc9   : > { %735 = vst [vmem:[%s3901_s17 + $0x168] sm:$0xff] %v734_v45 }
  0xca   : > { %737 = vst [vmem:[%s3901_s17 + $0x170] sm:$0xff] %v736_v46 }
  0xcb   : > { %739 = vst [vmem:[%s3901_s17 + $0x178] sm:$0xff] %v738_v47 }
  0xcc   : > { %741 = vst [vmem:[%s3901_s17 + $0x180] sm:$0xff] %v740_v48 }
  0xcd   : > { %743 = vst [vmem:[%s3901_s17 + $0x188] sm:$0xff] %v742_v49 }
  0xce   : > { %745 = vst [vmem:[%s3901_s17 + $0x190] sm:$0xff] %v744_v50 }
  0xcf   : > { %747 = vst [vmem:[%s3901_s17 + $0x198] sm:$0xff] %v746_v51 }
  0xd0   : > { %749 = vst [vmem:[%s3901_s17 + $0x1a0] sm:$0xff] %v748_v52 }
  0xd1   : > { %751 = vst [vmem:[%s3901_s17 + $0x1a8] sm:$0xff] %v750_v53 }
  0xd2   : > { %753 = vst [vmem:[%s3901_s17 + $0x1b0] sm:$0xff] %v752_v54 }
  0xd3   : > { %755 = vst [vmem:[%s3901_s17 + $0x1b8] sm:$0xff] %v754_v55 }
  0xd4   : > { %757 = vst [vmem:[%s3901_s17 + $0x1c0] sm:$0xff] %v756_v56 }
  0xd5   : > { %759 = vst [vmem:[%s3901_s17 + $0x1c8] sm:$0xff] %v758_v57 }
  0xd6   : > { %761 = vst [vmem:[%s3901_s17 + $0x1d0] sm:$0xff] %v760_v58 }
  0xd7   : > { %763 = vst [vmem:[%s3901_s17 + $0x1d8] sm:$0xff] %v762_v59 }
  0xd8   : > { %765 = vst [vmem:[%s3901_s17 + $0x1e0] sm:$0xff] %v764_v60 }
  0xd9   : > { %767 = vst [vmem:[%s3901_s17 + $0x1e8] sm:$0xff] %v766_v61 }
  0xda   : > { %769 = vst [vmem:[%s3901_s17 + $0x1f0] sm:$0xff] %v768_v62 }
  0xdb   : > { %771 = vst [vmem:[%s3901_s17 + $0x1f8] sm:$0xff] %v770_v63 }
  0xdc PF: > { %p3378_p5 = scmp.ge.s32.totalorder %s3513_s11, 1  ;;  %p794_p6 = scmp.lt.s32.totalorder %s3513_s11, 17 }
  0xde   : > { %p795_p7 = pnand %p3378_p5, %p794_p6 }
  0xdf   : > { %s801_s15 = sand.u32 (!%p795_p7), 1, %s3505_s30   ;;  %s3383_s28 = sshll.u32 (!%p795_p7), %s3581_s12, 7 }
  0xe0   : > { %798 = sbr.rel (%p795_p7) target bundleno = 1202 (0x4b2), region = 128  ;;  %s4033_s18 = sshll.u32 (!%p795_p7), %s801_s15, 8 }
  0xe1   : > { %s4036_s19 = scalar_lea.vmem (!%p795_p7), [#allocation2], %s4033_s18  ;;  %s4084_s21 = scalar_lea.vmem (!%p795_p7), [#allocation3], %s4033_s18 }
  0xe2   : > { %s4120_s22 = sshll.u32 (!%p795_p7), %s801_s15, 9  ;;  %p887_p8 = scmp.lt.s32.totalorder (!%p795_p7), %s3383_s28, 2047 }
  0xe3   : > { %s4139_s30 = scalar_lea.vmem (!%p795_p7), [#allocation4], %s4120_s22  ;;  %s4240_s27 = scalar_lea.vmem (!%p795_p7), [#allocation5], %s4120_s22 }
  0xe4   : > { %p898_p9 = scmp.lt.s32.totalorder (!%p795_p7), %s3581_s12, 15 }
  0xe5   : > { %v933_v0 = vld [vmem:[%s4036_s19 + $0xc0] sm:$0xff]  ;;  %v934_v1 = vld [vmem:[%s4036_s19 + $0xc8] sm:$0xff]  ;;  %v935_v2 = vld [vmem:[%s4036_s19 + $0xd0] sm:$0xff]  ;;  %vm941_vm0 = vcmask 261120   ;;  %vm1361_vm1 = vcmask 523264   ;;  %vm1821_vm2 = vcmask 1044484  }
  0xe6   : > { %957 = vmatpush.msra.mxu0 %v933_v0  ;;  %977 = vmatpush.msra.mxu1 %v934_v1  ;;  %v936_v3 = vld [vmem:[%s4036_s19 + $0xd8] sm:$0xff]  ;;  %v925_v4 = vld [vmem:[%s4036_s19 + $0x80] sm:$0xff]  ;;  %v926_v5 = vld [vmem:[%s4036_s19 + $0x88] sm:$0xff]  ;;  %vm1823_vm3 = vcmask 1046534   ;;  %vm1815_vm4 = vcmask 1040384   ;;  %vm1817_vm5 = vcmask 1042434  }
  0xe7   : > { %997 = vmatpush.msra.mxu2 %v935_v2  ;;  %1017 = vmatpush.msra.mxu3 %v936_v3  ;;  %v927_v6 = vld [vmem:[%s4036_s19 + $0x90] sm:$0xff]  ;;  %v928_v7 = vld [vmem:[%s4036_s19 + $0x98] sm:$0xff]  ;;  %v917_v8 = vld [vmem:[%s4036_s19 + $0x40] sm:$0xff]  ;;  %vm1825_vm6 = vcmask 1045508   ;;  %vm1819_vm7 = vcmask 1041408   ;;  %vm1827_vm8 = vcmask 1043456  }
  0xe8   : > { %958 = vmatpush.msra.mxu0 %v925_v4  ;;  %978 = vmatpush.msra.mxu1 %v926_v5  ;;  %v918_v9 = vld [vmem:[%s4036_s19 + $0x48] sm:$0xff]  ;;  %v919_v10 = vld [vmem:[%s4036_s19 + $0x50] sm:$0xff]  ;;  %v920_v11 = vld [vmem:[%s4036_s19 + $0x58] sm:$0xff]  ;;  %vm1835_vm9 = vcmask 1045509   ;;  %vm1837_vm10 = vcmask 1046528   ;;  %vm1829_vm11 = vcmask 1041409  }
  0xe9   : > { %998 = vmatpush.msra.mxu2 %v927_v6  ;;  %1018 = vmatpush.msra.mxu3 %v928_v7  ;;  %v909_v12 = vld [vmem:[%s4036_s19] sm:$0xff]  ;;  %v910_v13 = vld [vmem:[%s4036_s19 + $0x8] sm:$0xff]  ;;  %v911_v14 = vld [vmem:[%s4036_s19 + $0x10] sm:$0xff]  ;;  %vm1831_vm12 = vcmask 1043459   ;;  %vm1839_vm13 = vcmask 1046533   ;;  %vm1833_vm14 = vcmask 1042433  }
  0xea   : > { %959 = vmatpush.msra.mxu0 %v917_v8  ;;  %979 = vmatpush.msra.mxu1 %v918_v9  ;;  %v912_v15 = vld [vmem:[%s4036_s19 + $0x18] sm:$0xff]  ;;  %v4057_v16 = vld [vmem:[%s4742_s0] sm:$0x3]  ;;  %v938_v18 = vld [vmem:[%s4036_s19 + $0xe8] sm:$0xff]  ;;  %vm1841_vm15 = vcmask 1044481   ;;  %s4757_s28 = smov (!%p887_p8, %s3383_s28), 2047 }
  0xeb   : > { %999 = vmatpush.msra.mxu2 %v919_v10  ;;  %1019 = vmatpush.msra.mxu3 %v920_v11  ;;  %v937_v17 = vld [vmem:[%s4036_s19 + $0xe0] sm:$0xff]  ;;  %v939_v19 = vld [vmem:[%s4036_s19 + $0xf0] sm:$0xff]  ;;  %v940_v20 = vld [vmem:[%s4036_s19 + $0xf8] sm:$0xff]  ;;  %s3384_s29 = sshll.u32 %s4757_s28, 3  ;;  %s4759_s12 = smov (!%p898_p9, %s3581_s12), 15 }
  0xec   : > { %960 = vmatpush.msra.mxu0 %v909_v12  ;;  %980 = vmatpush.msra.mxu1 %v910_v13  ;;  %v929_v21 = vld [vmem:[%s4036_s19 + $0xa0] sm:$0xff]  ;;  %v930_v22 = vld [vmem:[%s4036_s19 + $0xa8] sm:$0xff]  ;;  %v931_v23 = vld [vmem:[%s4036_s19 + $0xb0] sm:$0xff]  ;;  %s4429_s15 = scalar_lea.vmem %s4748_s6, %s3384_s29  ;;  %s4576_s11 = scalar_lea.vmem %s4749_s7, %s3384_s29 }
  0xed   : > { %1000 = vmatpush.msra.mxu2 %v911_v14  ;;  %1020 = vmatpush.msra.mxu3 %v912_v15  ;;  %v932_v24 = vld [vmem:[%s4036_s19 + $0xb8] sm:$0xff]  ;;  %v921_v25 = vld [vmem:[%s4036_s19 + $0x60] sm:$0xff]  ;;  %v922_v26 = vld [vmem:[%s4036_s19 + $0x68] sm:$0xff]  ;;  %s3387_s20 = sshll.u32 %s4759_s12, 1 }
  0xee   : > { %3391 = vmatmul.msk.f32.vlgmr.msra.gmra.mxu2 %vm941_vm0, %v4057_v16  ;;  %3392 = vmatmul.msk.f32.vlgmr.msra.gmra.mxu3 %vm941_vm0, %v4057_v16  ;;  %v923_v27 = vld [vmem:[%s4036_s19 + $0x70] sm:$0xff]  ;;  %v924_v28 = vld [vmem:[%s4036_s19 + $0x78] sm:$0xff]  ;;  %v913_v29 = vld [vmem:[%s4036_s19 + $0x20] sm:$0xff]  ;;  %s905_s24 = scalar_lea.vmem %s4751_s9, %s3387_s20 }
  0xef   : > { %1037 = vmatpush.msrb.mxu0 %v937_v17  ;;  %1057 = vmatpush.msrb.mxu1 %v938_v18  ;;  %v914_v30 = vld [vmem:[%s4036_s19 + $0x28] sm:$0xff]  ;;  %v915_v31 = vld [vmem:[%s4036_s19 + $0x30] sm:$0xff]  ;;  %v916_v32 = vld [vmem:[%s4036_s19 + $0x38] sm:$0xff] }
  0xf0   : > { %1077 = vmatpush.msrb.mxu2 %v939_v19  ;;  %1097 = vmatpush.msrb.mxu3 %v940_v20  ;;  %v1129_v33 = vld [vmem:[%s4084_s21 + $0xc0] sm:$0xff]  ;;  %v1130_v34 = vld [vmem:[%s4084_s21 + $0xc8] sm:$0xff]  ;;  %v1131_v35 = vld [vmem:[%s4084_s21 + $0xd0] sm:$0xff] }
  0xf1   : > { %1038 = vmatpush.msrb.mxu0 %v929_v21  ;;  %1058 = vmatpush.msrb.mxu1 %v930_v22  ;;  %v1132_v36 = vld [vmem:[%s4084_s21 + $0xd8] sm:$0xff]  ;;  %v1121_v37 = vld [vmem:[%s4084_s21 + $0x80] sm:$0xff]  ;;  %v1122_v38 = vld [vmem:[%s4084_s21 + $0x88] sm:$0xff] }
  0xf2   : > { %1078 = vmatpush.msrb.mxu2 %v931_v23  ;;  %1098 = vmatpush.msrb.mxu3 %v932_v24  ;;  %v1123_v39 = vld [vmem:[%s4084_s21 + $0x90] sm:$0xff]  ;;  %v1124_v40 = vld [vmem:[%s4084_s21 + $0x98] sm:$0xff]  ;;  %v1113_v41 = vld [vmem:[%s4084_s21 + $0x40] sm:$0xff] }
  0xf3   : > { %3389 = vmatmul.msk.f32.vlgmr.msra.gmra.mxu0 %vm941_vm0, %v4057_v16  ;;  %3390 = vmatmul.msk.f32.vlgmr.msra.gmra.mxu1 %vm941_vm0, %v4057_v16  ;;  %v1114_v42 = vld [vmem:[%s4084_s21 + $0x48] sm:$0xff]  ;;  %v1115_v43 = vld [vmem:[%s4084_s21 + $0x50] sm:$0xff]  ;;  %v1116_v44 = vld [vmem:[%s4084_s21 + $0x58] sm:$0xff] }
  0xf4   : > { %1039 = vmatpush.msrb.mxu0 %v921_v25  ;;  %1059 = vmatpush.msrb.mxu1 %v922_v26  ;;  %v1105_v45 = vld [vmem:[%s4084_s21] sm:$0xff]  ;;  %v1106_v46 = vld [vmem:[%s4084_s21 + $0x8] sm:$0xff]  ;;  %v1107_v47 = vld [vmem:[%s4084_s21 + $0x10] sm:$0xff] }
  0xf5   : > { %1079 = vmatpush.msrb.mxu2 %v923_v27  ;;  %1099 = vmatpush.msrb.mxu3 %v924_v28  ;;  %v1108_v48 = vld [vmem:[%s4084_s21 + $0x18] sm:$0xff]  ;;  %v1133_v49 = vld [vmem:[%s4084_s21 + $0xe0] sm:$0xff]  ;;  %v1134_v50 = vld [vmem:[%s4084_s21 + $0xe8] sm:$0xff] }
  0xf6   : > { %1040 = vmatpush.msrb.mxu0 %v913_v29  ;;  %1060 = vmatpush.msrb.mxu1 %v914_v30  ;;  %v1135_v51 = vld [vmem:[%s4084_s21 + $0xf0] sm:$0xff]  ;;  %v1136_v52 = vld [vmem:[%s4084_s21 + $0xf8] sm:$0xff]  ;;  %v1125_v53 = vld [vmem:[%s4084_s21 + $0xa0] sm:$0xff] }
  0xf7   : > { %1080 = vmatpush.msrb.mxu2 %v915_v31  ;;  %1100 = vmatpush.msrb.mxu3 %v916_v32  ;;  %v1126_v54 = vld [vmem:[%s4084_s21 + $0xa8] sm:$0xff]  ;;  %v1127_v55 = vld [vmem:[%s4084_s21 + $0xb0] sm:$0xff]  ;;  %v1128_v56 = vld [vmem:[%s4084_s21 + $0xb8] sm:$0xff] }
  0xf8   : > { %1149 = vmatpush.msra.mxu0 %v1129_v33  ;;  %1169 = vmatpush.msra.mxu1 %v1130_v34  ;;  %v1117_v57 = vld [vmem:[%s4084_s21 + $0x60] sm:$0xff]  ;;  %v1118_v58 = vld [vmem:[%s4084_s21 + $0x68] sm:$0xff]  ;;  %v1119_v59 = vld [vmem:[%s4084_s21 + $0x70] sm:$0xff] }
  0xf9   : > { %1189 = vmatpush.msra.mxu2 %v1131_v35  ;;  %1209 = vmatpush.msra.mxu3 %v1132_v36  ;;  %v1120_v60 = vld [vmem:[%s4084_s21 + $0x78] sm:$0xff]  ;;  %v1109_v61 = vld [vmem:[%s4084_s21 + $0x20] sm:$0xff]  ;;  %v1110_v62 = vld [vmem:[%s4084_s21 + $0x28] sm:$0xff] }
  0xfa   : > { %3395 = vmatmul.msk.f32.vlgmr.msrb.gmra.mxu2 %vm941_vm0, %v4057_v16  ;;  %3396 = vmatmul.msk.f32.vlgmr.msrb.gmra.mxu3 %vm941_vm0, %v4057_v16  ;;  %v1111_v63 = vld [vmem:[%s4084_s21 + $0x30] sm:$0xff]  ;;  %v1112_v0 = vld [vmem:[%s4084_s21 + $0x38] sm:$0xff]  ;;  %v1353_v1 = vld [vmem:[%s4139_s30 + $0x1c0] sm:$0xff] }
  0xfb   : > { %1150 = vmatpush.msra.mxu0 %v1121_v37  ;;  %1170 = vmatpush.msra.mxu1 %v1122_v38  ;;  %v1354_v2 = vld [vmem:[%s4139_s30 + $0x1c8] sm:$0xff]  ;;  %v1355_v3 = vld [vmem:[%s4139_s30 + $0x1d0] sm:$0xff]  ;;  %v1356_v4 = vld [vmem:[%s4139_s30 + $0x1d8] sm:$0xff] }
  0xfc   : > { %1190 = vmatpush.msra.mxu2 %v1123_v39  ;;  %1210 = vmatpush.msra.mxu3 %v1124_v40  ;;  %v1345_v5 = vld [vmem:[%s4139_s30 + $0x180] sm:$0xff]  ;;  %v1346_v6 = vld [vmem:[%s4139_s30 + $0x188] sm:$0xff]  ;;  %v1347_v7 = vld [vmem:[%s4139_s30 + $0x190] sm:$0xff] }
  0xfd   : > { %1151 = vmatpush.msra.mxu0 %v1113_v41  ;;  %1171 = vmatpush.msra.mxu1 %v1114_v42  ;;  %v1348_v8 = vld [vmem:[%s4139_s30 + $0x198] sm:$0xff]  ;;  %v1337_v9 = vld [vmem:[%s4139_s30 + $0x140] sm:$0xff]  ;;  %v1338_v10 = vld [vmem:[%s4139_s30 + $0x148] sm:$0xff] }
  0xfe   : > { %1191 = vmatpush.msra.mxu2 %v1115_v43  ;;  %1211 = vmatpush.msra.mxu3 %v1116_v44  ;;  %v1339_v11 = vld [vmem:[%s4139_s30 + $0x150] sm:$0xff]  ;;  %v1340_v12 = vld [vmem:[%s4139_s30 + $0x158] sm:$0xff]  ;;  %v1329_v13 = vld [vmem:[%s4139_s30 + $0x100] sm:$0xff] }
  0xff   : > { %3393 = vmatmul.msk.f32.vlgmr.msrb.gmra.mxu0 %vm941_vm0, %v4057_v16  ;;  %3394 = vmatmul.msk.f32.vlgmr.msrb.gmra.mxu1 %vm941_vm0, %v4057_v16  ;;  %v1330_v14 = vld [vmem:[%s4139_s30 + $0x108] sm:$0xff]  ;;  %v1331_v15 = vld [vmem:[%s4139_s30 + $0x110] sm:$0xff]  ;;  %v1332_v17 = vld [vmem:[%s4139_s30 + $0x118] sm:$0xff] }
 0x100   : > { %1152 = vmatpush.msra.mxu0 %v1105_v45  ;;  %1172 = vmatpush.msra.mxu1 %v1106_v46  ;;  %v1321_v18 = vld [vmem:[%s4139_s30 + $0xc0] sm:$0xff]  ;;  %v1322_v19 = vld [vmem:[%s4139_s30 + $0xc8] sm:$0xff]  ;;  %v1323_v20 = vld [vmem:[%s4139_s30 + $0xd0] sm:$0xff] }
 0x101   : > { %1192 = vmatpush.msra.mxu2 %v1107_v47  ;;  %1212 = vmatpush.msra.mxu3 %v1108_v48  ;;  %v1324_v21 = vld [vmem:[%s4139_s30 + $0xd8] sm:$0xff]  ;;  %v1313_v22 = vld [vmem:[%s4139_s30 + $0x80] sm:$0xff]  ;;  %v1314_v23 = vld [vmem:[%s4139_s30 + $0x88] sm:$0xff] }
 0x102   : > { %1229 = vmatpush.msrb.mxu0 %v1133_v49  ;;  %1249 = vmatpush.msrb.mxu1 %v1134_v50  ;;  %v1315_v24 = vld [vmem:[%s4139_s30 + $0x90] sm:$0xff]  ;;  %v1316_v25 = vld [vmem:[%s4139_s30 + $0x98] sm:$0xff]  ;;  %v1305_v26 = vld [vmem:[%s4139_s30 + $0x40] sm:$0xff] }
 0x103   : > { %1269 = vmatpush.msrb.mxu2 %v1135_v51  ;;  %1289 = vmatpush.msrb.mxu3 %v1136_v52  ;;  %v1306_v27 = vld [vmem:[%s4139_s30 + $0x48] sm:$0xff]  ;;  %v1307_v28 = vld [vmem:[%s4139_s30 + $0x50] sm:$0xff]  ;;  %v1308_v29 = vld [vmem:[%s4139_s30 + $0x58] sm:$0xff] }
 0x104   : > { %1230 = vmatpush.msrb.mxu0 %v1125_v53  ;;  %1250 = vmatpush.msrb.mxu1 %v1126_v54  ;;  %v1298_v30 = vld [vmem:[%s4139_s30 + $0x8] sm:$0xff]  ;;  %v1299_v31 = vld [vmem:[%s4139_s30 + $0x10] sm:$0xff]  ;;  %v1300_v32 = vld [vmem:[%s4139_s30 + $0x18] sm:$0xff] }
 0x105   : > { %1270 = vmatpush.msrb.mxu2 %v1127_v55  ;;  %1290 = vmatpush.msrb.mxu3 %v1128_v56  ;;  %v4184_v33 = vld [vmem:[%s4743_s1] sm:$0xff]  ;;  %v1358_v35 = vld [vmem:[%s4139_s30 + $0x1e8] sm:$0xff]  ;;  %v1359_v36 = vld [vmem:[%s4139_s30 + $0x1f0] sm:$0xff] }
 0x106   : > { %1231 = vmatpush.msrb.mxu0 %v1117_v57  ;;  %1251 = vmatpush.msrb.mxu1 %v1118_v58  ;;  %v1357_v34 = vld [vmem:[%s4139_s30 + $0x1e0] sm:$0xff]  ;;  %v1360_v37 = vld [vmem:[%s4139_s30 + $0x1f8] sm:$0xff]  ;;  %v1350_v39 = vld [vmem:[%s4139_s30 + $0x1a8] sm:$0xff] }
 0x107   : > { %1271 = vmatpush.msrb.mxu2 %v1119_v59  ;;  %1291 = vmatpush.msrb.mxu3 %v1120_v60  ;;  %v1349_v38 = vld [vmem:[%s4139_s30 + $0x1a0] sm:$0xff]  ;;  %v1351_v40 = vld [vmem:[%s4139_s30 + $0x1b0] sm:$0xff]  ;;  %v1352_v41 = vld [vmem:[%s4139_s30 + $0x1b8] sm:$0xff] }
 0x108   : > { %3397 = vmatmul.msk.f32.vlgmr.msra.gmra.mxu0 %vm941_vm0, %v4057_v16  ;;  %3398 = vmatmul.msk.f32.vlgmr.msra.gmra.mxu1 %vm941_vm0, %v4057_v16  ;;  %v1341_v42 = vld [vmem:[%s4139_s30 + $0x160] sm:$0xff]  ;;  %v1342_v43 = vld [vmem:[%s4139_s30 + $0x168] sm:$0xff]  ;;  %v1343_v44 = vld [vmem:[%s4139_s30 + $0x170] sm:$0xff] }
 0x109   : > { %3399 = vmatmul.msk.f32.vlgmr.msra.gmra.mxu2 %vm941_vm0, %v4057_v16  ;;  %3400 = vmatmul.msk.f32.vlgmr.msra.gmra.mxu3 %vm941_vm0, %v4057_v16  ;;  %v1344_v45 = vld [vmem:[%s4139_s30 + $0x178] sm:$0xff]  ;;  %v1333_v46 = vld [vmem:[%s4139_s30 + $0x120] sm:$0xff]  ;;  %v1334_v47 = vld [vmem:[%s4139_s30 + $0x128] sm:$0xff] }
 0x10a   : > { %1232 = vmatpush.msrb.mxu0 %v1109_v61  ;;  %1252 = vmatpush.msrb.mxu1 %v1110_v62  ;;  %v1335_v48 = vld [vmem:[%s4139_s30 + $0x130] sm:$0xff]  ;;  %v1336_v49 = vld [vmem:[%s4139_s30 + $0x138] sm:$0xff]  ;;  %v4213_v50 = vld [vmem:[%s4743_s1 + $0x8] sm:$0xff] }
 0x10b   : > { %1272 = vmatpush.msrb.mxu2 %v1111_v63  ;;  %1292 = vmatpush.msrb.mxu3 %v1112_v0  ;;  %v1325_v51 = vld [vmem:[%s4139_s30 + $0xe0] sm:$0xff]  ;;  %v1326_v52 = vld [vmem:[%s4139_s30 + $0xe8] sm:$0xff]  ;;  %v1327_v53 = vld [vmem:[%s4139_s30 + $0xf0] sm:$0xff] }
 0x10c   : > { %1376 = vmatpush.msra.mxu0 %v1353_v1  ;;  %1399 = vmatpush.msra.mxu1 %v1354_v2  ;;  %v1328_v54 = vld [vmem:[%s4139_s30 + $0xf8] sm:$0xff]  ;;  %v1317_v55 = vld [vmem:[%s4139_s30 + $0xa0] sm:$0xff]  ;;  %v1318_v56 = vld [vmem:[%s4139_s30 + $0xa8] sm:$0xff] }
 0x10d   : > { %1422 = vmatpush.msra.mxu2 %v1355_v3  ;;  %1445 = vmatpush.msra.mxu3 %v1356_v4  ;;  %v1319_v57 = vld [vmem:[%s4139_s30 + $0xb0] sm:$0xff]  ;;  %v1320_v58 = vld [vmem:[%s4139_s30 + $0xb8] sm:$0xff]  ;;  %v1309_v59 = vld [vmem:[%s4139_s30 + $0x60] sm:$0xff] }
 0x10e   : > { %1377 = vmatpush.msra.mxu0 %v1345_v5  ;;  %1400 = vmatpush.msra.mxu1 %v1346_v6  ;;  %v1310_v60 = vld [vmem:[%s4139_s30 + $0x68] sm:$0xff]  ;;  %v1311_v61 = vld [vmem:[%s4139_s30 + $0x70] sm:$0xff]  ;;  %v1312_v62 = vld [vmem:[%s4139_s30 + $0x78] sm:$0xff] }
 0x10f   : > { %1423 = vmatpush.msra.mxu2 %v1347_v7  ;;  %1446 = vmatpush.msra.mxu3 %v1348_v8  ;;  %v1301_v63 = vld [vmem:[%s4139_s30 + $0x20] sm:$0xff]  ;;  %v1302_v0 = vld [vmem:[%s4139_s30 + $0x28] sm:$0xff]  ;;  %v1303_v1 = vld [vmem:[%s4139_s30 + $0x30] sm:$0xff] }
 0x110   : > { %1378 = vmatpush.msra.mxu0 %v1337_v9  ;;  %1401 = vmatpush.msra.mxu1 %v1338_v10  ;;  %v1304_v2 = vld [vmem:[%s4139_s30 + $0x38] sm:$0xff]  ;;  %v1608_v3 = vld [vmem:[%s4240_s27 + $0x1c0] sm:$0xff]  ;;  %v1609_v4 = vld [vmem:[%s4240_s27 + $0x1c8] sm:$0xff] }
 0x111   : > { %1424 = vmatpush.msra.mxu2 %v1339_v11  ;;  %1447 = vmatpush.msra.mxu3 %v1340_v12  ;;  %v1610_v5 = vld [vmem:[%s4240_s27 + $0x1d0] sm:$0xff]  ;;  %v1611_v6 = vld [vmem:[%s4240_s27 + $0x1d8] sm:$0xff]  ;;  %v1600_v7 = vld [vmem:[%s4240_s27 + $0x180] sm:$0xff] }
 0x112   : > { %1379 = vmatpush.msra.mxu0 %v1329_v13  ;;  %1402 = vmatpush.msra.mxu1 %v1330_v14  ;;  %v1601_v8 = vld [vmem:[%s4240_s27 + $0x188] sm:$0xff]  ;;  %v1602_v9 = vld [vmem:[%s4240_s27 + $0x190] sm:$0xff]  ;;  %v1603_v10 = vld [vmem:[%s4240_s27 + $0x198] sm:$0xff] }
 0x113   : > { %1425 = vmatpush.msra.mxu2 %v1331_v15  ;;  %1448 = vmatpush.msra.mxu3 %v1332_v17  ;;  %v1592_v11 = vld [vmem:[%s4240_s27 + $0x140] sm:$0xff]  ;;  %v1593_v12 = vld [vmem:[%s4240_s27 + $0x148] sm:$0xff]  ;;  %v1594_v13 = vld [vmem:[%s4240_s27 + $0x150] sm:$0xff] }
 0x114   : > { %3401 = vmatmul.msk.f32.vlgmr.msrb.gmra.mxu0 %vm941_vm0, %v4057_v16  ;;  %3402 = vmatmul.msk.f32.vlgmr.msrb.gmra.mxu1 %vm941_vm0, %v4057_v16  ;;  %v1595_v14 = vld [vmem:[%s4240_s27 + $0x158] sm:$0xff]  ;;  %v1584_v15 = vld [vmem:[%s4240_s27 + $0x100] sm:$0xff]  ;;  %v1585_v17 = vld [vmem:[%s4240_s27 + $0x108] sm:$0xff] }
 0x115   : > { %3403 = vmatmul.msk.f32.vlgmr.msrb.gmra.mxu2 %vm941_vm0, %v4057_v16  ;;  %3404 = vmatmul.msk.f32.vlgmr.msrb.gmra.mxu3 %vm941_vm0, %v4057_v16  ;;  %v1297_v16 = vld [vmem:[%s4139_s30] sm:$0xff]  ;;  %vm2198_vm0 = vcmask 57344   ;;  %s901_s30 = scalar_lea.vmem %s4750_s8, %s3387_s20 }
 0x116   : > { %1380 = vmatpush.msra.mxu0 %v1321_v18  ;;  %1403 = vmatpush.msra.mxu1 %v1322_v19  ;;  %v1576_v18 = vld [vmem:[%s4240_s27 + $0xc0] sm:$0xff]  ;;  %v1577_v19 = vld [vmem:[%s4240_s27 + $0xc8] sm:$0xff] }
 0x117   : > { %1426 = vmatpush.msra.mxu2 %v1323_v20  ;;  %1449 = vmatpush.msra.mxu3 %v1324_v21  ;;  %v1568_v20 = vld [vmem:[%s4240_s27 + $0x80] sm:$0xff]  ;;  %v1569_v21 = vld [vmem:[%s4240_s27 + $0x88] sm:$0xff] }
 0x118   : > { %1381 = vmatpush.msra.mxu0 %v1313_v22  ;;  %1404 = vmatpush.msra.mxu1 %v1314_v23  ;;  %v1560_v22 = vld [vmem:[%s4240_s27 + $0x40] sm:$0xff]  ;;  %v1561_v23 = vld [vmem:[%s4240_s27 + $0x48] sm:$0xff] }
 0x119   : > { %1427 = vmatpush.msra.mxu2 %v1315_v24  ;;  %1450 = vmatpush.msra.mxu3 %v1316_v25  ;;  %v1586_v24 = vld [vmem:[%s4240_s27 + $0x110] sm:$0xff]  ;;  %v1587_v25 = vld [vmem:[%s4240_s27 + $0x118] sm:$0xff] }
 0x11a   : > { %1382 = vmatpush.msra.mxu0 %v1305_v26  ;;  %1405 = vmatpush.msra.mxu1 %v1306_v27  ;;  %v1552_v26 = vld [vmem:[%s4240_s27] sm:$0xff]  ;;  %v1553_v27 = vld [vmem:[%s4240_s27 + $0x8] sm:$0xff] }
 0x11b   : > { %1428 = vmatpush.msra.mxu2 %v1307_v28  ;;  %1451 = vmatpush.msra.mxu3 %v1308_v29  ;;  %v1578_v28 = vld [vmem:[%s4240_s27 + $0xd0] sm:$0xff]  ;;  %v1579_v29 = vld [vmem:[%s4240_s27 + $0xd8] sm:$0xff] }
 0x11c   : > { %1383 = vmatpush.msra.mxu0 %v1297_v16  ;;  %1406 = vmatpush.msra.mxu1 %v1298_v30  ;;  %v1570_v16 = vld [vmem:[%s4240_s27 + $0x90] sm:$0xff]  ;;  %v1571_v30 = vld [vmem:[%s4240_s27 + $0x98] sm:$0xff] }
 0x11d   : > { %1429 = vmatpush.msra.mxu2 %v1299_v31  ;;  %1452 = vmatpush.msra.mxu3 %v1300_v32  ;;  %v1612_v31 = vld [vmem:[%s4240_s27 + $0x1e0] sm:$0xff]  ;;  %v1613_v32 = vld [vmem:[%s4240_s27 + $0x1e8] sm:$0xff] }
 0x11e   : > { %3405 = vmatmul.msk.f32.vlgmr.msra.gmra.mxu0 %vm1361_vm1, %v4184_v33  ;;  %3407 = vmatmul.msk.f32.vlgmr.msra.gmra.mxu1 %vm1361_vm1, %v4184_v33 }
 0x11f   : > { %3409 = vmatmul.msk.f32.vlgmr.msra.gmra.mxu2 %vm1361_vm1, %v4184_v33  ;;  %3411 = vmatmul.msk.f32.vlgmr.msra.gmra.mxu3 %vm1361_vm1, %v4184_v33 }
 0x120   : > { %1468 = vmatpush.msrb.mxu0 %v1357_v34  ;;  %1491 = vmatpush.msrb.mxu1 %v1358_v35  ;;  %v1562_v34 = vld [vmem:[%s4240_s27 + $0x50] sm:$0xff]  ;;  %v1563_v35 = vld [vmem:[%s4240_s27 + $0x58] sm:$0xff] }
 0x121   : > { %1514 = vmatpush.msrb.mxu2 %v1359_v36  ;;  %1537 = vmatpush.msrb.mxu3 %v1360_v37  ;;  %v1604_v36 = vld [vmem:[%s4240_s27 + $0x1a0] sm:$0xff]  ;;  %v1605_v37 = vld [vmem:[%s4240_s27 + $0x1a8] sm:$0xff] }
 0x122   : > { %1469 = vmatpush.msrb.mxu0 %v1349_v38  ;;  %1492 = vmatpush.msrb.mxu1 %v1350_v39  ;;  %v1554_v38 = vld [vmem:[%s4240_s27 + $0x10] sm:$0xff]  ;;  %v1555_v39 = vld [vmem:[%s4240_s27 + $0x18] sm:$0xff] }
 0x123   : > { %1515 = vmatpush.msrb.mxu2 %v1351_v40  ;;  %1538 = vmatpush.msrb.mxu3 %v1352_v41  ;;  %v1596_v40 = vld [vmem:[%s4240_s27 + $0x160] sm:$0xff]  ;;  %v1597_v41 = vld [vmem:[%s4240_s27 + $0x168] sm:$0xff] }
 0x124   : > { %1470 = vmatpush.msrb.mxu0 %v1341_v42  ;;  %1493 = vmatpush.msrb.mxu1 %v1342_v43  ;;  %v1588_v42 = vld [vmem:[%s4240_s27 + $0x120] sm:$0xff]  ;;  %v1589_v43 = vld [vmem:[%s4240_s27 + $0x128] sm:$0xff] }
 0x125   : > { %1516 = vmatpush.msrb.mxu2 %v1343_v44  ;;  %1539 = vmatpush.msrb.mxu3 %v1344_v45  ;;  %v1614_v44 = vld [vmem:[%s4240_s27 + $0x1f0] sm:$0xff]  ;;  %v1615_v45 = vld [vmem:[%s4240_s27 + $0x1f8] sm:$0xff] }
 0x126   : > { %1471 = vmatpush.msrb.mxu0 %v1333_v46  ;;  %1494 = vmatpush.msrb.mxu1 %v1334_v47  ;;  %v1580_v46 = vld [vmem:[%s4240_s27 + $0xe0] sm:$0xff]  ;;  %v1581_v47 = vld [vmem:[%s4240_s27 + $0xe8] sm:$0xff] }
 0x127   : > { %1517 = vmatpush.msrb.mxu2 %v1335_v48  ;;  %1540 = vmatpush.msrb.mxu3 %v1336_v49  ;;  %v1606_v48 = vld [vmem:[%s4240_s27 + $0x1b0] sm:$0xff]  ;;  %v1607_v49 = vld [vmem:[%s4240_s27 + $0x1b8] sm:$0xff] }
 0x128   : > { %3406 = vmatmul.msk.f32.gmra.mxu0 %vm1361_vm1, %v4213_v50  ;;  %3408 = vmatmul.msk.f32.gmra.mxu1 %vm1361_vm1, %v4213_v50 }
 0x129   : > { %3410 = vmatmul.msk.f32.gmra.mxu2 %vm1361_vm1, %v4213_v50  ;;  %3412 = vmatmul.msk.f32.gmra.mxu3 %vm1361_vm1, %v4213_v50 }
 0x12a   : > { %1472 = vmatpush.msrb.mxu0 %v1325_v51  ;;  %1495 = vmatpush.msrb.mxu1 %v1326_v52  ;;  %v1572_v51 = vld [vmem:[%s4240_s27 + $0xa0] sm:$0xff]  ;;  %v1573_v52 = vld [vmem:[%s4240_s27 + $0xa8] sm:$0xff] }
 0x12b   : > { %1518 = vmatpush.msrb.mxu2 %v1327_v53  ;;  %1541 = vmatpush.msrb.mxu3 %v1328_v54  ;;  %v1598_v53 = vld [vmem:[%s4240_s27 + $0x170] sm:$0xff]  ;;  %v1599_v54 = vld [vmem:[%s4240_s27 + $0x178] sm:$0xff] }
 0x12c   : > { %1473 = vmatpush.msrb.mxu0 %v1317_v55  ;;  %1496 = vmatpush.msrb.mxu1 %v1318_v56  ;;  %v1564_v55 = vld [vmem:[%s4240_s27 + $0x60] sm:$0xff]  ;;  %v1565_v56 = vld [vmem:[%s4240_s27 + $0x68] sm:$0xff] }
 0x12d   : > { %1519 = vmatpush.msrb.mxu2 %v1319_v57  ;;  %1542 = vmatpush.msrb.mxu3 %v1320_v58  ;;  %v1590_v57 = vld [vmem:[%s4240_s27 + $0x130] sm:$0xff]  ;;  %v1591_v58 = vld [vmem:[%s4240_s27 + $0x138] sm:$0xff] }
 0x12e   : > { %1474 = vmatpush.msrb.mxu0 %v1309_v59  ;;  %1497 = vmatpush.msrb.mxu1 %v1310_v60  ;;  %v1556_v59 = vld [vmem:[%s4240_s27 + $0x20] sm:$0xff]  ;;  %v1557_v60 = vld [vmem:[%s4240_s27 + $0x28] sm:$0xff] }
 0x12f   : > { %1520 = vmatpush.msrb.mxu2 %v1311_v61  ;;  %1543 = vmatpush.msrb.mxu3 %v1312_v62  ;;  %v1582_v61 = vld [vmem:[%s4240_s27 + $0xf0] sm:$0xff]  ;;  %v1583_v62 = vld [vmem:[%s4240_s27 + $0xf8] sm:$0xff] }
 0x130   : > { %1475 = vmatpush.msrb.mxu0 %v1301_v63  ;;  %1498 = vmatpush.msrb.mxu1 %v1302_v0  ;;  %v1574_v63 = vld [vmem:[%s4240_s27 + $0xb0] sm:$0xff]  ;;  %v1575_v0 = vld [vmem:[%s4240_s27 + $0xb8] sm:$0xff] }
 0x131   : > { %1521 = vmatpush.msrb.mxu2 %v1303_v1  ;;  %1544 = vmatpush.msrb.mxu3 %v1304_v2  ;;  %v1566_v1 = vld [vmem:[%s4240_s27 + $0x70] sm:$0xff]  ;;  %v1567_v2 = vld [vmem:[%s4240_s27 + $0x78] sm:$0xff] }
 0x132   : > { %3413 = vmatmul.msk.f32.vlgmr.msrb.gmra.mxu0 %vm1361_vm1, %v4184_v33  ;;  %3415 = vmatmul.msk.f32.vlgmr.msrb.gmra.mxu1 %vm1361_vm1, %v4184_v33 }
 0x133   : > { %3417 = vmatmul.msk.f32.vlgmr.msrb.gmra.mxu2 %vm1361_vm1, %v4184_v33  ;;  %3419 = vmatmul.msk.f32.vlgmr.msrb.gmra.mxu3 %vm1361_vm1, %v4184_v33 }
 0x134   : > { %1624 = vmatpush.msra.mxu0 %v1608_v3  ;;  %1647 = vmatpush.msra.mxu1 %v1609_v4  ;;  %v1558_v3 = vld [vmem:[%s4240_s27 + $0x30] sm:$0xff]  ;;  %v1559_v4 = vld [vmem:[%s4240_s27 + $0x38] sm:$0xff] }
 0x135   : > { %1670 = vmatpush.msra.mxu2 %v1610_v5  ;;  %1693 = vmatpush.msra.mxu3 %v1611_v6 }
 0x136   : > { %1625 = vmatpush.msra.mxu0 %v1600_v7  ;;  %1648 = vmatpush.msra.mxu1 %v1601_v8 }
 0x137   : > { %1671 = vmatpush.msra.mxu2 %v1602_v9  ;;  %1694 = vmatpush.msra.mxu3 %v1603_v10 }
 0x138   : > { %1626 = vmatpush.msra.mxu0 %v1592_v11  ;;  %1649 = vmatpush.msra.mxu1 %v1593_v12 }
 0x139   : > { %1672 = vmatpush.msra.mxu2 %v1594_v13  ;;  %1695 = vmatpush.msra.mxu3 %v1595_v14 }
 0x13a   : > { %3414 = vmatmul.msk.f32.gmra.mxu0 %vm1361_vm1, %v4213_v50  ;;  %3416 = vmatmul.msk.f32.gmra.mxu1 %vm1361_vm1, %v4213_v50 }
 0x13b   : > { %3418 = vmatmul.msk.f32.gmra.mxu2 %vm1361_vm1, %v4213_v50  ;;  %3420 = vmatmul.msk.f32.gmra.mxu3 %vm1361_vm1, %v4213_v50 }
 0x13c   : > { %1627 = vmatpush.msra.mxu0 %v1584_v15  ;;  %1650 = vmatpush.msra.mxu1 %v1585_v17 }
 0x13d   : > { %1673 = vmatpush.msra.mxu2 %v1586_v24  ;;  %1696 = vmatpush.msra.mxu3 %v1587_v25 }
 0x13e   : > { %1628 = vmatpush.msra.mxu0 %v1576_v18  ;;  %1651 = vmatpush.msra.mxu1 %v1577_v19 }
 0x13f   : > { %1674 = vmatpush.msra.mxu2 %v1578_v28  ;;  %1697 = vmatpush.msra.mxu3 %v1579_v29 }
 0x140   : > { %1629 = vmatpush.msra.mxu0 %v1568_v20  ;;  %1652 = vmatpush.msra.mxu1 %v1569_v21 }
 0x141   : > { %1675 = vmatpush.msra.mxu2 %v1570_v16  ;;  %1698 = vmatpush.msra.mxu3 %v1571_v30 }
 0x142   : > { %1630 = vmatpush.msra.mxu0 %v1560_v22  ;;  %1653 = vmatpush.msra.mxu1 %v1561_v23 }
 0x143   : > { %1676 = vmatpush.msra.mxu2 %v1562_v34  ;;  %1699 = vmatpush.msra.mxu3 %v1563_v35 }
 0x144   : > { %1631 = vmatpush.msra.mxu0 %v1552_v26  ;;  %1654 = vmatpush.msra.mxu1 %v1553_v27 }
 0x145   : > { %3421 = vmatmul.msk.f32.vlgmr.msra.gmra.mxu0 %vm1361_vm1, %v4184_v33  ;;  %3423 = vmatmul.msk.f32.vlgmr.msra.gmra.mxu1 %vm1361_vm1, %v4184_v33 }
 0x146   : > { %1716 = vmatpush.msrb.mxu0 %v1612_v31  ;;  %1739 = vmatpush.msrb.mxu1 %v1613_v32 }
 0x147   : > { %1677 = vmatpush.msra.mxu2 %v1554_v38  ;;  %1700 = vmatpush.msra.mxu3 %v1555_v39 }
 0x148   : > { %1717 = vmatpush.msrb.mxu0 %v1604_v36  ;;  %1740 = vmatpush.msrb.mxu1 %v1605_v37 }
 0x149   : > { %3425 = vmatmul.msk.f32.vlgmr.msra.gmra.mxu2 %vm1361_vm1, %v4184_v33  ;;  %3427 = vmatmul.msk.f32.vlgmr.msra.gmra.mxu3 %vm1361_vm1, %v4184_v33 }
 0x14a   : > { %1718 = vmatpush.msrb.mxu0 %v1596_v40  ;;  %1741 = vmatpush.msrb.mxu1 %v1597_v41 }
 0x14b   : > { %1762 = vmatpush.msrb.mxu2 %v1614_v44  ;;  %1785 = vmatpush.msrb.mxu3 %v1615_v45 }
 0x14c   : > { %1719 = vmatpush.msrb.mxu0 %v1588_v42  ;;  %1742 = vmatpush.msrb.mxu1 %v1589_v43 }
 0x14d   : > { %3422 = vmatmul.msk.f32.gmra.mxu0 %vm1361_vm1, %v4213_v50  ;;  %3424 = vmatmul.msk.f32.gmra.mxu1 %vm1361_vm1, %v4213_v50 }
 0x14e   : > { %1720 = vmatpush.msrb.mxu0 %v1580_v46  ;;  %1743 = vmatpush.msrb.mxu1 %v1581_v47 }
 0x14f   : > { %1763 = vmatpush.msrb.mxu2 %v1606_v48  ;;  %1786 = vmatpush.msrb.mxu3 %v1607_v49 }
 0x150   : > { %1721 = vmatpush.msrb.mxu0 %v1572_v51  ;;  %1744 = vmatpush.msrb.mxu1 %v1573_v52 }
 0x151   : > { %1764 = vmatpush.msrb.mxu2 %v1598_v53  ;;  %1787 = vmatpush.msrb.mxu3 %v1599_v54 }
 0x152   : > { %1722 = vmatpush.msrb.mxu0 %v1564_v55  ;;  %1745 = vmatpush.msrb.mxu1 %v1565_v56 }
 0x153   : > { %1765 = vmatpush.msrb.mxu2 %v1590_v57  ;;  %1788 = vmatpush.msrb.mxu3 %v1591_v58 }
 0x154   : > { %3426 = vmatmul.msk.f32.gmra.mxu2 %vm1361_vm1, %v4213_v50  ;;  %3428 = vmatmul.msk.f32.gmra.mxu3 %vm1361_vm1, %v4213_v50 }
 0x155   : > { %1723 = vmatpush.msrb.mxu0 %v1556_v59  ;;  %1746 = vmatpush.msrb.mxu1 %v1557_v60 }
 0x156   : > { %1766 = vmatpush.msrb.mxu2 %v1582_v61  ;;  %1789 = vmatpush.msrb.mxu3 %v1583_v62 }
 0x157   : > { %3429 = vmatmul.msk.f32.vlgmr.msrb.gmra.mxu0 %vm1361_vm1, %v4184_v33  ;;  %3431 = vmatmul.msk.f32.vlgmr.msrb.gmra.mxu1 %vm1361_vm1, %v4184_v33 }
 0x158   : > { %1767 = vmatpush.msrb.mxu2 %v1574_v63  ;;  %1790 = vmatpush.msrb.mxu3 %v1575_v0 }
 0x15a   : > { %1768 = vmatpush.msrb.mxu2 %v1566_v1  ;;  %1791 = vmatpush.msrb.mxu3 %v1567_v2 }
 0x15c   : > { %1769 = vmatpush.msrb.mxu2 %v1558_v3  ;;  %1792 = vmatpush.msrb.mxu3 %v1559_v4 }
 0x15d   : > { %3433 = vmatmul.msk.f32.vlgmr.msrb.gmra.mxu2 %vm1361_vm1, %v4184_v33  ;;  %3435 = vmatmul.msk.f32.vlgmr.msrb.gmra.mxu3 %vm1361_vm1, %v4184_v33 }
 0x15f   : > { %3430 = vmatmul.msk.f32.gmra.mxu0 %vm1361_vm1, %v4213_v50  ;;  %3432 = vmatmul.msk.f32.gmra.mxu1 %vm1361_vm1, %v4213_v50 }
 0x165   : > { %3434 = vmatmul.msk.f32.gmra.mxu2 %vm1361_vm1, %v4213_v50  ;;  %3436 = vmatmul.msk.f32.gmra.mxu3 %vm1361_vm1, %v4213_v50 }
 0x170   : > { %v4342_v5 = vpop.f32.mrf.mxu0  ;;  %v4344_v6 = vpop.f32.mrf.mxu1 }
 0x171   : > { %v4354_v7 = vpop.f32.mrf.mxu2  ;;  %v4356_v8 = vpop.f32.mrf.mxu3  ;;  %v1808_v50 = vrot.slane %v4344_v6, 7 }
 0x172   : > { %v1809_v23 = vrot.slane %v4354_v7, 6  ;;  %v1810_v24 = vrot.slane %v4356_v8, 5 }
 0x173   : > { %v1816_v27 = vsel %vm1815_vm4, %v4342_v5, %v1808_v50  ;;  %v1830_v48 = vsel %vm1829_vm11, %v4342_v5, %v1808_v50 }
 0x174   : > { %v1818_v28 = vsel %vm1817_vm5, %v1809_v23, %v1810_v24  ;;  %v1832_v49 = vsel %vm1831_vm12, %v1809_v23, %v1810_v24  ;;  %vm2247_vm5 = vcmask 64512  }
 0x175   : > { %v1820_v31 = vsel %vm1819_vm7, %v1816_v27, %v1818_v28  ;;  %v1834_v54 = vsel %vm1833_vm14, %v1830_v48, %v1832_v49 }
 0x17c   : > { %v1042_v9 = vpop.f32.mrf.mxu0  ;;  %v1062_v10 = vpop.f32.mrf.mxu1 }
 0x17d   : > { %v1082_v11 = vpop.f32.mrf.mxu2  ;;  %v1102_v33 = vpop.f32.mrf.mxu3  ;;  %v1811_v17 = vrot.slane %v1042_v9, 4  ;;  %v1812_v18 = vrot.slane %v1062_v10, 3 }
 0x17e   : > { %v1813_v19 = vrot.slane %v1082_v11, 2  ;;  %v1814_v20 = vrot.slane %v1102_v33, 1 }
 0x17f   : > { %v1822_v25 = vsel %vm1821_vm2, %v1811_v17, %v1812_v18  ;;  %v1836_v44 = vsel %vm1835_vm9, %v1811_v17, %v1812_v18 }
 0x180   : > { %v1824_v26 = vsel %vm1823_vm3, %v1813_v19, %v1814_v20  ;;  %v1838_v45 = vsel %vm1837_vm10, %v1814_v20, %v1813_v19  ;;  %vm2902_vm10 = vcmask 254976  }
 0x181   : > { %v1826_v29 = vsel %vm1825_vm6, %v1822_v25, %v1824_v26  ;;  %v1840_v51 = vsel %vm1839_vm13, %v1836_v44, %v1838_v45 }
 0x182   : > { %v1828_v32 = vsel %vm1827_vm8, %v1820_v31, %v1826_v29  ;;  %v1842_v57 = vsel %vm1841_vm15, %v1834_v54, %v1840_v51 }
 0x183   : > { %v1844_v36 = vperm.slane %v1828_v32, 0  ;;  %v1845_v37 = vperm.slane %v1828_v32, 1  ;;  %v1846_v40 = vperm.slane %v1828_v32, 2  ;;  %v1847_v41 = vperm.slane %v1828_v32, 3 }
 0x184   : > { %v1848_v55 = vperm.slane %v1828_v32, 4  ;;  %v1849_v56 = vperm.slane %v1828_v32, 5  ;;  %v1843_v58 = vrot.slane %v1842_v57, 1  ;;  %v1850_v63 = vperm.slane %v1828_v32, 6 }
 0x185   : > { %v4362_v12 = vpop.f32.mrf.mxu0  ;;  %v4364_v13 = vpop.f32.mrf.mxu1  ;;  %v1851_v0 = vperm.slane %v1828_v32, 7 }
 0x186   : > { %v2020_v1 = vperm.slane %v1843_v58, 0  ;;  %v2021_v2 = vperm.slane %v1843_v58, 1  ;;  %v2022_v5 = vperm.slane %v1843_v58, 2  ;;  %v2023_v6 = vperm.slane %v1843_v58, 3 }
 0x187   : > { %v2024_v7 = vperm.slane %v1843_v58, 4  ;;  %v2025_v8 = vperm.slane %v1843_v58, 5  ;;  %v2026_v9 = vperm.slane %v1843_v58, 6  ;;  %v2027_v10 = vperm.slane %v1843_v58, 7 }
 0x18c   : > { %v4366_v14 = vpop.f32.mrf.mxu2  ;;  %v4368_v15 = vpop.f32.mrf.mxu3 }
 0x191   : > { %v4370_v21 = vpop.f32.mrf.mxu0  ;;  %v4372_v22 = vpop.f32.mrf.mxu1 }
 0x198   : > { %v4378_v16 = vpop.f32.mrf.mxu2  ;;  %v4380_v30 = vpop.f32.mrf.mxu3 }
 0x19b   : > { %v1385_v34 = vpop.f32.mrf.mxu0  ;;  %v1408_v35 = vpop.f32.mrf.mxu1 }
 0x19c   : > { %1875 = vmatpush.xpose.msra.mxu0 %v1385_v34  ;;  %1895 = vmatpush.xpose.msra.mxu1 %v1408_v35 }
 0x19f   : > { %1876 = vmatmul.f32.vlgmr.msra.gmra.mxu0 %v1844_v36  ;;  %1896 = vmatmul.f32.vlgmr.msra.gmra.mxu1 %v1845_v37 }
 0x1a2   : > { %v1431_v38 = vpop.f32.mrf.mxu2  ;;  %v1454_v39 = vpop.f32.mrf.mxu3 }
 0x1a3   : > { %1915 = vmatpush.xpose.msra.mxu2 %v1431_v38  ;;  %1935 = vmatpush.xpose.msra.mxu3 %v1454_v39 }
 0x1a5   : > { %v1388_v42 = vpop.f32.mrf.mxu0  ;;  %v1411_v43 = vpop.f32.mrf.mxu1 }
 0x1a6   : > { %1916 = vmatmul.f32.vlgmr.msra.gmra.mxu2 %v1846_v40  ;;  %1936 = vmatmul.f32.vlgmr.msra.gmra.mxu3 %v1847_v41 }
 0x1ac   : > { %v1434_v46 = vpop.f32.mrf.mxu2  ;;  %v1457_v47 = vpop.f32.mrf.mxu3 }
 0x1af   : > { %v1477_v52 = vpop.f32.mrf.mxu0  ;;  %v1500_v53 = vpop.f32.mrf.mxu1 }
 0x1b0   : > { %1955 = vmatpush.xpose.msrb.mxu0 %v1477_v52  ;;  %1975 = vmatpush.xpose.msrb.mxu1 %v1500_v53 }
 0x1b3   : > { %1956 = vmatmul.f32.vlgmr.msrb.gmra.mxu0 %v1848_v55  ;;  %1976 = vmatmul.f32.vlgmr.msrb.gmra.mxu1 %v1849_v56 }
 0x1b4   : > { %2051 = vmatpush.xpose.msra.mxu0 %v1388_v42  ;;  %2071 = vmatpush.xpose.msra.mxu1 %v1411_v43 }
 0x1b6   : > { %v1523_v59 = vpop.f32.mrf.mxu2  ;;  %v1546_v60 = vpop.f32.mrf.mxu3 }
 0x1b7   : > { %1995 = vmatpush.xpose.msrb.mxu2 %v1523_v59  ;;  %2015 = vmatpush.xpose.msrb.mxu3 %v1546_v60  ;;  %v1480_v61 = vpop.f32.mrf.mxu0  ;;  %v1503_v62 = vpop.f32.mrf.mxu1 }
 0x1b8   : > { %2131 = vmatpush.xpose.msrb.mxu0 %v1480_v61  ;;  %2151 = vmatpush.xpose.msrb.mxu1 %v1503_v62 }
 0x1ba   : > { %1996 = vmatmul.f32.vlgmr.msrb.gmra.mxu2 %v1850_v63  ;;  %2016 = vmatmul.f32.vlgmr.msrb.gmra.mxu3 %v1851_v0 }
 0x1bb   : > { %2091 = vmatpush.xpose.msra.mxu2 %v1434_v46  ;;  %2111 = vmatpush.xpose.msra.mxu3 %v1457_v47 }
 0x1bc   : > { %2052 = vmatmul.f32.vlgmr.msra.gmra.mxu0 %v2020_v1  ;;  %2072 = vmatmul.f32.vlgmr.msra.gmra.mxu1 %v2021_v2 }
 0x1be   : > { %v1526_v3 = vpop.f32.mrf.mxu2  ;;  %v1549_v4 = vpop.f32.mrf.mxu3 }
 0x1bf   : > { %2171 = vmatpush.xpose.msrb.mxu2 %v1526_v3  ;;  %2191 = vmatpush.xpose.msrb.mxu3 %v1549_v4 }
 0x1c2   : > { %2092 = vmatmul.f32.vlgmr.msra.gmra.mxu2 %v2022_v5  ;;  %2112 = vmatmul.f32.vlgmr.msra.gmra.mxu3 %v2023_v6  ;;  %v1633_v11 = vpop.f32.mrf.mxu0  ;;  %v1656_v33 = vpop.f32.mrf.mxu1 }
 0x1c3   : > { %2266 = vmatpush.msra.mxu0 %v1633_v11  ;;  %2286 = vmatpush.msra.mxu1 %v1656_v33 }
 0x1c4   : > { %2132 = vmatmul.f32.vlgmr.msrb.gmra.mxu0 %v2024_v7  ;;  %2152 = vmatmul.f32.vlgmr.msrb.gmra.mxu1 %v2025_v8 }
 0x1ca   : > { %2172 = vmatmul.f32.vlgmr.msrb.gmra.mxu2 %v2026_v9  ;;  %2192 = vmatmul.f32.vlgmr.msrb.gmra.mxu3 %v2027_v10  ;;  %v4384_v17 = vpop.f32.mrf.mxu0  ;;  %v4386_v18 = vpop.f32.mrf.mxu1 }
 0x1cc   : > { %v1679_v19 = vpop.f32.mrf.mxu2  ;;  %v1702_v20 = vpop.f32.mrf.mxu3 }
 0x1cd   : > { %2306 = vmatpush.msra.mxu2 %v1679_v19  ;;  %2326 = vmatpush.msra.mxu3 %v1702_v20 }
 0x1d4   : > { %v1725_v50 = vpop.f32.mrf.mxu0  ;;  %v1748_v23 = vpop.f32.mrf.mxu1 }
 0x1d5   : > { %2346 = vmatpush.msrb.mxu0 %v1725_v50  ;;  %2366 = vmatpush.msrb.mxu1 %v1748_v23 }
 0x1d7   : > { %v4388_v24 = vpop.f32.mrf.mxu2  ;;  %v4390_v25 = vpop.f32.mrf.mxu3 }
 0x1dc   : > { %v4392_v28 = vpop.f32.mrf.mxu0  ;;  %v4394_v29 = vpop.f32.mrf.mxu1 }
 0x1e0   : > { %v1771_v26 = vpop.f32.mrf.mxu2  ;;  %v1794_v27 = vpop.f32.mrf.mxu3 }
 0x1e1   : > { %2386 = vmatpush.msrb.mxu2 %v1771_v26  ;;  %2406 = vmatpush.msrb.mxu3 %v1794_v27 }
 0x1e8   : > { %v4396_v31 = vpop.f32.mrf.mxu2  ;;  %v4398_v32 = vpop.f32.mrf.mxu3 }
 0x21c   : > { %v1877_v34 = vpop.f32.mrf.mxu0  ;;  %v1897_v35 = vpop.f32.mrf.mxu1 }
 0x21d   : > { %v1898_v37 = vadd.f32 %v1897_v35, %v1877_v34 }
 0x229   : > { %v1917_v36 = vpop.f32.mrf.mxu2  ;;  %v1937_v39 = vpop.f32.mrf.mxu3 }
 0x22a   : > { %v1918_v38 = vadd.f32 %v1917_v36, %v1898_v37 }
 0x22c   : > { %v1938_v40 = vadd.f32 %v1937_v39, %v1918_v38 }
 0x230   : > { %v1957_v41 = vpop.f32.mrf.mxu0  ;;  %v1977_v42 = vpop.f32.mrf.mxu1 }
 0x231   : > { %v1958_v43 = vadd.f32 %v1957_v41, %v1938_v40 }
 0x233   : > { %v1978_v44 = vadd.f32 %v1977_v42, %v1958_v43 }
 0x239   : > { %v2053_v48 = vpop.f32.mrf.mxu0  ;;  %v2073_v51 = vpop.f32.mrf.mxu1 }
 0x23a   : > { %v2074_v53 = vadd.f32 %v2073_v51, %v2053_v48  ;;  %v2588_v51 = vld [vmem:[%s4429_s15 + $0x70] sm:$0xff] }
 0x23d   : > { %v1997_v45 = vpop.f32.mrf.mxu2  ;;  %v2017_v46 = vpop.f32.mrf.mxu3 }
 0x23e   : > { %v1998_v47 = vadd.f32 %v1997_v45, %v1978_v44 }
 0x240   : > { %v2018_v49 = vadd.f32 %v2017_v46, %v1998_v47 }
 0x241   : > { %v2133_v59 = vpop.f32.mrf.mxu0  ;;  %v2153_v61 = vpop.f32.mrf.mxu1 }
 0x242   : > { %v2196_v52 = vmul.f32 0.03125, %v2018_v49  ;;  %v2637_v49 = vld [vmem:[%s4429_s15 + $0x1f8] sm:$0xff] }
 0x244   : > { %v2199_v54 = vsel %vm2198_vm0, %v2196_v52, -inf }
 0x245   : > { %v2093_v55 = vpop.f32.mrf.mxu2  ;;  %v2113_v56 = vpop.f32.mrf.mxu3  ;;  %2200 = vmax.xlane.f32.xlu0 %v2199_v54  ;;  %v2636_v54 = vld [vmem:[%s4429_s15 + $0x1f0] sm:$0xff] }
 0x246   : > { %v2094_v57 = vadd.f32 %v2093_v55, %v2074_v53  ;;  %v2620_v53 = vld [vmem:[%s4429_s15 + $0x170] sm:$0xff]  ;;  %v2587_v55 = vld [vmem:[%s4429_s15 + $0x68] sm:$0xff] }
 0x248   : > { %v2114_v58 = vadd.f32 %v2113_v56, %v2094_v57  ;;  %v2603_v56 = vld [vmem:[%s4429_s15 + $0xe8] sm:$0xff] }
 0x249   : > { %v2619_v57 = vld [vmem:[%s4429_s15 + $0x168] sm:$0xff] }
 0x24a   : > { %v2134_v60 = vadd.f32 %v2133_v59, %v2114_v58  ;;  %v2635_v58 = vld [vmem:[%s4429_s15 + $0x1e8] sm:$0xff]  ;;  %v2586_v59 = vld [vmem:[%s4429_s15 + $0x60] sm:$0xff] }
 0x24c   : > { %v2154_v62 = vadd.f32 %v2153_v61, %v2134_v60  ;;  %v2602_v60 = vld [vmem:[%s4429_s15 + $0xe0] sm:$0xff] }
 0x24d   : > { %v2173_v63 = vpop.f32.mrf.mxu2  ;;  %v2193_v1 = vpop.f32.mrf.mxu3  ;;  %v2618_v61 = vld [vmem:[%s4429_s15 + $0x160] sm:$0xff] }
 0x24e   : > { %v2174_v0 = vadd.f32 %v2173_v63, %v2154_v62  ;;  %v2634_v62 = vld [vmem:[%s4429_s15 + $0x1e0] sm:$0xff]  ;;  %v2585_v63 = vld [vmem:[%s4429_s15 + $0x58] sm:$0xff] }
 0x250   : > { %v2194_v2 = vadd.f32 %v2193_v1, %v2174_v0  ;;  %v2601_v0 = vld [vmem:[%s4429_s15 + $0xd8] sm:$0xff] }
 0x251   : > { %v2617_v1 = vld [vmem:[%s4429_s15 + $0x158] sm:$0xff] }
 0x252   : > { %v2197_v3 = vmul.f32 0.03125, %v2194_v2  ;;  %v2633_v2 = vld [vmem:[%s4429_s15 + $0x1d8] sm:$0xff] }
 0x254   : > { %v2202_v4 = vsel %vm2198_vm0, %v2197_v3, -inf }
 0x255   : > { %2203 = vmax.xlane.f32.xlu0 %v2202_v4  ;;  %v2600_v4 = vld [vmem:[%s4429_s15 + $0xd0] sm:$0xff] }
 0x2b8   : > { %v2201_v5 = vpop.xlane.xlu0 %2200 }
 0x2b9   : > { %v2205_v6 = vsub.f32 %v2196_v52, %v2201_v5  ;;  %v2604_v52 = vld [vmem:[%s4429_s15 + $0xf0] sm:$0xff] }
 0x2ba   : > { %v2616_v5 = vld [vmem:[%s4429_s15 + $0x150] sm:$0xff] }
 0x2bb   : > { %v2207_v7 = vmul.f32 1.442695, %v2205_v6  ;;  %v2632_v6 = vld [vmem:[%s4429_s15 + $0x1d0] sm:$0xff] }
 0x2bd   : > { %3483 = vpow2.f32 %v2207_v7  ;;  %v2583_v7 = vld [vmem:[%s4429_s15 + $0x48] sm:$0xff] }
 0x2c3   : > { %v3484_v8 = vpop.eup %3483 }
 0x2c4   : > { %v2211_v9 = vsel %vm2198_vm0, %v3484_v8, 0.0 }
 0x2c5   : > { %2212 = vadd.xlane.f32.xlu1 %v2211_v9  ;;  %v2615_v9 = vld [vmem:[%s4429_s15 + $0x148] sm:$0xff] }
 0x2c8   : > { %v2204_v10 = vpop.xlane.xlu0 %2203 }
 0x2c9   : > { %v2206_v11 = vsub.f32 %v2197_v3, %v2204_v10  ;;  %v2584_v3 = vld [vmem:[%s4429_s15 + $0x50] sm:$0xff]  ;;  %v2631_v10 = vld [vmem:[%s4429_s15 + $0x1c8] sm:$0xff] }
 0x2cb   : > { %v2209_v33 = vmul.f32 1.442695, %v2206_v11  ;;  %v2582_v11 = vld [vmem:[%s4429_s15 + $0x40] sm:$0xff] }
 0x2cd   : > { %3485 = vpow2.f32 %v2209_v33  ;;  %v2598_v33 = vld [vmem:[%s4429_s15 + $0xc0] sm:$0xff] }
 0x2d3   : > { %v3486_v19 = vpop.eup %3485 }
 0x2d4   : > { %v2214_v20 = vsel %vm2198_vm0, %v3486_v19, 0.0 }
 0x2d5   : > { %2215 = vadd.xlane.f32.xlu1 %v2214_v20  ;;  %v2630_v20 = vld [vmem:[%s4429_s15 + $0x1c0] sm:$0xff] }
 0x338   : > { %v2213_v50 = vpop.xlane.xlu1 %2212 }
 0x339   : > { %3487 = vrcp.f32 %v2213_v50  ;;  %v2228_v34 = vand.u32 2147483648, %v2213_v50  ;;  %v2226_v36 = vand.u32 2147483647, %v2213_v50  ;;  %vm2222_vm2 = vweird.f32 %v2213_v50 }
 0x33b   : > { %v2229_v38 = vor.u32 1.1754944e-38, %v2228_v34  ;;  %vm2227_vm4 = vcmp.eq.f32.partialorder %v2226_v36, 8.507059e+37  ;;  %v2580_v34 = vld [vmem:[%s4429_s15 + $0x30] sm:$0xff] }
 0x33c   : > { %v2612_v36 = vld [vmem:[%s4429_s15 + $0x130] sm:$0xff] }
 0x33f   : > { %v3488_v23 = vpop.eup %3487 }
 0x340   : > { %v2218_v26 = vmul.f32 %v3488_v23, %v2213_v50  ;;  %vm2223_vm1 = vweird.f32 %v3488_v23  ;;  %v2581_v50 = vld [vmem:[%s4429_s15 + $0x38] sm:$0xff] }
 0x341   : > { %vm2224_vm3 = vmor %vm2222_vm2, %vm2223_vm1 }
 0x342   : > { %v2219_v27 = vsub.f32 1.0, %v2218_v26  ;;  %v2613_v26 = vld [vmem:[%s4429_s15 + $0x138] sm:$0xff] }
 0x344   : > { %v2220_v35 = vmul.f32 %v3488_v23, %v2219_v27  ;;  %v2629_v27 = vld [vmem:[%s4429_s15 + $0x1b8] sm:$0xff] }
 0x346   : > { %v2221_v37 = vadd.f32 %v3488_v23, %v2220_v35  ;;  %v2596_v35 = vld [vmem:[%s4429_s15 + $0xb0] sm:$0xff] }
 0x348   : > { %v2225_v39 = vsel %vm2224_vm3, %v3488_v23, %v2221_v37  ;;  %v2216_v40 = vpop.xlane.xlu1 %2215  ;;  %v2597_v23 = vld [vmem:[%s4429_s15 + $0xb8] sm:$0xff]  ;;  %v2628_v37 = vld [vmem:[%s4429_s15 + $0x1b0] sm:$0xff] }
 0x349   : > { %v2230_v41 = vsel %vm2227_vm4, %v2229_v38, %v2225_v39  ;;  %3489 = vrcp.f32 %v2216_v40  ;;  %v2243_v46 = vand.u32 2147483648, %v2216_v40  ;;  %v2241_v48 = vand.u32 2147483647, %v2216_v40  ;;  %v2579_v38 = vld [vmem:[%s4429_s15 + $0x28] sm:$0xff] }
 0x34a   : > { %v2231_v42 = vmul.f32 %v3484_v8, %v2230_v41  ;;  %vm2237_vm7 = vweird.f32 %v2216_v40  ;;  %v2599_v8 = vld [vmem:[%s4429_s15 + $0xc8] sm:$0xff] }
 0x34b   : > { %vm2242_vm9 = vcmp.eq.f32.partialorder %v2241_v48, 8.507059e+37  ;;  %v2595_v39 = vld [vmem:[%s4429_s15 + $0xa8] sm:$0xff]  ;;  %v2609_v48 = vld [vmem:[%s4429_s15 + $0x118] sm:$0xff] }
 0x34c   : > { %3437 = vmatmul.msk.f32.vlgmr.msra.gmra.mxu0 %vm2247_vm5, %v2231_v42  ;;  %3438 = vmatmul.msk.f32.vlgmr.msra.gmra.mxu1 %vm2247_vm5, %v2231_v42  ;;  %v2627_v41 = vld [vmem:[%s4429_s15 + $0x1a8] sm:$0xff] }
 0x34d   : > { %3439 = vmatmul.msk.f32.vlgmr.msra.gmra.mxu2 %vm2247_vm5, %v2231_v42  ;;  %3440 = vmatmul.msk.f32.vlgmr.msra.gmra.mxu3 %vm2247_vm5, %v2231_v42 }
 0x34e   : > { %2429 = vmatpush.msra.mxu0 %v4384_v17  ;;  %2449 = vmatpush.msra.mxu1 %v4386_v18  ;;  %v2244_v18 = vor.u32 1.1754944e-38, %v2243_v46  ;;  %v2577_v46 = vld [vmem:[%s4429_s15 + $0x18] sm:$0xff] }
 0x34f   : > { %v3490_v43 = vpop.eup %3489  ;;  %2469 = vmatpush.msra.mxu2 %v4388_v24  ;;  %2489 = vmatpush.msra.mxu3 %v4390_v25 }
 0x350   : > { %v2233_v44 = vmul.f32 %v3490_v43, %v2216_v40  ;;  %vm2238_vm6 = vweird.f32 %v3490_v43  ;;  %v2611_v40 = vld [vmem:[%s4429_s15 + $0x128] sm:$0xff] }
 0x351   : > { %vm2239_vm8 = vmor %vm2237_vm7, %vm2238_vm6 }
 0x352   : > { %v2234_v45 = vsub.f32 1.0, %v2233_v44  ;;  %v2610_v44 = vld [vmem:[%s4429_s15 + $0x120] sm:$0xff] }
 0x354   : > { %v2235_v47 = vmul.f32 %v3490_v43, %v2234_v45  ;;  %3441 = vmatmul.msk.f32.vlgmr.msrb.gmra.mxu0 %vm2247_vm5, %v2231_v42  ;;  %3442 = vmatmul.msk.f32.vlgmr.msrb.gmra.mxu1 %vm2247_vm5, %v2231_v42  ;;  %v2626_v45 = vld [vmem:[%s4429_s15 + $0x1a0] sm:$0xff] }
 0x355   : > { %3443 = vmatmul.msk.f32.vlgmr.msrb.gmra.mxu2 %vm2247_vm5, %v2231_v42  ;;  %3444 = vmatmul.msk.f32.vlgmr.msrb.gmra.mxu3 %vm2247_vm5, %v2231_v42  ;;  %v2578_v42 = vld [vmem:[%s4429_s15 + $0x20] sm:$0xff] }
 0x356   : > { %v2236_v17 = vadd.f32 %v3490_v43, %v2235_v47  ;;  %2509 = vmatpush.msrb.mxu0 %v4392_v28  ;;  %2529 = vmatpush.msrb.mxu1 %v4394_v29  ;;  %v2589_v29 = vld [vmem:[%s4429_s15 + $0x78] sm:$0xff] }
 0x357   : > { %2549 = vmatpush.msrb.mxu2 %v4396_v31  ;;  %2569 = vmatpush.msrb.mxu3 %v4398_v32  ;;  %v2605_v31 = vld [vmem:[%s4429_s15 + $0xf8] sm:$0xff] }
 0x358   : > { %v2240_v24 = vsel %vm2239_vm8, %v3490_v43, %v2236_v17  ;;  %v2621_v32 = vld [vmem:[%s4429_s15 + $0x178] sm:$0xff]  ;;  %v2594_v43 = vld [vmem:[%s4429_s15 + $0xa0] sm:$0xff] }
 0x359   : > { %v2245_v25 = vsel %vm2242_vm9, %v2244_v18, %v2240_v24  ;;  %v2593_v47 = vld [vmem:[%s4429_s15 + $0x98] sm:$0xff]  ;;  %v2576_v18 = vld [vmem:[%s4429_s15 + $0x10] sm:$0xff] }
 0x35a   : > { %v2246_v28 = vmul.f32 %v3486_v19, %v2245_v25  ;;  %v2614_v19 = vld [vmem:[%s4429_s15 + $0x140] sm:$0xff]  ;;  %v2625_v17 = vld [vmem:[%s4429_s15 + $0x198] sm:$0xff]  ;;  %v2592_v24 = vld [vmem:[%s4429_s15 + $0x90] sm:$0xff] }
 0x35b   : > { %v2608_v25 = vld [vmem:[%s4429_s15 + $0x110] sm:$0xff] }
 0x35c   : > { %3445 = vmatmul.msk.f32.vlgmr.msra.gmra.mxu0 %vm2247_vm5, %v2246_v28  ;;  %3446 = vmatmul.msk.f32.vlgmr.msra.gmra.mxu1 %vm2247_vm5, %v2246_v28 }
 0x35d   : > { %3447 = vmatmul.msk.f32.vlgmr.msra.gmra.mxu2 %vm2247_vm5, %v2246_v28  ;;  %3448 = vmatmul.msk.f32.vlgmr.msra.gmra.mxu3 %vm2247_vm5, %v2246_v28 }
 0x35e   : > { %2742 = vmatpush.msra.mxu0 %v2589_v29  ;;  %2762 = vmatpush.msra.mxu1 %v2605_v31  ;;  %v2575_v29 = vld [vmem:[%s4429_s15 + $0x8] sm:$0xff] }
 0x35f   : > { %2782 = vmatpush.msra.mxu2 %v2621_v32  ;;  %2802 = vmatpush.msra.mxu3 %v2637_v49  ;;  %v2591_v31 = vld [vmem:[%s4429_s15 + $0x88] sm:$0xff] }
 0x360   : > { %2743 = vmatpush.msra.mxu0 %v2588_v51  ;;  %2763 = vmatpush.msra.mxu1 %v2604_v52  ;;  %v2607_v32 = vld [vmem:[%s4429_s15 + $0x108] sm:$0xff]  ;;  %v2574_v51 = vld [vmem:[%s4429_s15] sm:$0xff] }
 0x361   : > { %2783 = vmatpush.msra.mxu2 %v2620_v53  ;;  %2803 = vmatpush.msra.mxu3 %v2636_v54  ;;  %v2623_v49 = vld [vmem:[%s4429_s15 + $0x188] sm:$0xff]  ;;  %v2590_v52 = vld [vmem:[%s4429_s15 + $0x80] sm:$0xff]  ;;  %v2653_v53 = vld [vmem:[%s4429_s15 + $0x278] sm:$0xff] }
 0x362   : > { %2744 = vmatpush.msra.mxu0 %v2587_v55  ;;  %2764 = vmatpush.msra.mxu1 %v2603_v56  ;;  %v2669_v54 = vld [vmem:[%s4429_s15 + $0x2f8] sm:$0xff]  ;;  %v2606_v55 = vld [vmem:[%s4429_s15 + $0x100] sm:$0xff] }
 0x363   : > { %2784 = vmatpush.msra.mxu2 %v2619_v57  ;;  %2804 = vmatpush.msra.mxu3 %v2635_v58  ;;  %v2622_v56 = vld [vmem:[%s4429_s15 + $0x180] sm:$0xff]  ;;  %v2652_v57 = vld [vmem:[%s4429_s15 + $0x270] sm:$0xff] }
 0x364   : > { %3449 = vmatmul.msk.f32.vlgmr.msrb.gmra.mxu0 %vm2247_vm5, %v2246_v28  ;;  %3450 = vmatmul.msk.f32.vlgmr.msrb.gmra.mxu1 %vm2247_vm5, %v2246_v28  ;;  %v2668_v58 = vld [vmem:[%s4429_s15 + $0x2f0] sm:$0xff] }
 0x365   : > { %3451 = vmatmul.msk.f32.vlgmr.msrb.gmra.mxu2 %vm2247_vm5, %v2246_v28  ;;  %3452 = vmatmul.msk.f32.vlgmr.msrb.gmra.mxu3 %vm2247_vm5, %v2246_v28  ;;  %v2624_v28 = vld [vmem:[%s4429_s15 + $0x190] sm:$0xff] }
 0x366   : > { %2745 = vmatpush.msra.mxu0 %v2586_v59  ;;  %2765 = vmatpush.msra.mxu1 %v2602_v60  ;;  %v2685_v59 = vld [vmem:[%s4429_s15 + $0x378] sm:$0xff] }
 0x367   : > { %2785 = vmatpush.msra.mxu2 %v2618_v61  ;;  %2805 = vmatpush.msra.mxu3 %v2634_v62  ;;  %v2701_v60 = vld [vmem:[%s4429_s15 + $0x3f8] sm:$0xff]  ;;  %v2651_v61 = vld [vmem:[%s4429_s15 + $0x268] sm:$0xff] }
 0x368   : > { %2746 = vmatpush.msra.mxu0 %v2585_v63  ;;  %2766 = vmatpush.msra.mxu1 %v2601_v0  ;;  %v2667_v62 = vld [vmem:[%s4429_s15 + $0x2e8] sm:$0xff]  ;;  %v2684_v63 = vld [vmem:[%s4429_s15 + $0x370] sm:$0xff] }
 0x369   : > { %2786 = vmatpush.msra.mxu2 %v2617_v1  ;;  %2806 = vmatpush.msra.mxu3 %v2633_v2  ;;  %v2700_v0 = vld [vmem:[%s4429_s15 + $0x3f0] sm:$0xff]  ;;  %v2650_v1 = vld [vmem:[%s4429_s15 + $0x260] sm:$0xff] }
 0x36a   : > { %2747 = vmatpush.msra.mxu0 %v2584_v3  ;;  %2767 = vmatpush.msra.mxu1 %v2600_v4  ;;  %v2666_v2 = vld [vmem:[%s4429_s15 + $0x2e0] sm:$0xff]  ;;  %v2683_v3 = vld [vmem:[%s4429_s15 + $0x368] sm:$0xff] }
 0x36b   : > { %2787 = vmatpush.msra.mxu2 %v2616_v5  ;;  %2807 = vmatpush.msra.mxu3 %v2632_v6  ;;  %v2699_v4 = vld [vmem:[%s4429_s15 + $0x3e8] sm:$0xff]  ;;  %v2649_v5 = vld [vmem:[%s4429_s15 + $0x258] sm:$0xff] }
 0x36c   : > { %2748 = vmatpush.msra.mxu0 %v2583_v7  ;;  %2768 = vmatpush.msra.mxu1 %v2599_v8  ;;  %v2665_v6 = vld [vmem:[%s4429_s15 + $0x2d8] sm:$0xff]  ;;  %v2648_v7 = vld [vmem:[%s4429_s15 + $0x250] sm:$0xff] }
 0x36d   : > { %2788 = vmatpush.msra.mxu2 %v2615_v9  ;;  %2808 = vmatpush.msra.mxu3 %v2631_v10  ;;  %v2664_v8 = vld [vmem:[%s4429_s15 + $0x2d0] sm:$0xff]  ;;  %v2647_v9 = vld [vmem:[%s4429_s15 + $0x248] sm:$0xff] }
 0x36e   : > { %2749 = vmatpush.msra.mxu0 %v2582_v11  ;;  %2769 = vmatpush.msra.mxu1 %v2598_v33  ;;  %v2663_v10 = vld [vmem:[%s4429_s15 + $0x2c8] sm:$0xff]  ;;  %v2682_v11 = vld [vmem:[%s4429_s15 + $0x360] sm:$0xff] }
 0x36f   : > { %2789 = vmatpush.msra.mxu2 %v2614_v19  ;;  %2809 = vmatpush.msra.mxu3 %v2630_v20  ;;  %v2698_v33 = vld [vmem:[%s4429_s15 + $0x3e0] sm:$0xff] }
 0x370   : > { %2750 = vmatpush.msra.mxu0 %v2581_v50  ;;  %2770 = vmatpush.msra.mxu1 %v2597_v23  ;;  %v2646_v19 = vld [vmem:[%s4429_s15 + $0x240] sm:$0xff]  ;;  %v2681_v50 = vld [vmem:[%s4429_s15 + $0x358] sm:$0xff] }
 0x371   : > { %2790 = vmatpush.msra.mxu2 %v2613_v26  ;;  %2810 = vmatpush.msra.mxu3 %v2629_v27  ;;  %v2662_v20 = vld [vmem:[%s4429_s15 + $0x2c0] sm:$0xff]  ;;  %v2697_v23 = vld [vmem:[%s4429_s15 + $0x3d8] sm:$0xff] }
 0x372   : > { %2751 = vmatpush.msra.mxu0 %v2580_v34  ;;  %2771 = vmatpush.msra.mxu1 %v2596_v35  ;;  %v2645_v26 = vld [vmem:[%s4429_s15 + $0x238] sm:$0xff]  ;;  %v2680_v34 = vld [vmem:[%s4429_s15 + $0x350] sm:$0xff] }
 0x373   : > { %2791 = vmatpush.msra.mxu2 %v2612_v36  ;;  %2811 = vmatpush.msra.mxu3 %v2628_v37  ;;  %v2661_v27 = vld [vmem:[%s4429_s15 + $0x2b8] sm:$0xff]  ;;  %v2696_v35 = vld [vmem:[%s4429_s15 + $0x3d0] sm:$0xff] }
 0x374   : > { %2752 = vmatpush.msra.mxu0 %v2579_v38  ;;  %2772 = vmatpush.msra.mxu1 %v2595_v39  ;;  %v2644_v36 = vld [vmem:[%s4429_s15 + $0x230] sm:$0xff]  ;;  %v2679_v38 = vld [vmem:[%s4429_s15 + $0x348] sm:$0xff] }
 0x375   : > { %2792 = vmatpush.msra.mxu2 %v2611_v40  ;;  %2812 = vmatpush.msra.mxu3 %v2627_v41  ;;  %v2660_v37 = vld [vmem:[%s4429_s15 + $0x2b0] sm:$0xff]  ;;  %v2695_v39 = vld [vmem:[%s4429_s15 + $0x3c8] sm:$0xff] }
 0x376   : > { %2753 = vmatpush.msra.mxu0 %v2578_v42  ;;  %2773 = vmatpush.msra.mxu1 %v2594_v43  ;;  %v2643_v40 = vld [vmem:[%s4429_s15 + $0x228] sm:$0xff]  ;;  %v2678_v42 = vld [vmem:[%s4429_s15 + $0x340] sm:$0xff] }
 0x377   : > { %2793 = vmatpush.msra.mxu2 %v2610_v44  ;;  %2813 = vmatpush.msra.mxu3 %v2626_v45  ;;  %v2659_v41 = vld [vmem:[%s4429_s15 + $0x2a8] sm:$0xff]  ;;  %v2694_v43 = vld [vmem:[%s4429_s15 + $0x3c0] sm:$0xff] }
 0x378   : > { %2754 = vmatpush.msra.mxu0 %v2577_v46  ;;  %2774 = vmatpush.msra.mxu1 %v2593_v47  ;;  %v2642_v44 = vld [vmem:[%s4429_s15 + $0x220] sm:$0xff]  ;;  %v2677_v46 = vld [vmem:[%s4429_s15 + $0x338] sm:$0xff] }
 0x379   : > { %2794 = vmatpush.msra.mxu2 %v2609_v48  ;;  %2814 = vmatpush.msra.mxu3 %v2625_v17  ;;  %v2658_v45 = vld [vmem:[%s4429_s15 + $0x2a0] sm:$0xff]  ;;  %v2693_v47 = vld [vmem:[%s4429_s15 + $0x3b8] sm:$0xff] }
 0x37a   : > { %2755 = vmatpush.msra.mxu0 %v2576_v18  ;;  %2775 = vmatpush.msra.mxu1 %v2592_v24  ;;  %v2641_v48 = vld [vmem:[%s4429_s15 + $0x218] sm:$0xff]  ;;  %v2676_v18 = vld [vmem:[%s4429_s15 + $0x330] sm:$0xff] }
 0x37b   : > { %2795 = vmatpush.msra.mxu2 %v2608_v25  ;;  %2815 = vmatpush.msra.mxu3 %v2624_v28  ;;  %v2657_v17 = vld [vmem:[%s4429_s15 + $0x298] sm:$0xff]  ;;  %v2692_v24 = vld [vmem:[%s4429_s15 + $0x3b0] sm:$0xff] }
 0x37c   : > { %2756 = vmatpush.msra.mxu0 %v2575_v29  ;;  %2776 = vmatpush.msra.mxu1 %v2591_v31  ;;  %v2640_v25 = vld [vmem:[%s4429_s15 + $0x210] sm:$0xff]  ;;  %v2675_v29 = vld [vmem:[%s4429_s15 + $0x328] sm:$0xff] }
 0x37d   : > { %2796 = vmatpush.msra.mxu2 %v2607_v32  ;;  %2816 = vmatpush.msra.mxu3 %v2623_v49  ;;  %v2656_v28 = vld [vmem:[%s4429_s15 + $0x290] sm:$0xff]  ;;  %v2691_v31 = vld [vmem:[%s4429_s15 + $0x3a8] sm:$0xff] }
 0x37e   : > { %2757 = vmatpush.msra.mxu0 %v2574_v51  ;;  %2777 = vmatpush.msra.mxu1 %v2590_v52  ;;  %v2639_v32 = vld [vmem:[%s4429_s15 + $0x208] sm:$0xff]  ;;  %v2674_v51 = vld [vmem:[%s4429_s15 + $0x320] sm:$0xff] }
 0x37f   : > { %2797 = vmatpush.msra.mxu2 %v2606_v55  ;;  %2817 = vmatpush.msra.mxu3 %v2622_v56  ;;  %v2655_v49 = vld [vmem:[%s4429_s15 + $0x288] sm:$0xff]  ;;  %v2690_v52 = vld [vmem:[%s4429_s15 + $0x3a0] sm:$0xff]  ;;  %v2673_v55 = vld [vmem:[%s4429_s15 + $0x318] sm:$0xff] }
 0x380   : > { %2822 = vmatpush.msrb.mxu0 %v2653_v53  ;;  %2842 = vmatpush.msrb.mxu1 %v2669_v54  ;;  %v2638_v53 = vld [vmem:[%s4429_s15 + $0x200] sm:$0xff]  ;;  %v2689_v56 = vld [vmem:[%s4429_s15 + $0x398] sm:$0xff] }
 0x381   : > { %2862 = vmatpush.msrb.mxu2 %v2685_v59  ;;  %2882 = vmatpush.msrb.mxu3 %v2701_v60  ;;  %v2654_v54 = vld [vmem:[%s4429_s15 + $0x280] sm:$0xff]  ;;  %v2671_v59 = vld [vmem:[%s4429_s15 + $0x308] sm:$0xff] }
 0x382   : > { %2823 = vmatpush.msrb.mxu0 %v2652_v57  ;;  %2843 = vmatpush.msrb.mxu1 %v2668_v58  ;;  %v2672_v57 = vld [vmem:[%s4429_s15 + $0x310] sm:$0xff]  ;;  %v2687_v60 = vld [vmem:[%s4429_s15 + $0x388] sm:$0xff] }
 0x383   : > { %2863 = vmatpush.msrb.mxu2 %v2684_v63  ;;  %2883 = vmatpush.msrb.mxu3 %v2700_v0  ;;  %v2688_v58 = vld [vmem:[%s4429_s15 + $0x390] sm:$0xff] }
 0x384   : > { %2824 = vmatpush.msrb.mxu0 %v2651_v61  ;;  %2844 = vmatpush.msrb.mxu1 %v2667_v62  ;;  %v2670_v61 = vld [vmem:[%s4429_s15 + $0x300] sm:$0xff] }
 0x385   : > { %2864 = vmatpush.msrb.mxu2 %v2683_v3  ;;  %2884 = vmatpush.msrb.mxu3 %v2699_v4  ;;  %v2686_v62 = vld [vmem:[%s4429_s15 + $0x380] sm:$0xff] }
 0x386   : > { %2825 = vmatpush.msrb.mxu0 %v2650_v1  ;;  %2845 = vmatpush.msrb.mxu1 %v2666_v2 }
 0x387   : > { %2865 = vmatpush.msrb.mxu2 %v2682_v11  ;;  %2885 = vmatpush.msrb.mxu3 %v2698_v33  ;;  %v2919_v11 = vld [vmem:[%s4576_s11 + $0x78] sm:$0xff] }
 0x388   : > { %2826 = vmatpush.msrb.mxu0 %v2649_v5  ;;  %2846 = vmatpush.msrb.mxu1 %v2665_v6  ;;  %v2935_v33 = vld [vmem:[%s4576_s11 + $0xf8] sm:$0xff] }
 0x389   : > { %2866 = vmatpush.msrb.mxu2 %v2681_v50  ;;  %2886 = vmatpush.msrb.mxu3 %v2697_v23  ;;  %v2918_v50 = vld [vmem:[%s4576_s11 + $0x70] sm:$0xff] }
 0x38a   : > { %2827 = vmatpush.msrb.mxu0 %v2648_v7  ;;  %2847 = vmatpush.msrb.mxu1 %v2664_v8  ;;  %v2934_v23 = vld [vmem:[%s4576_s11 + $0xf0] sm:$0xff] }
 0x38b   : > { %2867 = vmatpush.msrb.mxu2 %v2680_v34  ;;  %2887 = vmatpush.msrb.mxu3 %v2696_v35 }
 0x38c   : > { %2828 = vmatpush.msrb.mxu0 %v2647_v9  ;;  %2848 = vmatpush.msrb.mxu1 %v2663_v10 }
 0x38d   : > { %2868 = vmatpush.msrb.mxu2 %v2679_v38  ;;  %2888 = vmatpush.msrb.mxu3 %v2695_v39 }
 0x38e   : > { %2829 = vmatpush.msrb.mxu0 %v2646_v19  ;;  %2849 = vmatpush.msrb.mxu1 %v2662_v20 }
 0x38f   : > { %2869 = vmatpush.msrb.mxu2 %v2678_v42  ;;  %2889 = vmatpush.msrb.mxu3 %v2694_v43  ;;  %v2916_v42 = vld [vmem:[%s4576_s11 + $0x60] sm:$0xff] }
 0x390   : > { %2830 = vmatpush.msrb.mxu0 %v2645_v26  ;;  %2850 = vmatpush.msrb.mxu1 %v2661_v27  ;;  %v2917_v26 = vld [vmem:[%s4576_s11 + $0x68] sm:$0xff]  ;;  %v2932_v43 = vld [vmem:[%s4576_s11 + $0xe0] sm:$0xff] }
 0x391   : > { %2870 = vmatpush.msrb.mxu2 %v2677_v46  ;;  %2890 = vmatpush.msrb.mxu3 %v2693_v47  ;;  %v2933_v27 = vld [vmem:[%s4576_s11 + $0xe8] sm:$0xff]  ;;  %v2951_v46 = vld [vmem:[%s4576_s11 + $0x178] sm:$0xff] }
 0x392   : > { %2831 = vmatpush.msrb.mxu0 %v2644_v36  ;;  %2851 = vmatpush.msrb.mxu1 %v2660_v37  ;;  %v2967_v47 = vld [vmem:[%s4576_s11 + $0x1f8] sm:$0xff] }
 0x393   : > { %2871 = vmatpush.msrb.mxu2 %v2676_v18  ;;  %2891 = vmatpush.msrb.mxu3 %v2692_v24  ;;  %v2915_v18 = vld [vmem:[%s4576_s11 + $0x58] sm:$0xff] }
 0x394   : > { %2832 = vmatpush.msrb.mxu0 %v2643_v40  ;;  %2852 = vmatpush.msrb.mxu1 %v2659_v41  ;;  %v2931_v24 = vld [vmem:[%s4576_s11 + $0xd8] sm:$0xff] }
 0x395   : > { %2872 = vmatpush.msrb.mxu2 %v2675_v29  ;;  %2892 = vmatpush.msrb.mxu3 %v2691_v31  ;;  %v2914_v29 = vld [vmem:[%s4576_s11 + $0x50] sm:$0xff] }
 0x396   : > { %2833 = vmatpush.msrb.mxu0 %v2642_v44  ;;  %2853 = vmatpush.msrb.mxu1 %v2658_v45  ;;  %v2930_v31 = vld [vmem:[%s4576_s11 + $0xd0] sm:$0xff] }
 0x397   : > { %2873 = vmatpush.msrb.mxu2 %v2674_v51  ;;  %2893 = vmatpush.msrb.mxu3 %v2690_v52  ;;  %v2949_v51 = vld [vmem:[%s4576_s11 + $0x168] sm:$0xff] }
 0x398   : > { %2834 = vmatpush.msrb.mxu0 %v2641_v48  ;;  %2854 = vmatpush.msrb.mxu1 %v2657_v17  ;;  %v2965_v52 = vld [vmem:[%s4576_s11 + $0x1e8] sm:$0xff] }
 0x399   : > { %2874 = vmatpush.msrb.mxu2 %v2673_v55  ;;  %2894 = vmatpush.msrb.mxu3 %v2689_v56  ;;  %v2913_v55 = vld [vmem:[%s4576_s11 + $0x48] sm:$0xff] }
 0x39a   : > { %2835 = vmatpush.msrb.mxu0 %v2640_v25  ;;  %2855 = vmatpush.msrb.mxu1 %v2656_v28  ;;  %v2950_v25 = vld [vmem:[%s4576_s11 + $0x170] sm:$0xff]  ;;  %v2929_v56 = vld [vmem:[%s4576_s11 + $0xc8] sm:$0xff] }
 0x39b   : > { %2875 = vmatpush.msrb.mxu2 %v2672_v57  ;;  %2895 = vmatpush.msrb.mxu3 %v2688_v58  ;;  %v2966_v28 = vld [vmem:[%s4576_s11 + $0x1f0] sm:$0xff]  ;;  %v2948_v57 = vld [vmem:[%s4576_s11 + $0x160] sm:$0xff] }
 0x39c   : > { %2836 = vmatpush.msrb.mxu0 %v2639_v32  ;;  %2856 = vmatpush.msrb.mxu1 %v2655_v49  ;;  %v2964_v58 = vld [vmem:[%s4576_s11 + $0x1e0] sm:$0xff] }
 0x39d   : > { %2876 = vmatpush.msrb.mxu2 %v2671_v59  ;;  %2896 = vmatpush.msrb.mxu3 %v2687_v60 }
 0x39e   : > { %2837 = vmatpush.msrb.mxu0 %v2638_v53  ;;  %2857 = vmatpush.msrb.mxu1 %v2654_v54 }
 0x39f   : > { %2877 = vmatpush.msrb.mxu2 %v2670_v61  ;;  %2897 = vmatpush.msrb.mxu3 %v2686_v62  ;;  %v2912_v61 = vld [vmem:[%s4576_s11 + $0x40] sm:$0xff] }
 0x3a0   : > { %v2928_v62 = vld [vmem:[%s4576_s11 + $0xc0] sm:$0xff] }
 0x3c9   : > { %v2268_v63 = vpop.f32.mrf.mxu0  ;;  %v2288_v0 = vpop.f32.mrf.mxu1 }
 0x3d0   : > { %v2308_v1 = vpop.f32.mrf.mxu2  ;;  %v2328_v2 = vpop.f32.mrf.mxu3 }
 0x3d1   : > { %v2348_v3 = vpop.f32.mrf.mxu0  ;;  %v2368_v4 = vpop.f32.mrf.mxu1 }
 0x3d8   : > { %v4567_v5 = vpop.f32.mrf.mxu2  ;;  %v4569_v6 = vpop.f32.mrf.mxu3 }
 0x3d9   : > { %v2431_v7 = vpop.f32.mrf.mxu0  ;;  %v2451_v8 = vpop.f32.mrf.mxu1 }
 0x3da   : > { %v2718_v9 = vrot.slane %v2431_v7, 7  ;;  %v2720_v10 = vrot.slane %v2451_v8, 7  ;;  %v2945_v7 = vld [vmem:[%s4576_s11 + $0x148] sm:$0xff] }
 0x3db   : > { %v2961_v8 = vld [vmem:[%s4576_s11 + $0x1c8] sm:$0xff] }
 0x3dc   : > { %v2719_v19 = vsel %vm1829_vm11, %v2718_v9, %v2268_v63  ;;  %v2721_v20 = vsel %vm1829_vm11, %v2720_v10, %v2288_v0  ;;  %v2947_v63 = vld [vmem:[%s4576_s11 + $0x158] sm:$0xff]  ;;  %v2909_v9 = vld [vmem:[%s4576_s11 + $0x28] sm:$0xff] }
 0x3dd   : > { %2758 = vmatmul.f32.vlgmr.msra.gmra.mxu0 %v2719_v19  ;;  %2778 = vmatmul.f32.vlgmr.msra.gmra.mxu1 %v2721_v20  ;;  %v2963_v0 = vld [vmem:[%s4576_s11 + $0x1d8] sm:$0xff]  ;;  %v2925_v10 = vld [vmem:[%s4576_s11 + $0xa8] sm:$0xff]  ;;  %v2908_v19 = vld [vmem:[%s4576_s11 + $0x20] sm:$0xff] }
 0x3de   : > { %3032 = vmatpush.msra.mxu0 %v2919_v11  ;;  %3052 = vmatpush.msra.mxu1 %v2935_v33  ;;  %v2944_v11 = vld [vmem:[%s4576_s11 + $0x140] sm:$0xff] }
 0x3df   : > { %v2960_v33 = vld [vmem:[%s4576_s11 + $0x1c0] sm:$0xff] }
 0x3e0   : > { %v2471_v34 = vpop.f32.mrf.mxu2  ;;  %v2491_v35 = vpop.f32.mrf.mxu3  ;;  %3033 = vmatpush.msra.mxu0 %v2918_v50  ;;  %3053 = vmatpush.msra.mxu1 %v2934_v23  ;;  %v2924_v20 = vld [vmem:[%s4576_s11 + $0xa0] sm:$0xff]  ;;  %v2943_v50 = vld [vmem:[%s4576_s11 + $0x138] sm:$0xff] }
 0x3e1   : > { %v2722_v36 = vrot.slane %v2471_v34, 7  ;;  %v2724_v37 = vrot.slane %v2491_v35, 7  ;;  %v2511_v38 = vpop.f32.mrf.mxu0  ;;  %v2531_v39 = vpop.f32.mrf.mxu1  ;;  %v2959_v23 = vld [vmem:[%s4576_s11 + $0x1b8] sm:$0xff]  ;;  %v2942_v34 = vld [vmem:[%s4576_s11 + $0x130] sm:$0xff] }
 0x3e2   : > { %v2726_v40 = vrot.slane %v2511_v38, 7  ;;  %v2728_v41 = vrot.slane %v2531_v39, 7  ;;  %3034 = vmatpush.msra.mxu0 %v2917_v26  ;;  %3054 = vmatpush.msra.mxu1 %v2933_v27  ;;  %v2907_v26 = vld [vmem:[%s4576_s11 + $0x18] sm:$0xff]  ;;  %v2958_v35 = vld [vmem:[%s4576_s11 + $0x1b0] sm:$0xff]  ;;  %v2941_v38 = vld [vmem:[%s4576_s11 + $0x128] sm:$0xff] }
 0x3e3   : > { %v2723_v44 = vsel %vm1829_vm11, %v2722_v36, %v2308_v1  ;;  %v2725_v45 = vsel %vm1829_vm11, %v2724_v37, %v2328_v2  ;;  %v2911_v1 = vld [vmem:[%s4576_s11 + $0x38] sm:$0xff]  ;;  %v2906_v36 = vld [vmem:[%s4576_s11 + $0x10] sm:$0xff]  ;;  %v2957_v39 = vld [vmem:[%s4576_s11 + $0x1a8] sm:$0xff] }
 0x3e4   : > { %2798 = vmatmul.f32.vlgmr.msra.gmra.mxu2 %v2723_v44  ;;  %2818 = vmatmul.f32.vlgmr.msra.gmra.mxu3 %v2725_v45  ;;  %v2727_v48 = vsel %vm1829_vm11, %v2726_v40, %v2348_v3  ;;  %v2729_v17 = vsel %vm1829_vm11, %v2728_v41, %v2368_v4  ;;  %v2927_v2 = vld [vmem:[%s4576_s11 + $0xb8] sm:$0xff]  ;;  %v2946_v3 = vld [vmem:[%s4576_s11 + $0x150] sm:$0xff]  ;;  %v2905_v40 = vld [vmem:[%s4576_s11 + $0x8] sm:$0xff] }
 0x3e5   : > { %3035 = vmatpush.msra.mxu0 %v2916_v42  ;;  %3055 = vmatpush.msra.mxu1 %v2932_v43  ;;  %v2962_v4 = vld [vmem:[%s4576_s11 + $0x1d0] sm:$0xff]  ;;  %v2923_v27 = vld [vmem:[%s4576_s11 + $0x98] sm:$0xff]  ;;  %v2921_v41 = vld [vmem:[%s4576_s11 + $0x88] sm:$0xff] }
 0x3e6   : > { %3072 = vmatpush.msra.mxu2 %v2951_v46  ;;  %3092 = vmatpush.msra.mxu3 %v2967_v47  ;;  %v2922_v37 = vld [vmem:[%s4576_s11 + $0x90] sm:$0xff]  ;;  %v2940_v42 = vld [vmem:[%s4576_s11 + $0x120] sm:$0xff]  ;;  %v2939_v46 = vld [vmem:[%s4576_s11 + $0x118] sm:$0xff] }
 0x3e7   : > { %2838 = vmatmul.f32.vlgmr.msrb.gmra.mxu0 %v2727_v48  ;;  %2858 = vmatmul.f32.vlgmr.msrb.gmra.mxu1 %v2729_v17  ;;  %v2956_v43 = vld [vmem:[%s4576_s11 + $0x1a0] sm:$0xff]  ;;  %v2955_v47 = vld [vmem:[%s4576_s11 + $0x198] sm:$0xff] }
 0x3e8   : > { %3036 = vmatpush.msra.mxu0 %v2915_v18  ;;  %3056 = vmatpush.msra.mxu1 %v2931_v24  ;;  %v2551_v32 = vpop.f32.mrf.mxu2  ;;  %v2571_v49 = vpop.f32.mrf.mxu3  ;;  %v2904_v44 = vld [vmem:[%s4576_s11] sm:$0xff]  ;;  %v2983_v48 = vld [vmem:[%s4576_s11 + $0x278] sm:$0xff]  ;;  %v2938_v18 = vld [vmem:[%s4576_s11 + $0x110] sm:$0xff] }
 0x3e9   : > { %3073 = vmatpush.msra.mxu2 %v2950_v25  ;;  %3093 = vmatpush.msra.mxu3 %v2966_v28  ;;  %v2730_v53 = vrot.slane %v2551_v32, 7  ;;  %v2732_v54 = vrot.slane %v2571_v49, 7  ;;  %v2920_v45 = vld [vmem:[%s4576_s11 + $0x80] sm:$0xff]  ;;  %v2999_v17 = vld [vmem:[%s4576_s11 + $0x2f8] sm:$0xff]  ;;  %v2954_v24 = vld [vmem:[%s4576_s11 + $0x190] sm:$0xff] }
 0x3ea   : > { %3037 = vmatpush.msra.mxu0 %v2914_v29  ;;  %3057 = vmatpush.msra.mxu1 %v2930_v31  ;;  %v2982_v25 = vld [vmem:[%s4576_s11 + $0x270] sm:$0xff]  ;;  %v2937_v29 = vld [vmem:[%s4576_s11 + $0x108] sm:$0xff] }
 0x3eb   : > { %3074 = vmatpush.msra.mxu2 %v2949_v51  ;;  %3094 = vmatpush.msra.mxu3 %v2965_v52  ;;  %v2731_v59 = vsel %vm1829_vm11, %v2730_v53, %v4567_v5  ;;  %v2733_v60 = vsel %vm1829_vm11, %v2732_v54, %v4569_v6  ;;  %v2910_v5 = vld [vmem:[%s4576_s11 + $0x30] sm:$0xff]  ;;  %v2953_v31 = vld [vmem:[%s4576_s11 + $0x188] sm:$0xff]  ;;  %v2980_v51 = vld [vmem:[%s4576_s11 + $0x260] sm:$0xff]  ;;  %vm3192_vm11 = vcmask 517120  }
 0x3ec   : > { %3038 = vmatpush.msra.mxu0 %v2913_v55  ;;  %3058 = vmatpush.msra.mxu1 %v2929_v56  ;;  %v2926_v6 = vld [vmem:[%s4576_s11 + $0xb0] sm:$0xff]  ;;  %v2981_v32 = vld [vmem:[%s4576_s11 + $0x268] sm:$0xff]  ;;  %v2996_v52 = vld [vmem:[%s4576_s11 + $0x2e0] sm:$0xff] }
 0x3ed   : > { %3075 = vmatpush.msra.mxu2 %v2948_v57  ;;  %3095 = vmatpush.msra.mxu3 %v2964_v58  ;;  %v2998_v28 = vld [vmem:[%s4576_s11 + $0x2f0] sm:$0xff]  ;;  %v2997_v49 = vld [vmem:[%s4576_s11 + $0x2e8] sm:$0xff]  ;;  %v3015_v53 = vld [vmem:[%s4576_s11 + $0x378] sm:$0xff] }
 0x3ee   : > { %2878 = vmatmul.f32.vlgmr.msrb.gmra.mxu2 %v2731_v59  ;;  %2898 = vmatmul.f32.vlgmr.msrb.gmra.mxu3 %v2733_v60  ;;  %v3031_v54 = vld [vmem:[%s4576_s11 + $0x3f8] sm:$0xff]  ;;  %v3014_v57 = vld [vmem:[%s4576_s11 + $0x370] sm:$0xff] }
 0x3ef   : > { %3039 = vmatpush.msra.mxu0 %v2912_v61  ;;  %3059 = vmatpush.msra.mxu1 %v2928_v62  ;;  %v2979_v55 = vld [vmem:[%s4576_s11 + $0x258] sm:$0xff]  ;;  %v3030_v58 = vld [vmem:[%s4576_s11 + $0x3f0] sm:$0xff]  ;;  %v2977_v61 = vld [vmem:[%s4576_s11 + $0x248] sm:$0xff] }
 0x3f0   : > { %3076 = vmatpush.msra.mxu2 %v2947_v63  ;;  %3096 = vmatpush.msra.mxu3 %v2963_v0  ;;  %v2995_v56 = vld [vmem:[%s4576_s11 + $0x2d8] sm:$0xff]  ;;  %v2978_v59 = vld [vmem:[%s4576_s11 + $0x250] sm:$0xff]  ;;  %v2993_v62 = vld [vmem:[%s4576_s11 + $0x2c8] sm:$0xff] }
 0x3f1   : > { %3040 = vmatpush.msra.mxu0 %v2911_v1  ;;  %3060 = vmatpush.msra.mxu1 %v2927_v2  ;;  %v2994_v60 = vld [vmem:[%s4576_s11 + $0x2d0] sm:$0xff]  ;;  %v3012_v63 = vld [vmem:[%s4576_s11 + $0x360] sm:$0xff] }
 0x3f2   : > { %3077 = vmatpush.msra.mxu2 %v2946_v3  ;;  %3097 = vmatpush.msra.mxu3 %v2962_v4  ;;  %v3028_v0 = vld [vmem:[%s4576_s11 + $0x3e0] sm:$0xff]  ;;  %v3011_v3 = vld [vmem:[%s4576_s11 + $0x358] sm:$0xff] }
 0x3f3   : > { %3041 = vmatpush.msra.mxu0 %v2910_v5  ;;  %3061 = vmatpush.msra.mxu1 %v2926_v6  ;;  %v2976_v1 = vld [vmem:[%s4576_s11 + $0x240] sm:$0xff]  ;;  %v3027_v4 = vld [vmem:[%s4576_s11 + $0x3d8] sm:$0xff] }
 0x3f4   : > { %3078 = vmatpush.msra.mxu2 %v2945_v7  ;;  %3098 = vmatpush.msra.mxu3 %v2961_v8  ;;  %v2992_v2 = vld [vmem:[%s4576_s11 + $0x2c0] sm:$0xff]  ;;  %v2975_v5 = vld [vmem:[%s4576_s11 + $0x238] sm:$0xff]  ;;  %v3010_v7 = vld [vmem:[%s4576_s11 + $0x350] sm:$0xff] }
 0x3f5   : > { %3042 = vmatpush.msra.mxu0 %v2909_v9  ;;  %3062 = vmatpush.msra.mxu1 %v2925_v10  ;;  %v2991_v6 = vld [vmem:[%s4576_s11 + $0x2b8] sm:$0xff]  ;;  %v3026_v8 = vld [vmem:[%s4576_s11 + $0x3d0] sm:$0xff] }
 0x3f6   : > { %3079 = vmatpush.msra.mxu2 %v2944_v11  ;;  %3099 = vmatpush.msra.mxu3 %v2960_v33  ;;  %v2974_v9 = vld [vmem:[%s4576_s11 + $0x230] sm:$0xff]  ;;  %v3009_v11 = vld [vmem:[%s4576_s11 + $0x348] sm:$0xff] }
 0x3f7   : > { %3043 = vmatpush.msra.mxu0 %v2908_v19  ;;  %3063 = vmatpush.msra.mxu1 %v2924_v20  ;;  %v2990_v10 = vld [vmem:[%s4576_s11 + $0x2b0] sm:$0xff]  ;;  %v3025_v33 = vld [vmem:[%s4576_s11 + $0x3c8] sm:$0xff] }
 0x3f8   : > { %3080 = vmatpush.msra.mxu2 %v2943_v50  ;;  %3100 = vmatpush.msra.mxu3 %v2959_v23  ;;  %v2973_v19 = vld [vmem:[%s4576_s11 + $0x228] sm:$0xff]  ;;  %v3008_v50 = vld [vmem:[%s4576_s11 + $0x340] sm:$0xff] }
 0x3f9   : > { %3044 = vmatpush.msra.mxu0 %v2907_v26  ;;  %3064 = vmatpush.msra.mxu1 %v2923_v27  ;;  %v2989_v20 = vld [vmem:[%s4576_s11 + $0x2a8] sm:$0xff]  ;;  %v3024_v23 = vld [vmem:[%s4576_s11 + $0x3c0] sm:$0xff] }
 0x3fa   : > { %3081 = vmatpush.msra.mxu2 %v2942_v34  ;;  %3101 = vmatpush.msra.mxu3 %v2958_v35  ;;  %v2972_v26 = vld [vmem:[%s4576_s11 + $0x220] sm:$0xff]  ;;  %v3007_v34 = vld [vmem:[%s4576_s11 + $0x338] sm:$0xff] }
 0x3fb   : > { %3045 = vmatpush.msra.mxu0 %v2906_v36  ;;  %3065 = vmatpush.msra.mxu1 %v2922_v37  ;;  %v2988_v27 = vld [vmem:[%s4576_s11 + $0x2a0] sm:$0xff]  ;;  %v3023_v35 = vld [vmem:[%s4576_s11 + $0x3b8] sm:$0xff] }
 0x3fc   : > { %3082 = vmatpush.msra.mxu2 %v2941_v38  ;;  %3102 = vmatpush.msra.mxu3 %v2957_v39  ;;  %v2971_v36 = vld [vmem:[%s4576_s11 + $0x218] sm:$0xff]  ;;  %v3006_v38 = vld [vmem:[%s4576_s11 + $0x330] sm:$0xff] }
 0x3fd   : > { %3046 = vmatpush.msra.mxu0 %v2905_v40  ;;  %3066 = vmatpush.msra.mxu1 %v2921_v41  ;;  %v2987_v37 = vld [vmem:[%s4576_s11 + $0x298] sm:$0xff]  ;;  %v3022_v39 = vld [vmem:[%s4576_s11 + $0x3b0] sm:$0xff] }
 0x3fe   : > { %3083 = vmatpush.msra.mxu2 %v2940_v42  ;;  %3103 = vmatpush.msra.mxu3 %v2956_v43  ;;  %v2970_v40 = vld [vmem:[%s4576_s11 + $0x210] sm:$0xff]  ;;  %v3005_v42 = vld [vmem:[%s4576_s11 + $0x328] sm:$0xff] }
 0x3ff   : > { %3047 = vmatpush.msra.mxu0 %v2904_v44  ;;  %3067 = vmatpush.msra.mxu1 %v2920_v45  ;;  %v2986_v41 = vld [vmem:[%s4576_s11 + $0x290] sm:$0xff]  ;;  %v3021_v43 = vld [vmem:[%s4576_s11 + $0x3a8] sm:$0xff] }
 0x400   : > { %3084 = vmatpush.msra.mxu2 %v2939_v46  ;;  %3104 = vmatpush.msra.mxu3 %v2955_v47  ;;  %v2969_v44 = vld [vmem:[%s4576_s11 + $0x208] sm:$0xff]  ;;  %v3004_v46 = vld [vmem:[%s4576_s11 + $0x320] sm:$0xff] }
 0x401   : > { %3048 = vmatmul.f32.vlgmr.msra.gmra.mxu0 %v4362_v12  ;;  %3068 = vmatmul.f32.vlgmr.msra.gmra.mxu1 %v4364_v13  ;;  %v2936_v12 = vld [vmem:[%s4576_s11 + $0x100] sm:$0xff]  ;;  %v2985_v45 = vld [vmem:[%s4576_s11 + $0x288] sm:$0xff] }
 0x402   : > { %3112 = vmatpush.msrb.mxu0 %v2983_v48  ;;  %3132 = vmatpush.msrb.mxu1 %v2999_v17  ;;  %v2952_v13 = vld [vmem:[%s4576_s11 + $0x180] sm:$0xff] }
 0x403   : > { %3085 = vmatpush.msra.mxu2 %v2938_v18  ;;  %3105 = vmatpush.msra.mxu3 %v2954_v24  ;;  %v3020_v47 = vld [vmem:[%s4576_s11 + $0x3a0] sm:$0xff]  ;;  %v3003_v18 = vld [vmem:[%s4576_s11 + $0x318] sm:$0xff] }
 0x404   : > { %3113 = vmatpush.msrb.mxu0 %v2982_v25  ;;  %3133 = vmatpush.msrb.mxu1 %v2998_v28  ;;  %v2968_v48 = vld [vmem:[%s4576_s11 + $0x200] sm:$0xff]  ;;  %v3019_v24 = vld [vmem:[%s4576_s11 + $0x398] sm:$0xff]  ;;  %v3002_v25 = vld [vmem:[%s4576_s11 + $0x310] sm:$0xff] }
 0x405   : > { %3086 = vmatpush.msra.mxu2 %v2937_v29  ;;  %3106 = vmatpush.msra.mxu3 %v2953_v31  ;;  %v2984_v17 = vld [vmem:[%s4576_s11 + $0x280] sm:$0xff]  ;;  %v3018_v28 = vld [vmem:[%s4576_s11 + $0x390] sm:$0xff]  ;;  %v3001_v29 = vld [vmem:[%s4576_s11 + $0x308] sm:$0xff] }
 0x406   : > { %3114 = vmatpush.msrb.mxu0 %v2981_v32  ;;  %3134 = vmatpush.msrb.mxu1 %v2997_v49  ;;  %v3017_v31 = vld [vmem:[%s4576_s11 + $0x388] sm:$0xff]  ;;  %v3000_v32 = vld [vmem:[%s4576_s11 + $0x300] sm:$0xff] }
 0x407   : > { %3087 = vmatpush.msra.mxu2 %v2936_v12  ;;  %3107 = vmatpush.msra.mxu3 %v2952_v13  ;;  %v3016_v49 = vld [vmem:[%s4576_s11 + $0x380] sm:$0xff] }
 0x408   : > { %3088 = vmatmul.f32.vlgmr.msra.gmra.mxu2 %v4366_v14  ;;  %3108 = vmatmul.f32.vlgmr.msra.gmra.mxu3 %v4368_v15  ;;  %v3013_v14 = vld [vmem:[%s4576_s11 + $0x368] sm:$0xff] }
 0x409   : > { %3115 = vmatpush.msrb.mxu0 %v2980_v51  ;;  %3135 = vmatpush.msrb.mxu1 %v2996_v52  ;;  %v3029_v15 = vld [vmem:[%s4576_s11 + $0x3e8] sm:$0xff] }
 0x40a   : > { %3152 = vmatpush.msrb.mxu2 %v3015_v53  ;;  %3172 = vmatpush.msrb.mxu3 %v3031_v54 }
 0x40b   : > { %3116 = vmatpush.msrb.mxu0 %v2979_v55  ;;  %3136 = vmatpush.msrb.mxu1 %v2995_v56 }
 0x40c   : > { %3153 = vmatpush.msrb.mxu2 %v3014_v57  ;;  %3173 = vmatpush.msrb.mxu3 %v3030_v58 }
 0x40d   : > { %3117 = vmatpush.msrb.mxu0 %v2978_v59  ;;  %3137 = vmatpush.msrb.mxu1 %v2994_v60 }
 0x40e   : > { %3154 = vmatpush.msrb.mxu2 %v3013_v14  ;;  %3174 = vmatpush.msrb.mxu3 %v3029_v15 }
 0x40f   : > { %3118 = vmatpush.msrb.mxu0 %v2977_v61  ;;  %3138 = vmatpush.msrb.mxu1 %v2993_v62 }
 0x410   : > { %3155 = vmatpush.msrb.mxu2 %v3012_v63  ;;  %3175 = vmatpush.msrb.mxu3 %v3028_v0 }
 0x411   : > { %3119 = vmatpush.msrb.mxu0 %v2976_v1  ;;  %3139 = vmatpush.msrb.mxu1 %v2992_v2 }
 0x412   : > { %3156 = vmatpush.msrb.mxu2 %v3011_v3  ;;  %3176 = vmatpush.msrb.mxu3 %v3027_v4 }
 0x413   : > { %3120 = vmatpush.msrb.mxu0 %v2975_v5  ;;  %3140 = vmatpush.msrb.mxu1 %v2991_v6 }
 0x414   : > { %3157 = vmatpush.msrb.mxu2 %v3010_v7  ;;  %3177 = vmatpush.msrb.mxu3 %v3026_v8 }
 0x415   : > { %3121 = vmatpush.msrb.mxu0 %v2974_v9  ;;  %3141 = vmatpush.msrb.mxu1 %v2990_v10 }
 0x416   : > { %3158 = vmatpush.msrb.mxu2 %v3009_v11  ;;  %3178 = vmatpush.msrb.mxu3 %v3025_v33 }
 0x417   : > { %3122 = vmatpush.msrb.mxu0 %v2973_v19  ;;  %3142 = vmatpush.msrb.mxu1 %v2989_v20 }
 0x418   : > { %3159 = vmatpush.msrb.mxu2 %v3008_v50  ;;  %3179 = vmatpush.msrb.mxu3 %v3024_v23 }
 0x419   : > { %3123 = vmatpush.msrb.mxu0 %v2972_v26  ;;  %3143 = vmatpush.msrb.mxu1 %v2988_v27 }
 0x41a   : > { %3160 = vmatpush.msrb.mxu2 %v3007_v34  ;;  %3180 = vmatpush.msrb.mxu3 %v3023_v35 }
 0x41b   : > { %3124 = vmatpush.msrb.mxu0 %v2971_v36  ;;  %3144 = vmatpush.msrb.mxu1 %v2987_v37 }
 0x41c   : > { %3161 = vmatpush.msrb.mxu2 %v3006_v38  ;;  %3181 = vmatpush.msrb.mxu3 %v3022_v39 }
 0x41d   : > { %3125 = vmatpush.msrb.mxu0 %v2970_v40  ;;  %3145 = vmatpush.msrb.mxu1 %v2986_v41 }
 0x41e   : > { %3162 = vmatpush.msrb.mxu2 %v3005_v42  ;;  %3182 = vmatpush.msrb.mxu3 %v3021_v43 }
 0x41f   : > { %3126 = vmatpush.msrb.mxu0 %v2969_v44  ;;  %3146 = vmatpush.msrb.mxu1 %v2985_v45 }
 0x420   : > { %3163 = vmatpush.msrb.mxu2 %v3004_v46  ;;  %3183 = vmatpush.msrb.mxu3 %v3020_v47 }
 0x421   : > { %3127 = vmatpush.msrb.mxu0 %v2968_v48  ;;  %3147 = vmatpush.msrb.mxu1 %v2984_v17 }
 0x422   : > { %3164 = vmatpush.msrb.mxu2 %v3003_v18  ;;  %3184 = vmatpush.msrb.mxu3 %v3019_v24 }
 0x423   : > { %3128 = vmatmul.f32.vlgmr.msrb.gmra.mxu0 %v4370_v21  ;;  %3148 = vmatmul.f32.vlgmr.msrb.gmra.mxu1 %v4372_v22 }
 0x424   : > { %3165 = vmatpush.msrb.mxu2 %v3002_v25  ;;  %3185 = vmatpush.msrb.mxu3 %v3018_v28 }
 0x426   : > { %3166 = vmatpush.msrb.mxu2 %v3001_v29  ;;  %3186 = vmatpush.msrb.mxu3 %v3017_v31 }
 0x428   : > { %3167 = vmatpush.msrb.mxu2 %v3000_v32  ;;  %3187 = vmatpush.msrb.mxu3 %v3016_v49 }
 0x429   : > { %3168 = vmatmul.f32.vlgmr.msrb.gmra.mxu2 %v4378_v16  ;;  %3188 = vmatmul.f32.vlgmr.msrb.gmra.mxu3 %v4380_v30 }
 0x45a   : > { %v2759_v12 = vpop.f32.mrf.mxu0  ;;  %v2779_v21 = vpop.f32.mrf.mxu1 }
 0x45b   : > { %v2780_v13 = vadd.f32 %v2779_v21, %v2759_v12 }
 0x464   : > { %v2839_v54 = vpop.f32.mrf.mxu0  ;;  %v2859_v56 = vpop.f32.mrf.mxu1 }
 0x467   : > { %v2799_v22 = vpop.f32.mrf.mxu2  ;;  %v2819_v52 = vpop.f32.mrf.mxu3 }
 0x468   : > { %v2800_v51 = vadd.f32 %v2799_v22, %v2780_v13 }
 0x46a   : > { %v2820_v53 = vadd.f32 %v2819_v52, %v2800_v51 }
 0x46c   : > { %v2840_v55 = vadd.f32 %v2839_v54, %v2820_v53 }
 0x46e   : > { %v2860_v57 = vadd.f32 %v2859_v56, %v2840_v55 }
 0x471   : > { %v2879_v58 = vpop.f32.mrf.mxu2  ;;  %v2899_v16 = vpop.f32.mrf.mxu3 }
 0x472   : > { %v2880_v59 = vadd.f32 %v2879_v58, %v2860_v57 }
 0x474   : > { %v2900_v30 = vadd.f32 %v2899_v16, %v2880_v59 }
 0x476   : > { %2903 = vst.msk [vmem:[%s901_s30] sm:$0x3] %vm2902_vm10, %v2900_v30 }
 0x47e   : > { %v3049_v60 = vpop.f32.mrf.mxu0  ;;  %v3069_v14 = vpop.f32.mrf.mxu1 }
 0x47f   : > { %v3070_v61 = vadd.f32 %v3069_v14, %v3049_v60 }
 0x48b   : > { %v3089_v15 = vpop.f32.mrf.mxu2  ;;  %v3109_v63 = vpop.f32.mrf.mxu3 }
 0x48c   : > { %v3090_v62 = vadd.f32 %v3089_v15, %v3070_v61 }
 0x48e   : > { %v3110_v1 = vadd.f32 %v3109_v63, %v3090_v62 }
 0x4a0   : > { %v3129_v0 = vpop.f32.mrf.mxu0  ;;  %v3149_v3 = vpop.f32.mrf.mxu1 }
 0x4a1   : > { %v3130_v2 = vadd.f32 %v3129_v0, %v3110_v1 }
 0x4a3   : > { %v3150_v4 = vadd.f32 %v3149_v3, %v3130_v2 }
 0x4ac   : > { %v3169_v5 = vpop.f32.mrf.mxu2  ;;  %v3189_v7 = vpop.f32.mrf.mxu3 }
 0x4ad   : > { %v3170_v6 = vadd.f32 %v3169_v5, %v3150_v4 }
 0x4af   : > { %v3190_v8 = vadd.f32 %v3189_v7, %v3170_v6 }
 0x4b1   : > { %3193 = vst.msk [vmem:[%s905_s24] sm:$0x3] %vm3192_vm11, %v3190_v8 }
 0x4b2 PF: > { %p17_p10 = scmp.ge.s32.totalorder %s3584_s13, 18   ;;  %s4753_s30 = smov %s3509_s10 }
 0x4b3   : > { %s4754_s10 = smov %s3593_s16  ;;  %s4755_s11 = smov %s3584_s13 }
 0x4b4   :  { %19 = sbr.rel (!%p17_p10) target bundleno = 2 (0x2), region = 221 }

// kernel: qformer_block_forward.5
= control target key start
LH: loop header
LB: loop body
LE: loop exit
PB: predicated region body
PF: predicated region fallthrough
CT: control target
= control target key end

     0   :  { %s423_s0 = inlined_call_operand.vmem [shape: f32[16,64], index: 0, kind: input, shape index: {}]   ;;  %s424_s1 = inlined_call_operand.vmem [shape: f32[64,128], index: 1, kind: input, shape index: {}]   ;;  %s425_s2 = inlined_call_operand.vmem [shape: f32[1,128], index: 2, kind: input, shape index: {}]   ;;  %s426_s3 = inlined_call_operand.vmem [shape: f32[128,128], index: 3, kind: input, shape index: {}]   ;;  %s427_s4 = inlined_call_operand.vmem [shape: f32[1,128], index: 4, kind: input, shape index: {}]   ;;  %s428_s5 = inlined_call_operand.vmem [shape: f32[128,48], index: 5, kind: input, shape index: {}]   ;;  %s429_s6 = inlined_call_operand.vmem [shape: f32[1,48], index: 6, kind: input, shape index: {}]   ;;  %s430_s7 = inlined_call_operand.hbm [shape: f32[16,48], index: 7, kind: output, shape index: {}]  }
   0x1   :  { %v36_v0 = vld [vmem:[%s424_s1 + $0x38] sm:$0xff]  ;;  %v35_v1 = vld [vmem:[%s424_s1 + $0x30] sm:$0xff]  ;;  %v34_v2 = vld [vmem:[%s424_s1 + $0x28] sm:$0xff] }
   0x2   :  { %56 = vmatpush.msra.mxu0 %v36_v0  ;;  %v88_v3 = vld [vmem:[%s426_s3 + $0x78] sm:$0xff]  ;;  %v87_v4 = vld [vmem:[%s426_s3 + $0x70] sm:$0xff]  ;;  %v33_v5 = vld [vmem:[%s424_s1 + $0x20] sm:$0xff] }
   0x3   :  { %93 = vmatpush.msra.mxu1 %v88_v3  ;;  %184 = vmatpush.msra.mxu3 %v88_v3  ;;  %v86_v6 = vld [vmem:[%s426_s3 + $0x68] sm:$0xff]  ;;  %v32_v7 = vld [vmem:[%s424_s1 + $0x18] sm:$0xff]  ;;  %v85_v8 = vld [vmem:[%s426_s3 + $0x60] sm:$0xff] }
   0x4   :  { %57 = vmatpush.msra.mxu0 %v35_v1  ;;  %v31_v9 = vld [vmem:[%s424_s1 + $0x10] sm:$0xff] }
   0x5   :  { %94 = vmatpush.msra.mxu1 %v87_v4  ;;  %185 = vmatpush.msra.mxu3 %v87_v4 }
   0x6   :  { %58 = vmatpush.msra.mxu0 %v34_v2 }
   0x7   :  { %95 = vmatpush.msra.mxu1 %v86_v6  ;;  %186 = vmatpush.msra.mxu3 %v86_v6 }
   0x8   :  { %59 = vmatpush.msra.mxu0 %v33_v5 }
   0x9   :  { %12 = vsyncpa [#allocation3], 0  ;;  %v84_v10 = vld [vmem:[%s426_s3 + $0x58] sm:$0xff]  ;;  %v30_v11 = vld [vmem:[%s424_s1 + $0x8] sm:$0xff]  ;;  %96 = vmatpush.msra.mxu1 %v85_v8  ;;  %187 = vmatpush.msra.mxu3 %v85_v8  ;;  %vm41_vm0 = vcmask 523264   ;;  %vm161_vm1 = vcmask 392192  }
   0xa   :  { %60 = vmatpush.msra.mxu0 %v32_v7  ;;  %v83_v12 = vld [vmem:[%s426_s3 + $0x50] sm:$0xff]  ;;  %v29_v13 = vld [vmem:[%s424_s1] sm:$0xff]  ;;  %v82_v15 = vld [vmem:[%s426_s3 + $0x48] sm:$0xff]  ;;  %s170_s16 = sshll.u32 %s430_s7, 4  ;;  %s241_s17 = smov 128   ;;  %s171_s16 = int_to_ptr.hbm [resolvable:$true] %s170_s16 }
   0xb   :  { %97 = vmatpush.msra.mxu1 %v84_v10  ;;  %188 = vmatpush.msra.mxu3 %v84_v10  ;;  %v27_v14 = vld [vmem:[%s423_s0] sm:$0xff]  ;;  %v80_v17 = vld [vmem:[%s426_s3 + $0x38] sm:$0xff]  ;;  %v79_v18 = vld [vmem:[%s426_s3 + $0x30] sm:$0xff]  ;;  %s242_s18 = smov 8  }
   0xc   :  { %61 = vmatpush.msra.mxu0 %v31_v9  ;;  %v81_v16 = vld [vmem:[%s426_s3 + $0x40] sm:$0xff]  ;;  %v28_v19 = vld [vmem:[%s423_s0 + $0x8] sm:$0xff]  ;;  %v76_v22 = vld [vmem:[%s426_s3 + $0x18] sm:$0xff] }
   0xd   :  { %98 = vmatpush.msra.mxu1 %v83_v12  ;;  %189 = vmatpush.msra.mxu3 %v83_v12  ;;  %v78_v20 = vld [vmem:[%s426_s3 + $0x28] sm:$0xff]  ;;  %v77_v21 = vld [vmem:[%s426_s3 + $0x20] sm:$0xff]  ;;  %v75_v23 = vld [vmem:[%s426_s3 + $0x10] sm:$0xff] }
   0xe   :  { %62 = vmatpush.msra.mxu0 %v30_v11  ;;  %v74_v24 = vld [vmem:[%s426_s3 + $0x8] sm:$0xff]  ;;  %v73_v25 = vld [vmem:[%s426_s3] sm:$0xff]  ;;  %v133_v26 = vld [vmem:[%s428_s5 + $0x78] sm:$0xff] }
   0xf   :  { %99 = vmatpush.msra.mxu1 %v82_v15  ;;  %190 = vmatpush.msra.mxu3 %v82_v15  ;;  %v132_v27 = vld [vmem:[%s428_s5 + $0x70] sm:$0xff]  ;;  %v131_v28 = vld [vmem:[%s428_s5 + $0x68] sm:$0xff]  ;;  %v130_v29 = vld [vmem:[%s428_s5 + $0x60] sm:$0xff] }
  0x10   :  { %63 = vmatpush.msra.mxu0 %v29_v13  ;;  %138 = vmatpush.msra.mxu2 %v133_v26  ;;  %v129_v30 = vld [vmem:[%s428_s5 + $0x58] sm:$0xff]  ;;  %v128_v31 = vld [vmem:[%s428_s5 + $0x50] sm:$0xff]  ;;  %v127_v32 = vld [vmem:[%s428_s5 + $0x48] sm:$0xff] }
  0x11   :  { %182 = vmatmul.msk.f32.vlgmr.msra.gmra.mxu0 %vm41_vm0, %v27_v14  ;;  %100 = vmatpush.msra.mxu1 %v81_v16  ;;  %v203_v33 = vld [vmem:[%s425_s2] ss:$0 sm:$0xff]  ;;  %v125_v36 = vld [vmem:[%s428_s5 + $0x38] sm:$0xff]  ;;  %v124_v38 = vld [vmem:[%s428_s5 + $0x30] sm:$0xff] }
  0x12   :  { %191 = vmatpush.msra.mxu3 %v81_v16  ;;  %139 = vmatpush.msra.mxu2 %v132_v27  ;;  %v126_v34 = vld [vmem:[%s428_s5 + $0x40] sm:$0xff]  ;;  %v123_v39 = vld [vmem:[%s428_s5 + $0x28] sm:$0xff]  ;;  %v121_v45 = vld [vmem:[%s428_s5 + $0x18] sm:$0xff] }
  0x13   :  { %101 = vmatpush.msra.mxu1 %v80_v17  ;;  %v122_v44 = vld [vmem:[%s428_s5 + $0x20] sm:$0xff]  ;;  %v120_v46 = vld [vmem:[%s428_s5 + $0x10] sm:$0xff]  ;;  %v119_v47 = vld [vmem:[%s428_s5 + $0x8] sm:$0xff] }
  0x14   :  { %192 = vmatpush.msra.mxu3 %v80_v17  ;;  %140 = vmatpush.msra.mxu2 %v131_v28  ;;  %v118_v48 = vld [vmem:[%s428_s5] sm:$0xff]  ;;  %s240_s5 = smov [#allocation2]  }
  0x15   :  { %102 = vmatpush.msra.mxu1 %v79_v18  ;;  %v204_v49 = vld [vmem:[%s427_s4] ss:$0 sm:$0xff]  ;;  %s168_s4 = sshll.u32 %s240_s5, 4  ;;  %s169_s4 = int_to_ptr.vmem [resolvable:$true] %s168_s4 }
  0x16   :  { %193 = vmatpush.msra.mxu3 %v79_v18  ;;  %141 = vmatpush.msra.mxu2 %v130_v29  ;;  %v205_v56 = vld [vmem:[%s429_s6] ss:$0 sm:$0xff] }
  0x17   :  { %103 = vmatpush.msra.mxu1 %v78_v20 }
  0x18   :  { %194 = vmatpush.msra.mxu3 %v78_v20  ;;  %142 = vmatpush.msra.mxu2 %v129_v30 }
  0x19   :  { %183 = vmatmul.msk.f32.gmra.mxu0 %vm41_vm0, %v28_v19  ;;  %104 = vmatpush.msra.mxu1 %v77_v21 }
  0x1a   :  { %195 = vmatpush.msra.mxu3 %v77_v21  ;;  %143 = vmatpush.msra.mxu2 %v128_v31 }
  0x1b   :  { %105 = vmatpush.msra.mxu1 %v76_v22 }
  0x1c   :  { %196 = vmatpush.msra.mxu3 %v76_v22  ;;  %144 = vmatpush.msra.mxu2 %v127_v32 }
  0x1d   :  { %106 = vmatpush.msra.mxu1 %v75_v23 }
  0x1e   :  { %197 = vmatpush.msra.mxu3 %v75_v23  ;;  %145 = vmatpush.msra.mxu2 %v126_v34 }
  0x1f   :  { %107 = vmatpush.msra.mxu1 %v74_v24 }
  0x20   :  { %198 = vmatpush.msra.mxu3 %v74_v24  ;;  %146 = vmatpush.msra.mxu2 %v125_v36 }
  0x21   :  { %108 = vmatpush.msra.mxu1 %v73_v25 }
  0x22   :  { %199 = vmatpush.msra.mxu3 %v73_v25  ;;  %147 = vmatpush.msra.mxu2 %v124_v38 }
  0x24   :  { %148 = vmatpush.msra.mxu2 %v123_v39 }
  0x26   :  { %149 = vmatpush.msra.mxu2 %v122_v44 }
  0x28   :  { %150 = vmatpush.msra.mxu2 %v121_v45 }
  0x2a   :  { %151 = vmatpush.msra.mxu2 %v120_v46 }
  0x2c   :  { %152 = vmatpush.msra.mxu2 %v119_v47 }
  0x2e   :  { %153 = vmatpush.msra.mxu2 %v118_v48 }
  0x8e   :  { %v65_v35 = vpop.f32.mrf.mxu0 }
  0x8f   :  { %v66_v37 = vadd.f32 %v203_v33, %v65_v35 }
  0x91   :  { %206 = vtanh.f32 %v66_v37 }
  0x96   :  { %v68_v40 = vpop.f32.mrf.mxu0 }
  0x97   :  { %v207_v41 = vpop.eup %206  ;;  %v69_v42 = vadd.f32 %v203_v33, %v68_v40 }
  0x98   :  { %109 = vmatmul.f32.vlgmr.msra.gmra.mxu1 %v207_v41 }
  0x99   :  { %208 = vtanh.f32 %v69_v42 }
  0x9f   :  { %v209_v43 = vpop.eup %208 }
  0xa0   :  { %112 = vmatmul.f32.vlgmr.msra.gmra.mxu3 %v209_v43 }
 0x115   :  { %v110_v50 = vpop.f32.mrf.mxu1 }
 0x116   :  { %v111_v51 = vadd.f32 %v204_v49, %v110_v50 }
 0x118   :  { %210 = vtanh.f32 %v111_v51 }
 0x11e   :  { %v211_v52 = vpop.eup %210 }
 0x11f   :  { %154 = vmatmul.f32.vlgmr.msra.gmra.mxu2 %v211_v52 }
 0x123   :  { %v113_v53 = vpop.f32.mrf.mxu3 }
 0x124   :  { %v114_v54 = vadd.f32 %v204_v49, %v113_v53 }
 0x126   :  { %212 = vtanh.f32 %v114_v54 }
 0x12c   :  { %v213_v55 = vpop.eup %212 }
 0x12d   :  { %157 = vmatmul.f32.gmra.mxu2 %v213_v55 }
 0x1a2   :  { %v155_v57 = vpop.f32.mrf.mxu2 }
 0x1a3   :  { %v156_v58 = vadd.f32 %v205_v56, %v155_v57 }
 0x1a5   :  { %162 = vst.msk [vmem:[#allocation2] sm:$0xff] %vm161_vm1, %v156_v58 }
 0x1b0   :  { %v158_v59 = vpop.f32.mrf.mxu2 }
 0x1b1   :  { %v159_v60 = vadd.f32 %v205_v56, %v158_v59 }
 0x1b3   :  { %163 = vst.msk [vmem:[#allocation2 + $0x8] sm:$0xff] %vm161_vm1, %v159_v60 }
 0x1b4   :  { %176 = dma.vmem_to_hbm [thread:$0]  %s169_s4, 256, %s171_s16, [#allocation3], %s241_s17, %s241_s17, %s242_s18  }
 0x1b5   :  { %238 = dma.done.wait [#allocation3], 256  }
 0x1b6   :  { %239 = vsyncadd [#allocation3], 4294967040 }
 0x1b7   :  { %181 = vsyncpa [#allocation3], 1 }

</bundles_post_ra>
